<compile_context>
chip_gen: v5e
topology: v5e:2x2
jax: 0.10.0
libtpu: 0.0.40
codegen_flags: <defaults>
</compile_context>

<pallas_src>
import jax
import jax.numpy as jnp
from jax import lax
from jax.experimental import pallas as pl
from jax.experimental.pallas import tpu as pltpu

LANE = 128          # channel padding target (TPU lane width)
BN_EPS = 1e-5


# ----------------------------- math helpers -------------------------------- #
def _mish_kernel(x):
    """Mish: x * tanh(softplus(x)) via 1 exp + 1 approx EUP reciprocal.

    tanh(log(1 + e^x)) = v / (v + 2) with v = e^x (e^x + 2); guarded for large x.
    """
    ex = jnp.exp(jnp.minimum(x, 20.0))
    v = ex * (ex + 2.0)
    t = v * pl.reciprocal(v + 2.0, approx=True)
    t = jnp.where(x > 20.0, 1.0, t)
    return x * t


def _mish_ref(x):
    sp = jnp.where(x > 20.0, x, jnp.log(1.0 + jnp.exp(jnp.minimum(x, 20.0))))
    return x * jnp.tanh(sp)


# ----------------------- roll-direction probe (one-time) -------------------- #
_ROLL_JNP = None


def _roll_is_jnp_convention():
    """True if pltpu.roll(x, s, axis=0)[i] == x[(i - s) % n] (jnp.roll convention)."""
    global _ROLL_JNP
    if _ROLL_JNP is not None:
        return _ROLL_JNP

    def probe_kernel(o_ref):
        o_ref[...] = pltpu.roll(
            lax.broadcasted_iota(jnp.float32, (8, LANE), 0), shift=1, axis=0)

    try:
        probe = pl.pallas_call(
            probe_kernel, out_shape=jax.ShapeDtypeStruct((8, LANE), jnp.float32))()
        _ROLL_JNP = bool(jax.device_get(probe)[0, 0] == 7.0)
    except Exception:
        return True          # don't cache the fallback (e.g. called under tracing)
    return _ROLL_JNP


# ----------------------------- fused Pallas kernel -------------------------- #
def _make_resblock_kernel(H, W, Cp, nblocks, shortcut, chunk, pad, buf_dtype, roll_jnp):
    HW = H * W
    nchunks = HW // chunk
    # roll amounts realizing out[r] = p[r-1] (left tap) / out[r] = p[r+1] (right tap)
    sh_left = 1 if roll_jnp else chunk - 1
    sh_right = chunk - 1 if roll_jnp else 1
    C0, C1, C2, C3 = 0, Cp, 2 * Cp, 3 * Cp
    cast_wide = jnp.dtype(buf_dtype) != jnp.dtype(jnp.bfloat16)

    def kernel(x_ref, w1_ref, b1_ref, w2_ref, b2_ref, o_ref, wbuf):
        # Zero the lane-group regions of the wide h1 scratch corresponding to taps outside
        # the image (dy=-1 group for the first image row, dy=+1 group for the last).
        # These regions are never overwritten by the data stores below.
        zrows = jnp.zeros((W, Cp), buf_dtype)
        wbuf[pad:pad + W, C0:C1] = zrows
        wbuf[pad + HW - W:pad + HW, C2:C3] = zrows

        # Column masks for the left/right 3x3 taps (chunk % W == 0, so in-chunk column ==
        # image column).  Hoisted out of all loops.
        col = lax.rem(lax.broadcasted_iota(jnp.int32, (chunk, 1), 0), W)
        not_left = col > 0            # invalid positions for the dx == 0 taps
        not_right = col < (W - 1)     # invalid positions for the dx == 2 taps

        for b in range(nblocks):
            src = x_ref if b == 0 else o_ref    # running activation lives in o_ref

            # -- phase 1: 1x1 conv + folded BN + Mish; dy-stack h1 into the wide scratch --
            def phase1(ci, carry):
                r0 = pl.multiple_of(ci * chunk, chunk)
                a = src[pl.ds(r0, chunk), :].astype(jnp.bfloat16)
                h = jnp.dot(a, w1_ref[b], preferred_element_type=jnp.float32)
                h1 = _mish_kernel(h + b1_ref[b]).astype(buf_dtype)
                wbuf[pl.ds(pad + r0, chunk), C1:C2] = h1        # dy =  0 lane group
                wbuf[pl.ds(pad + r0 + W, chunk), C0:C1] = h1    # dy = -1 lane group
                wbuf[pl.ds(pad + r0 - W, chunk), C2:C3] = h1    # dy = +1 lane group
                return carry

            lax.fori_loop(0, nchunks, phase1, 0)

            # -- phase 2: 3x3 conv as 3 K=3*Cp dots + folded BN + Mish + residual --------
            def phase2(ci, carry):
                r0 = pl.multiple_of(ci * chunk, chunk)
                wide = wbuf[pl.ds(pad + r0, chunk), :]          # (chunk, 3*Cp)
                if cast_wide:
                    wide = wide.astype(jnp.bfloat16)
                acc = jnp.dot(wide, w2_ref[b, 1], preferred_element_type=jnp.float32)
                p0 = jnp.dot(wide, w2_ref[b, 0], preferred_element_type=jnp.float32)
                acc = acc + jnp.where(not_left,
                                      pltpu.roll(p0, shift=sh_left, axis=0), 0.0)
                p2 = jnp.dot(wide, w2_ref[b, 2], preferred_element_type=jnp.float32)
                acc = acc + jnp.where(not_right,
                                      pltpu.roll(p2, shift=sh_right, axis=0), 0.0)
                h2 = _mish_kernel(acc + b2_ref[b])
                res = src[pl.ds(r0, chunk), :]
                o_ref[pl.ds(r0, chunk), :] = (res + h2) if shortcut else h2
                return carry

            lax.fori_loop(0, nchunks, phase2, 0)

    return kernel


# ----------------------------- parameter folding ---------------------------- #
def init_raw_params(key, ch, nblocks):
    """Deterministic synthetic params with PyTorch-layout shapes."""
    blocks = []
    for b in range(nblocks):
        ks = jax.random.split(jax.random.fold_in(key, b), 10)
        blocks.append({
            "w1": jax.random.normal(ks[0], (ch, ch, 1, 1), jnp.float32) / jnp.sqrt(ch),
            "g1": 1.0 + 0.1 * jax.random.normal(ks[1], (ch,), jnp.float32),
            "be1": 0.1 * jax.random.normal(ks[2], (ch,), jnp.float32),
            "m1": 0.1 * jax.random.normal(ks[3], (ch,), jnp.float32),
            "v1": 0.5 + jax.random.uniform(ks[4], (ch,), jnp.float32),
            "w2": jax.random.normal(ks[5], (ch, ch, 3, 3), jnp.float32) / jnp.sqrt(9.0 * ch),
            "g2": 1.0 + 0.1 * jax.random.normal(ks[6], (ch,), jnp.float32),
            "be2": 0.1 * jax.random.normal(ks[7], (ch,), jnp.float32),
            "m2": 0.1 * jax.random.normal(ks[8], (ch,), jnp.float32),
            "v2": 0.5 + jax.random.uniform(ks[9], (ch,), jnp.float32),
        })
    return blocks


def fold_params(raw_blocks, cp=LANE):
    """Fold eval-mode BN into conv weights, pad channels to `cp`, stack over blocks.

    w1: (nb, cp, cp) bf16; w2: (nb, 3[dx], 3*cp[dy*cp+ci], cp[co]) bf16 (dy-K-stacked);
    biases f32.
    """
    nb = len(raw_blocks)
    ch = raw_blocks[0]["w1"].shape[0]
    W1 = jnp.zeros((nb, cp, cp), jnp.float32)
    B1 = jnp.zeros((nb, 1, cp), jnp.float32)
    W2 = jnp.zeros((nb, 3, 3 * cp, cp), jnp.float32)
    B2 = jnp.zeros((nb, 1, cp), jnp.float32)
    for i, blk in enumerate(raw_blocks):
        s1 = blk["g1"] / jnp.sqrt(blk["v1"] + BN_EPS)
        w1 = (blk["w1"][:, :, 0, 0] * s1[:, None]).T              # (ci, co)
        b1 = blk["be1"] - blk["m1"] * s1
        s2 = blk["g2"] / jnp.sqrt(blk["v2"] + BN_EPS)
        w2 = blk["w2"] * s2[:, None, None, None]                  # (co, ci, 3, 3)
        b2 = blk["be2"] - blk["m2"] * s2

        W1 = W1.at[i, :ch, :ch].set(w1)
        B1 = B1.at[i, 0, :ch].set(b1)
        for dy in range(3):
            for dx in range(3):
                W2 = W2.at[i, dx, dy * cp:dy * cp + ch, :ch].set(w2[:, :, dy, dx].T)
        B2 = B2.at[i, 0, :ch].set(b2)
    return {"w1": W1.astype(jnp.bfloat16), "b1": B1,
            "w2": W2.astype(jnp.bfloat16), "b2": B2}


# ----------------------------- forward wrapper ------------------------------ #
def _pick_chunk_rows(H, W, target_rows=512):
    """Largest chunk (multiple of W, divides H*W) not exceeding ~target rows."""
    rpc = 1
    for cand in range(1, H + 1):
        if H % cand == 0 and cand * W <= max(target_rows, W):
            rpc = cand
    return rpc * W


def resblock_forward(x_nchw, folded, *, shortcut=True):
    """Fused Pallas ResBlock forward. Input/output layout matches PyTorch NCHW."""
    n, c, hh, ww = x_nchw.shape
    cp = LANE
    assert c <= cp, f"channel count {c} > {cp} not supported by this kernel config"
    assert ww % 8 == 0, "W must be a multiple of 8 for sublane tiling"
    hw = hh * ww
    nb = folded["w1"].shape[0]

    buf_dtype = jnp.bfloat16 if ww % 16 == 0 else jnp.float32   # bf16 scratch needs 16-row align
    pad = ww                                                    # top/bottom scratch padding rows
    chunk = _pick_chunk_rows(hh, ww)

    # layout glue (pure JAX): NCHW -> (N*H*W, Cp) lane-dense rows
    x = jnp.transpose(x_nchw, (0, 2, 3, 1)).reshape(n, hw, c)
    x = jnp.pad(x, ((0, 0), (0, 0), (0, cp - c))).reshape(n * hw, cp).astype(jnp.float32)

    roll_jnp = _roll_is_jnp_convention()
    kernel = _make_resblock_kernel(hh, ww, cp, nb, shortcut, chunk, pad, buf_dtype, roll_jnp)

    flops = 2 * n * nb * hw * (cp * cp + 3 * (3 * cp) * cp)     # 1x1 + three K=3*cp dots
    transcendentals = n * nb * hw * cp * 4                      # exp + recip, two Mish / block
    bytes_accessed = (2 * n * hw * cp * 4                       # x in + out (f32)
                      + nb * cp * cp * 2 + nb * 9 * cp * cp * 2  # bf16 weights
                      + 2 * nb * cp * 4)                        # f32 biases

    itemsize = jnp.dtype(buf_dtype).itemsize
    vmem_needed = (2 * 2 * hw * cp * 4                          # x + out, double-buffered
                   + (hw + 2 * pad) * 3 * cp * itemsize         # wide h1 scratch
                   + 2 * (nb * cp * cp * 2 + nb * 9 * cp * cp * 2 + 2 * nb * cp * 4)
                   + 10 * chunk * cp * 4)                       # live per-chunk temporaries
    vmem_limit = int(min(max(int(vmem_needed * 1.5), 32 << 20), 128 << 20))

    out2d = pl.pallas_call(
        kernel,
        out_shape=jax.ShapeDtypeStruct((n * hw, cp), jnp.float32),
        grid=(n,),
        in_specs=[
            pl.BlockSpec((hw, cp), lambda i: (i, 0)),                   # x (per image)
            pl.BlockSpec((nb, cp, cp), lambda i: (0, 0, 0)),            # w1 (all blocks)
            pl.BlockSpec((nb, 1, cp), lambda i: (0, 0, 0)),             # b1
            pl.BlockSpec((nb, 3, 3 * cp, cp), lambda i: (0, 0, 0, 0)),  # w2 (dy-K-stacked)
            pl.BlockSpec((nb, 1, cp), lambda i: (0, 0, 0)),             # b2
        ],
        out_specs=pl.BlockSpec((hw, cp), lambda i: (i, 0)),
        scratch_shapes=[pltpu.VMEM((hw + 2 * pad, 3 * cp), buf_dtype)],
        compiler_params=pltpu.CompilerParams(
            dimension_semantics=("parallel",),
            vmem_limit_bytes=vmem_limit),
        cost_estimate=pl.CostEstimate(flops=int(flops),
                                      transcendentals=int(transcendentals),
                                      bytes_accessed=int(bytes_accessed)),
    )(x, folded["w1"], folded["b1"], folded["w2"], folded["b2"])

    out = out2d.reshape(n, hh, ww, cp)[..., :c]
    return jnp.transpose(out, (0, 3, 1, 2))                            # back to NCHW


# ----------------------------- pure-JAX reference --------------------------- #
def _bn_eval(y, g, be, m, v):
    s = g / jnp.sqrt(v + BN_EPS)
    return y * s[None, :, None, None] + (be - m * s)[None, :, None, None]


def resblock_reference(x_nchw, raw_blocks, shortcut=True):
    dn = ("NCHW", "OIHW", "NCHW")
    x = x_nchw
    for blk in raw_blocks:
        h = lax.conv_general_dilated(x, blk["w1"], (1, 1), [(0, 0), (0, 0)],
                                     dimension_numbers=dn)
        h = _mish_ref(_bn_eval(h, blk["g1"], blk["be1"], blk["m1"], blk["v1"]))
        h = lax.conv_general_dilated(h, blk["w2"], (1, 1), [(1, 1), (1, 1)],
                                     dimension_numbers=dn)
        h = _mish_ref(_bn_eval(h, blk["g2"], blk["be2"], blk["m2"], blk["v2"]))
        x = x + h if shortcut else h
    return x


if __name__ == "__main__":
    ch, nblocks = 4, 2
    n, hh, ww = 2, 16, 16

    key = jax.random.PRNGKey(0)
    kx, kp = jax.random.split(key)
    x = jax.random.normal(kx, (n, ch, hh, ww), jnp.float32)

    raw = init_raw_params(kp, ch, nblocks)
    folded = fold_params(raw)

    _roll_is_jnp_convention()          # resolve HW rotate direction eagerly (outside jit)

    fwd = jax.jit(lambda xx: resblock_forward(xx, folded, shortcut=True))
    out = jax.block_until_ready(fwd(x))

    ref = resblock_reference(x, raw, shortcut=True)
    assert out.shape == x.shape and out.dtype == x.dtype
    max_err = float(jnp.max(jnp.abs(out - ref)))
    # bf16 MXU operands + approx reciprocal in Mish => slightly looser tolerance than pure-f32
    if not bool(jnp.allclose(out, ref, rtol=3e-2, atol=3e-2)):
        raise AssertionError(f"Pallas ResBlock mismatch vs reference, max abs err = {max_err}")
    print("KERNEL_OK")
</pallas_src>

<mosaic_0001>
module attributes {stable_mosaic.version = 11 : i64} {
  func.func @kernel(%arg0: i32, %arg1: memref<256x128xf32, #tpu.memory_space<vmem>>, %arg2: memref<2x128x128xbf16, #tpu.memory_space<vmem>>, %arg3: memref<2x1x128xf32, #tpu.memory_space<vmem>>, %arg4: memref<2x3x384x128xbf16, #tpu.memory_space<vmem>>, %arg5: memref<2x1x128xf32, #tpu.memory_space<vmem>>, %arg6: memref<256x128xf32, #tpu.memory_space<vmem>>, %arg7: memref<288x384xbf16, #tpu.memory_space<vmem>>) attributes {dimension_semantics = [#tpu.dimension_semantics<parallel>], iteration_bounds = array<i64: 2>, scalar_prefetch = 0 : i64, scratch_operands = 1 : i64, tpu.core_type = #tpu.core_type<tc>, window_params = [{transform_indices = @transform_0, window_bounds = array<i64: 256, 128>}, {pipeline_mode = #tpu.pipeline_mode<synchronous>, transform_indices = @transform_1, window_bounds = array<i64: 2, 128, 128>}, {pipeline_mode = #tpu.pipeline_mode<synchronous>, transform_indices = @transform_2, window_bounds = array<i64: 2, 1, 128>}, {pipeline_mode = #tpu.pipeline_mode<synchronous>, transform_indices = @transform_3, window_bounds = array<i64: 2, 3, 384, 128>}, {pipeline_mode = #tpu.pipeline_mode<synchronous>, transform_indices = @transform_4, window_bounds = array<i64: 2, 1, 128>}, {transform_indices = @transform_5, window_bounds = array<i64: 256, 128>}]} {
    %cst = arith.constant 0.000000e+00 : bf16
    %0 = vector.broadcast %cst : bf16 to vector<16x128xbf16>
    %c16 = arith.constant 16 : index
    %c0 = arith.constant 0 : index
    %1 = vector.load %arg7[%c16, %c0] : memref<288x384xbf16, #tpu.memory_space<vmem>>, vector<16x128xbf16>
    tpu.vector_store %arg7[%c16, %c0], %0 {strides = array<i32>} : memref<288x384xbf16, #tpu.memory_space<vmem>>, vector<16x128xbf16>,
    %c256 = arith.constant 256 : index
    %c256_0 = arith.constant 256 : index
    %2 = vector.load %arg7[%c256, %c256_0] : memref<288x384xbf16, #tpu.memory_space<vmem>>, vector<16x128xbf16>
    tpu.vector_store %arg7[%c256, %c256_0], %0 {strides = array<i32>} : memref<288x384xbf16, #tpu.memory_space<vmem>>, vector<16x128xbf16>,
    %3 = tpu.iota {dimensions = array<i32: 0>} : vector<256x1xi32>
    %c16_i32 = arith.constant 16 : i32
    %4 = vector.broadcast %c16_i32 : i32 to vector<256x1xi32>
    %5 = arith.remsi %3, %4 : vector<256x1xi32>
    %c0_i32 = arith.constant 0 : i32
    %6 = vector.broadcast %c0_i32 : i32 to vector<256x1xi32>
    %7 = arith.cmpi sgt, %5, %6 : vector<256x1xi32>
    %c15_i32 = arith.constant 15 : i32
    %8 = vector.broadcast %c15_i32 : i32 to vector<256x1xi32>
    %9 = arith.cmpi slt, %5, %8 : vector<256x1xi32>
    %c0_i32_1 = arith.constant 0 : i32
    %c256_i32 = arith.constant 256 : i32
    %10 = arith.muli %c0_i32_1, %c256_i32 : i32
    %11 = tpu.assume_multiple %10, 256 : i32
    %12 = arith.index_cast %11 : i32 to index
    %c0_2 = arith.constant 0 : index
    %13 = vector.load %arg1[%12, %c0_2] : memref<256x128xf32, #tpu.memory_space<vmem>>, vector<256x128xf32>
    %14 = arith.truncf %13 : vector<256x128xf32> to vector<256x128xbf16>
    %c0_3 = arith.constant 0 : index
    %c0_4 = arith.constant 0 : index
    %c0_5 = arith.constant 0 : index
    %15 = vector.load %arg2[%c0_3, %c0_4, %c0_5] : memref<2x128x128xbf16, #tpu.memory_space<vmem>>, vector<1x128x128xbf16>
    %16 = vector.shape_cast %15 : vector<1x128x128xbf16> to vector<128x128xbf16>
    %cst_6 = arith.constant dense<0.000000e+00> : vector<256x128xf32>
    %17 = tpu.matmul %14, %16, %cst_6 {dimension_numbers = #tpu.dot_dimension_numbers<[1], [0], [0], [1], [0, 0, 1, 1], [], []>} : vector<256x128xbf16>, vector<128x128xbf16>, vector<256x128xf32> -> vector<256x128xf32>
    %c0_7 = arith.constant 0 : index
    %c0_8 = arith.constant 0 : index
    %c0_9 = arith.constant 0 : index
    %18 = vector.load %arg3[%c0_7, %c0_8, %c0_9] : memref<2x1x128xf32, #tpu.memory_space<vmem>>, vector<1x1x128xf32>
    %19 = vector.shape_cast %18 : vector<1x1x128xf32> to vector<1x128xf32>
    %20 = vector.broadcast %19 : vector<1x128xf32> to vector<256x128xf32>
    %21 = arith.addf %17, %20 : vector<256x128xf32>
    %cst_10 = arith.constant 2.000000e+01 : f32
    %22 = vector.broadcast %cst_10 : f32 to vector<256x128xf32>
    %23 = arith.minimumf %21, %22 : vector<256x128xf32>
    %24 = math.exp %23 : vector<256x128xf32>
    %cst_11 = arith.constant 2.000000e+00 : f32
    %25 = vector.broadcast %cst_11 : f32 to vector<256x128xf32>
    %26 = arith.addf %24, %25 : vector<256x128xf32>
    %27 = arith.mulf %24, %26 : vector<256x128xf32>
    %cst_12 = arith.constant 2.000000e+00 : f32
    %28 = vector.broadcast %cst_12 : f32 to vector<256x128xf32>
    %29 = arith.addf %27, %28 : vector<256x128xf32>
    %30 = tpu.reciprocal %29 {approx = true} : vector<256x128xf32> -> vector<256x128xf32>
    %31 = arith.mulf %27, %30 : vector<256x128xf32>
    %cst_13 = arith.constant 2.000000e+01 : f32
    %32 = vector.broadcast %cst_13 : f32 to vector<256x128xf32>
    %33 = arith.cmpf ogt, %21, %32 : vector<256x128xf32>
    %cst_14 = arith.constant 1.000000e+00 : f32
    %34 = vector.broadcast %cst_14 : f32 to vector<256x128xf32>
    %35 = arith.select %33, %34, %31 : vector<256x128xi1>, vector<256x128xf32>
    %36 = arith.mulf %21, %35 : vector<256x128xf32>
    %37 = arith.truncf %36 : vector<256x128xf32> to vector<256x128xbf16>
    %c16_i32_15 = arith.constant 16 : i32
    %38 = arith.addi %c16_i32_15, %11 : i32
    %39 = arith.index_cast %38 : i32 to index
    %c128 = arith.constant 128 : index
    %40 = vector.load %arg7[%39, %c128] : memref<288x384xbf16, #tpu.memory_space<vmem>>, vector<256x128xbf16>
    tpu.vector_store %arg7[%39, %c128], %37 {strides = array<i32>} : memref<288x384xbf16, #tpu.memory_space<vmem>>, vector<256x128xbf16>,
    %c16_i32_16 = arith.constant 16 : i32
    %41 = arith.addi %c16_i32_16, %11 : i32
    %c16_i32_17 = arith.constant 16 : i32
    %42 = arith.addi %41, %c16_i32_17 : i32
    %43 = arith.index_cast %42 : i32 to index
    %c0_18 = arith.constant 0 : index
    %44 = vector.load %arg7[%43, %c0_18] : memref<288x384xbf16, #tpu.memory_space<vmem>>, vector<256x128xbf16>
    tpu.vector_store %arg7[%43, %c0_18], %37 {strides = array<i32>} : memref<288x384xbf16, #tpu.memory_space<vmem>>, vector<256x128xbf16>,
    %c16_i32_19 = arith.constant 16 : i32
    %45 = arith.addi %c16_i32_19, %11 : i32
    %c16_i32_20 = arith.constant 16 : i32
    %46 = arith.subi %45, %c16_i32_20 : i32
    %47 = arith.index_cast %46 : i32 to index
    %c256_21 = arith.constant 256 : index
    %48 = vector.load %arg7[%47, %c256_21] : memref<288x384xbf16, #tpu.memory_space<vmem>>, vector<256x128xbf16>
    tpu.vector_store %arg7[%47, %c256_21], %37 {strides = array<i32>} : memref<288x384xbf16, #tpu.memory_space<vmem>>, vector<256x128xbf16>,
    %c1_i32 = arith.constant 1 : i32
    %c0_i32_22 = arith.constant 0 : i32
    %c256_i32_23 = arith.constant 256 : i32
    %49 = arith.muli %c0_i32_22, %c256_i32_23 : i32
    %50 = tpu.assume_multiple %49, 256 : i32
    %c16_i32_24 = arith.constant 16 : i32
    %51 = arith.addi %c16_i32_24, %50 : i32
    %52 = arith.index_cast %51 : i32 to index
    %c0_25 = arith.constant 0 : index
    %53 = vector.load %arg7[%52, %c0_25] : memref<288x384xbf16, #tpu.memory_space<vmem>>, vector<256x384xbf16>
    %c0_26 = arith.constant 0 : index
    %c1 = arith.constant 1 : index
    %c0_27 = arith.constant 0 : index
    %c0_28 = arith.constant 0 : index
    %54 = vector.load %arg4[%c0_26, %c1, %c0_27, %c0_28] : memref<2x3x384x128xbf16, #tpu.memory_space<vmem>>, vector<1x1x384x128xbf16>
    %55 = vector.shape_cast %54 : vector<1x1x384x128xbf16> to vector<384x128xbf16>
    %cst_29 = arith.constant dense<0.000000e+00> : vector<256x128xf32>
    %56 = tpu.matmul %53, %55, %cst_29 {dimension_numbers = #tpu.dot_dimension_numbers<[1], [0], [0], [1], [0, 0, 1, 1], [], []>} : vector<256x384xbf16>, vector<384x128xbf16>, vector<256x128xf32> -> vector<256x128xf32>
    %c0_30 = arith.constant 0 : index
    %c0_31 = arith.constant 0 : index
    %c0_32 = arith.constant 0 : index
    %c0_33 = arith.constant 0 : index
    %57 = vector.load %arg4[%c0_30, %c0_31, %c0_32, %c0_33] : memref<2x3x384x128xbf16, #tpu.memory_space<vmem>>, vector<1x1x384x128xbf16>
    %58 = vector.shape_cast %57 : vector<1x1x384x128xbf16> to vector<384x128xbf16>
    %cst_34 = arith.constant dense<0.000000e+00> : vector<256x128xf32>
    %59 = tpu.matmul %53, %58, %cst_34 {dimension_numbers = #tpu.dot_dimension_numbers<[1], [0], [0], [1], [0, 0, 1, 1], [], []>} : vector<256x384xbf16>, vector<384x128xbf16>, vector<256x128xf32> -> vector<256x128xf32>
    %c1_i32_35 = arith.constant 1 : i32
    %60 = tpu.dynamic_rotate %59 by %c1_i32_35 dim 0 : vector<256x128xf32>, i32 -> vector<256x128xf32>
    %cst_36 = arith.constant 0.000000e+00 : f32
    %61 = vector.shape_cast %7 : vector<256x1xi1> to vector<256x1xi1>
    %62 = vector.broadcast %61 : vector<256x1xi1> to vector<256x128xi1>
    %63 = vector.broadcast %cst_36 : f32 to vector<256x128xf32>
    %64 = arith.select %62, %60, %63 : vector<256x128xi1>, vector<256x128xf32>
    %65 = arith.addf %56, %64 : vector<256x128xf32>
    %c0_37 = arith.constant 0 : index
    %c2 = arith.constant 2 : index
    %c0_38 = arith.constant 0 : index
    %c0_39 = arith.constant 0 : index
    %66 = vector.load %arg4[%c0_37, %c2, %c0_38, %c0_39] : memref<2x3x384x128xbf16, #tpu.memory_space<vmem>>, vector<1x1x384x128xbf16>
    %67 = vector.shape_cast %66 : vector<1x1x384x128xbf16> to vector<384x128xbf16>
    %cst_40 = arith.constant dense<0.000000e+00> : vector<256x128xf32>
    %68 = tpu.matmul %53, %67, %cst_40 {dimension_numbers = #tpu.dot_dimension_numbers<[1], [0], [0], [1], [0, 0, 1, 1], [], []>} : vector<256x384xbf16>, vector<384x128xbf16>, vector<256x128xf32> -> vector<256x128xf32>
    %c255_i32 = arith.constant 255 : i32
    %69 = tpu.dynamic_rotate %68 by %c255_i32 dim 0 : vector<256x128xf32>, i32 -> vector<256x128xf32>
    %cst_41 = arith.constant 0.000000e+00 : f32
    %70 = vector.shape_cast %9 : vector<256x1xi1> to vector<256x1xi1>
    %71 = vector.broadcast %70 : vector<256x1xi1> to vector<256x128xi1>
    %72 = vector.broadcast %cst_41 : f32 to vector<256x128xf32>
    %73 = arith.select %71, %69, %72 : vector<256x128xi1>, vector<256x128xf32>
    %74 = arith.addf %65, %73 : vector<256x128xf32>
    %c0_42 = arith.constant 0 : index
    %c0_43 = arith.constant 0 : index
    %c0_44 = arith.constant 0 : index
    %75 = vector.load %arg5[%c0_42, %c0_43, %c0_44] : memref<2x1x128xf32, #tpu.memory_space<vmem>>, vector<1x1x128xf32>
    %76 = vector.shape_cast %75 : vector<1x1x128xf32> to vector<1x128xf32>
    %77 = vector.broadcast %76 : vector<1x128xf32> to vector<256x128xf32>
    %78 = arith.addf %74, %77 : vector<256x128xf32>
    %cst_45 = arith.constant 2.000000e+01 : f32
    %79 = vector.broadcast %cst_45 : f32 to vector<256x128xf32>
    %80 = arith.minimumf %78, %79 : vector<256x128xf32>
    %81 = math.exp %80 : vector<256x128xf32>
    %cst_46 = arith.constant 2.000000e+00 : f32
    %82 = vector.broadcast %cst_46 : f32 to vector<256x128xf32>
    %83 = arith.addf %81, %82 : vector<256x128xf32>
    %84 = arith.mulf %81, %83 : vector<256x128xf32>
    %cst_47 = arith.constant 2.000000e+00 : f32
    %85 = vector.broadcast %cst_47 : f32 to vector<256x128xf32>
    %86 = arith.addf %84, %85 : vector<256x128xf32>
    %87 = tpu.reciprocal %86 {approx = true} : vector<256x128xf32> -> vector<256x128xf32>
    %88 = arith.mulf %84, %87 : vector<256x128xf32>
    %cst_48 = arith.constant 2.000000e+01 : f32
    %89 = vector.broadcast %cst_48 : f32 to vector<256x128xf32>
    %90 = arith.cmpf ogt, %78, %89 : vector<256x128xf32>
    %cst_49 = arith.constant 1.000000e+00 : f32
    %91 = vector.broadcast %cst_49 : f32 to vector<256x128xf32>
    %92 = arith.select %90, %91, %88 : vector<256x128xi1>, vector<256x128xf32>
    %93 = arith.mulf %78, %92 : vector<256x128xf32>
    %94 = arith.index_cast %50 : i32 to index
    %c0_50 = arith.constant 0 : index
    %95 = vector.load %arg1[%94, %c0_50] : memref<256x128xf32, #tpu.memory_space<vmem>>, vector<256x128xf32>
    %96 = arith.addf %95, %93 : vector<256x128xf32>
    %97 = arith.index_cast %50 : i32 to index
    %c0_51 = arith.constant 0 : index
    %98 = vector.load %arg6[%97, %c0_51] : memref<256x128xf32, #tpu.memory_space<vmem>>, vector<256x128xf32>
    tpu.vector_store %arg6[%97, %c0_51], %96 {strides = array<i32>} : memref<256x128xf32, #tpu.memory_space<vmem>>, vector<256x128xf32>,
    %c1_i32_52 = arith.constant 1 : i32
    %c0_i32_53 = arith.constant 0 : i32
    %c256_i32_54 = arith.constant 256 : i32
    %99 = arith.muli %c0_i32_53, %c256_i32_54 : i32
    %100 = tpu.assume_multiple %99, 256 : i32
    %101 = arith.index_cast %100 : i32 to index
    %c0_55 = arith.constant 0 : index
    %102 = vector.load %arg6[%101, %c0_55] : memref<256x128xf32, #tpu.memory_space<vmem>>, vector<256x128xf32>
    %103 = arith.truncf %102 : vector<256x128xf32> to vector<256x128xbf16>
    %c1_56 = arith.constant 1 : index
    %c0_57 = arith.constant 0 : index
    %c0_58 = arith.constant 0 : index
    %104 = vector.load %arg2[%c1_56, %c0_57, %c0_58] : memref<2x128x128xbf16, #tpu.memory_space<vmem>>, vector<1x128x128xbf16>
    %105 = vector.shape_cast %104 : vector<1x128x128xbf16> to vector<128x128xbf16>
    %cst_59 = arith.constant dense<0.000000e+00> : vector<256x128xf32>
    %106 = tpu.matmul %103, %105, %cst_59 {dimension_numbers = #tpu.dot_dimension_numbers<[1], [0], [0], [1], [0, 0, 1, 1], [], []>} : vector<256x128xbf16>, vector<128x128xbf16>, vector<256x128xf32> -> vector<256x128xf32>
    %c1_60 = arith.constant 1 : index
    %c0_61 = arith.constant 0 : index
    %c0_62 = arith.constant 0 : index
    %107 = vector.load %arg3[%c1_60, %c0_61, %c0_62] : memref<2x1x128xf32, #tpu.memory_space<vmem>>, vector<1x1x128xf32>
    %108 = vector.shape_cast %107 : vector<1x1x128xf32> to vector<1x128xf32>
    %109 = vector.broadcast %108 : vector<1x128xf32> to vector<256x128xf32>
    %110 = arith.addf %106, %109 : vector<256x128xf32>
    %cst_63 = arith.constant 2.000000e+01 : f32
    %111 = vector.broadcast %cst_63 : f32 to vector<256x128xf32>
    %112 = arith.minimumf %110, %111 : vector<256x128xf32>
    %113 = math.exp %112 : vector<256x128xf32>
    %cst_64 = arith.constant 2.000000e+00 : f32
    %114 = vector.broadcast %cst_64 : f32 to vector<256x128xf32>
    %115 = arith.addf %113, %114 : vector<256x128xf32>
    %116 = arith.mulf %113, %115 : vector<256x128xf32>
    %cst_65 = arith.constant 2.000000e+00 : f32
    %117 = vector.broadcast %cst_65 : f32 to vector<256x128xf32>
    %118 = arith.addf %116, %117 : vector<256x128xf32>
    %119 = tpu.reciprocal %118 {approx = true} : vector<256x128xf32> -> vector<256x128xf32>
    %120 = arith.mulf %116, %119 : vector<256x128xf32>
    %cst_66 = arith.constant 2.000000e+01 : f32
    %121 = vector.broadcast %cst_66 : f32 to vector<256x128xf32>
    %122 = arith.cmpf ogt, %110, %121 : vector<256x128xf32>
    %cst_67 = arith.constant 1.000000e+00 : f32
    %123 = vector.broadcast %cst_67 : f32 to vector<256x128xf32>
    %124 = arith.select %122, %123, %120 : vector<256x128xi1>, vector<256x128xf32>
    %125 = arith.mulf %110, %124 : vector<256x128xf32>
    %126 = arith.truncf %125 : vector<256x128xf32> to vector<256x128xbf16>
    %c16_i32_68 = arith.constant 16 : i32
    %127 = arith.addi %c16_i32_68, %100 : i32
    %128 = arith.index_cast %127 : i32 to index
    %c128_69 = arith.constant 128 : index
    %129 = vector.load %arg7[%128, %c128_69] : memref<288x384xbf16, #tpu.memory_space<vmem>>, vector<256x128xbf16>
    tpu.vector_store %arg7[%128, %c128_69], %126 {strides = array<i32>} : memref<288x384xbf16, #tpu.memory_space<vmem>>, vector<256x128xbf16>,
    %c16_i32_70 = arith.constant 16 : i32
    %130 = arith.addi %c16_i32_70, %100 : i32
    %c16_i32_71 = arith.constant 16 : i32
    %131 = arith.addi %130, %c16_i32_71 : i32
    %132 = arith.index_cast %131 : i32 to index
    %c0_72 = arith.constant 0 : index
    %133 = vector.load %arg7[%132, %c0_72] : memref<288x384xbf16, #tpu.memory_space<vmem>>, vector<256x128xbf16>
    tpu.vector_store %arg7[%132, %c0_72], %126 {strides = array<i32>} : memref<288x384xbf16, #tpu.memory_space<vmem>>, vector<256x128xbf16>,
    %c16_i32_73 = arith.constant 16 : i32
    %134 = arith.addi %c16_i32_73, %100 : i32
    %c16_i32_74 = arith.constant 16 : i32
    %135 = arith.subi %134, %c16_i32_74 : i32
    %136 = arith.index_cast %135 : i32 to index
    %c256_75 = arith.constant 256 : index
    %137 = vector.load %arg7[%136, %c256_75] : memref<288x384xbf16, #tpu.memory_space<vmem>>, vector<256x128xbf16>
    tpu.vector_store %arg7[%136, %c256_75], %126 {strides = array<i32>} : memref<288x384xbf16, #tpu.memory_space<vmem>>, vector<256x128xbf16>,
    %c1_i32_76 = arith.constant 1 : i32
    %c0_i32_77 = arith.constant 0 : i32
    %c256_i32_78 = arith.constant 256 : i32
    %138 = arith.muli %c0_i32_77, %c256_i32_78 : i32
    %139 = tpu.assume_multiple %138, 256 : i32
    %c16_i32_79 = arith.constant 16 : i32
    %140 = arith.addi %c16_i32_79, %139 : i32
    %141 = arith.index_cast %140 : i32 to index
    %c0_80 = arith.constant 0 : index
    %142 = vector.load %arg7[%141, %c0_80] : memref<288x384xbf16, #tpu.memory_space<vmem>>, vector<256x384xbf16>
    %c1_81 = arith.constant 1 : index
    %c1_82 = arith.constant 1 : index
    %c0_83 = arith.constant 0 : index
    %c0_84 = arith.constant 0 : index
    %143 = vector.load %arg4[%c1_81, %c1_82, %c0_83, %c0_84] : memref<2x3x384x128xbf16, #tpu.memory_space<vmem>>, vector<1x1x384x128xbf16>
    %144 = vector.shape_cast %143 : vector<1x1x384x128xbf16> to vector<384x128xbf16>
    %cst_85 = arith.constant dense<0.000000e+00> : vector<256x128xf32>
    %145 = tpu.matmul %142, %144, %cst_85 {dimension_numbers = #tpu.dot_dimension_numbers<[1], [0], [0], [1], [0, 0, 1, 1], [], []>} : vector<256x384xbf16>, vector<384x128xbf16>, vector<256x128xf32> -> vector<256x128xf32>
    %c1_86 = arith.constant 1 : index
    %c0_87 = arith.constant 0 : index
    %c0_88 = arith.constant 0 : index
    %c0_89 = arith.constant 0 : index
    %146 = vector.load %arg4[%c1_86, %c0_87, %c0_88, %c0_89] : memref<2x3x384x128xbf16, #tpu.memory_space<vmem>>, vector<1x1x384x128xbf16>
    %147 = vector.shape_cast %146 : vector<1x1x384x128xbf16> to vector<384x128xbf16>
    %cst_90 = arith.constant dense<0.000000e+00> : vector<256x128xf32>
    %148 = tpu.matmul %142, %147, %cst_90 {dimension_numbers = #tpu.dot_dimension_numbers<[1], [0], [0], [1], [0, 0, 1, 1], [], []>} : vector<256x384xbf16>, vector<384x128xbf16>, vector<256x128xf32> -> vector<256x128xf32>
    %c1_i32_91 = arith.constant 1 : i32
    %149 = tpu.dynamic_rotate %148 by %c1_i32_91 dim 0 : vector<256x128xf32>, i32 -> vector<256x128xf32>
    %cst_92 = arith.constant 0.000000e+00 : f32
    %150 = vector.shape_cast %7 : vector<256x1xi1> to vector<256x1xi1>
    %151 = vector.broadcast %150 : vector<256x1xi1> to vector<256x128xi1>
    %152 = vector.broadcast %cst_92 : f32 to vector<256x128xf32>
    %153 = arith.select %151, %149, %152 : vector<256x128xi1>, vector<256x128xf32>
    %154 = arith.addf %145, %153 : vector<256x128xf32>
    %c1_93 = arith.constant 1 : index
    %c2_94 = arith.constant 2 : index
    %c0_95 = arith.constant 0 : index
    %c0_96 = arith.constant 0 : index
    %155 = vector.load %arg4[%c1_93, %c2_94, %c0_95, %c0_96] : memref<2x3x384x128xbf16, #tpu.memory_space<vmem>>, vector<1x1x384x128xbf16>
    %156 = vector.shape_cast %155 : vector<1x1x384x128xbf16> to vector<384x128xbf16>
    %cst_97 = arith.constant dense<0.000000e+00> : vector<256x128xf32>
    %157 = tpu.matmul %142, %156, %cst_97 {dimension_numbers = #tpu.dot_dimension_numbers<[1], [0], [0], [1], [0, 0, 1, 1], [], []>} : vector<256x384xbf16>, vector<384x128xbf16>, vector<256x128xf32> -> vector<256x128xf32>
    %c255_i32_98 = arith.constant 255 : i32
    %158 = tpu.dynamic_rotate %157 by %c255_i32_98 dim 0 : vector<256x128xf32>, i32 -> vector<256x128xf32>
    %cst_99 = arith.constant 0.000000e+00 : f32
    %159 = vector.shape_cast %9 : vector<256x1xi1> to vector<256x1xi1>
    %160 = vector.broadcast %159 : vector<256x1xi1> to vector<256x128xi1>
    %161 = vector.broadcast %cst_99 : f32 to vector<256x128xf32>
    %162 = arith.select %160, %158, %161 : vector<256x128xi1>, vector<256x128xf32>
    %163 = arith.addf %154, %162 : vector<256x128xf32>
    %c1_100 = arith.constant 1 : index
    %c0_101 = arith.constant 0 : index
    %c0_102 = arith.constant 0 : index
    %164 = vector.load %arg5[%c1_100, %c0_101, %c0_102] : memref<2x1x128xf32, #tpu.memory_space<vmem>>, vector<1x1x128xf32>
    %165 = vector.shape_cast %164 : vector<1x1x128xf32> to vector<1x128xf32>
    %166 = vector.broadcast %165 : vector<1x128xf32> to vector<256x128xf32>
    %167 = arith.addf %163, %166 : vector<256x128xf32>
    %cst_103 = arith.constant 2.000000e+01 : f32
    %168 = vector.broadcast %cst_103 : f32 to vector<256x128xf32>
    %169 = arith.minimumf %167, %168 : vector<256x128xf32>
    %170 = math.exp %169 : vector<256x128xf32>
    %cst_104 = arith.constant 2.000000e+00 : f32
    %171 = vector.broadcast %cst_104 : f32 to vector<256x128xf32>
    %172 = arith.addf %170, %171 : vector<256x128xf32>
    %173 = arith.mulf %170, %172 : vector<256x128xf32>
    %cst_105 = arith.constant 2.000000e+00 : f32
    %174 = vector.broadcast %cst_105 : f32 to vector<256x128xf32>
    %175 = arith.addf %173, %174 : vector<256x128xf32>
    %176 = tpu.reciprocal %175 {approx = true} : vector<256x128xf32> -> vector<256x128xf32>
    %177 = arith.mulf %173, %176 : vector<256x128xf32>
    %cst_106 = arith.constant 2.000000e+01 : f32
    %178 = vector.broadcast %cst_106 : f32 to vector<256x128xf32>
    %179 = arith.cmpf ogt, %167, %178 : vector<256x128xf32>
    %cst_107 = arith.constant 1.000000e+00 : f32
    %180 = vector.broadcast %cst_107 : f32 to vector<256x128xf32>
    %181 = arith.select %179, %180, %177 : vector<256x128xi1>, vector<256x128xf32>
    %182 = arith.mulf %167, %181 : vector<256x128xf32>
    %183 = arith.index_cast %139 : i32 to index
    %c0_108 = arith.constant 0 : index
    %184 = vector.load %arg6[%183, %c0_108] : memref<256x128xf32, #tpu.memory_space<vmem>>, vector<256x128xf32>
    %185 = arith.addf %184, %182 : vector<256x128xf32>
    %186 = arith.index_cast %139 : i32 to index
    %c0_109 = arith.constant 0 : index
    %187 = vector.load %arg6[%186, %c0_109] : memref<256x128xf32, #tpu.memory_space<vmem>>, vector<256x128xf32>
    tpu.vector_store %arg6[%186, %c0_109], %185 {strides = array<i32>} : memref<256x128xf32, #tpu.memory_space<vmem>>, vector<256x128xf32>,
    %c1_i32_110 = arith.constant 1 : i32
    return
  }
  func.func @transform_0(%arg0: i32) -> (i32, i32) {
    %c0_i32 = arith.constant 0 : i32
    %c0_i32_0 = arith.constant 0 : i32
    return %arg0, %c0_i32 : i32, i32
  }
  func.func @transform_1(%arg0: i32) -> (i32, i32, i32) {
    %c0_i32 = arith.constant 0 : i32
    %c0_i32_0 = arith.constant 0 : i32
    %c0_i32_1 = arith.constant 0 : i32
    %c0_i32_2 = arith.constant 0 : i32
    return %c0_i32, %c0_i32_0, %c0_i32_1 : i32, i32, i32
  }
  func.func @transform_2(%arg0: i32) -> (i32, i32, i32) {
    %c0_i32 = arith.constant 0 : i32
    %c0_i32_0 = arith.constant 0 : i32
    %c0_i32_1 = arith.constant 0 : i32
    %c0_i32_2 = arith.constant 0 : i32
    return %c0_i32, %c0_i32_0, %c0_i32_1 : i32, i32, i32
  }
  func.func @transform_3(%arg0: i32) -> (i32, i32, i32, i32) {
    %c0_i32 = arith.constant 0 : i32
    %c0_i32_0 = arith.constant 0 : i32
    %c0_i32_1 = arith.constant 0 : i32
    %c0_i32_2 = arith.constant 0 : i32
    %c0_i32_3 = arith.constant 0 : i32
    return %c0_i32, %c0_i32_0, %c0_i32_1, %c0_i32_2 : i32, i32, i32, i32
  }
  func.func @transform_4(%arg0: i32) -> (i32, i32, i32) {
    %c0_i32 = arith.constant 0 : i32
    %c0_i32_0 = arith.constant 0 : i32
    %c0_i32_1 = arith.constant 0 : i32
    %c0_i32_2 = arith.constant 0 : i32
    return %c0_i32, %c0_i32_0, %c0_i32_1 : i32, i32, i32
  }
  func.func @transform_5(%arg0: i32) -> (i32, i32) {
    %c0_i32 = arith.constant 0 : i32
    %c0_i32_0 = arith.constant 0 : i32
    return %arg0, %c0_i32 : i32, i32
  }
}

</mosaic_0001>

<bundles_post_ra>
// kernel: _lambda_.1
= control target key start
LH: loop header
LB: loop body
LE: loop exit
PB: predicated region body
PF: predicated region fallthrough
CT: control target
= control target key end

     0   :  { %s9065_s18 = smov 0   ;;  %s12813_s0 = inlined_call_operand.vmem [shape: f32[512,128], index: 0, kind: input, shape index: {}]   ;;  %s12814_s1 = inlined_call_operand.vmem [shape: bf16[2,128,128], index: 1, kind: input, shape index: {}]   ;;  %s12815_s2 = inlined_call_operand.vmem [shape: f32[2,1,128], index: 2, kind: input, shape index: {}]   ;;  %s12816_s3 = inlined_call_operand.vmem [shape: bf16[2,3,384,128], index: 3, kind: input, shape index: {}]   ;;  %s12817_s4 = inlined_call_operand.vmem [shape: f32[2,1,128], index: 4, kind: input, shape index: {}]   ;;  %s12818_s5 = inlined_call_operand.vmem [shape: f32[512,128], index: 5, kind: output, shape index: {}]  }
   0x1 LB: > { %s6947_s19 = sadd.s32 4294967295, %s9032_s18   ;;  %p6951_p0 = scmp.ge.s32.totalorder %s9032_s18, 1  ;;  %s9032_s18 = sphi %s9065_s18, %s15_s18  }
   0x2   : > { %p188_p1 = scmp.lt.s32.totalorder %s9032_s18, 3 }
   0x4   : > { %p189_p2 = pnand %p6951_p0, %p188_p1 }
   0x6   : > { %192 = sbr.rel (%p189_p2) target bundleno = 2015 (0x7df), region = 40 }
   0xb   : > { %v8247_v0 = vld [vmem:[%s12814_s1 + $0x38] sm:$0xff]  ;;  %v8246_v1 = vld [vmem:[%s12814_s1 + $0x30] sm:$0xff]  ;;  %v8245_v2 = vld [vmem:[%s12814_s1 + $0x28] sm:$0xff]  ;;  %s6952_s26 = sshll.u32 %s6947_s19, 5  ;;  %v9034_v38 = vmov 0  }
   0xc   : > { %670 = vmatpush.bf16.msra.mxu0 %v8247_v0  ;;  %v8244_v3 = vld [vmem:[%s12814_s1 + $0x20] sm:$0xff]  ;;  %p217_p3 = scmp.lt.s32.totalorder %s6952_s26, 63  ;;  %v8243_v4 = vld [vmem:[%s12814_s1 + $0x18] sm:$0xff]  ;;  %v8242_v5 = vld [vmem:[%s12814_s1 + $0x10] sm:$0xff]  ;;  %229 = vst [vmem:[#allocation2 + $0x18] sm:$0xf] %v9034_v38 }
   0xd   : > { %v8241_v6 = vld [vmem:[%s12814_s1 + $0x8] sm:$0xff]  ;;  %v8240_v7 = vld [vmem:[%s12814_s1] sm:$0xff]  ;;  %v8327_v26 = vld [vmem:[%s12816_s3 + $0x38] sm:$0xff]  ;;  %230 = vst [vmem:[#allocation2 + $0x24] sm:$0xf] %v9034_v38 }
   0xe   : > { %s13365_s26 = smov (!%p217_p3, %s6952_s26), 63  ;;  %1815 = vmatpush.bf16.msra.mxu1 %v8327_v26  ;;  %v8326_v30 = vld [vmem:[%s12816_s3 + $0x30] sm:$0xff]  ;;  %v8325_v31 = vld [vmem:[%s12816_s3 + $0x28] sm:$0xff]  ;;  %v8324_v32 = vld [vmem:[%s12816_s3 + $0x20] sm:$0xff]  ;;  %231 = vst [vmem:[#allocation2 + $0x188] sm:$0xf] %v9034_v38 }
   0xf   : > { %s6953_s8 = sshll.u32 %s13365_s26, 3  ;;  %v8323_v35 = vld [vmem:[%s12816_s3 + $0x18] sm:$0xff]  ;;  %v8322_v37 = vld [vmem:[%s12816_s3 + $0x10] sm:$0xff]  ;;  %v8321_v39 = vld [vmem:[%s12816_s3 + $0x8] sm:$0xff]  ;;  %232 = vst [vmem:[#allocation2 + $0x194] sm:$0xf] %v9034_v38 }
  0x10   : > { %671 = vmatpush.bf16.msra.mxu0 %v8246_v1  ;;  %s9102_s13 = scalar_lea.vmem %s12813_s0, %s6953_s8  ;;  %v8335_v40 = vld [vmem:[%s12816_s3 + $0x78] sm:$0xff]  ;;  %v8320_v41 = vld [vmem:[%s12816_s3] sm:$0xff]  ;;  %v8334_v42 = vld [vmem:[%s12816_s3 + $0x70] sm:$0xff]  ;;  %s10482_s21 = scalar_lea.vmem %s12818_s5, %s6953_s8 }
  0x11   : > { %v554_v8 = vld [vmem:[%s9102_s13] sm:$0xff]  ;;  %v555_v9 = vld [vmem:[%s9102_s13 + $0x8] sm:$0xff]  ;;  %v556_v11 = vld [vmem:[%s9102_s13 + $0x10] sm:$0xff]  ;;  %1904 = vmatpush.bf16.msra.mxu2 %v8335_v40 }
  0x12   : > { %v586_v10 = vpack.c.bf16 %v555_v9, %v554_v8  ;;  %v557_v12 = vld [vmem:[%s9102_s13 + $0x18] sm:$0xff]  ;;  %v558_v14 = vld [vmem:[%s9102_s13 + $0x20] sm:$0xff]  ;;  %v559_v15 = vld [vmem:[%s9102_s13 + $0x28] sm:$0xff]  ;;  %1816 = vmatpush.bf16.msra.mxu1 %v8326_v30 }
  0x13   : > { %v587_v13 = vpack.c.bf16 %v557_v12, %v556_v11  ;;  %v588_v16 = vpack.c.bf16 %v559_v15, %v558_v14  ;;  %v560_v17 = vld [vmem:[%s9102_s13 + $0x30] sm:$0xff]  ;;  %v561_v18 = vld [vmem:[%s9102_s13 + $0x38] sm:$0xff]  ;;  %v562_v20 = vld [vmem:[%s9102_s13 + $0x40] sm:$0xff] }
  0x14   : > { %672 = vmatpush.bf16.msra.mxu0 %v8245_v2  ;;  %v589_v19 = vpack.c.bf16 %v561_v18, %v560_v17  ;;  %v563_v21 = vld [vmem:[%s9102_s13 + $0x48] sm:$0xff]  ;;  %v564_v23 = vld [vmem:[%s9102_s13 + $0x50] sm:$0xff]  ;;  %v565_v24 = vld [vmem:[%s9102_s13 + $0x58] sm:$0xff] }
  0x15   : > { %v590_v22 = vpack.c.bf16 %v563_v21, %v562_v20  ;;  %v591_v25 = vpack.c.bf16 %v565_v24, %v564_v23  ;;  %v566_v27 = vld [vmem:[%s9102_s13 + $0x60] sm:$0xff]  ;;  %v567_v28 = vld [vmem:[%s9102_s13 + $0x68] sm:$0xff]  ;;  %v568_v33 = vld [vmem:[%s9102_s13 + $0x70] sm:$0xff]  ;;  %1905 = vmatpush.bf16.msra.mxu2 %v8334_v42 }
  0x16   : > { %v592_v29 = vpack.c.bf16 %v567_v28, %v566_v27  ;;  %1817 = vmatpush.bf16.msra.mxu1 %v8325_v31  ;;  %v569_v34 = vld [vmem:[%s9102_s13 + $0x78] sm:$0xff]  ;;  %v570_v44 = vld [vmem:[%s9102_s13 + $0x80] sm:$0xff]  ;;  %v571_v45 = vld [vmem:[%s9102_s13 + $0x88] sm:$0xff] }
  0x17   : > { %v593_v36 = vpack.c.bf16 %v569_v34, %v568_v33  ;;  %v7038_v43 = vld [vmem:[#allocation2 + $0x18] sm:$0xf]  ;;  %v8249_v46 = vld [vmem:[#allocation2 + $0x20] sm:$0xf0]  ;;  %v9158_v47 = vld [vmem:[%s12815_s2] ss:$0 sm:$0xff]  ;;  %v594_v50 = vpack.c.bf16 %v571_v45, %v570_v44 }
  0x18   : > { %673 = vmatpush.bf16.msra.mxu0 %v8244_v3  ;;  %v9160_v48 = vor.u32 %v8249_v46, %v7038_v43  ;;  %v8333_v49 = vld [vmem:[%s12816_s3 + $0x68] sm:$0xff]  ;;  %v8332_v53 = vld [vmem:[%s12816_s3 + $0x60] sm:$0xff]  ;;  %v8331_v56 = vld [vmem:[%s12816_s3 + $0x58] sm:$0xff] }
  0x19   : > { %1906 = vmatpush.bf16.msra.mxu2 %v8333_v49  ;;  %v8343_v57 = vld [vmem:[%s12816_s3 + $0xb8] sm:$0xff]  ;;  %v8330_v60 = vld [vmem:[%s12816_s3 + $0x50] sm:$0xff]  ;;  %v8329_v3 = vld [vmem:[%s12816_s3 + $0x48] sm:$0xff] }
  0x1a   : > { %1818 = vmatpush.bf16.msra.mxu1 %v8324_v32  ;;  %1993 = vmatpush.bf16.msra.mxu3 %v8343_v57  ;;  %v8342_v61 = vld [vmem:[%s12816_s3 + $0xb0] sm:$0xff]  ;;  %v573_v0 = vld [vmem:[%s9102_s13 + $0x98] sm:$0xff]  ;;  %v8340_v11 = vld [vmem:[%s12816_s3 + $0xa0] sm:$0xff] }
  0x1b   : > { %v572_v63 = vld [vmem:[%s9102_s13 + $0x90] sm:$0xff]  ;;  %v574_v26 = vld [vmem:[%s9102_s13 + $0xa0] sm:$0xff]  ;;  %v575_v27 = vld [vmem:[%s9102_s13 + $0xa8] sm:$0xff] }
  0x1c   : > { %674 = vmatpush.bf16.msra.mxu0 %v8243_v4  ;;  %v8341_v4 = vld [vmem:[%s12816_s3 + $0xa8] sm:$0xff]  ;;  %v8338_v21 = vld [vmem:[%s12816_s3 + $0x90] sm:$0xff]  ;;  %v596_v34 = vpack.c.bf16 %v575_v27, %v574_v26  ;;  %v8303_v44 = vld [vmem:[%s12816_s3 + $0xf8] sm:$0xff] }
  0x1d   : > { %1907 = vmatpush.bf16.msra.mxu2 %v8332_v53  ;;  %v8337_v31 = vld [vmem:[%s12816_s3 + $0x88] sm:$0xff]  ;;  %v8311_v45 = vld [vmem:[%s12816_s3 + $0x138] sm:$0xff] }
  0x1e   : > { %1819 = vmatpush.bf16.msra.mxu1 %v8323_v35  ;;  %1994 = vmatpush.bf16.msra.mxu3 %v8342_v61 }
  0x20   : > { %675 = vmatpush.bf16.msra.mxu0 %v8242_v5 }
  0x21   : > { %1908 = vmatpush.bf16.msra.mxu2 %v8331_v56 }
  0x22   : > { %1820 = vmatpush.bf16.msra.mxu1 %v8322_v37  ;;  %1995 = vmatpush.bf16.msra.mxu3 %v8341_v4 }
  0x24   : > { %676 = vmatpush.bf16.msra.mxu0 %v8241_v6  ;;  %v595_v6 = vpack.c.bf16 %v573_v0, %v572_v63 }
  0x25   : > { %1909 = vmatpush.bf16.msra.mxu2 %v8330_v60 }
  0x26   : > { %1821 = vmatpush.bf16.msra.mxu1 %v8321_v39  ;;  %1996 = vmatpush.bf16.msra.mxu3 %v8340_v11  ;;  %v8336_v39 = vld [vmem:[%s12816_s3 + $0x80] sm:$0xff] }
  0x28   : > { %677 = vmatpush.bf16.msra.mxu0 %v8240_v7 }
  0x29   : > { %1910 = vmatpush.bf16.msra.mxu2 %v8329_v3 }
  0x2a   : > { %1822 = vmatpush.bf16.msra.mxu1 %v8320_v41 }
  0x2b   : > { %678 = vmatmul.bf16.vlgmr.msra.gmra.mxu0 %v586_v10  ;;  %v8328_v10 = vld [vmem:[%s12816_s3 + $0x40] sm:$0xff] }
  0x2c   : > { %2387 = vmatpush.bf16.msrb.mxu0 %v8303_v44 }
  0x2d   : > { %1823 = vmatmul.bf16.vlgmr.msra.gmra.mxu1 %v9160_v48  ;;  %1911 = vmatpush.bf16.msra.mxu2 %v8328_v10 }
  0x2e   : > { %2476 = vmatpush.bf16.msrb.mxu1 %v8311_v45 }
  0x3b   : > { %683 = vmatmul.bf16.gmra.mxu0 %v587_v13 }
  0x4b   : > { %688 = vmatmul.bf16.gmra.mxu0 %v588_v16  ;;  %v8339_v16 = vld [vmem:[%s12816_s3 + $0x98] sm:$0xff] }
  0x4c   : > { %1997 = vmatpush.bf16.msra.mxu3 %v8339_v16 }
  0x50   : > { %1998 = vmatpush.bf16.msra.mxu3 %v8338_v21 }
  0x54   : > { %1999 = vmatpush.bf16.msra.mxu3 %v8337_v31 }
  0x58   : > { %2000 = vmatpush.bf16.msra.mxu3 %v8336_v39 }
  0x5b   : > { %693 = vmatmul.bf16.gmra.mxu0 %v589_v19 }
  0x6b   : > { %698 = vmatmul.bf16.gmra.mxu0 %v590_v22 }
  0x7b   : > { %703 = vmatmul.bf16.gmra.mxu0 %v591_v25 }
  0x8b   : > { %708 = vmatmul.bf16.gmra.mxu0 %v592_v29 }
  0x9b   : > { %713 = vmatmul.bf16.gmra.mxu0 %v593_v36 }
  0xa8   : > { %v679_v51 = vpop.f32.mrf.mxu0 }
  0xa9   : > { %v9167_v52 = vadd.f32 %v9158_v47, %v679_v51 }
  0xab   : > { %v759_v54 = vmin.f32 %v9167_v52, 20.0  ;;  %718 = vmatmul.bf16.gmra.mxu0 %v594_v50  ;;  %vm1015_vm0 = vcmp.gt.f32.partialorder %v9167_v52, 20.0 }
  0xad   : > { %v791_v55 = vmul.f32 1.442695, %v759_v54 }
  0xaf   : > { %8509 = vpow2.f32 %v791_v55 }
  0xb0   : > { %v681_v58 = vpop.f32.mrf.mxu0 }
  0xb1   : > { %v9180_v59 = vadd.f32 %v9158_v47, %v681_v58 }
  0xb3   : > { %v760_v62 = vmin.f32 %v9180_v59, 20.0  ;;  %vm1016_vm1 = vcmp.gt.f32.partialorder %v9180_v59, 20.0 }
  0xb5   : > { %v8510_v1 = vpop.eup %8509  ;;  %v793_v2 = vmul.f32 1.442695, %v760_v62  ;;  %v577_v62 = vld [vmem:[%s9102_s13 + $0xb8] sm:$0xff] }
  0xb6   : > { %v855_v5 = vadd.f32 2.0, %v8510_v1 }
  0xb7   : > { %8511 = vpow2.f32 %v793_v2 }
  0xb8   : > { %v887_v7 = vmul.f32 %v8510_v1, %v855_v5  ;;  %v684_v8 = vpop.f32.mrf.mxu0 }
  0xb9   : > { %v9198_v9 = vadd.f32 %v9158_v47, %v684_v8 }
  0xba   : > { %v919_v12 = vadd.f32 2.0, %v887_v7 }
  0xbb   : > { %v761_v13 = vmin.f32 %v9198_v9, 20.0  ;;  %723 = vmatmul.bf16.gmra.mxu0 %v595_v6  ;;  %vm1017_vm2 = vcmp.gt.f32.partialorder %v9198_v9, 20.0 }
  0xbc   : > { %8513 = vrcp.f32 %v919_v12 }
  0xbd   : > { %v8512_v14 = vpop.eup %8511  ;;  %v795_v15 = vmul.f32 1.442695, %v761_v13 }
  0xbe   : > { %v856_v17 = vadd.f32 2.0, %v8512_v14 }
  0xbf   : > { %8515 = vpow2.f32 %v795_v15 }
  0xc0   : > { %v888_v18 = vmul.f32 %v8512_v14, %v856_v17  ;;  %v686_v19 = vpop.f32.mrf.mxu0 }
  0xc1   : > { %v9211_v20 = vadd.f32 %v9158_v47, %v686_v19 }
  0xc2   : > { %v8514_v22 = vpop.eup %8513  ;;  %v920_v23 = vadd.f32 2.0, %v888_v18 }
  0xc3   : > { %v983_v24 = vmul.f32 %v8514_v22, %v887_v7  ;;  %v762_v25 = vmin.f32 %v9211_v20, 20.0  ;;  %vm1018_vm3 = vcmp.gt.f32.partialorder %v9211_v20, 20.0 }
  0xc4   : > { %8517 = vrcp.f32 %v920_v23 }
  0xc5   : > { %v8516_v28 = vpop.eup %8515  ;;  %v1047_v29 = vsel %vm1015_vm0, 1.0, %v983_v24  ;;  %v797_v30 = vmul.f32 1.442695, %v762_v25 }
  0xc6   : > { %v1079_v32 = vmul.f32 %v1047_v29, %v9167_v52  ;;  %v857_v33 = vadd.f32 2.0, %v8516_v28 }
  0xc7   : > { %8519 = vpow2.f32 %v797_v30 }
  0xc8   : > { %v1111_v35 = vpack.c.bf16 %v1079_v32, %v1079_v32  ;;  %v889_v36 = vmul.f32 %v8516_v28, %v857_v33  ;;  %v689_v37 = vpop.f32.mrf.mxu0  ;;  %v579_v33 = vld [vmem:[%s9102_s13 + $0xc8] sm:$0xff] }
  0xc9   : > { %v9225_v38 = vadd.f32 %v9158_v47, %v689_v37 }
  0xca   : > { %v8518_v40 = vpop.eup %8517  ;;  %1149 = vst [vmem:[#allocation2 + $0x1c] sm:$0xf] %v1111_v35  ;;  %v921_v41 = vadd.f32 2.0, %v889_v36 }
  0xcb   : > { %1187 = vst [vmem:[#allocation2 + $0x30] sm:$0xf] %v1111_v35  ;;  %v984_v42 = vmul.f32 %v8518_v40, %v888_v18  ;;  %v763_v43 = vmin.f32 %v9225_v38, 20.0  ;;  %728 = vmatmul.bf16.gmra.mxu0 %v596_v34  ;;  %vm1019_vm4 = vcmp.gt.f32.partialorder %v9225_v38, 20.0 }
  0xcc   : > { %8521 = vrcp.f32 %v921_v41 }
  0xcd   : > { %v8520_v46 = vpop.eup %8519  ;;  %v1048_v49 = vsel %vm1016_vm1, 1.0, %v984_v42  ;;  %v799_v50 = vmul.f32 1.442695, %v763_v43 }
  0xce   : > { %v1080_v51 = vmul.f32 %v1048_v49, %v9180_v59  ;;  %v858_v52 = vadd.f32 2.0, %v8520_v46  ;;  %v576_v59 = vld [vmem:[%s9102_s13 + $0xb0] sm:$0xff] }
  0xcf   : > { %8523 = vpow2.f32 %v799_v50  ;;  %v597_v4 = vpack.c.bf16 %v577_v62, %v576_v59  ;;  %v8310_v59 = vld [vmem:[%s12816_s3 + $0x130] sm:$0xff] }
  0xd0   : > { %v1112_v53 = vpack.c.bf16 %v1080_v51, %v1080_v51  ;;  %v890_v54 = vmul.f32 %v8520_v46, %v858_v52  ;;  %v691_v55 = vpop.f32.mrf.mxu0  ;;  %2477 = vmatpush.bf16.msrb.mxu1 %v8310_v59  ;;  %v582_v59 = vld [vmem:[%s9102_s13 + $0xe0] sm:$0xff] }
  0xd1   : > { %v9240_v56 = vadd.f32 %v9158_v47, %v691_v55  ;;  %v8248_v11 = vld [vmem:[#allocation2 + $0x1c] sm:$0xf] }
  0xd2   : > { %v8522_v57 = vpop.eup %8521  ;;  %1150 = vst [vmem:[#allocation2 + $0x28] sm:$0xf] %v1112_v53  ;;  %v922_v58 = vadd.f32 2.0, %v890_v54  ;;  %v7050_v10 = vld [vmem:[#allocation2 + $0x30] sm:$0xf] }
  0xd3   : > { %1188 = vst [vmem:[#allocation2 + $0x3c] sm:$0xf] %v1112_v53  ;;  %v985_v60 = vmul.f32 %v8522_v57, %v889_v36  ;;  %v764_v61 = vmin.f32 %v9240_v56, 20.0  ;;  %vm1020_vm5 = vcmp.gt.f32.partialorder %v9240_v56, 20.0 }
  0xd4   : > { %8525 = vrcp.f32 %v922_v58 }
  0xd5   : > { %v8524_v63 = vpop.eup %8523  ;;  %v1049_v0 = vsel %vm1017_vm2, 1.0, %v985_v60  ;;  %v801_v1 = vmul.f32 1.442695, %v764_v61  ;;  %v8302_v60 = vld [vmem:[%s12816_s3 + $0xf0] sm:$0xff] }
  0xd6   : > { %v1081_v2 = vmul.f32 %v1049_v0, %v9198_v9  ;;  %v859_v3 = vadd.f32 2.0, %v8524_v63  ;;  %2388 = vmatpush.bf16.msrb.mxu0 %v8302_v60 }
  0xd7   : > { %8527 = vpow2.f32 %v801_v1 }
  0xd8   : > { %v1113_v5 = vpack.c.bf16 %v1081_v2, %v1081_v2  ;;  %v891_v6 = vmul.f32 %v8524_v63, %v859_v3  ;;  %v694_v7 = vpop.f32.mrf.mxu0 }
  0xd9   : > { %v9248_v8 = vadd.f32 %v9158_v47, %v694_v7  ;;  %v7040_v12 = vld [vmem:[#allocation2 + $0x24] sm:$0xf0] }
  0xda   : > { %v8526_v13 = vpop.eup %8525  ;;  %1151 = vst [vmem:[#allocation2 + $0x34] sm:$0xf] %v1113_v5  ;;  %v923_v14 = vadd.f32 2.0, %v891_v6  ;;  %v8252_v15 = vld [vmem:[#allocation2 + $0x38] sm:$0xf0]  ;;  %v9250_v16 = vor.u32 %v8248_v11, %v7040_v12  ;;  %v580_v12 = vld [vmem:[%s9102_s13 + $0xd0] sm:$0xff] }
  0xdb   : > { %1189 = vst [vmem:[#allocation2 + $0x48] sm:$0xf] %v1113_v5  ;;  %v986_v9 = vmul.f32 %v8526_v13, %v890_v54  ;;  %v765_v17 = vmin.f32 %v9248_v8, 20.0  ;;  %733 = vmatmul.bf16.gmra.mxu0 %v597_v4  ;;  %v9253_v18 = vor.u32 %v8252_v15, %v7050_v10  ;;  %vm1021_vm6 = vcmp.gt.f32.partialorder %v9248_v8, 20.0  ;;  %v581_v13 = vld [vmem:[%s9102_s13 + $0xd8] sm:$0xff] }
  0xdc   : > { %1224 = vst [vmem:[#allocation2 + $0x20] sm:$0xf] %v1113_v5  ;;  %8529 = vrcp.f32 %v923_v14  ;;  %1912 = vmatmul.bf16.vlgmr.msra.gmra.mxu2 %v9250_v16  ;;  %v8301_v14 = vld [vmem:[%s12816_s3 + $0xe8] sm:$0xff] }
  0xdd   : > { %v8528_v19 = vpop.eup %8527  ;;  %v1050_v21 = vsel %vm1018_vm3, 1.0, %v986_v9  ;;  %v803_v22 = vmul.f32 1.442695, %v765_v17  ;;  %1828 = vmatmul.bf16.gmra.mxu1 %v9253_v18  ;;  %2389 = vmatpush.bf16.msrb.mxu0 %v8301_v14 }
  0xde   : > { %v1082_v23 = vmul.f32 %v1050_v21, %v9211_v20  ;;  %v860_v24 = vadd.f32 2.0, %v8528_v19  ;;  %v578_v20 = vld [vmem:[%s9102_s13 + $0xc0] sm:$0xff] }
  0xdf   : > { %8531 = vpow2.f32 %v803_v22  ;;  %v598_v40 = vpack.c.bf16 %v579_v33, %v578_v20  ;;  %v599_v22 = vpack.c.bf16 %v581_v13, %v580_v12  ;;  %v8296_v12 = vld [vmem:[%s12816_s3 + $0xc0] sm:$0xff] }
  0xe0   : > { %v1114_v25 = vpack.c.bf16 %v1082_v23, %v1082_v23  ;;  %v892_v26 = vmul.f32 %v8528_v19, %v860_v24  ;;  %v696_v27 = vpop.f32.mrf.mxu0 }
  0xe1   : > { %v9260_v28 = vadd.f32 %v9158_v47, %v696_v27  ;;  %v8251_v44 = vld [vmem:[#allocation2 + $0x34] sm:$0xf]  ;;  %v8300_v27 = vld [vmem:[%s12816_s3 + $0xe0] sm:$0xff] }
  0xe2   : > { %v8530_v29 = vpop.eup %8529  ;;  %1152 = vst [vmem:[#allocation2 + $0x40] sm:$0xf] %v1114_v25  ;;  %v924_v30 = vadd.f32 2.0, %v892_v26  ;;  %v7062_v46 = vld [vmem:[#allocation2 + $0x48] sm:$0xf]  ;;  %2390 = vmatpush.bf16.msrb.mxu0 %v8300_v27 }
  0xe3   : > { %1190 = vst [vmem:[#allocation2 + $0x54] sm:$0xf] %v1114_v25  ;;  %v987_v31 = vmul.f32 %v8530_v29, %v891_v6  ;;  %v766_v32 = vmin.f32 %v9260_v28, 20.0  ;;  %v7046_v50 = vld [vmem:[#allocation2 + $0x20] sm:$0xf]  ;;  %vm1022_vm7 = vcmp.gt.f32.partialorder %v9260_v28, 20.0 }
  0xe4   : > { %1225 = vst [vmem:[#allocation2 + $0x2c] sm:$0xf] %v1114_v25  ;;  %8533 = vrcp.f32 %v924_v30  ;;  %v8309_v27 = vld [vmem:[%s12816_s3 + $0x128] sm:$0xff] }
  0xe5   : > { %v8532_v34 = vpop.eup %8531  ;;  %v1051_v35 = vsel %vm1019_vm4, 1.0, %v987_v31  ;;  %v805_v36 = vmul.f32 1.442695, %v766_v32  ;;  %2478 = vmatpush.bf16.msrb.mxu1 %v8309_v27 }
  0xe6   : > { %v1083_v37 = vmul.f32 %v1051_v35, %v9225_v38  ;;  %v861_v39 = vadd.f32 2.0, %v8532_v34 }
  0xe7   : > { %8535 = vpow2.f32 %v805_v36 }
  0xe8   : > { %v1115_v41 = vpack.c.bf16 %v1083_v37, %v1083_v37  ;;  %v893_v42 = vmul.f32 %v8532_v34, %v861_v39  ;;  %v699_v43 = vpop.f32.mrf.mxu0 }
  0xe9   : > { %v9268_v45 = vadd.f32 %v9158_v47, %v699_v43  ;;  %v7052_v49 = vld [vmem:[#allocation2 + $0x3c] sm:$0xf0] }
  0xea   : > { %v8534_v51 = vpop.eup %8533  ;;  %1153 = vst [vmem:[#allocation2 + $0x4c] sm:$0xf] %v1115_v41  ;;  %v925_v52 = vadd.f32 2.0, %v893_v42  ;;  %v8255_v53 = vld [vmem:[#allocation2 + $0x50] sm:$0xf0]  ;;  %v9270_v54 = vor.u32 %v8251_v44, %v7052_v49 }
  0xeb   : > { %1191 = vst [vmem:[#allocation2 + $0x60] sm:$0xf] %v1115_v41  ;;  %v988_v38 = vmul.f32 %v8534_v51, %v892_v26  ;;  %v767_v55 = vmin.f32 %v9268_v45, 20.0  ;;  %738 = vmatmul.bf16.gmra.mxu0 %v598_v40  ;;  %v9273_v57 = vor.u32 %v8255_v53, %v7062_v46  ;;  %v8250_v58 = vld [vmem:[#allocation2 + $0x28] sm:$0xf0]  ;;  %v8298_v53 = vld [vmem:[%s12816_s3 + $0xd0] sm:$0xff] }
  0xec   : > { %1226 = vst [vmem:[#allocation2 + $0x38] sm:$0xf] %v1115_v41  ;;  %8537 = vrcp.f32 %v925_v52  ;;  %1917 = vmatmul.bf16.gmra.mxu2 %v9270_v54  ;;  %v9280_v61 = vor.u32 %v8250_v58, %v7046_v50  ;;  %v8299_v41 = vld [vmem:[%s12816_s3 + $0xd8] sm:$0xff]  ;;  %vm1023_vm8 = vcmp.gt.f32.partialorder %v9268_v45, 20.0 }
  0xed   : > { %v8536_v62 = vpop.eup %8535  ;;  %v1052_v63 = vsel %vm1020_vm5, 1.0, %v988_v38  ;;  %v807_v0 = vmul.f32 1.442695, %v767_v55  ;;  %1833 = vmatmul.bf16.gmra.mxu1 %v9273_v57  ;;  %2391 = vmatpush.bf16.msrb.mxu0 %v8299_v41 }
  0xee   : > { %12956 = vst [vmem:[#allocation3_spill] sm:$0xff] %v9280_v61  ;;  %v1084_v1 = vmul.f32 %v1052_v63, %v9240_v56  ;;  %v862_v2 = vadd.f32 2.0, %v8536_v62  ;;  %2001 = vmatmul.bf16.vlgmr.msra.gmra.mxu3 %v9280_v61  ;;  %v8297_v63 = vld [vmem:[%s12816_s3 + $0xc8] sm:$0xff] }
  0xef   : > { %8539 = vpow2.f32 %v807_v0 }
  0xf0   : > { %v1116_v3 = vpack.c.bf16 %v1084_v1, %v1084_v1  ;;  %v894_v4 = vmul.f32 %v8536_v62, %v862_v2  ;;  %v701_v5 = vpop.f32.mrf.mxu0  ;;  %v583_v62 = vld [vmem:[%s9102_s13 + $0xe8] sm:$0xff] }
  0xf1   : > { %v9289_v6 = vadd.f32 %v9158_v47, %v701_v5  ;;  %v8254_v26 = vld [vmem:[#allocation2 + $0x4c] sm:$0xf]  ;;  %2392 = vmatpush.bf16.msrb.mxu0 %v8298_v53  ;;  %v600_v5 = vpack.c.bf16 %v583_v62, %v582_v59 }
  0xf2   : > { %v8538_v7 = vpop.eup %8537  ;;  %1154 = vst [vmem:[#allocation2 + $0x58] sm:$0xf] %v1116_v3  ;;  %v926_v10 = vadd.f32 2.0, %v894_v4  ;;  %v7074_v30 = vld [vmem:[#allocation2 + $0x60] sm:$0xf] }
  0xf3   : > { %1192 = vst [vmem:[#allocation2 + $0x6c] sm:$0xf] %v1116_v3  ;;  %v989_v11 = vmul.f32 %v8538_v7, %v893_v42  ;;  %v768_v56 = vmin.f32 %v9289_v6, 20.0  ;;  %v7058_v32 = vld [vmem:[#allocation2 + $0x38] sm:$0xf]  ;;  %vm1024_vm9 = vcmp.gt.f32.partialorder %v9289_v6, 20.0 }
  0xf4   : > { %1227 = vst [vmem:[#allocation2 + $0x44] sm:$0xf] %v1116_v3  ;;  %8541 = vrcp.f32 %v926_v10 }
  0xf5   : > { %v8540_v15 = vpop.eup %8539  ;;  %v1053_v9 = vsel %vm1021_vm6, 1.0, %v989_v11  ;;  %v809_v17 = vmul.f32 1.442695, %v768_v56  ;;  %2393 = vmatpush.bf16.msrb.mxu0 %v8297_v63 }
  0xf6   : > { %v1085_v19 = vmul.f32 %v1053_v9, %v9248_v8  ;;  %v863_v21 = vadd.f32 2.0, %v8540_v15 }
  0xf7   : > { %8543 = vpow2.f32 %v809_v17 }
  0xf8   : > { %v1117_v23 = vpack.c.bf16 %v1085_v19, %v1085_v19  ;;  %v895_v24 = vmul.f32 %v8540_v15, %v863_v21  ;;  %v704_v25 = vpop.f32.mrf.mxu0 }
  0xf9   : > { %v9303_v29 = vadd.f32 %v9158_v47, %v704_v25  ;;  %v7064_v31 = vld [vmem:[#allocation2 + $0x54] sm:$0xf0]  ;;  %2394 = vmatpush.bf16.msrb.mxu0 %v8296_v12 }
  0xfa   : > { %v8542_v20 = vpop.eup %8541  ;;  %1155 = vst [vmem:[#allocation2 + $0x64] sm:$0xf] %v1117_v23  ;;  %v927_v8 = vadd.f32 2.0, %v895_v24  ;;  %v8258_v33 = vld [vmem:[#allocation2 + $0x68] sm:$0xf0]  ;;  %v9305_v34 = vor.u32 %v8254_v26, %v7064_v31 }
  0xfb   : > { %1193 = vst [vmem:[#allocation2 + $0x78] sm:$0xf] %v1117_v23  ;;  %v990_v35 = vmul.f32 %v8542_v20, %v894_v4  ;;  %v769_v36 = vmin.f32 %v9303_v29, 20.0  ;;  %743 = vmatmul.bf16.gmra.mxu0 %v599_v22  ;;  %v9308_v37 = vor.u32 %v8258_v33, %v7074_v30  ;;  %v8253_v39 = vld [vmem:[#allocation2 + $0x40] sm:$0xf0]  ;;  %vm1025_vm10 = vcmp.gt.f32.partialorder %v9303_v29, 20.0 }
  0xfc   : > { %1228 = vst [vmem:[#allocation2 + $0x50] sm:$0xf] %v1117_v23  ;;  %8545 = vrcp.f32 %v927_v8  ;;  %1922 = vmatmul.bf16.gmra.mxu2 %v9305_v34  ;;  %v9312_v40 = vor.u32 %v8253_v39, %v7058_v32 }
  0xfd   : > { %v8544_v42 = vpop.eup %8543  ;;  %v1054_v43 = vsel %vm1022_vm7, 1.0, %v990_v35  ;;  %v811_v44 = vmul.f32 1.442695, %v769_v36  ;;  %1838 = vmatmul.bf16.gmra.mxu1 %v9308_v37 }
  0xfe   : > { %12957 = vst [vmem:[#allocation4_spill] sm:$0xff] %v9312_v40  ;;  %v1086_v46 = vmul.f32 %v1054_v43, %v9260_v28  ;;  %v864_v49 = vadd.f32 2.0, %v8544_v42  ;;  %2006 = vmatmul.bf16.gmra.mxu3 %v9312_v40 }
  0xff   : > { %8547 = vpow2.f32 %v811_v44  ;;  %v584_v44 = vld [vmem:[%s9102_s13 + $0xf0] sm:$0xff] }
 0x100   : > { %v1118_v50 = vpack.c.bf16 %v1086_v46, %v1086_v46  ;;  %v896_v51 = vmul.f32 %v8544_v42, %v864_v49  ;;  %v706_v52 = vpop.f32.mrf.mxu0  ;;  %v585_v46 = vld [vmem:[%s9102_s13 + $0xf8] sm:$0xff] }
 0x101   : > { %v9324_v38 = vadd.f32 %v9158_v47, %v706_v52  ;;  %v8257_v56 = vld [vmem:[#allocation2 + $0x64] sm:$0xf] }
 0x102   : > { %v8546_v55 = vpop.eup %8545  ;;  %1156 = vst [vmem:[#allocation2 + $0x70] sm:$0xf] %v1118_v50  ;;  %v928_v28 = vadd.f32 2.0, %v896_v51  ;;  %v7086_v14 = vld [vmem:[#allocation2 + $0x78] sm:$0xf] }
 0x103   : > { %1194 = vst [vmem:[#allocation2 + $0x84] sm:$0xf] %v1118_v50  ;;  %v991_v58 = vmul.f32 %v8546_v55, %v895_v24  ;;  %v770_v60 = vmin.f32 %v9324_v38, 20.0  ;;  %v7070_v9 = vld [vmem:[#allocation2 + $0x50] sm:$0xf]  ;;  %v601_v55 = vpack.c.bf16 %v585_v46, %v584_v44  ;;  %vm1026_vm11 = vcmp.gt.f32.partialorder %v9324_v38, 20.0 }
 0x104   : > { %1229 = vst [vmem:[#allocation2 + $0x5c] sm:$0xf] %v1118_v50  ;;  %8549 = vrcp.f32 %v928_v28 }
 0x105   : > { %v8548_v0 = vpop.eup %8547  ;;  %v1055_v1 = vsel %vm1023_vm8, 1.0, %v991_v58  ;;  %v813_v2 = vmul.f32 1.442695, %v770_v60 }
 0x106   : > { %v1087_v3 = vmul.f32 %v1055_v1, %v9268_v45  ;;  %v865_v4 = vadd.f32 2.0, %v8548_v0 }
 0x107   : > { %8551 = vpow2.f32 %v813_v2 }
 0x108   : > { %v1119_v7 = vpack.c.bf16 %v1087_v3, %v1087_v3  ;;  %v897_v10 = vmul.f32 %v8548_v0, %v865_v4  ;;  %v709_v11 = vpop.f32.mrf.mxu0 }
 0x109   : > { %v9338_v13 = vadd.f32 %v9158_v47, %v709_v11  ;;  %v7076_v15 = vld [vmem:[#allocation2 + $0x6c] sm:$0xf0] }
 0x10a   : > { %v8550_v17 = vpop.eup %8549  ;;  %1157 = vst [vmem:[#allocation2 + $0x7c] sm:$0xf] %v1119_v7  ;;  %v929_v45 = vadd.f32 2.0, %v897_v10  ;;  %v8261_v19 = vld [vmem:[#allocation2 + $0x80] sm:$0xf0]  ;;  %v9340_v21 = vor.u32 %v8257_v56, %v7076_v15 }
 0x10b   : > { %1195 = vst [vmem:[#allocation2 + $0x90] sm:$0xf] %v1119_v7  ;;  %v992_v22 = vmul.f32 %v8550_v17, %v896_v51  ;;  %v771_v23 = vmin.f32 %v9338_v13, 20.0  ;;  %748 = vmatmul.bf16.gmra.mxu0 %v600_v5  ;;  %v9343_v24 = vor.u32 %v8261_v19, %v7086_v14  ;;  %v8256_v25 = vld [vmem:[#allocation2 + $0x58] sm:$0xf0]  ;;  %vm1027_vm12 = vcmp.gt.f32.partialorder %v9338_v13, 20.0 }
 0x10c   : > { %1230 = vst [vmem:[#allocation2 + $0x68] sm:$0xf] %v1119_v7  ;;  %8553 = vrcp.f32 %v929_v45  ;;  %1927 = vmatmul.bf16.gmra.mxu2 %v9340_v21  ;;  %v9347_v26 = vor.u32 %v8256_v25, %v7070_v9 }
 0x10d   : > { %v8552_v30 = vpop.eup %8551  ;;  %v1056_v31 = vsel %vm1024_vm9, 1.0, %v992_v22  ;;  %v815_v32 = vmul.f32 1.442695, %v771_v23  ;;  %1843 = vmatmul.bf16.gmra.mxu1 %v9343_v24 }
 0x10e   : > { %12958 = vst [vmem:[#allocation5_spill] sm:$0xff] %v9347_v26  ;;  %v1088_v20 = vmul.f32 %v1056_v31, %v9289_v6  ;;  %v866_v8 = vadd.f32 2.0, %v8552_v30  ;;  %2011 = vmatmul.bf16.gmra.mxu3 %v9347_v26 }
 0x10f   : > { %8555 = vpow2.f32 %v815_v32 }
 0x110   : > { %v1120_v33 = vpack.c.bf16 %v1088_v20, %v1088_v20  ;;  %v898_v35 = vmul.f32 %v8552_v30, %v866_v8  ;;  %v711_v36 = vpop.f32.mrf.mxu0 }
 0x111   : > { %v9356_v39 = vadd.f32 %v9158_v47, %v711_v36  ;;  %v8260_v59 = vld [vmem:[#allocation2 + $0x7c] sm:$0xf] }
 0x112   : > { %v8554_v41 = vpop.eup %8553  ;;  %1158 = vst [vmem:[#allocation2 + $0x88] sm:$0xf] %v1120_v33  ;;  %v930_v42 = vadd.f32 2.0, %v898_v35  ;;  %v7098_v63 = vld [vmem:[#allocation2 + $0x90] sm:$0xf] }
 0x113   : > { %1196 = vst [vmem:[#allocation2 + $0x9c] sm:$0xf] %v1120_v33  ;;  %v993_v43 = vmul.f32 %v8554_v41, %v897_v10  ;;  %v772_v6 = vmin.f32 %v9356_v39, 20.0  ;;  %v7082_v1 = vld [vmem:[#allocation2 + $0x68] sm:$0xf]  ;;  %vm1028_vm13 = vcmp.gt.f32.partialorder %v9356_v39, 20.0 }
 0x114   : > { %1231 = vst [vmem:[#allocation2 + $0x74] sm:$0xf] %v1120_v33  ;;  %8557 = vrcp.f32 %v930_v42 }
 0x115   : > { %v8556_v49 = vpop.eup %8555  ;;  %v1057_v50 = vsel %vm1025_vm10, 1.0, %v993_v43  ;;  %v817_v51 = vmul.f32 1.442695, %v772_v6 }
 0x116   : > { %v1089_v52 = vmul.f32 %v1057_v50, %v9303_v29  ;;  %v867_v53 = vadd.f32 2.0, %v8556_v49 }
 0x117   : > { %8559 = vpow2.f32 %v817_v51 }
 0x118   : > { %v1121_v28 = vpack.c.bf16 %v1089_v52, %v1089_v52  ;;  %v899_v58 = vmul.f32 %v8556_v49, %v867_v53  ;;  %v714_v60 = vpop.f32.mrf.mxu0 }
 0x119   : > { %v9364_v62 = vadd.f32 %v9158_v47, %v714_v60  ;;  %v7088_v0 = vld [vmem:[#allocation2 + $0x84] sm:$0xf0]  ;;  %v8308_v60 = vld [vmem:[%s12816_s3 + $0x120] sm:$0xff] }
 0x11a   : > { %v8558_v2 = vpop.eup %8557  ;;  %1159 = vst [vmem:[#allocation2 + $0x94] sm:$0xf] %v1121_v28  ;;  %v931_v3 = vadd.f32 2.0, %v899_v58  ;;  %v8264_v4 = vld [vmem:[#allocation2 + $0x98] sm:$0xf0]  ;;  %v9366_v5 = vor.u32 %v8260_v59, %v7088_v0  ;;  %2479 = vmatpush.bf16.msrb.mxu1 %v8308_v60 }
 0x11b   : > { %1197 = vst [vmem:[#allocation2 + $0xa8] sm:$0xf] %v1121_v28  ;;  %v994_v29 = vmul.f32 %v8558_v2, %v898_v35  ;;  %v773_v7 = vmin.f32 %v9364_v62, 20.0  ;;  %753 = vmatmul.bf16.gmra.mxu0 %v601_v55  ;;  %v9369_v10 = vor.u32 %v8264_v4, %v7098_v63  ;;  %v8259_v11 = vld [vmem:[#allocation2 + $0x70] sm:$0xf0]  ;;  %vm1029_vm14 = vcmp.gt.f32.partialorder %v9364_v62, 20.0 }
 0x11c   : > { %1232 = vst [vmem:[#allocation2 + $0x80] sm:$0xf] %v1121_v28  ;;  %8561 = vrcp.f32 %v931_v3  ;;  %1932 = vmatmul.bf16.gmra.mxu2 %v9366_v5  ;;  %v9373_v56 = vor.u32 %v8259_v11, %v7082_v1 }
 0x11d   : > { %v8560_v12 = vpop.eup %8559  ;;  %v1058_v14 = vsel %vm1026_vm11, 1.0, %v994_v29  ;;  %v819_v15 = vmul.f32 1.442695, %v773_v7  ;;  %1848 = vmatmul.bf16.gmra.mxu1 %v9369_v10 }
 0x11e   : > { %12959 = vst [vmem:[#allocation6_spill] sm:$0xff] %v9373_v56  ;;  %v1090_v9 = vmul.f32 %v1058_v14, %v9324_v38  ;;  %v868_v17 = vadd.f32 2.0, %v8560_v12  ;;  %2016 = vmatmul.bf16.gmra.mxu3 %v9373_v56 }
 0x11f   : > { %8563 = vpow2.f32 %v819_v15 }
 0x120   : > { %v1122_v45 = vpack.c.bf16 %v1090_v9, %v1090_v9  ;;  %v900_v19 = vmul.f32 %v8560_v12, %v868_v17  ;;  %v716_v22 = vpop.f32.mrf.mxu0 }
 0x121   : > { %v9379_v23 = vadd.f32 %v9158_v47, %v716_v22  ;;  %v8263_v42 = vld [vmem:[#allocation2 + $0x94] sm:$0xf] }
 0x122   : > { %v8562_v25 = vpop.eup %8561  ;;  %1160 = vst [vmem:[#allocation2 + $0xa0] sm:$0xf] %v1122_v45  ;;  %v932_v27 = vadd.f32 2.0, %v900_v19  ;;  %v7110_v6 = vld [vmem:[#allocation2 + $0xa8] sm:$0xf] }
 0x123   : > { %1198 = vst [vmem:[#allocation2 + $0xb4] sm:$0xf] %v1122_v45  ;;  %v995_v30 = vmul.f32 %v8562_v25, %v899_v58  ;;  %v774_v31 = vmin.f32 %v9379_v23, 20.0  ;;  %v7094_v46 = vld [vmem:[#allocation2 + $0x80] sm:$0xf]  ;;  %vm1030_vm15 = vcmp.gt.f32.partialorder %v9379_v23, 20.0 }
 0x124   : > { %1233 = vst [vmem:[#allocation2 + $0x8c] sm:$0xf] %v1122_v45  ;;  %8565 = vrcp.f32 %v932_v27 }
 0x125   : > { %v8564_v38 = vpop.eup %8563  ;;  %v1059_v32 = vsel %vm1027_vm12, 1.0, %v995_v30  ;;  %v821_v20 = vmul.f32 1.442695, %v774_v31 }
 0x126   : > { %v1091_v8 = vmul.f32 %v1059_v32, %v9338_v13  ;;  %v869_v33 = vadd.f32 2.0, %v8564_v38 }
 0x127   : > { %8567 = vpow2.f32 %v821_v20 }
 0x128   : > { %v1123_v35 = vpack.c.bf16 %v1091_v8, %v1091_v8  ;;  %v901_v36 = vmul.f32 %v8564_v38, %v869_v33  ;;  %v719_v41 = vpop.f32.mrf.mxu0 }
 0x129   : > { %v9385_v43 = vadd.f32 %v9158_v47, %v719_v41  ;;  %v7100_v44 = vld [vmem:[#allocation2 + $0x9c] sm:$0xf0] }
 0x12a   : > { %v8566_v49 = vpop.eup %8565  ;;  %1161 = vst [vmem:[#allocation2 + $0xac] sm:$0xf] %v1123_v35  ;;  %v933_v50 = vadd.f32 2.0, %v901_v36  ;;  %v8267_v51 = vld [vmem:[#allocation2 + $0xb0] sm:$0xf0]  ;;  %v9387_v52 = vor.u32 %v8263_v42, %v7100_v44 }
 0x12b   : > { %1199 = vst [vmem:[#allocation2 + $0xc0] sm:$0xf] %v1123_v35  ;;  %v996_v13 = vmul.f32 %v8566_v49, %v900_v19  ;;  %v775_v53 = vmin.f32 %v9385_v43, 20.0  ;;  %2395 = vmatmul.bf16.vlgmr.msrb.gmra.mxu0 %v9160_v48  ;;  %v9391_v55 = vor.u32 %v8267_v51, %v7110_v6  ;;  %v8262_v28 = vld [vmem:[#allocation2 + $0x88] sm:$0xf0]  ;;  %vm1031_vm0 = vcmp.gt.f32.partialorder %v9385_v43, 20.0 }
 0x12c   : > { %1234 = vst [vmem:[#allocation2 + $0x98] sm:$0xf] %v1123_v35  ;;  %8569 = vrcp.f32 %v933_v50  ;;  %1937 = vmatmul.bf16.gmra.mxu2 %v9387_v52  ;;  %v9395_v58 = vor.u32 %v8262_v28, %v7094_v46 }
 0x12d   : > { %12960 = vst [vmem:[#allocation7_spill] sm:$0xff] %v9391_v55  ;;  %v8568_v59 = vpop.eup %8567  ;;  %v1060_v63 = vsel %vm1028_vm13, 1.0, %v996_v13  ;;  %v823_v0 = vmul.f32 1.442695, %v775_v53  ;;  %1853 = vmatmul.bf16.gmra.mxu1 %v9391_v55 }
 0x12e   : > { %12961 = vst [vmem:[#allocation8_spill] sm:$0xff] %v9395_v58  ;;  %v1092_v1 = vmul.f32 %v1060_v63, %v9356_v39  ;;  %v870_v2 = vadd.f32 2.0, %v8568_v59  ;;  %2021 = vmatmul.bf16.gmra.mxu3 %v9395_v58 }
 0x12f   : > { %8571 = vpow2.f32 %v823_v0 }
 0x130   : > { %v1124_v3 = vpack.c.bf16 %v1092_v1, %v1092_v1  ;;  %v902_v4 = vmul.f32 %v8568_v59, %v870_v2  ;;  %v721_v29 = vpop.f32.mrf.mxu0 }
 0x131   : > { %v9404_v7 = vadd.f32 %v9158_v47, %v721_v29  ;;  %v8266_v30 = vld [vmem:[#allocation2 + $0xac] sm:$0xf] }
 0x132   : > { %v8570_v11 = vpop.eup %8569  ;;  %1162 = vst [vmem:[#allocation2 + $0xb8] sm:$0xf] %v1124_v3  ;;  %v934_v12 = vadd.f32 2.0, %v902_v4  ;;  %v7122_v38 = vld [vmem:[#allocation2 + $0xc0] sm:$0xf] }
 0x133   : > { %1200 = vst [vmem:[#allocation2 + $0xcc] sm:$0xf] %v1124_v3  ;;  %v997_v14 = vmul.f32 %v8570_v11, %v901_v36  ;;  %v776_v15 = vmin.f32 %v9404_v7, 20.0  ;;  %v7106_v20 = vld [vmem:[#allocation2 + $0x98] sm:$0xf]  ;;  %vm1032_vm1 = vcmp.gt.f32.partialorder %v9404_v7, 20.0 }
 0x134   : > { %1235 = vst [vmem:[#allocation2 + $0xa4] sm:$0xf] %v1124_v3  ;;  %8573 = vrcp.f32 %v934_v12 }
 0x135   : > { %v8572_v39 = vpop.eup %8571  ;;  %v1061_v9 = vsel %vm1029_vm14, 1.0, %v997_v14  ;;  %v825_v17 = vmul.f32 1.442695, %v776_v15  ;;  %v9431_v14 = vpop.f32.mrf.mxu1 }
 0x136   : > { %v1093_v45 = vmul.f32 %v1061_v9, %v9364_v62  ;;  %v871_v19 = vadd.f32 2.0, %v8572_v39  ;;  %v9436_v9 = vld [vmem:[%s12815_s2] ss:$0 sm:$0xff] }
 0x137   : > { %8575 = vpow2.f32 %v825_v17 }
 0x138   : > { %v1125_v22 = vpack.c.bf16 %v1093_v45, %v1093_v45  ;;  %v903_v25 = vmul.f32 %v8572_v39, %v871_v19  ;;  %v724_v27 = vpop.f32.mrf.mxu0 }
 0x139   : > { %v9410_v31 = vadd.f32 %v9158_v47, %v724_v27  ;;  %v7112_v32 = vld [vmem:[#allocation2 + $0xb4] sm:$0xf0] }
 0x13a   : > { %v8574_v8 = vpop.eup %8573  ;;  %1163 = vst [vmem:[#allocation2 + $0xc4] sm:$0xf] %v1125_v22  ;;  %v935_v33 = vadd.f32 2.0, %v903_v25  ;;  %v8270_v35 = vld [vmem:[#allocation2 + $0xc8] sm:$0xf0]  ;;  %v9412_v36 = vor.u32 %v8266_v30, %v7112_v32 }
 0x13b   : > { %1201 = vst [vmem:[#allocation2 + $0xd8] sm:$0xf] %v1125_v22  ;;  %v998_v62 = vmul.f32 %v8574_v8, %v902_v4  ;;  %v777_v41 = vmin.f32 %v9410_v31, 20.0  ;;  %2400 = vmatmul.bf16.gmra.mxu0 %v9253_v18  ;;  %v9416_v42 = vor.u32 %v8270_v35, %v7122_v38  ;;  %v8265_v6 = vld [vmem:[#allocation2 + $0xa0] sm:$0xf0]  ;;  %v8307_v35 = vld [vmem:[%s12816_s3 + $0x118] sm:$0xff] }
 0x13c   : > { %1236 = vst [vmem:[#allocation2 + $0xb0] sm:$0xf] %v1125_v22  ;;  %8577 = vrcp.f32 %v935_v33  ;;  %1942 = vmatmul.bf16.gmra.mxu2 %v9412_v36  ;;  %v9420_v44 = vor.u32 %v8265_v6, %v7106_v20  ;;  %2480 = vmatpush.bf16.msrb.mxu1 %v8307_v35  ;;  %vm1033_vm2 = vcmp.gt.f32.partialorder %v9410_v31, 20.0 }
 0x13d   : > { %12962 = vst [vmem:[#allocation9_spill] sm:$0xff] %v9416_v42  ;;  %v8576_v46 = vpop.eup %8575  ;;  %v1062_v49 = vsel %vm1030_vm15, 1.0, %v998_v62  ;;  %v827_v50 = vmul.f32 1.442695, %v777_v41  ;;  %1858 = vmatmul.bf16.gmra.mxu1 %v9416_v42 }
 0x13e   : > { %12963 = vst [vmem:[#allocation10_spill] sm:$0xff] %v9420_v44  ;;  %v1094_v51 = vmul.f32 %v1062_v49, %v9379_v23  ;;  %v872_v13 = vadd.f32 2.0, %v8576_v46  ;;  %2026 = vmatmul.bf16.gmra.mxu3 %v9420_v44 }
 0x13f   : > { %8579 = vpow2.f32 %v827_v50 }
 0x140   : > { %v1126_v53 = vpack.c.bf16 %v1094_v51, %v1094_v51  ;;  %v904_v28 = vmul.f32 %v8576_v46, %v872_v13  ;;  %v726_v60 = vpop.f32.mrf.mxu0 }
 0x141   : > { %v9426_v59 = vadd.f32 %v9158_v47, %v726_v60  ;;  %v8269_v39 = vld [vmem:[#allocation2 + $0xc4] sm:$0xf] }
 0x142   : > { %v8578_v63 = vpop.eup %8577  ;;  %1164 = vst [vmem:[#allocation2 + $0xd0] sm:$0xf] %v1126_v53  ;;  %v936_v0 = vadd.f32 2.0, %v904_v28  ;;  %v7134_v45 = vld [vmem:[#allocation2 + $0xd8] sm:$0xf] }
 0x143   : > { %1202 = vst [vmem:[#allocation2 + $0xe4] sm:$0xf] %v1126_v53  ;;  %v999_v1 = vmul.f32 %v8578_v63, %v903_v25  ;;  %v778_v2 = vmin.f32 %v9426_v59, 20.0  ;;  %v7118_v22 = vld [vmem:[#allocation2 + $0xb0] sm:$0xf]  ;;  %v9460_v63 = vpop.f32.mrf.mxu1  ;;  %vm1034_vm3 = vcmp.gt.f32.partialorder %v9426_v59, 20.0 }
 0x144   : > { %1237 = vst [vmem:[#allocation2 + $0xbc] sm:$0xf] %v1126_v53  ;;  %8581 = vrcp.f32 %v936_v0 }
 0x145   : > { %v8580_v23 = vpop.eup %8579  ;;  %v1063_v3 = vsel %vm1031_vm0, 1.0, %v999_v1  ;;  %v829_v4 = vmul.f32 1.442695, %v778_v2 }
 0x146   : > { %v1095_v29 = vmul.f32 %v1063_v3, %v9385_v43  ;;  %v873_v11 = vadd.f32 2.0, %v8580_v23 }
 0x147   : > { %8583 = vpow2.f32 %v829_v4 }
 0x148   : > { %v1127_v47 = vpack.c.bf16 %v1095_v29, %v1095_v29  ;;  %v905_v12 = vmul.f32 %v8580_v23, %v873_v11  ;;  %v729_v15 = vpop.f32.mrf.mxu0 }
 0x149   : > { %v9439_v17 = vadd.f32 %v9436_v9, %v729_v15  ;;  %v7124_v19 = vld [vmem:[#allocation2 + $0xcc] sm:$0xf0] }
 0x14a   : > { %v8582_v43 = vpop.eup %8581  ;;  %1165 = vst [vmem:[#allocation2 + $0xdc] sm:$0xf] %v1127_v47  ;;  %v937_v25 = vadd.f32 2.0, %v905_v12  ;;  %v8273_v27 = vld [vmem:[#allocation2 + $0xe0] sm:$0xf0]  ;;  %v9441_v30 = vor.u32 %v8269_v39, %v7124_v19 }
 0x14b   : > { %1203 = vst [vmem:[#allocation2 + $0xf0] sm:$0xf] %v1127_v47  ;;  %v1000_v38 = vmul.f32 %v8582_v43, %v904_v28  ;;  %v779_v32 = vmin.f32 %v9439_v17, 20.0  ;;  %2405 = vmatmul.bf16.gmra.mxu0 %v9273_v57  ;;  %v9445_v20 = vor.u32 %v8273_v27, %v7134_v45  ;;  %v8268_v8 = vld [vmem:[#allocation2 + $0xb8] sm:$0xf0]  ;;  %vm1035_vm4 = vcmp.gt.f32.partialorder %v9439_v17, 20.0 }
 0x14c   : > { %1238 = vst [vmem:[#allocation2 + $0xc8] sm:$0xf] %v1127_v47  ;;  %8585 = vrcp.f32 %v937_v25  ;;  %1947 = vmatmul.bf16.gmra.mxu2 %v9441_v30  ;;  %v9449_v33 = vor.u32 %v8268_v8, %v7118_v22 }
 0x14d   : > { %12964 = vst [vmem:[#allocation11_spill] sm:$0xff] %v9445_v20  ;;  %v8584_v62 = vpop.eup %8583  ;;  %v1064_v41 = vsel %vm1032_vm1, 1.0, %v1000_v38  ;;  %v831_v6 = vmul.f32 1.442695, %v779_v32  ;;  %1863 = vmatmul.bf16.gmra.mxu1 %v9445_v20 }
 0x14e   : > { %12965 = vst [vmem:[#allocation12_spill] sm:$0xff] %v9449_v33  ;;  %v1096_v46 = vmul.f32 %v1064_v41, %v9404_v7  ;;  %v874_v49 = vadd.f32 2.0, %v8584_v62  ;;  %2031 = vmatmul.bf16.gmra.mxu3 %v9449_v33 }
 0x14f   : > { %8587 = vpow2.f32 %v831_v6 }
 0x150   : > { %v1128_v50 = vpack.c.bf16 %v1096_v46, %v1096_v46  ;;  %v906_v51 = vmul.f32 %v8584_v62, %v874_v49  ;;  %v731_v13 = vpop.f32.mrf.mxu0 }
 0x151   : > { %v9458_v53 = vadd.f32 %v9436_v9, %v731_v13  ;;  %v8272_v15 = vld [vmem:[#allocation2 + $0xdc] sm:$0xf] }
 0x152   : > { %v8586_v28 = vpop.eup %8585  ;;  %1166 = vst [vmem:[#allocation2 + $0xe8] sm:$0xf] %v1128_v50  ;;  %v938_v60 = vadd.f32 2.0, %v906_v51 }
 0x153   : > { %1204 = vst [vmem:[#allocation2 + $0xfc] sm:$0xf] %v1128_v50  ;;  %v1001_v0 = vmul.f32 %v8586_v28, %v905_v12  ;;  %v780_v7 = vmin.f32 %v9458_v53, 20.0  ;;  %v7146_v12 = vld [vmem:[#allocation2 + $0xf0] sm:$0xf]  ;;  %vm1036_vm5 = vcmp.gt.f32.partialorder %v9458_v53, 20.0 }
 0x154   : > { %1239 = vst [vmem:[#allocation2 + $0xd4] sm:$0xf] %v1128_v50  ;;  %8589 = vrcp.f32 %v938_v60  ;;  %v7130_v19 = vld [vmem:[#allocation2 + $0xc8] sm:$0xf] }
 0x155   : > { %v8588_v1 = vpop.eup %8587  ;;  %v1065_v2 = vsel %vm1033_vm2, 1.0, %v1001_v0  ;;  %v833_v23 = vmul.f32 1.442695, %v780_v7 }
 0x156   : > { %v1097_v3 = vmul.f32 %v1065_v2, %v9410_v31  ;;  %v875_v4 = vadd.f32 2.0, %v8588_v1 }
 0x157   : > { %8591 = vpow2.f32 %v833_v23 }
 0x158   : > { %v1129_v29 = vpack.c.bf16 %v1097_v3, %v1097_v3  ;;  %v907_v11 = vmul.f32 %v8588_v1, %v875_v4  ;;  %v734_v47 = vpop.f32.mrf.mxu0 }
 0x159   : > { %v9466_v39 = vadd.f32 %v9436_v9, %v734_v47  ;;  %v7136_v45 = vld [vmem:[#allocation2 + $0xe4] sm:$0xf0] }
 0x15a   : > { %v8590_v22 = vpop.eup %8589  ;;  %1167 = vst [vmem:[#allocation2 + $0xf4] sm:$0xf] %v1129_v29  ;;  %v939_v43 = vadd.f32 2.0, %v907_v11  ;;  %v9468_v25 = vpop.f32.mrf.mxu1  ;;  %v8276_v27 = vld [vmem:[#allocation2 + $0xf8] sm:$0xf0]  ;;  %v9470_v38 = vor.u32 %v8272_v15, %v7136_v45 }
 0x15b   : > { %1205 = vst [vmem:[#allocation2 + $0x108] sm:$0xf] %v1129_v29  ;;  %v1002_v31 = vmul.f32 %v8590_v22, %v906_v51  ;;  %v781_v32 = vmin.f32 %v9466_v39, 20.0  ;;  %2410 = vmatmul.bf16.gmra.mxu0 %v9308_v37  ;;  %v9474_v8 = vor.u32 %v8276_v27, %v7146_v12  ;;  %v8271_v35 = vld [vmem:[#allocation2 + $0xd0] sm:$0xf0]  ;;  %vm1037_vm6 = vcmp.gt.f32.partialorder %v9466_v39, 20.0 }
 0x15c   : > { %1240 = vst [vmem:[#allocation2 + $0xe0] sm:$0xf] %v1129_v29  ;;  %8593 = vrcp.f32 %v939_v43  ;;  %1952 = vmatmul.bf16.gmra.mxu2 %v9470_v38  ;;  %v9478_v62 = vor.u32 %v8271_v35, %v7130_v19 }
 0x15d   : > { %v8592_v41 = vpop.eup %8591  ;;  %v1066_v6 = vsel %vm1034_vm3, 1.0, %v1002_v31  ;;  %v835_v46 = vmul.f32 1.442695, %v781_v32  ;;  %1868 = vmatmul.bf16.gmra.mxu1 %v9474_v8 }
 0x15e   : > { %12966 = vst [vmem:[#allocation13_spill] sm:$0xff] %v9478_v62  ;;  %v1098_v49 = vmul.f32 %v1066_v6, %v9426_v59  ;;  %v876_v50 = vadd.f32 2.0, %v8592_v41  ;;  %2036 = vmatmul.bf16.gmra.mxu3 %v9478_v62 }
 0x15f   : > { %8595 = vpow2.f32 %v835_v46  ;;  %v1913_v51 = vpop.f32.mrf.mxu2 }
 0x160   : > { %v1130_v13 = vpack.c.bf16 %v1098_v49, %v1098_v49  ;;  %v908_v28 = vmul.f32 %v8592_v41, %v876_v50  ;;  %v9484_v60 = vadd.f32 %v1913_v51, %v9431_v14  ;;  %v736_v0 = vpop.f32.mrf.mxu0 }
 0x161   : > { %v9487_v7 = vadd.f32 %v9436_v9, %v736_v0  ;;  %v8275_v43 = vld [vmem:[#allocation2 + $0xf4] sm:$0xf] }
 0x162   : > { %v8594_v1 = vpop.eup %8593  ;;  %1168 = vst [vmem:[#allocation2 + $0x100] sm:$0xf] %v1130_v13  ;;  %v940_v2 = vadd.f32 2.0, %v908_v28  ;;  %v9489_v23 = vpop.f32.mrf.mxu1  ;;  %v7158_v31 = vld [vmem:[#allocation2 + $0x108] sm:$0xf] }
 0x163   : > { %1206 = vst [vmem:[#allocation2 + $0x114] sm:$0xf] %v1130_v13  ;;  %v1003_v59 = vmul.f32 %v8594_v1, %v907_v11  ;;  %v782_v3 = vmin.f32 %v9487_v7, 20.0  ;;  %v7142_v35 = vld [vmem:[#allocation2 + $0xe0] sm:$0xf]  ;;  %v8306_v1 = vld [vmem:[%s12816_s3 + $0x110] sm:$0xff] }
 0x164   : > { %1241 = vst [vmem:[#allocation2 + $0xec] sm:$0xf] %v1130_v13  ;;  %8597 = vrcp.f32 %v940_v2  ;;  %2481 = vmatpush.bf16.msrb.mxu1 %v8306_v1  ;;  %vm1038_vm8 = vcmp.gt.f32.partialorder %v9487_v7, 20.0 }
 0x165   : > { %v8596_v4 = vpop.eup %8595  ;;  %v1067_v14 = vsel %vm1035_vm4, 1.0, %v1003_v59  ;;  %v837_v29 = vmul.f32 1.442695, %v782_v3 }
 0x166   : > { %v1099_v47 = vmul.f32 %v1067_v14, %v9439_v17  ;;  %v877_v15 = vadd.f32 2.0, %v8596_v4 }
 0x167   : > { %8599 = vpow2.f32 %v837_v29  ;;  %v1915_v12 = vpop.f32.mrf.mxu2 }
 0x168   : > { %v1131_v45 = vpack.c.bf16 %v1099_v47, %v1099_v47  ;;  %v909_v19 = vmul.f32 %v8596_v4, %v877_v15  ;;  %v9495_v22 = vadd.f32 %v1915_v12, %v9460_v63  ;;  %v739_v11 = vpop.f32.mrf.mxu0 }
 0x169   : > { %v9498_v27 = vadd.f32 %v9436_v9, %v739_v11  ;;  %v7148_v32 = vld [vmem:[#allocation2 + $0xfc] sm:$0xf0] }
 0x16a   : > { %v8598_v41 = vpop.eup %8597  ;;  %1169 = vst [vmem:[#allocation2 + $0x10c] sm:$0xf] %v1131_v45  ;;  %v941_v6 = vadd.f32 2.0, %v909_v19  ;;  %v9500_v17 = vpop.f32.mrf.mxu1  ;;  %v8279_v46 = vld [vmem:[#allocation2 + $0x110] sm:$0xf0]  ;;  %v9502_v49 = vor.u32 %v8275_v43, %v7148_v32 }
 0x16b   : > { %1207 = vst [vmem:[#allocation2 + $0x120] sm:$0xf] %v1131_v45  ;;  %v1004_v50 = vmul.f32 %v8598_v41, %v908_v28  ;;  %v783_v63 = vmin.f32 %v9498_v27, 20.0  ;;  %2415 = vmatmul.bf16.gmra.mxu0 %v9343_v24  ;;  %v9506_v51 = vor.u32 %v8279_v46, %v7158_v31  ;;  %v8274_v13 = vld [vmem:[#allocation2 + $0xe8] sm:$0xf0]  ;;  %vm1039_vm9 = vcmp.gt.f32.partialorder %v9498_v27, 20.0 }
 0x16c   : > { %12967 = vst [vmem:[#allocation14_spill] sm:$0xff] %v9502_v49  ;;  %8601 = vrcp.f32 %v941_v6  ;;  %1957 = vmatmul.bf16.gmra.mxu2 %v9502_v49  ;;  %v9510_v0 = vor.u32 %v8274_v13, %v7142_v35  ;;  %v233_v35 = vlaneseq }
 0x16d   : > { %1242 = vst [vmem:[#allocation2 + $0xf8] sm:$0xf] %v1131_v45  ;;  %v8600_v28 = vpop.eup %8599  ;;  %v1068_v2 = vsel %vm1036_vm5, 1.0, %v1004_v50  ;;  %v839_v59 = vmul.f32 1.442695, %v783_v63  ;;  %1873 = vmatmul.bf16.gmra.mxu1 %v9506_v51 }
 0x16e   : > { %12968 = vst [vmem:[#allocation15_spill] sm:$0xff] %v9510_v0  ;;  %v1100_v3 = vmul.f32 %v1068_v2, %v9458_v53  ;;  %v878_v4 = vadd.f32 2.0, %v8600_v28  ;;  %2041 = vmatmul.bf16.gmra.mxu3 %v9510_v0  ;;  %v9532_v1 = vshrl.u32 %v233_v35, 7 }
 0x16f   : > { %8603 = vpow2.f32 %v839_v59  ;;  %v1918_v14 = vpop.f32.mrf.mxu2 }
 0x170   : > { %v1132_v29 = vpack.c.bf16 %v1100_v3, %v1100_v3  ;;  %v910_v47 = vmul.f32 %v8600_v28, %v878_v4  ;;  %v9519_v15 = vadd.f32 %v1918_v14, %v9468_v25  ;;  %v741_v12 = vpop.f32.mrf.mxu0  ;;  %vm12872_vm7 = vcmp.lt.s32.totalorder %v9532_v1, 1 }
 0x171   : > { %v2002_v45 = vpop.f32.mrf.mxu3  ;;  %v9522_v11 = vadd.f32 %v9436_v9, %v741_v12  ;;  %v8278_v3 = vld [vmem:[#allocation2 + $0x10c] sm:$0xf] }
 0x172   : > { %v8602_v43 = vpop.eup %8601  ;;  %1170 = vst [vmem:[#allocation2 + $0x118] sm:$0xf] %v1132_v29  ;;  %v942_v31 = vadd.f32 2.0, %v910_v47  ;;  %v9525_v53 = vadd.f32 %v2002_v45, %v9484_v60  ;;  %v9527_v32 = vpop.f32.mrf.mxu1 }
 0x173   : > { %1208 = vst [vmem:[#allocation2 + $0x12c] sm:$0xf] %v1132_v29  ;;  %v1005_v41 = vmul.f32 %v8602_v43, %v909_v19  ;;  %v784_v6 = vmin.f32 %v9522_v11, 20.0  ;;  %vm1040_vm10 = vcmp.gt.f32.partialorder %v9522_v11, 20.0 }
 0x174   : > { %12969 = vst [vmem:[#allocation16_spill] sm:$0xff] %v9525_v53  ;;  %8605 = vrcp.f32 %v942_v31  ;;  %v7154_v45 = vld [vmem:[#allocation2 + $0xf8] sm:$0xf] }
 0x175   : > { %1243 = vst [vmem:[#allocation2 + $0x104] sm:$0xf] %v1132_v29  ;;  %v8604_v25 = vpop.eup %8603  ;;  %v1069_v46 = vsel %vm1037_vm6, 1.0, %v1005_v41  ;;  %v841_v50 = vmul.f32 1.442695, %v784_v6 }
 0x176   : > { %v1101_v63 = vmul.f32 %v1069_v46, %v9466_v39  ;;  %v879_v13 = vadd.f32 2.0, %v8604_v25  ;;  %v7170_v29 = vld [vmem:[#allocation2 + $0x120] sm:$0xf] }
 0x177   : > { %8607 = vpow2.f32 %v841_v50  ;;  %v1920_v60 = vpop.f32.mrf.mxu2 }
 0x178   : > { %v1133_v28 = vpack.c.bf16 %v1101_v63, %v1101_v63  ;;  %v911_v2 = vmul.f32 %v8604_v25, %v879_v13  ;;  %v9535_v19 = vadd.f32 %v1920_v60, %v9489_v23  ;;  %v744_v59 = vpop.f32.mrf.mxu0 }
 0x179   : > { %v2004_v4 = vpop.f32.mrf.mxu3  ;;  %v9538_v14 = vadd.f32 %v9436_v9, %v744_v59  ;;  %v7160_v12 = vld [vmem:[#allocation2 + $0x114] sm:$0xf0] }
 0x17a   : > { %v8606_v39 = vpop.eup %8605  ;;  %1171 = vst [vmem:[#allocation2 + $0x124] sm:$0xf] %v1133_v28  ;;  %v943_v43 = vadd.f32 2.0, %v911_v2  ;;  %v2005_v31 = vadd.f32 %v2004_v4, %v9495_v22  ;;  %v9541_v35 = vpop.f32.mrf.mxu1  ;;  %v8282_v41 = vld [vmem:[#allocation2 + $0x128] sm:$0xf0]  ;;  %v9543_v6 = vor.u32 %v8278_v3, %v7160_v12  ;;  %v12819_v22 = vrot.slane %v9525_v53, 7 }
 0x17b   : > { %1209 = vst [vmem:[#allocation2 + $0x138] sm:$0xf] %v1133_v28  ;;  %v1006_v23 = vmul.f32 %v8606_v39, %v910_v47  ;;  %v785_v25 = vmin.f32 %v9538_v14, 20.0  ;;  %2420 = vmatmul.bf16.gmra.mxu0 %v9369_v10  ;;  %v9549_v46 = vor.u32 %v8282_v41, %v7170_v29  ;;  %vm1041_vm11 = vcmp.gt.f32.partialorder %v9538_v14, 20.0 }
 0x17c   : > { %12970 = vst [vmem:[#allocation17_spill] sm:$0xff] %v9543_v6  ;;  %v8277_v50 = vld [vmem:[#allocation2 + $0x100] sm:$0xf0]  ;;  %8609 = vrcp.f32 %v943_v43  ;;  %v2083_v63 = vrot.slane %v2005_v31, 7  ;;  %1962 = vmatmul.bf16.gmra.mxu2 %v9543_v6 }
 0x17d   : > { %1244 = vst [vmem:[#allocation2 + $0x110] sm:$0xf] %v1133_v28  ;;  %v9553_v13 = vor.u32 %v8277_v50, %v7154_v45  ;;  %v8608_v60 = vpop.eup %8607  ;;  %v1070_v47 = vsel %vm1038_vm8, 1.0, %v1006_v23  ;;  %v843_v59 = vmul.f32 1.442695, %v785_v25  ;;  %1878 = vmatmul.bf16.gmra.mxu1 %v9549_v46 }
 0x17e   : > { %v1102_v3 = vmul.f32 %v1070_v47, %v9487_v7  ;;  %v880_v4 = vadd.f32 2.0, %v8608_v60  ;;  %v9562_v28 = vsel %vm12872_vm7, %v12819_v22, %v2083_v63 }
 0x17f   : > { %12971 = vst [vmem:[#allocation18_spill] sm:$0xff] %v9553_v13  ;;  %2046 = vmatmul.bf16.gmra.mxu3 %v9553_v13  ;;  %8611 = vpow2.f32 %v843_v59  ;;  %v1923_v29 = vpop.f32.mrf.mxu2 }
 0x180   : > { %v1134_v12 = vpack.c.bf16 %v1102_v3, %v1102_v3  ;;  %v912_v45 = vmul.f32 %v8608_v60, %v880_v4  ;;  %v9565_v39 = vadd.f32 %v1923_v29, %v9500_v17  ;;  %v746_v43 = vpop.f32.mrf.mxu0 }
 0x181   : > { %v2007_v31 = vpop.f32.mrf.mxu3  ;;  %v9568_v7 = vadd.f32 %v9436_v9, %v746_v43 }
 0x182   : > { %v8610_v41 = vpop.eup %8609  ;;  %1172 = vst [vmem:[#allocation2 + $0x130] sm:$0xf] %v1134_v12  ;;  %v944_v23 = vadd.f32 2.0, %v912_v45  ;;  %v2008_v25 = vadd.f32 %v2007_v31, %v9519_v15  ;;  %v9571_v50 = vpop.f32.mrf.mxu1 }
 0x183   : > { %1210 = vst [vmem:[#allocation2 + $0x144] sm:$0xf] %v1134_v12  ;;  %v1007_v47 = vmul.f32 %v8610_v41, %v911_v2  ;;  %v786_v59 = vmin.f32 %v9568_v7, 20.0  ;;  %vm1042_vm12 = vcmp.gt.f32.partialorder %v9568_v7, 20.0 }
 0x184   : > { %1245 = vst [vmem:[#allocation2 + $0x11c] sm:$0xf] %v1134_v12  ;;  %8613 = vrcp.f32 %v944_v23  ;;  %v2084_v17 = vrot.slane %v2008_v25, 7  ;;  %v8281_v23 = vld [vmem:[#allocation2 + $0x124] sm:$0xf] }
 0x185   : > { %v8612_v60 = vpop.eup %8611  ;;  %v1071_v3 = vsel %vm1039_vm9, 1.0, %v1007_v47  ;;  %v845_v4 = vmul.f32 1.442695, %v786_v59  ;;  %v7182_v59 = vld [vmem:[#allocation2 + $0x138] sm:$0xf] }
 0x186   : > { %v1103_v29 = vmul.f32 %v1071_v3, %v9498_v27  ;;  %v881_v43 = vadd.f32 2.0, %v8612_v60  ;;  %v9578_v15 = vsel %vm12872_vm7, %v2083_v63, %v2084_v17  ;;  %v7166_v3 = vld [vmem:[#allocation2 + $0x110] sm:$0xf] }
 0x187   : > { %8615 = vpow2.f32 %v845_v4  ;;  %v1925_v31 = vpop.f32.mrf.mxu2 }
 0x188   : > { %v1135_v2 = vpack.c.bf16 %v1103_v29, %v1103_v29  ;;  %v913_v41 = vmul.f32 %v8612_v60, %v881_v43  ;;  %v9581_v12 = vadd.f32 %v1925_v31, %v9527_v32  ;;  %v749_v22 = vpop.f32.mrf.mxu0 }
 0x189   : > { %v2009_v25 = vpop.f32.mrf.mxu3  ;;  %v9584_v47 = vadd.f32 %v9436_v9, %v749_v22  ;;  %v7172_v27 = vld [vmem:[#allocation2 + $0x12c] sm:$0xf0] }
 0x18a   : > { %v8614_v53 = vpop.eup %8613  ;;  %1173 = vst [vmem:[#allocation2 + $0x13c] sm:$0xf] %v1135_v2  ;;  %v945_v63 = vadd.f32 2.0, %v913_v41  ;;  %v2010_v4 = vadd.f32 %v2009_v25, %v9535_v19  ;;  %v9587_v6 = vpop.f32.mrf.mxu1  ;;  %v8285_v60 = vld [vmem:[#allocation2 + $0x140] sm:$0xf0]  ;;  %v9589_v29 = vor.u32 %v8281_v23, %v7172_v27 }
 0x18b   : > { %1211 = vst [vmem:[#allocation2 + $0x150] sm:$0xf] %v1135_v2  ;;  %v1008_v32 = vmul.f32 %v8614_v53, %v912_v45  ;;  %v787_v43 = vmin.f32 %v9584_v47, 20.0  ;;  %2425 = vmatmul.bf16.gmra.mxu0 %v9391_v55  ;;  %v9593_v22 = vor.u32 %v8285_v60, %v7182_v59  ;;  %v8280_v31 = vld [vmem:[#allocation2 + $0x118] sm:$0xf0]  ;;  %v8305_v53 = vld [vmem:[%s12816_s3 + $0x108] sm:$0xff] }
 0x18c   : > { %12972 = vst [vmem:[#allocation19_spill] sm:$0xff] %v9589_v29  ;;  %8617 = vrcp.f32 %v945_v63  ;;  %v2085_v13 = vrot.slane %v2010_v4, 7  ;;  %1967 = vmatmul.bf16.gmra.mxu2 %v9589_v29  ;;  %v9597_v19 = vor.u32 %v8280_v31, %v7166_v3  ;;  %v8319_v45 = vld [vmem:[%s12816_s3 + $0x178] sm:$0xff]  ;;  %2482 = vmatpush.bf16.msrb.mxu1 %v8305_v53  ;;  %vm1043_vm13 = vcmp.gt.f32.partialorder %v9584_v47, 20.0 }
 0x18d   : > { %1246 = vst [vmem:[#allocation2 + $0x128] sm:$0xf] %v1135_v2  ;;  %v8616_v23 = vpop.eup %8615  ;;  %v1072_v25 = vsel %vm1040_vm10, 1.0, %v1008_v32  ;;  %v847_v59 = vmul.f32 1.442695, %v787_v43  ;;  %1883 = vmatmul.bf16.gmra.mxu1 %v9593_v22  ;;  %2565 = vmatpush.bf16.msrb.mxu2 %v8319_v45 }
 0x18e   : > { %12973 = vst [vmem:[#allocation20_spill] sm:$0xff] %v9597_v19  ;;  %v1104_v2 = vmul.f32 %v1072_v25, %v9522_v11  ;;  %v882_v27 = vadd.f32 2.0, %v8616_v23  ;;  %v9610_v3 = vsel %vm12872_vm7, %v2084_v17, %v2085_v13 }
 0x18f   : > { %2051 = vmatmul.bf16.gmra.mxu3 %v9597_v19  ;;  %8619 = vpow2.f32 %v847_v59  ;;  %v1928_v63 = vpop.f32.mrf.mxu2 }
 0x190   : > { %v1136_v4 = vpack.c.bf16 %v1104_v2, %v1104_v2  ;;  %v914_v60 = vmul.f32 %v8616_v23, %v882_v27  ;;  %v9613_v32 = vadd.f32 %v1928_v63, %v9541_v35  ;;  %v751_v43 = vpop.f32.mrf.mxu0 }
 0x191   : > { %v2012_v31 = vpop.f32.mrf.mxu3  ;;  %v9616_v11 = vadd.f32 %v9436_v9, %v751_v43 }
 0x192   : > { %v8618_v25 = vpop.eup %8617  ;;  %1174 = vst [vmem:[#allocation2 + $0x148] sm:$0xf] %v1136_v4  ;;  %v946_v53 = vadd.f32 2.0, %v914_v60  ;;  %v2013_v29 = vadd.f32 %v2012_v31, %v9565_v39  ;;  %v9619_v17 = vpop.f32.mrf.mxu1 }
 0x193   : > { %1212 = vst [vmem:[#allocation2 + $0x15c] sm:$0xf] %v1136_v4  ;;  %v1009_v45 = vmul.f32 %v8618_v25, %v913_v41  ;;  %v788_v59 = vmin.f32 %v9616_v11, 20.0  ;;  %vm1044_vm14 = vcmp.gt.f32.partialorder %v9616_v11, 20.0 }
 0x194   : > { %1247 = vst [vmem:[#allocation2 + $0x134] sm:$0xf] %v1136_v4  ;;  %8621 = vrcp.f32 %v946_v53  ;;  %v2086_v35 = vrot.slane %v2013_v29, 7  ;;  %v8284_v53 = vld [vmem:[#allocation2 + $0x13c] sm:$0xf] }
 0x195   : > { %v8620_v23 = vpop.eup %8619  ;;  %v1073_v2 = vsel %vm1041_vm11, 1.0, %v1009_v45  ;;  %v849_v27 = vmul.f32 1.442695, %v788_v59  ;;  %v7194_v59 = vld [vmem:[#allocation2 + $0x150] sm:$0xf] }
 0x196   : > { %v1105_v63 = vmul.f32 %v1073_v2, %v9538_v14  ;;  %v883_v43 = vadd.f32 2.0, %v8620_v23  ;;  %v9626_v39 = vsel %vm12872_vm7, %v2085_v13, %v2086_v35  ;;  %v7178_v2 = vld [vmem:[#allocation2 + $0x128] sm:$0xf] }
 0x197   : > { %8623 = vpow2.f32 %v849_v27  ;;  %v1930_v31 = vpop.f32.mrf.mxu2 }
 0x198   : > { %v1137_v41 = vpack.c.bf16 %v1105_v63, %v1105_v63  ;;  %v915_v25 = vmul.f32 %v8620_v23, %v883_v43  ;;  %v9629_v4 = vadd.f32 %v1930_v31, %v9571_v50  ;;  %v754_v19 = vpop.f32.mrf.mxu0 }
 0x199   : > { %v2014_v29 = vpop.f32.mrf.mxu3  ;;  %v9632_v45 = vadd.f32 %v9436_v9, %v754_v19  ;;  %v7184_v14 = vld [vmem:[#allocation2 + $0x144] sm:$0xf0] }
 0x19a   : > { %v8622_v49 = vpop.eup %8621  ;;  %1175 = vst [vmem:[#allocation2 + $0x154] sm:$0xf] %v1137_v41  ;;  %v947_v13 = vadd.f32 2.0, %v915_v25  ;;  %v2015_v27 = vadd.f32 %v2014_v29, %v9581_v12  ;;  %v9635_v0 = vpop.f32.mrf.mxu1  ;;  %v8288_v23 = vld [vmem:[#allocation2 + $0x158] sm:$0xf0]  ;;  %v9637_v63 = vor.u32 %v8284_v53, %v7184_v14 }
 0x19b   : > { %1213 = vst [vmem:[#allocation2 + $0x168] sm:$0xf] %v1137_v41  ;;  %v1010_v50 = vmul.f32 %v8622_v49, %v914_v60  ;;  %v789_v43 = vmin.f32 %v9632_v45, 20.0  ;;  %2430 = vmatmul.bf16.gmra.mxu0 %v9416_v42  ;;  %v9641_v19 = vor.u32 %v8288_v23, %v7194_v59  ;;  %v8283_v31 = vld [vmem:[#allocation2 + $0x130] sm:$0xf0]  ;;  %vm1045_vm15 = vcmp.gt.f32.partialorder %v9632_v45, 20.0 }
 0x19c   : > { %12974 = vst [vmem:[#allocation21_spill] sm:$0xff] %v9637_v63  ;;  %8625 = vrcp.f32 %v947_v13  ;;  %v2087_v55 = vrot.slane %v2015_v27, 7  ;;  %1972 = vmatmul.bf16.gmra.mxu2 %v9637_v63  ;;  %v9645_v12 = vor.u32 %v8283_v31, %v7178_v2 }
 0x19d   : > { %1248 = vst [vmem:[#allocation2 + $0x140] sm:$0xf] %v1137_v41  ;;  %v8624_v53 = vpop.eup %8623  ;;  %v1074_v29 = vsel %vm1042_vm12, 1.0, %v1010_v50  ;;  %v851_v14 = vmul.f32 1.442695, %v789_v43  ;;  %1888 = vmatmul.bf16.gmra.mxu1 %v9641_v19 }
 0x19e   : > { %12975 = vst [vmem:[#allocation22_spill] sm:$0xff] %v9645_v12  ;;  %v1106_v49 = vmul.f32 %v1074_v29, %v9568_v7  ;;  %v884_v60 = vadd.f32 2.0, %v8624_v53  ;;  %v9652_v41 = vsel %vm12872_vm7, %v2086_v35, %v2087_v55  ;;  %v8318_v7 = vld [vmem:[%s12816_s3 + $0x170] sm:$0xff] }
 0x19f   : > { %2056 = vmatmul.bf16.gmra.mxu3 %v9645_v12  ;;  %8627 = vpow2.f32 %v851_v14  ;;  %v1933_v59 = vpop.f32.mrf.mxu2  ;;  %2566 = vmatpush.bf16.msrb.mxu2 %v8318_v7 }
 0x1a0   : > { %v1138_v13 = vpack.c.bf16 %v1106_v49, %v1106_v49  ;;  %v916_v27 = vmul.f32 %v8624_v53, %v884_v60  ;;  %v9655_v2 = vadd.f32 %v1933_v59, %v9587_v6  ;;  %v756_v23 = vpop.f32.mrf.mxu0  ;;  %v8304_v49 = vld [vmem:[%s12816_s3 + $0x100] sm:$0xff] }
 0x1a1   : > { %v2017_v50 = vpop.f32.mrf.mxu3  ;;  %v9658_v43 = vadd.f32 %v9436_v9, %v756_v23  ;;  %2483 = vmatpush.bf16.msrb.mxu1 %v8304_v49  ;;  %v8316_v49 = vld [vmem:[%s12816_s3 + $0x160] sm:$0xff] }
 0x1a2   : > { %v8626_v31 = vpop.eup %8625  ;;  %1176 = vst [vmem:[#allocation2 + $0x160] sm:$0xf] %v1138_v13  ;;  %v948_v35 = vadd.f32 2.0, %v916_v27  ;;  %v9664_v29 = vadd.f32 %v2017_v50, %v9613_v32  ;;  %v9666_v14 = vpop.f32.mrf.mxu1  ;;  %v8351_v32 = vld [vmem:[%s12816_s3 + $0x1b8] sm:$0xff] }
 0x1a3   : > { %1214 = vst [vmem:[#allocation2 + $0x174] sm:$0xf] %v1138_v13  ;;  %v1011_v6 = vmul.f32 %v8626_v31, %v915_v25  ;;  %v790_v53 = vmin.f32 %v9658_v43, 20.0  ;;  %v8317_v25 = vld [vmem:[%s12816_s3 + $0x168] sm:$0xff]  ;;  %2847 = vmatpush.bf16.msrb.mxu3 %v8351_v32  ;;  %vm1046_vm1 = vcmp.gt.f32.partialorder %v9658_v43, 20.0 }
 0x1a4   : > { %1249 = vst [vmem:[#allocation2 + $0x14c] sm:$0xf] %v1138_v13  ;;  %8629 = vrcp.f32 %v948_v35  ;;  %v2088_v9 = vrot.slane %v9664_v29, 7  ;;  %2567 = vmatpush.bf16.msrb.mxu2 %v8317_v25 }
 0x1a5   : > { %v8628_v60 = vpop.eup %8627  ;;  %v1075_v59 = vsel %vm1043_vm13, 1.0, %v1011_v6  ;;  %v853_v23 = vmul.f32 1.442695, %v790_v53  ;;  %v8287_v6 = vld [vmem:[#allocation2 + $0x154] sm:$0xf] }
 0x1a6   : > { %v1107_v13 = vmul.f32 %v1075_v59, %v9584_v47  ;;  %v885_v50 = vadd.f32 2.0, %v8628_v60  ;;  %v9683_v7 = vsel %vm12872_vm7, %v2087_v55, %v2088_v9  ;;  %v7206_v47 = vld [vmem:[#allocation2 + $0x168] sm:$0xf] }
 0x1a7   : > { %8631 = vpow2.f32 %v853_v23  ;;  %v1935_v31 = vpop.f32.mrf.mxu2 }
 0x1a8   : > { %v1139_v35 = vpack.c.bf16 %v1107_v13, %v1107_v13  ;;  %v917_v29 = vmul.f32 %v8628_v60, %v885_v50  ;;  %v9686_v63 = vadd.f32 %v1935_v31, %v9619_v17  ;;  %v9688_v12 = vpop.f32.mrf.mxu0  ;;  %v7190_v31 = vld [vmem:[#allocation2 + $0x140] sm:$0xf]  ;;  %2568 = vmatpush.bf16.msrb.mxu2 %v8316_v49 }
 0x1a9   : > { %12976 = vst [vmem:[#allocation23_spill] sm:$0xff] %v9688_v12  ;;  %v2019_v53 = vpop.f32.mrf.mxu3  ;;  %v7196_v59 = vld [vmem:[#allocation2 + $0x15c] sm:$0xf0] }
 0x1aa   : > { %v8630_v55 = vpop.eup %8629  ;;  %1177 = vst [vmem:[#allocation2 + $0x16c] sm:$0xf] %v1139_v35  ;;  %v949_v32 = vadd.f32 2.0, %v917_v29  ;;  %v2020_v25 = vadd.f32 %v2019_v53, %v9629_v4  ;;  %v9694_v23 = vpop.f32.mrf.mxu1  ;;  %v8291_v60 = vld [vmem:[#allocation2 + $0x170] sm:$0xf0]  ;;  %v9696_v17 = vor.u32 %v8287_v6, %v7196_v59 }
 0x1ab   : > { %1215 = vst [vmem:[#allocation2 + $0x180] sm:$0xf] %v1139_v35  ;;  %v1012_v13 = vmul.f32 %v8630_v55, %v916_v27  ;;  %2435 = vmatmul.bf16.gmra.mxu0 %v9445_v20  ;;  %v9699_v50 = vor.u32 %v8291_v60, %v7206_v47  ;;  %v8286_v12 = vld [vmem:[#allocation2 + $0x148] sm:$0xf0]  ;;  %v8359_v27 = vld [vmem:[%s12816_s3 + $0x1f8] sm:$0xff]  ;;  %v236_v47 = vadd.s32 16, %v9532_v1 }
 0x1ac   : > { %12977 = vst [vmem:[#allocation24_spill] sm:$0xff] %v9696_v17  ;;  %8633 = vrcp.f32 %v949_v32  ;;  %v2089_v42 = vrot.slane %v2020_v25, 7  ;;  %1977 = vmatmul.bf16.gmra.mxu2 %v9696_v17  ;;  %v9703_v4 = vor.u32 %v8286_v12, %v7190_v31  ;;  %2936 = vmatpush.bf16.msra.mxu0 %v8359_v27  ;;  %v8367_v12 = vld [vmem:[%s12816_s3 + $0x238] sm:$0xff]  ;;  %v8314_v17 = vld [vmem:[%s12816_s3 + $0x150] sm:$0xff] }
 0x1ad   : > { %1250 = vst [vmem:[#allocation2 + $0x158] sm:$0xf] %v1139_v35  ;;  %v8632_v6 = vpop.eup %8631  ;;  %v1076_v53 = vsel %vm1044_vm14, 1.0, %v1012_v13  ;;  %1893 = vmatmul.bf16.gmra.mxu1 %v9699_v50  ;;  %v8315_v35 = vld [vmem:[%s12816_s3 + $0x158] sm:$0xff] }
 0x1ae   : > { %12978 = vst [vmem:[#allocation25_spill] sm:$0xff] %v9703_v4  ;;  %v1108_v59 = vmul.f32 %v1076_v53, %v9616_v11  ;;  %v886_v49 = vadd.f32 2.0, %v8632_v6  ;;  %v9720_v55 = vsel %vm12872_vm7, %v2088_v9, %v2089_v42  ;;  %2569 = vmatpush.bf16.msrb.mxu2 %v8315_v35  ;;  %3025 = vmatpush.bf16.msra.mxu1 %v8367_v12  ;;  %v284_v53 = vand.u32 15, %v236_v47  ;;  %v8350_v9 = vld [vmem:[%s12816_s3 + $0x1b0] sm:$0xff]  ;;  %v8349_v12 = vld [vmem:[%s12816_s3 + $0x1a8] sm:$0xff] }
 0x1af   : > { %2061 = vmatmul.bf16.gmra.mxu3 %v9703_v4  ;;  %v1938_v32 = vpop.f32.mrf.mxu2 }
 0x1b0   : > { %v1140_v25 = vpack.c.bf16 %v1108_v59, %v1108_v59  ;;  %v918_v60 = vmul.f32 %v8632_v6, %v886_v49  ;;  %v9723_v13 = vadd.f32 %v1938_v32, %v9635_v0  ;;  %v2398_v11 = vpop.f32.mrf.mxu0  ;;  %2848 = vmatpush.bf16.msrb.mxu3 %v8350_v9  ;;  %v8313_v49 = vld [vmem:[%s12816_s3 + $0x148] sm:$0xff]  ;;  %vm9744_vm0 = vcmp.gt.s32.totalorder %v284_v53, 0 }
 0x1b1   : > { %v2022_v31 = vpop.f32.mrf.mxu3  ;;  %v9726_v27 = vadd.f32 %v2398_v11, %v9562_v28  ;;  %v2213_v53 = vsel %vm9744_vm0, %v9578_v15, 0.0 }
 0x1b2   : > { %v8634_v35 = vpop.eup %8633  ;;  %1178 = vst [vmem:[#allocation2 + $0x178] sm:$0xf] %v1140_v25  ;;  %v950_v0 = vadd.f32 2.0, %v918_v60  ;;  %v2023_v6 = vadd.f32 %v2022_v31, %v9655_v2  ;;  %v9736_v59 = vpop.f32.mrf.mxu1  ;;  %2570 = vmatpush.bf16.msrb.mxu2 %v8314_v17  ;;  %v12979_v2 = vmov 0 }
 0x1b3   : > { %1216 = vst [vmem:[#allocation2 + $0x18c] sm:$0xf] %v1140_v25  ;;  %v1013_v28 = vmul.f32 %v8634_v35, %v917_v29  ;;  %v12980_v2 = vsel %vm9744_vm0, 4294967295, %v12979_v2  ;;  %v8290_v35 = vld [vmem:[#allocation2 + $0x16c] sm:$0xf] }
 0x1b4   : > { %1251 = vst [vmem:[#allocation2 + $0x164] sm:$0xf] %v1140_v25  ;;  %8635 = vrcp.f32 %v950_v0  ;;  %v2090_v47 = vrot.slane %v2023_v6, 7  ;;  %2849 = vmatpush.bf16.msrb.mxu3 %v8349_v12  ;;  %v8312_v6 = vld [vmem:[%s12816_s3 + $0x140] sm:$0xff] }
 0x1b5   : > { %v1077_v32 = vsel %vm1045_vm15, 1.0, %v1013_v28  ;;  %12981 = vst [vmem:[#allocation26_spill] sm:$0xff] %v12980_v2  ;;  %v7218_v12 = vld [vmem:[#allocation2 + $0x180] sm:$0xf] }
 0x1b6   : > { %v1109_v29 = vmul.f32 %v1077_v32, %v9632_v45  ;;  %v9751_v17 = vsel %vm12872_vm7, %v2089_v42, %v2090_v47  ;;  %2571 = vmatpush.bf16.msrb.mxu2 %v8313_v49 }
 0x1b7   : > { %v1940_v25 = vpop.f32.mrf.mxu2 }
 0x1b8   : > { %v1141_v11 = vpack.c.bf16 %v1109_v29, %v1109_v29  ;;  %v9754_v31 = vadd.f32 %v1940_v25, %v9666_v14  ;;  %v2401_v9 = vpop.f32.mrf.mxu0  ;;  %v8348_v14 = vld [vmem:[%s12816_s3 + $0x1a0] sm:$0xff] }
 0x1b9   : > { %v2024_v45 = vpop.f32.mrf.mxu3  ;;  %v9760_v0 = vadd.f32 %v2401_v9, %v2213_v53  ;;  %v7208_v42 = vld [vmem:[#allocation2 + $0x174] sm:$0xf0]  ;;  %2850 = vmatpush.bf16.msrb.mxu3 %v8348_v14 }
 0x1ba   : > { %v8636_v28 = vpop.eup %8635  ;;  %1179 = vst [vmem:[#allocation2 + $0x184] sm:$0xf] %v1141_v11  ;;  %v2025_v15 = vadd.f32 %v2024_v45, %v9686_v63  ;;  %v9769_v49 = vpop.f32.mrf.mxu1  ;;  %v8294_v32 = vld [vmem:[#allocation2 + $0x188] sm:$0xf0]  ;;  %v9771_v29 = vor.u32 %v8290_v35, %v7208_v42  ;;  %v7202_v9 = vld [vmem:[#allocation2 + $0x158] sm:$0xf]  ;;  %2572 = vmatpush.bf16.msrb.mxu2 %v8312_v6 }
 0x1bb   : > { %v1014_v25 = vmul.f32 %v8636_v28, %v918_v60  ;;  %2440 = vmatmul.bf16.gmra.mxu0 %v9474_v8  ;;  %v9774_v53 = vor.u32 %v8294_v32, %v7218_v12  ;;  %v8289_v2 = vld [vmem:[#allocation2 + $0x160] sm:$0xf0]  ;;  %1252 = vst [vmem:[#allocation2 + $0x170] sm:$0xf] %v1141_v11  ;;  %v238_v60 = vadd.s32 32, %v9532_v1  ;;  %v8347_v35 = vld [vmem:[%s12816_s3 + $0x198] sm:$0xff] }
 0x1bc   : > { %12982 = vst [vmem:[#allocation27_spill] sm:$0xff] %v9771_v29  ;;  %v2091_v4 = vrot.slane %v2025_v15, 7  ;;  %1982 = vmatmul.bf16.gmra.mxu2 %v9771_v29  ;;  %v9777_v20 = vor.u32 %v8289_v2, %v7202_v9  ;;  %v12983_v9 = vmov 0 }
 0x1bd   : > { %v1078_v63 = vsel %vm1046_vm1, 1.0, %v1014_v25  ;;  %1898 = vmatmul.bf16.gmra.mxu1 %v9774_v53  ;;  %2851 = vmatpush.bf16.msrb.mxu3 %v8347_v35  ;;  %v298_v12 = vand.u32 15, %v238_v60 }
 0x1be   : > { %v1110_v45 = vmul.f32 %v1078_v63, %v9658_v43  ;;  %v9790_v2 = vsel %vm12872_vm7, %v2090_v47, %v2091_v4  ;;  %v8346_v43 = vld [vmem:[%s12816_s3 + $0x190] sm:$0xff] }
 0x1bf   : > { %2066 = vmatmul.bf16.gmra.mxu3 %v9777_v20  ;;  %v1943_v11 = vpop.f32.mrf.mxu2  ;;  %vm9803_vm2 = vcmp.gt.s32.totalorder %v298_v12, 0 }
 0x1c0   : > { %v1142_v42 = vpack.c.bf16 %v1110_v45, %v1110_v45  ;;  %v1944_v6 = vadd.f32 %v1943_v11, %v9694_v23  ;;  %v2403_v14 = vpop.f32.mrf.mxu0  ;;  %v8345_v23 = vld [vmem:[%s12816_s3 + $0x188] sm:$0xff]  ;;  %v12984_v9 = vsel %vm9803_vm2, 4294967295, %v12983_v9  ;;  %v2215_v35 = vsel %vm9803_vm2, %v9626_v39, 0.0 }
 0x1c1   : > { %v2027_v28 = vpop.f32.mrf.mxu3  ;;  %v9794_v15 = vadd.f32 %v2403_v14, %v9610_v3  ;;  %2852 = vmatpush.bf16.msrb.mxu3 %v8346_v43  ;;  %12985 = vst [vmem:[#allocation28_spill] sm:$0xff] %v12984_v9  ;;  %v8293_v60 = vld [vmem:[#allocation2 + $0x184] sm:$0xf] }
 0x1c2   : > { %1180 = vst [vmem:[#allocation2 + $0x190] sm:$0xf] %v1142_v42  ;;  %v2028_v32 = vadd.f32 %v2027_v28, %v9723_v13  ;;  %v1861_v47 = vpop.f32.mrf.mxu1  ;;  %v7214_v28 = vld [vmem:[#allocation2 + $0x170] sm:$0xf] }
 0x1c3   : > { %1253 = vst [vmem:[#allocation2 + $0x17c] sm:$0xf] %v1142_v42 }
 0x1c4   : > { %v2092_v25 = vrot.slane %v2028_v32, 7 }
 0x1c5   : > { %2853 = vmatpush.bf16.msrb.mxu3 %v8345_v23 }
 0x1c6   : > { %v9809_v3 = vsel %vm12872_vm7, %v2091_v4, %v2092_v25  ;;  %v8344_v4 = vld [vmem:[%s12816_s3 + $0x180] sm:$0xff] }
 0x1c7   : > { %v1945_v63 = vpop.f32.mrf.mxu2 }
 0x1c8   : > { %v1946_v13 = vadd.f32 %v1945_v63, %v9736_v59  ;;  %v2406_v45 = vpop.f32.mrf.mxu0  ;;  %v8358_v63 = vld [vmem:[%s12816_s3 + $0x1f0] sm:$0xff] }
 0x1c9   : > { %v2029_v11 = vpop.f32.mrf.mxu3  ;;  %v9815_v42 = vadd.f32 %v2406_v45, %v2215_v35  ;;  %v7220_v14 = vld [vmem:[#allocation2 + $0x18c] sm:$0xf0]  ;;  %2854 = vmatpush.bf16.msrb.mxu3 %v8344_v4  ;;  %2937 = vmatpush.bf16.msra.mxu0 %v8358_v63 }
 0x1ca   : > { %v2030_v12 = vadd.f32 %v2029_v11, %v9754_v31  ;;  %v1864_v43 = vpop.f32.mrf.mxu1  ;;  %v9821_v32 = vor.u32 %v8293_v60, %v7220_v14  ;;  %v8292_v59 = vld [vmem:[#allocation2 + $0x178] sm:$0xf0]  ;;  %v240_v31 = vadd.s32 48, %v9532_v1  ;;  %v8366_v60 = vld [vmem:[%s12816_s3 + $0x230] sm:$0xff] }
 0x1cb   : > { %2445 = vmatmul.bf16.gmra.mxu0 %v9506_v51  ;;  %v9825_v23 = vor.u32 %v8292_v59, %v7214_v28  ;;  %3026 = vmatpush.bf16.msra.mxu1 %v8366_v60 }
 0x1cc   : > { %12986 = vst [vmem:[#allocation29_spill] sm:$0xff] %v9821_v32  ;;  %v2093_v39 = vrot.slane %v2030_v12, 7  ;;  %1987 = vmatmul.bf16.gmra.mxu2 %v9821_v32  ;;  %v312_v12 = vand.u32 15, %v240_v31  ;;  %v12988_v32 = vmov 0 }
 0x1cd   : > { %12987 = vst [vmem:[#allocation30_spill] sm:$0xff] %v9825_v23  ;;  %2484 = vmatmul.bf16.vlgmr.msrb.gmra.mxu1 %v9250_v16 }
 0x1ce   : > { %v9838_v35 = vsel %vm12872_vm7, %v2092_v25, %v2093_v39  ;;  %vm9844_vm3 = vcmp.gt.s32.totalorder %v312_v12, 0 }
 0x1cf   : > { %2071 = vmatmul.bf16.gmra.mxu3 %v9825_v23  ;;  %v1948_v45 = vpop.f32.mrf.mxu2  ;;  %v12989_v32 = vsel %vm9844_vm3, 4294967295, %v12988_v32 }
 0x1d0   : > { %v1949_v11 = vadd.f32 %v1948_v45, %v9769_v49  ;;  %v2408_v14 = vpop.f32.mrf.mxu0  ;;  %12990 = vst [vmem:[#allocation31_spill] sm:$0xff] %v12989_v32  ;;  %v7226_v49 = vld [vmem:[#allocation2 + $0x188] sm:$0xf]  ;;  %v8295_v45 = vld [vmem:[#allocation2 + $0x190] sm:$0xf0] }
 0x1d1   : > { %v2032_v28 = vpop.f32.mrf.mxu3  ;;  %v9842_v4 = vadd.f32 %v2408_v14, %v9652_v41  ;;  %v2217_v41 = vsel %vm9844_vm3, %v9683_v7, 0.0 }
 0x1d2   : > { %v2033_v59 = vadd.f32 %v2032_v28, %v1944_v6  ;;  %v1866_v63 = vpop.f32.mrf.mxu1 }
 0x1d4   : > { %v2094_v9 = vrot.slane %v2033_v59, 7  ;;  %v9857_v59 = vor.u32 %v8295_v45, %v7226_v49 }
 0x1d6   : > { %v9850_v25 = vsel %vm12872_vm7, %v2093_v39, %v2094_v9  ;;  %12991 = vst [vmem:[#allocation32_spill] sm:$0xff] %v9857_v59 }
 0x1d7   : > { %v1950_v23 = vpop.f32.mrf.mxu2 }
 0x1d8   : > { %v1951_v60 = vadd.f32 %v1950_v23, %v1861_v47  ;;  %v2411_v31 = vpop.f32.mrf.mxu0  ;;  %v242_v47 = vadd.s32 64, %v9532_v1 }
 0x1d9   : > { %v2034_v6 = vpop.f32.mrf.mxu3  ;;  %v9855_v14 = vadd.f32 %v2411_v31, %v2217_v41 }
 0x1da   : > { %v2035_v28 = vadd.f32 %v2034_v6, %v1946_v13  ;;  %v1869_v12 = vpop.f32.mrf.mxu1  ;;  %v326_v31 = vand.u32 15, %v242_v47 }
 0x1db   : > { %2450 = vmatmul.bf16.gmra.mxu0 %v9549_v46 }
 0x1dc   : > { %v2095_v39 = vrot.slane %v2035_v28, 7  ;;  %2573 = vmatmul.bf16.vlgmr.msrb.gmra.mxu2 %v9280_v61  ;;  %vm9871_vm4 = vcmp.gt.s32.totalorder %v326_v31, 0  ;;  %v12992_v61 = vmov 0 }
 0x1dd   : > { %2489 = vmatmul.bf16.gmra.mxu1 %v9270_v54  ;;  %v12993_v61 = vsel %vm9871_vm4, 4294967295, %v12992_v61 }
 0x1de   : > { %v9866_v7 = vsel %vm12872_vm7, %v2094_v9, %v2095_v39  ;;  %12994 = vst [vmem:[#allocation33_spill] sm:$0xff] %v12993_v61  ;;  %v12995_v61 = vmov 0 }
 0x1df   : > { %2076 = vmatmul.bf16.gmra.mxu3 %v9857_v59  ;;  %v1953_v23 = vpop.f32.mrf.mxu2 }
 0x1e0   : > { %v1954_v13 = vadd.f32 %v1953_v23, %v1864_v43  ;;  %v2413_v41 = vpop.f32.mrf.mxu0  ;;  %v2219_v43 = vsel %vm9871_vm4, %v9751_v17, 0.0  ;;  %v8365_v17 = vld [vmem:[%s12816_s3 + $0x228] sm:$0xff] }
 0x1e1   : > { %v2037_v49 = vpop.f32.mrf.mxu3  ;;  %v9869_v45 = vadd.f32 %v2413_v41, %v9720_v55  ;;  %3027 = vmatpush.bf16.msra.mxu1 %v8365_v17 }
 0x1e2   : > { %v2038_v6 = vadd.f32 %v2037_v49, %v1949_v11  ;;  %v1871_v28 = vpop.f32.mrf.mxu1 }
 0x1e4   : > { %v2096_v32 = vrot.slane %v2038_v6, 7 }
 0x1e6   : > { %v9877_v59 = vsel %vm12872_vm7, %v2095_v39, %v2096_v32  ;;  %v8357_v39 = vld [vmem:[%s12816_s3 + $0x1e8] sm:$0xff] }
 0x1e7   : > { %v1955_v9 = vpop.f32.mrf.mxu2  ;;  %2938 = vmatpush.bf16.msra.mxu0 %v8357_v39 }
 0x1e8   : > { %v1956_v29 = vadd.f32 %v1955_v9, %v1866_v63  ;;  %v2416_v55 = vpop.f32.mrf.mxu0  ;;  %v244_v63 = vadd.s32 80, %v9532_v1 }
 0x1e9   : > { %v2039_v23 = vpop.f32.mrf.mxu3  ;;  %v9882_v47 = vadd.f32 %v2416_v55, %v2219_v43 }
 0x1ea   : > { %v2040_v11 = vadd.f32 %v2039_v23, %v1951_v60  ;;  %v1874_v41 = vpop.f32.mrf.mxu1  ;;  %v340_v23 = vand.u32 15, %v244_v63 }
 0x1eb   : > { %2455 = vmatmul.bf16.gmra.mxu0 %v9593_v22 }
 0x1ec   : > { %v2097_v49 = vrot.slane %v2040_v11, 7  ;;  %2578 = vmatmul.bf16.gmra.mxu2 %v9312_v40  ;;  %vm9902_vm5 = vcmp.gt.s32.totalorder %v340_v23, 0 }
 0x1ed   : > { %2494 = vmatmul.bf16.gmra.mxu1 %v9305_v34  ;;  %v12996_v61 = vsel %vm9902_vm5, 4294967295, %v12995_v61  ;;  %v2221_v17 = vsel %vm9902_vm5, %v9809_v3, 0.0  ;;  %v246_v3 = vadd.s32 96, %v9532_v1 }
 0x1ee   : > { %v9897_v60 = vsel %vm12872_vm7, %v2096_v32, %v2097_v49  ;;  %12997 = vst [vmem:[#allocation34_spill] sm:$0xff] %v12996_v61 }
 0x1ef   : > { %2855 = vmatmul.bf16.vlgmr.msrb.gmra.mxu3 %v9160_v48  ;;  %v1958_v31 = vpop.f32.mrf.mxu2 }
 0x1f0   : > { %v1959_v6 = vadd.f32 %v1958_v31, %v1869_v12  ;;  %v2418_v9 = vpop.f32.mrf.mxu0 }
 0x1f1   : > { %v2042_v43 = vpop.f32.mrf.mxu3  ;;  %v9900_v55 = vadd.f32 %v2418_v9, %v9790_v2 }
 0x1f2   : > { %v2043_v11 = vadd.f32 %v2042_v43, %v1954_v13  ;;  %v1876_v48 = vpop.f32.mrf.mxu1  ;;  %v8356_v13 = vld [vmem:[%s12816_s3 + $0x1e0] sm:$0xff] }
 0x1f3   : > { %2939 = vmatpush.bf16.msra.mxu0 %v8356_v13 }
 0x1f4   : > { %v2098_v39 = vrot.slane %v2043_v11, 7 }
 0x1f6   : > { %v9908_v32 = vsel %vm12872_vm7, %v2097_v49, %v2098_v39 }
 0x1f7   : > { %v1960_v40 = vpop.f32.mrf.mxu2 }
 0x1f8   : > { %v1961_v12 = vadd.f32 %v1960_v40, %v1871_v28  ;;  %v2421_v2 = vpop.f32.mrf.mxu0  ;;  %v8355_v40 = vld [vmem:[%s12816_s3 + $0x1d8] sm:$0xff] }
 0x1f9   : > { %v2044_v63 = vpop.f32.mrf.mxu3  ;;  %v9916_v31 = vadd.f32 %v2421_v2, %v2221_v17  ;;  %2940 = vmatpush.bf16.msra.mxu0 %v8355_v40  ;;  %v8354_v17 = vld [vmem:[%s12816_s3 + $0x1d0] sm:$0xff] }
 0x1fa   : > { %v2045_v9 = vadd.f32 %v2044_v63, %v1956_v29  ;;  %v1879_v43 = vpop.f32.mrf.mxu1  ;;  %v354_v63 = vand.u32 15, %v246_v3 }
 0x1fb   : > { %2460 = vmatmul.bf16.gmra.mxu0 %v9641_v19 }
 0x1fc   : > { %v2099_v49 = vrot.slane %v2045_v9, 7  ;;  %2583 = vmatmul.bf16.gmra.mxu2 %v9347_v26  ;;  %vm9939_vm6 = vcmp.gt.s32.totalorder %v354_v63, 0 }
 0x1fd   : > { %2499 = vmatmul.bf16.gmra.mxu1 %v9340_v21  ;;  %2941 = vmatpush.bf16.msra.mxu0 %v8354_v17 }
 0x1fe   : > { %v9928_v29 = vsel %vm12872_vm7, %v2098_v39, %v2099_v49  ;;  %v8353_v39 = vld [vmem:[%s12816_s3 + $0x1c8] sm:$0xff] }
 0x1ff   : > { %2860 = vmatmul.bf16.gmra.mxu3 %v9253_v18  ;;  %v1963_v28 = vpop.f32.mrf.mxu2 }
 0x200   : > { %v1964_v23 = vadd.f32 %v1963_v28, %v1874_v41  ;;  %v2423_v11 = vpop.f32.mrf.mxu0  ;;  %v12998_v41 = vmov 0 }
 0x201   : > { %v9934_v13 = vadd.f32 %v2423_v11, %v9838_v35  ;;  %v12999_v41 = vsel %vm9939_vm6, 4294967295, %v12998_v41  ;;  %2942 = vmatpush.bf16.msra.mxu0 %v8353_v39  ;;  %v8352_v11 = vld [vmem:[%s12816_s3 + $0x1c0] sm:$0xff] }
 0x202   : > { %v2047_v2 = vpop.f32.mrf.mxu3  ;;  %v1881_v61 = vpop.f32.mrf.mxu1  ;;  %13000 = vst [vmem:[#allocation35_spill] sm:$0xff] %v12999_v41 }
 0x203   : > { %v2048_v9 = vadd.f32 %v2047_v2, %v1959_v6  ;;  %v2223_v6 = vsel %vm9939_vm6, %v9850_v25, 0.0  ;;  %v248_v25 = vadd.s32 112, %v9532_v1 }
 0x205   : > { %v2100_v18 = vrot.slane %v2048_v9, 7  ;;  %2943 = vmatpush.bf16.msra.mxu0 %v8352_v11 }
 0x207   : > { %v9945_v40 = vsel %vm12872_vm7, %v2099_v49, %v2100_v18  ;;  %v1965_v35 = vpop.f32.mrf.mxu2 }
 0x208   : > { %v1966_v28 = vadd.f32 %v1965_v35, %v1876_v48  ;;  %v2426_v3 = vpop.f32.mrf.mxu0  ;;  %v8364_v48 = vld [vmem:[%s12816_s3 + $0x220] sm:$0xff] }
 0x209   : > { %v9953_v2 = vadd.f32 %v2426_v3, %v2223_v6  ;;  %3028 = vmatpush.bf16.msra.mxu1 %v8364_v48 }
 0x20a   : > { %v2049_v17 = vpop.f32.mrf.mxu3  ;;  %v1884_v9 = vpop.f32.mrf.mxu1 }
 0x20b   : > { %v2050_v63 = vadd.f32 %v2049_v17, %v1961_v12  ;;  %2465 = vmatmul.bf16.gmra.mxu0 %v9699_v50  ;;  %v368_v17 = vand.u32 15, %v248_v25 }
 0x20c   : > { %2588 = vmatmul.bf16.gmra.mxu2 %v9373_v56  ;;  %v13001_v56 = vmov 0 }
 0x20d   : > { %v2101_v49 = vrot.slane %v2050_v63, 7  ;;  %2504 = vmatmul.bf16.gmra.mxu1 %v9366_v5  ;;  %vm9970_vm8 = vcmp.gt.s32.totalorder %v368_v17, 0 }
 0x20e   : > { %v13002_v56 = vsel %vm9970_vm8, 4294967295, %v13001_v56  ;;  %v2225_v48 = vsel %vm9970_vm8, %v9877_v59, 0.0 }
 0x20f   : > { %2865 = vmatmul.bf16.gmra.mxu3 %v9273_v57  ;;  %v9965_v12 = vsel %vm12872_vm7, %v2100_v18, %v2101_v49  ;;  %v1968_v39 = vpop.f32.mrf.mxu2  ;;  %13003 = vst [vmem:[#allocation36_spill] sm:$0xff] %v13002_v56  ;;  %v13004_v56 = vmov 0 }
 0x210   : > { %v1969_v35 = vadd.f32 %v1968_v39, %v1879_v43  ;;  %v2428_v6 = vpop.f32.mrf.mxu0 }
 0x211   : > { %v9968_v11 = vadd.f32 %v2428_v6, %v9866_v7 }
 0x212   : > { %v2052_v3 = vpop.f32.mrf.mxu3  ;;  %v1886_v41 = vpop.f32.mrf.mxu1 }
 0x213   : > { %v2053_v63 = vadd.f32 %v2052_v3, %v1964_v23 }
 0x215   : > { %v2102_v57 = vrot.slane %v2053_v63, 7 }
 0x217   : > { %v9976_v18 = vsel %vm12872_vm7, %v2101_v49, %v2102_v57  ;;  %v1970_v26 = vpop.f32.mrf.mxu2  ;;  %v250_v49 = vadd.s32 128, %v9532_v1 }
 0x218   : > { %v1971_v43 = vadd.f32 %v1970_v26, %v1881_v61  ;;  %v2431_v7 = vpop.f32.mrf.mxu0 }
 0x219   : > { %v9981_v25 = vadd.f32 %v2431_v7, %v2225_v48  ;;  %v382_v48 = vand.u32 15, %v250_v49 }
 0x21a   : > { %v2054_v39 = vpop.f32.mrf.mxu3  ;;  %v1889_v6 = vpop.f32.mrf.mxu1 }
 0x21b   : > { %v2055_v23 = vadd.f32 %v2054_v39, %v1966_v28  ;;  %2470 = vmatmul.bf16.gmra.mxu0 %v9774_v53  ;;  %vm9995_vm9 = vcmp.gt.s32.totalorder %v382_v48, 0 }
 0x21c   : > { %2593 = vmatmul.bf16.gmra.mxu2 %v9395_v58  ;;  %v13005_v56 = vsel %vm9995_vm9, 4294967295, %v13004_v56 }
 0x21d   : > { %v2103_v3 = vrot.slane %v2055_v23, 7  ;;  %2509 = vmatmul.bf16.gmra.mxu1 %v9387_v52  ;;  %13006 = vst [vmem:[#allocation37_spill] sm:$0xff] %v13005_v56 }
 0x21f   : > { %2870 = vmatmul.bf16.gmra.mxu3 %v9308_v37  ;;  %v9990_v61 = vsel %vm12872_vm7, %v2102_v57, %v2103_v3  ;;  %v1973_v26 = vpop.f32.mrf.mxu2 }
 0x220   : > { %v1974_v59 = vadd.f32 %v1973_v26, %v1884_v9  ;;  %v2433_v17 = vpop.f32.mrf.mxu0  ;;  %v2227_v9 = vsel %vm9995_vm9, %v9908_v32, 0.0  ;;  %v8363_v32 = vld [vmem:[%s12816_s3 + $0x218] sm:$0xff] }
 0x221   : > { %v9993_v63 = vadd.f32 %v2433_v17, %v9897_v60  ;;  %3029 = vmatpush.bf16.msra.mxu1 %v8363_v32 }
 0x222   : > { %v2057_v28 = vpop.f32.mrf.mxu3  ;;  %v1891_v39 = vpop.f32.mrf.mxu1 }
 0x223   : > { %v2058_v7 = vadd.f32 %v2057_v28, %v1969_v35 }
 0x225   : > { %v2104_v23 = vrot.slane %v2058_v7, 7 }
 0x227   : > { %v10001_v37 = vsel %vm12872_vm7, %v2103_v3, %v2104_v23  ;;  %v1975_v57 = vpop.f32.mrf.mxu2  ;;  %v252_v3 = vadd.s32 144, %v9532_v1 }
 0x228   : > { %v1976_v58 = vadd.f32 %v1975_v57, %v1886_v41  ;;  %v2436_v60 = vpop.f32.mrf.mxu0 }
 0x229   : > { %v10006_v49 = vadd.f32 %v2436_v60, %v2227_v9  ;;  %v396_v9 = vand.u32 15, %v252_v3 }
 0x22a   : > { %v2059_v26 = vpop.f32.mrf.mxu3  ;;  %v1894_v17 = vpop.f32.mrf.mxu1 }
 0x22b   : > { %v2060_v35 = vadd.f32 %v2059_v26, %v1971_v43  ;;  %2944 = vmatmul.bf16.vlgmr.msra.gmra.mxu0 %v9250_v16  ;;  %vm10023_vm10 = vcmp.gt.s32.totalorder %v396_v9, 0 }
 0x22c   : > { %2598 = vmatmul.bf16.gmra.mxu2 %v9420_v44  ;;  %v2229_v32 = vsel %vm10023_vm10, %v9945_v40, 0.0 }
 0x22d   : > { %v2105_v28 = vrot.slane %v2060_v35, 7  ;;  %2514 = vmatmul.bf16.gmra.mxu1 %v9412_v36  ;;  %v13007_v35 = vmov 0 }
 0x22e   : > { %v13008_v35 = vsel %vm10023_vm10, 4294967295, %v13007_v35 }
 0x22f   : > { %2875 = vmatmul.bf16.gmra.mxu3 %v9343_v24  ;;  %v10018_v41 = vsel %vm12872_vm7, %v2104_v23, %v2105_v28  ;;  %v1978_v43 = vpop.f32.mrf.mxu2  ;;  %13009 = vst [vmem:[#allocation38_spill] sm:$0xff] %v13008_v35 }
 0x230   : > { %v1979_v48 = vadd.f32 %v1978_v43, %v1889_v6  ;;  %v2438_v16 = vpop.f32.mrf.mxu0 }
 0x231   : > { %v10021_v57 = vadd.f32 %v2438_v16, %v9928_v29 }
 0x232   : > { %v2062_v7 = vpop.f32.mrf.mxu3  ;;  %v1896_v26 = vpop.f32.mrf.mxu1 }
 0x233   : > { %v2063_v60 = vadd.f32 %v2062_v7, %v1974_v59 }
 0x235   : > { %v2106_v24 = vrot.slane %v2063_v60, 7 }
 0x237   : > { %v10029_v23 = vsel %vm12872_vm7, %v2105_v28, %v2106_v24  ;;  %v1980_v56 = vpop.f32.mrf.mxu2  ;;  %v254_v28 = vadd.s32 160, %v9532_v1 }
 0x238   : > { %v1981_v6 = vadd.f32 %v1980_v56, %v1891_v39  ;;  %v2441_v29 = vpop.f32.mrf.mxu0 }
 0x239   : > { %v10034_v3 = vadd.f32 %v2441_v29, %v2229_v32 }
 0x23a   : > { %v2064_v43 = vpop.f32.mrf.mxu3  ;;  %v1899_v16 = vpop.f32.mrf.mxu1 }
 0x23b   : > { %v2065_v59 = vadd.f32 %v2064_v43, %v1976_v58  ;;  %2949 = vmatmul.bf16.gmra.mxu0 %v9270_v54  ;;  %v410_v54 = vand.u32 15, %v254_v28 }
 0x23c   : > { %2603 = vmatmul.bf16.gmra.mxu2 %v9449_v33 }
 0x23d   : > { %v2107_v7 = vrot.slane %v2065_v59, 7  ;;  %2519 = vmatmul.bf16.gmra.mxu1 %v9441_v30  ;;  %vm10048_vm11 = vcmp.gt.s32.totalorder %v410_v54, 0  ;;  %v13010_v59 = vmov 0 }
 0x23e   : > { %v13011_v59 = vsel %vm10048_vm11, 4294967295, %v13010_v59 }
 0x23f   : > { %2880 = vmatmul.bf16.gmra.mxu3 %v9369_v10  ;;  %v10043_v56 = vsel %vm12872_vm7, %v2106_v24, %v2107_v7  ;;  %v1983_v40 = vpop.f32.mrf.mxu2  ;;  %13012 = vst [vmem:[#allocation39_spill] sm:$0xff] %v13011_v59 }
 0x240   : > { %v1984_v39 = vadd.f32 %v1983_v40, %v1894_v17  ;;  %v2443_v9 = vpop.f32.mrf.mxu0  ;;  %v2231_v17 = vsel %vm10048_vm11, %v9976_v18, 0.0 }
 0x241   : > { %v10046_v60 = vadd.f32 %v2443_v9, %v9965_v12 }
 0x242   : > { %v2067_v58 = vpop.f32.mrf.mxu3  ;;  %v1901_v29 = vpop.f32.mrf.mxu1 }
 0x243   : > { %v2068_v32 = vadd.f32 %v2067_v58, %v1979_v48 }
 0x245   : > { %v2108_v43 = vrot.slane %v2068_v32, 7 }
 0x247   : > { %v10054_v10 = vsel %vm12872_vm7, %v2107_v7, %v2108_v43  ;;  %v1985_v24 = vpop.f32.mrf.mxu2  ;;  %v13013_v7 = vld [vmem:[#allocation7_spill] sm:$0xff] }
 0x248   : > { %v1986_v35 = vadd.f32 %v1985_v24, %v1896_v26  ;;  %v2446_v12 = vpop.f32.mrf.mxu0  ;;  %v256_v26 = vadd.s32 176, %v9532_v1 }
 0x249   : > { %v10059_v28 = vadd.f32 %v2446_v12, %v2231_v17 }
 0x24a   : > { %v2069_v40 = vpop.f32.mrf.mxu3  ;;  %v10061_v9 = vpop.f32.mrf.mxu1 }
 0x24b   : > { %v2070_v48 = vadd.f32 %v2069_v40, %v1981_v6  ;;  %2954 = vmatmul.bf16.gmra.mxu0 %v9305_v34  ;;  %v424_v34 = vand.u32 15, %v256_v26 }
 0x24c   : > { %2608 = vmatmul.bf16.gmra.mxu2 %v9478_v62  ;;  %v270_v62 = vand.u32 15, %v9532_v1 }
 0x24d   : > { %v2109_v58 = vrot.slane %v2070_v48, 7  ;;  %2524 = vmatmul.bf16.gmra.mxu1 %v9470_v38  ;;  %v8362_v48 = vld [vmem:[%s12816_s3 + $0x210] sm:$0xff]  ;;  %vm10079_vm12 = vcmp.gt.s32.totalorder %v424_v34, 0 }
 0x24e   : > { %3030 = vmatpush.bf16.msra.mxu1 %v8362_v48  ;;  %v13017_v48 = vld [vmem:[#allocation15_spill] sm:$0xff]  ;;  %vm10124_vm14 = vcmp.gt.s32.totalorder %v270_v62, 0  ;;  %v8375_v62 = vld [vmem:[%s12814_s1 + $0x78] sm:$0xff] }
 0x24f   : > { %2885 = vmatmul.bf16.gmra.mxu3 %v13013_v7  ;;  %v10070_v18 = vsel %vm12872_vm7, %v2108_v43, %v2109_v58  ;;  %v1988_v54 = vpop.f32.mrf.mxu2  ;;  %v13014_v43 = vmov 0  ;;  %3909 = vmatpush.bf16.msra.mxu2 %v8375_v62 }
 0x250   : > { %v1989_v32 = vadd.f32 %v1988_v54, %v1899_v16  ;;  %v2448_v6 = vpop.f32.mrf.mxu0  ;;  %v13015_v43 = vsel %vm10079_vm12, 4294967295, %v13014_v43 }
 0x251   : > { %v10073_v17 = vadd.f32 %v2448_v6, %v9990_v61  ;;  %13016 = vst [vmem:[#allocation7_spill] sm:$0xff] %v13015_v43 }
 0x252   : > { %v2072_v24 = vpop.f32.mrf.mxu3  ;;  %v2487_v40 = vpop.f32.mrf.mxu1 }
 0x253   : > { %v2073_v12 = vadd.f32 %v2072_v24, %v1984_v39  ;;  %v2488_v7 = vadd.f32 %v2487_v40, %v9726_v27  ;;  %v2233_v39 = vsel %vm10079_vm12, %v10001_v37, 0.0 }
 0x255   : > { %v2110_v59 = vrot.slane %v2073_v12, 7 }
 0x257   : > { %v10085_v16 = vsel %vm12872_vm7, %v2109_v58, %v2110_v59  ;;  %v1990_v61 = vpop.f32.mrf.mxu2  ;;  %v13018_v58 = vld [vmem:[#allocation14_spill] sm:$0xff] }
 0x258   : > { %v1991_v26 = vadd.f32 %v1990_v61, %v1901_v29  ;;  %v2451_v54 = vpop.f32.mrf.mxu0  ;;  %v258_v29 = vadd.s32 192, %v9532_v1  ;;  %v13019_v61 = vld [vmem:[#allocation9_spill] sm:$0xff] }
 0x259   : > { %v10090_v24 = vadd.f32 %v2451_v54, %v2233_v39 }
 0x25a   : > { %v2074_v6 = vpop.f32.mrf.mxu3  ;;  %v2490_v12 = vpop.f32.mrf.mxu1 }
 0x25b   : > { %v2075_v27 = vadd.f32 %v2074_v6, %v1986_v35  ;;  %v2491_v34 = vadd.f32 %v2490_v12, %v9760_v0  ;;  %2959 = vmatmul.bf16.gmra.mxu0 %v9340_v21  ;;  %v438_v21 = vand.u32 15, %v258_v29 }
 0x25c   : > { %2613 = vmatmul.bf16.gmra.mxu2 %v13017_v48  ;;  %v13020_v48 = vmov 0 }
 0x25d   : > { %v2111_v40 = vrot.slane %v2075_v27, 7  ;;  %2529 = vmatmul.bf16.gmra.mxu1 %v13018_v58  ;;  %vm10106_vm13 = vcmp.gt.s32.totalorder %v438_v21, 0 }
 0x25e   : > { %v13021_v48 = vsel %vm10106_vm13, 4294967295, %v13020_v48 }
 0x25f   : > { %2890 = vmatmul.bf16.gmra.mxu3 %v13019_v61  ;;  %v10100_v37 = vsel %vm12872_vm7, %v2110_v59, %v2111_v40  ;;  %v2574_v39 = vpop.f32.mrf.mxu2  ;;  %13022 = vst [vmem:[#allocation14_spill] sm:$0xff] %v13021_v48 }
 0x260   : > { %v2453_v35 = vpop.f32.mrf.mxu0 }
 0x261   : > { %v10103_v0 = vadd.f32 %v2453_v35, %v10018_v41  ;;  %v2235_v41 = vsel %vm10106_vm13, %v10029_v23, 0.0  ;;  %v260_v23 = vadd.s32 208, %v9532_v1 }
 0x262   : > { %v2077_v54 = vpop.f32.mrf.mxu3  ;;  %v2492_v27 = vpop.f32.mrf.mxu1 }
 0x263   : > { %v2078_v6 = vadd.f32 %v2077_v54, %v1989_v32  ;;  %v2493_v12 = vadd.f32 %v2492_v27, %v9794_v15  ;;  %v13028_v27 = vld [vmem:[#allocation17_spill] sm:$0xff] }
 0x265   : > { %v2112_v43 = vrot.slane %v2078_v6, 7  ;;  %v13027_v6 = vld [vmem:[#allocation18_spill] sm:$0xff] }
 0x267   : > { %v10112_v59 = vsel %vm12872_vm7, %v2111_v40, %v2112_v43  ;;  %v2576_v61 = vpop.f32.mrf.mxu2  ;;  %v13024_v40 = vmov 0 }
 0x268   : > { %v10115_v33 = vadd.f32 %v2576_v61, %v2488_v7  ;;  %v2456_v32 = vpop.f32.mrf.mxu0  ;;  %v13025_v40 = vsel %vm10124_vm14, 4294967295, %v13024_v40  ;;  %v13029_v61 = vld [vmem:[#allocation16_spill] sm:$0xff] }
 0x269   : > { %v10120_v29 = vadd.f32 %v2456_v32, %v2235_v41  ;;  %13026 = vst [vmem:[#allocation40_spill] sm:$0xff] %v13025_v40  ;;  %v13030_v41 = vrot.slane %v13029_v61, 7  ;;  %v13031_v32 = vld [vmem:[#allocation11_spill] sm:$0xff] }
 0x26a   : > { %13023 = vst [vmem:[#allocation9_spill] sm:$0xff] %v10115_v33  ;;  %v2079_v15 = vpop.f32.mrf.mxu3  ;;  %v2495_v54 = vpop.f32.mrf.mxu1  ;;  %v452_v33 = vand.u32 15, %v260_v23 }
 0x26b   : > { %v2080_v35 = vadd.f32 %v2079_v15, %v1991_v26  ;;  %v2496_v21 = vadd.f32 %v2495_v54, %v9815_v42  ;;  %2964 = vmatmul.bf16.gmra.mxu0 %v9366_v5  ;;  %v8361_v5 = vld [vmem:[%s12816_s3 + $0x208] sm:$0xff]  ;;  %v13032_v54 = vld [vmem:[#allocation23_spill] sm:$0xff] }
 0x26c   : > { %2618 = vmatmul.bf16.gmra.mxu2 %v13027_v6  ;;  %3031 = vmatpush.bf16.msra.mxu1 %v8361_v5  ;;  %vm10158_vm15 = vcmp.gt.s32.totalorder %v452_v33, 0  ;;  %v13037_v33 = vld [vmem:[#allocation19_spill] sm:$0xff] }
 0x26d   : > { %v2113_v7 = vrot.slane %v2080_v35, 7  ;;  %2534 = vmatmul.bf16.gmra.mxu1 %v13028_v27 }
 0x26f   : > { %v2146_v26 = vsel %vm12872_vm7, %v2113_v7, %v13030_v41  ;;  %2895 = vmatmul.bf16.gmra.mxu3 %v13031_v32  ;;  %v10144_v42 = vsel %vm12872_vm7, %v2112_v43, %v2113_v7  ;;  %v2579_v35 = vpop.f32.mrf.mxu2 }
 0x270   : > { %v2211_v15 = vsel %vm10124_vm14, %v2146_v26, 0.0  ;;  %v10149_v41 = vadd.f32 %v2579_v35, %v2491_v34  ;;  %v2458_v32 = vpop.f32.mrf.mxu0  ;;  %v13033_v26 = vmov 0  ;;  %vm13173_vm14 = vcmp.lt.s32.totalorder %v9532_v1, 7 }
 0x271   : > { %v2397_v61 = vadd.f32 %v13032_v54, %v2211_v15  ;;  %v10152_v48 = vadd.f32 %v2458_v32, %v10043_v56  ;;  %v13034_v26 = vsel %vm10158_vm15, 4294967295, %v13033_v26  ;;  %v2237_v56 = vsel %vm10158_vm15, %v10054_v10, 0.0 }
 0x272   : > { %v2497_v44 = vpop.f32.mrf.mxu1  ;;  %13035 = vst [vmem:[#allocation17_spill] sm:$0xff] %v13034_v26  ;;  %vm13094_vm15 = vcmp.lt.s32.totalorder %v9532_v1, 7 }
 0x273   : > { %v2486_v6 = vadd.f32 %v10061_v9, %v2397_v61  ;;  %v2498_v43 = vadd.f32 %v2497_v44, %v9842_v4  ;;  %v13036_v44 = vld [vmem:[#allocation20_spill] sm:$0xff]  ;;  %v262_v4 = vadd.s32 224, %v9532_v1 }
 0x275   : > { %v10156_v7 = vadd.f32 %v2574_v39, %v2486_v6  ;;  %v466_v35 = vand.u32 15, %v262_v4 }
 0x277   : > { %v2581_v34 = vpop.f32.mrf.mxu2  ;;  %vm10181_vm1 = vcmp.gt.s32.totalorder %v466_v35, 0 }
 0x278   : > { %v10162_v15 = vadd.f32 %v2581_v34, %v2493_v12  ;;  %v2461_v5 = vpop.f32.mrf.mxu0 }
 0x279   : > { %v10167_v23 = vadd.f32 %v2461_v5, %v2237_v56  ;;  %v13042_v5 = vld [vmem:[#allocation21_spill] sm:$0xff] }
 0x27a   : > { %v2500_v9 = vpop.f32.mrf.mxu1 }
 0x27b   : > { %v2501_v62 = vadd.f32 %v2500_v9, %v9855_v14  ;;  %2969 = vmatmul.bf16.gmra.mxu0 %v9387_v52  ;;  %v13038_v52 = vmov 0  ;;  %v264_v9 = vadd.s32 240, %v9532_v1 }
 0x27c   : > { %2623 = vmatmul.bf16.gmra.mxu2 %v13036_v44  ;;  %v13039_v52 = vsel %vm10181_vm1, 4294967295, %v13038_v52 }
 0x27d   : > { %2539 = vmatmul.bf16.gmra.mxu1 %v13037_v33  ;;  %13040 = vst [vmem:[#allocation16_spill] sm:$0xff] %v13039_v52 }
 0x27f   : > { %2900 = vmatmul.bf16.gmra.mxu3 %v9474_v8  ;;  %v2584_v39 = vpop.f32.mrf.mxu2  ;;  %v2239_v8 = vsel %vm10181_vm1, %v10085_v16, 0.0  ;;  %v8360_v16 = vld [vmem:[%s12816_s3 + $0x200] sm:$0xff] }
 0x280   : > { %v10175_v12 = vadd.f32 %v2584_v39, %v2496_v21  ;;  %v2463_v10 = vpop.f32.mrf.mxu0  ;;  %3032 = vmatpush.bf16.msra.mxu1 %v8360_v16 }
 0x281   : > { %v10178_v6 = vadd.f32 %v2463_v10, %v10070_v18  ;;  %v480_v10 = vand.u32 15, %v264_v9 }
 0x282   : > { %v2502_v54 = vpop.f32.mrf.mxu1 }
 0x283   : > { %v2503_v14 = vadd.f32 %v2502_v54, %v9869_v45  ;;  %v13041_v45 = vld [vmem:[#allocation22_spill] sm:$0xff]  ;;  %vm10212_vm7 = vcmp.gt.s32.totalorder %v480_v10, 0  ;;  %v13043_v54 = vmov 0 }
 0x284   : > { %v13044_v54 = vsel %vm10212_vm7, 4294967295, %v13043_v54 }
 0x285   : > { %13045 = vst [vmem:[#allocation11_spill] sm:$0xff] %v13044_v54 }
 0x287   : > { %v2586_v61 = vpop.f32.mrf.mxu2 }
 0x288   : > { %v10185_v32 = vadd.f32 %v2586_v61, %v2498_v43  ;;  %v2466_v21 = vpop.f32.mrf.mxu0  ;;  %v8374_v43 = vld [vmem:[%s12814_s1 + $0x70] sm:$0xff] }
 0x289   : > { %v10190_v34 = vadd.f32 %v2466_v21, %v2239_v8  ;;  %3910 = vmatpush.bf16.msra.mxu2 %v8374_v43  ;;  %v2856_v8 = vpop.f32.mrf.mxu3  ;;  %v13047_v43 = vld [vmem:[#allocation24_spill] sm:$0xff] }
 0x28a   : > { %v2505_v18 = vpop.f32.mrf.mxu1 }
 0x28b   : > { %v2506_v56 = vadd.f32 %v2505_v18, %v9882_v47  ;;  %2974 = vmatmul.bf16.gmra.mxu0 %v9412_v36 }
 0x28c   : > { %2628 = vmatmul.bf16.gmra.mxu2 %v13041_v45 }
 0x28d   : > { %2544 = vmatmul.bf16.gmra.mxu1 %v13042_v5 }
 0x28f   : > { %2905 = vmatmul.bf16.gmra.mxu3 %v9506_v51  ;;  %v2589_v4 = vpop.f32.mrf.mxu2 }
 0x290   : > { %v10204_v47 = vadd.f32 %v2589_v4, %v2501_v62  ;;  %v2468_v36 = vpop.f32.mrf.mxu0  ;;  %v2241_v62 = vsel %vm10212_vm7, %v10112_v59, 0.0  ;;  %vm12882_vm7 = vcmp.lt.s32.totalorder %v9532_v1, 7 }
 0x291   : > { %v10207_v39 = vadd.f32 %v2468_v36, %v10100_v37  ;;  %v2858_v10 = vpop.f32.mrf.mxu3 }
 0x292   : > { %v2507_v35 = vpop.f32.mrf.mxu1 }
 0x293   : > { %v10210_v51 = vadd.f32 %v2507_v35, %v9900_v55  ;;  %v13046_v55 = vld [vmem:[#allocation25_spill] sm:$0xff] }
 0x297   : > { %v2591_v61 = vpop.f32.mrf.mxu2 }
 0x298   : > { %v10216_v21 = vadd.f32 %v2591_v61, %v2503_v14  ;;  %v2471_v18 = vpop.f32.mrf.mxu0 }
 0x299   : > { %v10221_v37 = vadd.f32 %v2471_v18, %v2241_v62 }
 0x29a   : > { %v2510_v9 = vpop.f32.mrf.mxu1 }
 0x29b   : > { %v2511_v16 = vadd.f32 %v2510_v9, %v9916_v31  ;;  %2979 = vmatmul.bf16.gmra.mxu0 %v9441_v30 }
 0x29c   : > { %2633 = vmatmul.bf16.gmra.mxu2 %v13046_v55 }
 0x29d   : > { %2549 = vmatmul.bf16.gmra.mxu1 %v13047_v43 }
 0x29f   : > { %2910 = vmatmul.bf16.gmra.mxu3 %v9549_v46  ;;  %v2594_v14 = vpop.f32.mrf.mxu2 }
 0x2a0   : > { %v10228_v4 = vadd.f32 %v2594_v14, %v2506_v56  ;;  %v2473_v36 = vpop.f32.mrf.mxu0  ;;  %v2861_v56 = vpop.f32.mrf.mxu3 }
 0x2a1   : > { %v10231_v59 = vadd.f32 %v2473_v36, %v10144_v42  ;;  %v13048_v42 = vld [vmem:[#allocation27_spill] sm:$0xff] }
 0x2a2   : > { %v2512_v35 = vpop.f32.mrf.mxu1 }
 0x2a3   : > { %v10234_v61 = vadd.f32 %v2512_v35, %v9934_v13  ;;  %v8373_v13 = vld [vmem:[%s12814_s1 + $0x68] sm:$0xff] }
 0x2a4   : > { %3911 = vmatpush.bf16.msra.mxu2 %v8373_v13  ;;  %v13050_v13 = vld [vmem:[#allocation29_spill] sm:$0xff] }
 0x2a7   : > { %v10236_v31 = vpop.f32.mrf.mxu2 }
 0x2a8   : > { %v2945_v30 = vpop.f32.mrf.mxu0  ;;  %v2863_v35 = vpop.f32.mrf.mxu3 }
 0x2a9   : > { %v10238_v62 = vadd.f32 %v2945_v30, %v2856_v8 }
 0x2aa   : > { %v2515_v18 = vpop.f32.mrf.mxu1 }
 0x2ab   : > { %v2516_v46 = vadd.f32 %v2515_v18, %v9953_v2  ;;  %2984 = vmatmul.bf16.gmra.mxu0 %v9470_v38 }
 0x2ac   : > { %2638 = vmatmul.bf16.gmra.mxu2 %v9777_v20 }
 0x2ad   : > { %2554 = vmatmul.bf16.gmra.mxu1 %v13048_v42 }
 0x2af   : > { %2915 = vmatmul.bf16.gmra.mxu3 %v9593_v22  ;;  %v2599_v9 = vpop.f32.mrf.mxu2 }
 0x2b0   : > { %v10248_v14 = vadd.f32 %v2599_v9, %v2511_v16  ;;  %v2947_v8 = vpop.f32.mrf.mxu0  ;;  %v13049_v16 = vld [vmem:[#allocation30_spill] sm:$0xff] }
 0x2b1   : > { %v10250_v36 = vadd.f32 %v2947_v8, %v2858_v10 }
 0x2b2   : > { %v2517_v2 = vpop.f32.mrf.mxu1 }
 0x2b3   : > { %v10253_v38 = vadd.f32 %v2517_v2, %v9968_v11  ;;  %v2866_v11 = vpop.f32.mrf.mxu3 }
 0x2b7   : > { %v10255_v30 = vpop.f32.mrf.mxu2 }
 0x2b8   : > { %v2950_v18 = vpop.f32.mrf.mxu0 }
 0x2b9   : > { %v10257_v22 = vadd.f32 %v2950_v18, %v2861_v56 }
 0x2ba   : > { %v2520_v54 = vpop.f32.mrf.mxu1 }
 0x2bb   : > { %v2521_v52 = vadd.f32 %v2520_v54, %v9981_v25  ;;  %2989 = vmatmul.bf16.gmra.mxu0 %v13018_v58  ;;  %v2868_v26 = vpop.f32.mrf.mxu3 }
 0x2bc   : > { %2643 = vmatmul.bf16.gmra.mxu2 %v13049_v16 }
 0x2bd   : > { %2559 = vmatmul.bf16.gmra.mxu1 %v13050_v13 }
 0x2bf   : > { %2920 = vmatmul.bf16.gmra.mxu3 %v9641_v19  ;;  %v2604_v10 = vpop.f32.mrf.mxu2 }
 0x2c0   : > { %v10264_v9 = vadd.f32 %v2604_v10, %v2516_v46  ;;  %v2952_v8 = vpop.f32.mrf.mxu0  ;;  %v13053_v46 = vld [vmem:[#allocation32_spill] sm:$0xff]  ;;  %v13054_v10 = vld [vmem:[#allocation3_spill] sm:$0xff] }
 0x2c1   : > { %v10266_v2 = vadd.f32 %v2952_v8, %v2863_v35 }
 0x2c2   : > { %v2522_v56 = vpop.f32.mrf.mxu1 }
 0x2c3   : > { %v10269_v18 = vadd.f32 %v2522_v56, %v9993_v63  ;;  %v8372_v63 = vld [vmem:[%s12814_s1 + $0x60] sm:$0xff] }
 0x2c4   : > { %3912 = vmatpush.bf16.msra.mxu2 %v8372_v63 }
 0x2c5   : > { %13051 = vst [vmem:[#allocation23_spill] sm:$0xff] %v10269_v18 }
 0x2c7   : > { %v10271_v25 = vpop.f32.mrf.mxu2 }
 0x2c8   : > { %13052 = vst [vmem:[#allocation20_spill] sm:$0xff] %v10271_v25  ;;  %v2955_v58 = vpop.f32.mrf.mxu0 }
 0x2c9   : > { %v10273_v54 = vadd.f32 %v2955_v58, %v2866_v11 }
 0x2ca   : > { %v2525_v40 = vpop.f32.mrf.mxu1 }
 0x2cb   : > { %v2526_v19 = vadd.f32 %v2525_v40, %v10006_v49  ;;  %2994 = vmatmul.bf16.gmra.mxu0 %v13028_v27  ;;  %v2871_v27 = vpop.f32.mrf.mxu3 }
 0x2cc   : > { %2648 = vmatmul.bf16.gmra.mxu2 %v13053_v46 }
 0x2cd   : > { %3033 = vmatmul.bf16.vlgmr.msra.gmra.mxu1 %v13054_v10 }
 0x2cf   : > { %2925 = vmatmul.bf16.gmra.mxu3 %v9699_v50  ;;  %v2609_v35 = vpop.f32.mrf.mxu2 }
 0x2d0   : > { %v10283_v11 = vadd.f32 %v2609_v35, %v2521_v52  ;;  %v2957_v8 = vpop.f32.mrf.mxu0  ;;  %v13055_v52 = vld [vmem:[#allocation4_spill] sm:$0xff] }
 0x2d1   : > { %v10285_v56 = vadd.f32 %v2957_v8, %v2868_v26 }
 0x2d2   : > { %v2527_v49 = vpop.f32.mrf.mxu1 }
 0x2d3   : > { %v10288_v40 = vadd.f32 %v2527_v49, %v10021_v57  ;;  %v2873_v63 = vpop.f32.mrf.mxu3 }
 0x2d7   : > { %v10290_v58 = vpop.f32.mrf.mxu2 }
 0x2d8   : > { %v2960_v10 = vpop.f32.mrf.mxu0 }
 0x2d9   : > { %v10292_v18 = vadd.f32 %v2960_v10, %v2871_v27 }
 0x2da   : > { %v2530_v25 = vpop.f32.mrf.mxu1 }
 0x2db   : > { %v2531_v50 = vadd.f32 %v2530_v25, %v10034_v3  ;;  %2999 = vmatmul.bf16.gmra.mxu0 %v13037_v33  ;;  %v13056_v25 = vld [vmem:[#allocation5_spill] sm:$0xff] }
 0x2dd   : > { %3038 = vmatmul.bf16.gmra.mxu1 %v13055_v52 }
 0x2df   : > { %2930 = vmatmul.bf16.gmra.mxu3 %v9774_v53  ;;  %v2614_v26 = vpop.f32.mrf.mxu2  ;;  %v8371_v53 = vld [vmem:[%s12814_s1 + $0x58] sm:$0xff] }
 0x2e0   : > { %v10298_v35 = vadd.f32 %v2614_v26, %v2526_v19  ;;  %v2962_v57 = vpop.f32.mrf.mxu0  ;;  %3913 = vmatpush.bf16.msra.mxu2 %v8371_v53 }
 0x2e1   : > { %v10300_v8 = vadd.f32 %v2962_v57, %v2873_v63 }
 0x2e2   : > { %v2532_v49 = vpop.f32.mrf.mxu1 }
 0x2e3   : > { %v10303_v27 = vadd.f32 %v2532_v49, %v10046_v60 }
 0x2e7   : > { %v10305_v10 = vpop.f32.mrf.mxu2 }
 0x2ea   : > { %v2535_v3 = vpop.f32.mrf.mxu1 }
 0x2eb   : > { %v2536_v33 = vadd.f32 %v2535_v3, %v10059_v28  ;;  %3004 = vmatmul.bf16.gmra.mxu0 %v13042_v5  ;;  %v13058_v5 = vld [vmem:[#allocation6_spill] sm:$0xff] }
 0x2ed   : > { %3043 = vmatmul.bf16.gmra.mxu1 %v13056_v25 }
 0x2ef   : > { %v2619_v19 = vpop.f32.mrf.mxu2 }
 0x2f0   : > { %v10313_v52 = vadd.f32 %v2619_v19, %v2531_v50 }
 0x2f2   : > { %v2537_v63 = vpop.f32.mrf.mxu1 }
 0x2f3   : > { %v10316_v60 = vadd.f32 %v2537_v63, %v10073_v17  ;;  %v13062_v63 = vld [vmem:[#allocation8_spill] sm:$0xff] }
 0x2f5   : > { %13057 = vst [vmem:[#allocation19_spill] sm:$0xff] %v10316_v60 }
 0x2f7   : > { %v10318_v26 = vpop.f32.mrf.mxu2 }
 0x2fa   : > { %v2540_v57 = vpop.f32.mrf.mxu1 }
 0x2fb   : > { %v2541_v28 = vadd.f32 %v2540_v57, %v10090_v24  ;;  %3009 = vmatmul.bf16.gmra.mxu0 %v13047_v43  ;;  %v8370_v24 = vld [vmem:[%s12814_s1 + $0x50] sm:$0xff] }
 0x2fc   : > { %3914 = vmatpush.bf16.msra.mxu2 %v8370_v24 }
 0x2fd   : > { %3048 = vmatmul.bf16.gmra.mxu1 %v13058_v5 }
 0x2ff   : > { %v2624_v49 = vpop.f32.mrf.mxu2 }
 0x300   : > { %v10323_v3 = vadd.f32 %v2624_v49, %v2536_v33 }
 0x302   : > { %13059 = vst [vmem:[#allocation22_spill] sm:$0xff] %v10323_v3  ;;  %v2542_v25 = vpop.f32.mrf.mxu1 }
 0x303   : > { %v10326_v50 = vadd.f32 %v2542_v25, %v10103_v0  ;;  %v13066_v25 = vld [vmem:[#allocation10_spill] sm:$0xff] }
 0x305   : > { %13060 = vst [vmem:[#allocation21_spill] sm:$0xff] %v10326_v50 }
 0x307   : > { %v10328_v53 = vpop.f32.mrf.mxu2 }
 0x308   : > { %13061 = vst [vmem:[#allocation25_spill] sm:$0xff] %v10328_v53 }
 0x30a   : > { %v2545_v17 = vpop.f32.mrf.mxu1 }
 0x30b   : > { %v2546_v19 = vadd.f32 %v2545_v17, %v10120_v29  ;;  %3014 = vmatmul.bf16.gmra.mxu0 %v13048_v42  ;;  %v8455_v29 = vld [vmem:[%s12816_s3 + $0x278] sm:$0xff] }
 0x30c   : > { %5040 = vmatpush.bf16.msra.mxu3 %v8455_v29  ;;  %v13070_v29 = vld [vmem:[#allocation12_spill] sm:$0xff] }
 0x30d   : > { %3053 = vmatmul.bf16.gmra.mxu1 %v13062_v63 }
 0x30f   : > { %v2629_v43 = vpop.f32.mrf.mxu2 }
 0x310   : > { %v10336_v33 = vadd.f32 %v2629_v43, %v2541_v28 }
 0x312   : > { %13063 = vst [vmem:[#allocation24_spill] sm:$0xff] %v10336_v33  ;;  %v2547_v57 = vpop.f32.mrf.mxu1 }
 0x313   : > { %v10339_v0 = vadd.f32 %v2547_v57, %v10152_v48 }
 0x315   : > { %13064 = vst [vmem:[#allocation27_spill] sm:$0xff] %v10339_v0 }
 0x317   : > { %v10344_v42 = vpop.f32.mrf.mxu2 }
 0x318   : > { %13065 = vst [vmem:[#allocation30_spill] sm:$0xff] %v10344_v42 }
 0x31a   : > { %v2550_v5 = vpop.f32.mrf.mxu1 }
 0x31b   : > { %v2551_v49 = vadd.f32 %v2550_v5, %v10167_v23  ;;  %3019 = vmatmul.bf16.gmra.mxu0 %v13050_v13  ;;  %v8369_v23 = vld [vmem:[%s12814_s1 + $0x48] sm:$0xff] }
 0x31c   : > { %3915 = vmatpush.bf16.msra.mxu2 %v8369_v23  ;;  %v10377_v23 = vpop.f32.mrf.mxu3 }
 0x31d   : > { %3058 = vmatmul.bf16.gmra.mxu1 %v13066_v25 }
 0x31f   : > { %v2634_v28 = vpop.f32.mrf.mxu2 }
 0x320   : > { %v10349_v17 = vadd.f32 %v2634_v28, %v2546_v19 }
 0x322   : > { %13067 = vst [vmem:[#allocation29_spill] sm:$0xff] %v10349_v17  ;;  %v2552_v63 = vpop.f32.mrf.mxu1  ;;  %v10372_v17 = vpop.f32.mrf.mxu0 }
 0x323   : > { %v10352_v48 = vadd.f32 %v2552_v63, %v10178_v6 }
 0x325   : > { %13068 = vst [vmem:[#allocation32_spill] sm:$0xff] %v10352_v48 }
 0x327   : > { %v10354_v24 = vpop.f32.mrf.mxu2 }
 0x328   : > { %13069 = vst [vmem:[#allocation3_spill] sm:$0xff] %v10354_v24 }
 0x32a   : > { %v2555_v43 = vpop.f32.mrf.mxu1 }
 0x32b   : > { %v2556_v57 = vadd.f32 %v2555_v43, %v10190_v34  ;;  %v13074_v34 = vld [vmem:[#allocation13_spill] sm:$0xff] }
 0x32d   : > { %3063 = vmatmul.bf16.gmra.mxu1 %v13070_v29 }
 0x32f   : > { %v2639_v13 = vpop.f32.mrf.mxu2 }
 0x330   : > { %v10361_v5 = vadd.f32 %v2639_v13, %v2551_v49 }
 0x332   : > { %13071 = vst [vmem:[#allocation4_spill] sm:$0xff] %v10361_v5  ;;  %v2557_v19 = vpop.f32.mrf.mxu1  ;;  %v13078_v5 = vld [vmem:[#allocation15_spill] sm:$0xff] }
 0x333   : > { %v10364_v25 = vadd.f32 %v2557_v19, %v10207_v39  ;;  %v10381_v19 = vpop.f32.mrf.mxu0 }
 0x335   : > { %13072 = vst [vmem:[#allocation5_spill] sm:$0xff] %v10364_v25 }
 0x337   : > { %v10366_v6 = vpop.f32.mrf.mxu2 }
 0x338   : > { %13073 = vst [vmem:[#allocation6_spill] sm:$0xff] %v10366_v6 }
 0x33a   : > { %v2560_v28 = vpop.f32.mrf.mxu1 }
 0x33b   : > { %v2561_v63 = vadd.f32 %v2560_v28, %v10221_v37  ;;  %v10384_v37 = vpop.f32.mrf.mxu3 }
 0x33d   : > { %3068 = vmatmul.bf16.gmra.mxu1 %v13074_v34 }
 0x33f   : > { %v2644_v43 = vpop.f32.mrf.mxu2 }
 0x340   : > { %v10370_v29 = vadd.f32 %v2644_v43, %v2556_v57 }
 0x342   : > { %13075 = vst [vmem:[#allocation8_spill] sm:$0xff] %v10370_v29  ;;  %v2562_v48 = vpop.f32.mrf.mxu1 }
 0x343   : > { %v10375_v49 = vadd.f32 %v2562_v48, %v10231_v59 }
 0x345   : > { %13076 = vst [vmem:[#allocation10_spill] sm:$0xff] %v10375_v49  ;;  %v235_v49 = vadd.s32 8, %v9532_v1 }
 0x347   : > { %v10379_v39 = vpop.f32.mrf.mxu2 }
 0x348   : > { %13077 = vst [vmem:[#allocation12_spill] sm:$0xff] %v10379_v39  ;;  %v10395_v39 = vpop.f32.mrf.mxu0 }
 0x34a   : > { %v3034_v13 = vpop.f32.mrf.mxu1 }
 0x34b   : > { %v10389_v34 = vadd.f32 %v3034_v13, %v10238_v62  ;;  %v277_v13 = vand.u32 15, %v235_v49 }
 0x34d   : > { %3073 = vmatmul.bf16.gmra.mxu1 %v13078_v5  ;;  %13080 = vst [vmem:[#allocation15_spill] sm:$0xff] %v10389_v34  ;;  %v12880_v48 = vrot.slane %v10389_v34, 1  ;;  %v10400_v5 = vld [vmem:[%s12817_s4] ss:$0 sm:$0xff]  ;;  %vm10417_vm1 = vcmp.lt.s32.totalorder %v277_v13, 15 }
 0x34f   : > { %v2649_v28 = vpop.f32.mrf.mxu2 }
 0x350   : > { %v10386_v57 = vadd.f32 %v2649_v28, %v2561_v63 }
 0x352   : > { %13079 = vst [vmem:[#allocation13_spill] sm:$0xff] %v10386_v57  ;;  %v3036_v43 = vpop.f32.mrf.mxu1 }
 0x353   : > { %v3037_v59 = vadd.f32 %v3036_v43, %v10250_v36  ;;  %v10406_v36 = vpop.f32.mrf.mxu3 }
 0x355   : > { %v3115_v29 = vrot.slane %v3037_v59, 1  ;;  %v8454_v59 = vld [vmem:[%s12816_s3 + $0x270] sm:$0xff] }
 0x356   : > { %5041 = vmatpush.bf16.msra.mxu3 %v8454_v59 }
 0x357   : > { %v3177_v62 = vsel %vm12882_vm7, %v12880_v48, %v3115_v29  ;;  %v13081_v48 = vmov 0 }
 0x358   : > { %v3275_v63 = vadd.f32 %v3177_v62, %v10156_v7  ;;  %v13082_v48 = vsel %vm10417_vm1, 4294967295, %v13081_v48  ;;  %v13084_v7 = vld [vmem:[#allocation18_spill] sm:$0xff] }
 0x359   : > { %13083 = vst [vmem:[#allocation41_spill] sm:$0xff] %v13082_v48 }
 0x35a   : > { %v10410_v28 = vadd.f32 %v10400_v5, %v3275_v63  ;;  %v3039_v43 = vpop.f32.mrf.mxu1  ;;  %v10424_v63 = vpop.f32.mrf.mxu0 }
 0x35b   : > { %v3040_v57 = vadd.f32 %v3039_v43, %v10257_v22  ;;  %v13085_v43 = vld [vmem:[#allocation9_spill] sm:$0xff]  ;;  %v10429_v59 = vpop.f32.mrf.mxu3 }
 0x35c   : > { %v3343_v34 = vmin.f32 %v10410_v28, 20.0 }
 0x35d   : > { %v3116_v25 = vrot.slane %v3040_v57, 1  ;;  %3078 = vmatmul.bf16.gmra.mxu1 %v13084_v7  ;;  %v8368_v57 = vld [vmem:[%s12814_s1 + $0x40] sm:$0xff] }
 0x35e   : > { %v3375_v49 = vmul.f32 1.442695, %v3343_v34  ;;  %3916 = vmatpush.bf16.msra.mxu2 %v8368_v57 }
 0x35f   : > { %v3176_v62 = vsel %vm12882_vm7, %v3115_v29, %v3116_v25 }
 0x360   : > { %8637 = vpow2.f32 %v3375_v49  ;;  %v3244_v22 = vsel %vm10417_vm1, %v3176_v62, 0.0  ;;  %v237_v62 = vadd.s32 24, %v9532_v1  ;;  %vm13089_vm1 = vcmp.lt.s32.totalorder %v9532_v1, 7 }
 0x361   : > { %v3276_v6 = vadd.f32 %v3244_v22, %v13085_v43 }
 0x362   : > { %v3041_v13 = vpop.f32.mrf.mxu1  ;;  %v10443_v50 = vpop.f32.mrf.mxu0 }
 0x363   : > { %v10435_v34 = vadd.f32 %v10400_v5, %v3276_v6  ;;  %v3042_v29 = vadd.f32 %v3041_v13, %v10266_v2  ;;  %v291_v6 = vand.u32 15, %v237_v62  ;;  %v10449_v33 = vpop.f32.mrf.mxu3 }
 0x365   : > { %v3344_v7 = vmin.f32 %v10435_v34, 20.0  ;;  %v3117_v49 = vrot.slane %v3042_v29, 1 }
 0x366   : > { %v8638_v48 = vpop.eup %8637 }
 0x367   : > { %v3439_v22 = vadd.f32 2.0, %v8638_v48  ;;  %v3377_v43 = vmul.f32 1.442695, %v3344_v7  ;;  %v3175_v24 = vsel %vm12882_vm7, %v3116_v25, %v3117_v49  ;;  %vm10452_vm7 = vcmp.lt.s32.totalorder %v291_v6, 15 }
 0x368   : > { %v3277_v0 = vadd.f32 %v3175_v24, %v10149_v41  ;;  %v13086_v25 = vmov 0 }
 0x369   : > { %v3471_v42 = vmul.f32 %v8638_v48, %v3439_v22  ;;  %8639 = vpow2.f32 %v3377_v43  ;;  %v13087_v25 = vsel %vm10452_vm7, 4294967295, %v13086_v25 }
 0x36a   : > { %v10446_v2 = vadd.f32 %v10400_v5, %v3277_v0  ;;  %v3044_v13 = vpop.f32.mrf.mxu1  ;;  %13088 = vst [vmem:[#allocation18_spill] sm:$0xff] %v13087_v25 }
 0x36b   : > { %v3503_v57 = vadd.f32 2.0, %v3471_v42  ;;  %v3045_v29 = vadd.f32 %v3044_v13, %v10273_v54 }
 0x36c   : > { %v3345_v7 = vmin.f32 %v10446_v2, 20.0 }
 0x36d   : > { %8641 = vrcp.f32 %v3503_v57  ;;  %v3118_v41 = vrot.slane %v3045_v29, 1  ;;  %3083 = vmatmul.bf16.gmra.mxu1 %v13036_v44  ;;  %v10466_v29 = vpop.f32.mrf.mxu0 }
 0x36e   : > { %v3379_v24 = vmul.f32 1.442695, %v3345_v7 }
 0x36f   : > { %v8640_v48 = vpop.eup %8639  ;;  %v3174_v0 = vsel %vm13089_vm1, %v3117_v49, %v3118_v41  ;;  %vm3599_vm1 = vcmp.gt.f32.partialorder %v10410_v28, 20.0 }
 0x370   : > { %v3440_v62 = vadd.f32 2.0, %v8640_v48  ;;  %8643 = vpow2.f32 %v3379_v24  ;;  %v3246_v54 = vsel %vm10452_vm7, %v3174_v0, 0.0  ;;  %vm13090_vm7 = vcmp.lt.s32.totalorder %v9532_v1, 7 }
 0x371   : > { %v3278_v22 = vadd.f32 %v3246_v54, %v10162_v15  ;;  %v239_v15 = vadd.s32 40, %v9532_v1 }
 0x372   : > { %v3472_v43 = vmul.f32 %v8640_v48, %v3440_v62  ;;  %v3046_v6 = vpop.f32.mrf.mxu1  ;;  %v10471_v62 = vpop.f32.mrf.mxu3 }
 0x373   : > { %v8642_v13 = vpop.eup %8641  ;;  %v10463_v57 = vadd.f32 %v10400_v5, %v3278_v22  ;;  %v3047_v44 = vadd.f32 %v3046_v6, %v10285_v56  ;;  %v3695_v22 = vld [vmem:[%s9102_s13] sm:$0xff] }
 0x374   : > { %v3567_v49 = vmul.f32 %v8642_v13, %v3471_v42  ;;  %v3504_v7 = vadd.f32 2.0, %v3472_v43 }
 0x375   : > { %v3346_v24 = vmin.f32 %v10463_v57, 20.0  ;;  %v3119_v0 = vrot.slane %v3047_v44, 1 }
 0x376   : > { %v8644_v48 = vpop.eup %8643  ;;  %v3631_v54 = vsel %vm3599_vm1, 1.0, %v3567_v49  ;;  %8645 = vrcp.f32 %v3504_v7  ;;  %v305_v7 = vand.u32 15, %v239_v15  ;;  %vm3600_vm1 = vcmp.gt.f32.partialorder %v10435_v34, 20.0 }
 0x377   : > { %v3663_v56 = vmul.f32 %v3631_v54, %v10410_v28  ;;  %v3441_v6 = vadd.f32 2.0, %v8644_v48  ;;  %v3381_v25 = vmul.f32 1.442695, %v3346_v24  ;;  %v3173_v42 = vsel %vm13090_vm7, %v3118_v41, %v3119_v0  ;;  %v8453_v41 = vld [vmem:[%s12816_s3 + $0x268] sm:$0xff] }
 0x378   : > { %v3279_v13 = vadd.f32 %v3173_v42, %v10175_v12  ;;  %5042 = vmatpush.bf16.msra.mxu3 %v8453_v41  ;;  %vm10494_vm7 = vcmp.lt.s32.totalorder %v305_v7, 15  ;;  %v3696_v42 = vld [vmem:[%s9102_s13 + $0x8] sm:$0xff] }
 0x379   : > { %v3727_v44 = vadd.f32 %v3695_v22, %v3663_v56  ;;  %v3473_v49 = vmul.f32 %v8644_v48, %v3441_v6  ;;  %8647 = vpow2.f32 %v3381_v25  ;;  %v13091_v25 = vmov 0  ;;  %v10499_v48 = vpop.f32.mrf.mxu0 }
 0x37a   : > { %v10486_v28 = vadd.f32 %v10400_v5, %v3279_v13  ;;  %v3049_v24 = vpop.f32.mrf.mxu1  ;;  %v13092_v25 = vsel %vm10494_vm7, 4294967295, %v13091_v25 }
 0x37b   : > { %3759 = vst [vmem:[%s10482_s21] sm:$0xff] %v3727_v44  ;;  %v3505_v54 = vadd.f32 2.0, %v3473_v49  ;;  %v3050_v53 = vadd.f32 %v3049_v24, %v10292_v18 }
 0x37c   : > { %v8646_v60 = vpop.eup %8645  ;;  %v3347_v12 = vmin.f32 %v10486_v28, 20.0  ;;  %13093 = vst [vmem:[#allocation9_spill] sm:$0xff] %v13092_v25 }
 0x37d   : > { %v3568_v22 = vmul.f32 %v8646_v60, %v3472_v43  ;;  %8649 = vrcp.f32 %v3505_v54  ;;  %v3120_v15 = vrot.slane %v3050_v53, 1  ;;  %3088 = vmatmul.bf16.gmra.mxu1 %v13041_v45  ;;  %v10505_v43 = vpop.f32.mrf.mxu3 }
 0x37e   : > { %v3383_v56 = vmul.f32 1.442695, %v3347_v12 }
 0x37f   : > { %v8648_v6 = vpop.eup %8647  ;;  %v3632_v18 = vsel %vm3600_vm1, 1.0, %v3568_v22  ;;  %v3172_v60 = vsel %vm13094_vm15, %v3119_v0, %v3120_v15  ;;  %vm3601_vm15 = vcmp.gt.f32.partialorder %v10446_v2, 20.0  ;;  %vm13095_vm1 = vcmp.lt.s32.totalorder %v9532_v1, 7 }
 0x380   : > { %v3664_v13 = vmul.f32 %v3632_v18, %v10435_v34  ;;  %v3442_v7 = vadd.f32 2.0, %v8648_v6  ;;  %8651 = vpow2.f32 %v3383_v56  ;;  %v3248_v45 = vsel %vm10494_vm7, %v3172_v60, 0.0 }
 0x381   : > { %v3280_v53 = vadd.f32 %v3248_v45, %v10185_v32  ;;  %v241_v32 = vadd.s32 56, %v9532_v1  ;;  %vm13099_vm7 = vcmp.lt.s32.totalorder %v9532_v1, 7 }
 0x382   : > { %v3728_v24 = vadd.f32 %v3696_v42, %v3664_v13  ;;  %v3474_v54 = vmul.f32 %v8648_v6, %v3442_v7  ;;  %v3051_v41 = vpop.f32.mrf.mxu1  ;;  %v3697_v13 = vld [vmem:[%s9102_s13 + $0x10] sm:$0xff] }
 0x383   : > { %v8650_v12 = vpop.eup %8649  ;;  %v10512_v22 = vadd.f32 %v10400_v5, %v3280_v53  ;;  %v3052_v0 = vadd.f32 %v3051_v41, %v10300_v8  ;;  %v10525_v53 = vpop.f32.mrf.mxu0 }
 0x384   : > { %3760 = vst [vmem:[%s10482_s21 + $0x8] sm:$0xff] %v3728_v24  ;;  %v3569_v3 = vmul.f32 %v8650_v12, %v3473_v49  ;;  %v3506_v34 = vadd.f32 2.0, %v3474_v54  ;;  %v3823_v18 = vpack.c.bf16 %v3728_v24, %v3727_v44  ;;  %v2966_v49 = vadd.f32 %v10372_v17, %v10377_v23 }
 0x385   : > { %v3348_v56 = vmin.f32 %v10512_v22, 20.0  ;;  %v3121_v60 = vrot.slane %v3052_v0, 1  ;;  %v319_v12 = vand.u32 15, %v241_v32  ;;  %v10528_v0 = vpop.f32.mrf.mxu3 }
 0x386   : > { %v8652_v42 = vpop.eup %8651  ;;  %v3633_v6 = vsel %vm3601_vm15, 1.0, %v3569_v3  ;;  %8653 = vrcp.f32 %v3506_v34  ;;  %3917 = vmatmul.bf16.vlgmr.msra.gmra.mxu2 %v3823_v18 }
 0x387   : > { %v3665_v7 = vmul.f32 %v3633_v6, %v10446_v2  ;;  %v3443_v8 = vadd.f32 2.0, %v8652_v42  ;;  %v3385_v45 = vmul.f32 1.442695, %v3348_v56  ;;  %v3171_v44 = vsel %vm13095_vm1, %v3120_v15, %v3121_v60 }
 0x388   : > { %v3281_v24 = vadd.f32 %v3171_v44, %v10204_v47  ;;  %vm10535_vm15 = vcmp.lt.s32.totalorder %v319_v12, 15  ;;  %v13096_v47 = vmov 0  ;;  %vm3602_vm1 = vcmp.gt.f32.partialorder %v10463_v57, 20.0 }
 0x389   : > { %v3729_v41 = vadd.f32 %v3697_v13, %v3665_v7  ;;  %v3475_v3 = vmul.f32 %v8652_v42, %v3443_v8  ;;  %8655 = vpow2.f32 %v3385_v45  ;;  %v13097_v47 = vsel %vm10535_vm15, 4294967295, %v13096_v47  ;;  %v3698_v7 = vld [vmem:[%s9102_s13 + $0x18] sm:$0xff] }
 0x38a   : > { %v10531_v2 = vadd.f32 %v10400_v5, %v3281_v24  ;;  %v3054_v34 = vpop.f32.mrf.mxu1  ;;  %13098 = vst [vmem:[#allocation42_spill] sm:$0xff] %v13097_v47 }
 0x38b   : > { %3761 = vst [vmem:[%s10482_s21 + $0x10] sm:$0xff] %v3729_v41  ;;  %v3507_v15 = vadd.f32 2.0, %v3475_v3  ;;  %v3055_v18 = vadd.f32 %v3054_v34, %v2966_v49  ;;  %v10550_v24 = vpop.f32.mrf.mxu0 }
 0x38c   : > { %v8654_v56 = vpop.eup %8653  ;;  %v3349_v17 = vmin.f32 %v10531_v2, 20.0 }
 0x38d   : > { %v3570_v23 = vmul.f32 %v8654_v56, %v3474_v54  ;;  %8657 = vrcp.f32 %v3507_v15  ;;  %v3122_v32 = vrot.slane %v3055_v18, 1  ;;  %3093 = vmatmul.bf16.gmra.mxu1 %v13046_v55  ;;  %v2968_v55 = vadd.f32 %v10381_v19, %v10384_v37  ;;  %v10555_v56 = vpop.f32.mrf.mxu3 }
 0x38e   : > { %v3387_v42 = vmul.f32 1.442695, %v3349_v17  ;;  %v243_v37 = vadd.s32 72, %v9532_v1 }
 0x38f   : > { %v8656_v6 = vpop.eup %8655  ;;  %v3634_v13 = vsel %vm3602_vm1, 1.0, %v3570_v23  ;;  %v3170_v8 = vsel %vm13099_vm7, %v3121_v60, %v3122_v32  ;;  %vm3603_vm7 = vcmp.gt.f32.partialorder %v10486_v28, 20.0  ;;  %vm13100_vm1 = vcmp.lt.s32.totalorder %v9532_v1, 7 }
 0x390   : > { %v3666_v54 = vmul.f32 %v3634_v13, %v10463_v57  ;;  %v3444_v45 = vadd.f32 2.0, %v8656_v6  ;;  %8659 = vpow2.f32 %v3387_v42  ;;  %v3250_v44 = vsel %vm10535_vm15, %v3170_v8, 0.0 }
 0x391   : > { %v3282_v49 = vadd.f32 %v3250_v44, %v10216_v21  ;;  %vm13104_vm15 = vcmp.lt.s32.totalorder %v9532_v1, 7 }
 0x392   : > { %v3730_v12 = vadd.f32 %v3698_v7, %v3666_v54  ;;  %v3476_v34 = vmul.f32 %v8656_v6, %v3444_v45  ;;  %v3056_v15 = vpop.f32.mrf.mxu1  ;;  %v3699_v7 = vld [vmem:[%s9102_s13 + $0x20] sm:$0xff] }
 0x393   : > { %v8658_v18 = vpop.eup %8657  ;;  %v10553_v60 = vadd.f32 %v10400_v5, %v3282_v49  ;;  %v3057_v57 = vadd.f32 %v3056_v15, %v2968_v55 }
 0x394   : > { %3762 = vst [vmem:[%s10482_s21 + $0x18] sm:$0xff] %v3730_v12  ;;  %v3571_v17 = vmul.f32 %v8658_v18, %v3475_v3  ;;  %v3508_v23 = vadd.f32 2.0, %v3476_v34  ;;  %v3824_v42 = vpack.c.bf16 %v3730_v12, %v3729_v41  ;;  %v2971_v3 = vadd.f32 %v10395_v39, %v10406_v36  ;;  %v10575_v39 = vpop.f32.mrf.mxu0 }
 0x395   : > { %v3350_v21 = vmin.f32 %v10553_v60, 20.0  ;;  %v3123_v19 = vrot.slane %v3057_v57, 1  ;;  %v333_v12 = vand.u32 15, %v243_v37  ;;  %v8452_v57 = vld [vmem:[%s12816_s3 + $0x260] sm:$0xff] }
 0x396   : > { %v8660_v6 = vpop.eup %8659  ;;  %v3635_v13 = vsel %vm3603_vm7, 1.0, %v3571_v17  ;;  %8661 = vrcp.f32 %v3508_v23  ;;  %3922 = vmatmul.bf16.gmra.mxu2 %v3824_v42  ;;  %5043 = vmatpush.bf16.msra.mxu3 %v8452_v57  ;;  %v13101_v23 = vmov 0 }
 0x397   : > { %v3667_v8 = vmul.f32 %v3635_v13, %v10486_v28  ;;  %v3445_v54 = vadd.f32 2.0, %v8660_v6  ;;  %v3389_v45 = vmul.f32 1.442695, %v3350_v21  ;;  %v3169_v41 = vsel %vm13100_vm1, %v3122_v32, %v3123_v19  ;;  %v10583_v21 = vpop.f32.mrf.mxu3 }
 0x398   : > { %v3283_v44 = vadd.f32 %v3169_v41, %v10228_v4  ;;  %vm10578_vm7 = vcmp.lt.s32.totalorder %v333_v12, 15  ;;  %vm3604_vm1 = vcmp.gt.f32.partialorder %v10512_v22, 20.0  ;;  %v2597_v13 = vadd.f32 %v10236_v31, %v10210_v51 }
 0x399   : > { %v3731_v55 = vadd.f32 %v3699_v7, %v3667_v8  ;;  %v3477_v49 = vmul.f32 %v8660_v6, %v3445_v54  ;;  %8663 = vpow2.f32 %v3389_v45  ;;  %v13102_v23 = vsel %vm10578_vm7, 4294967295, %v13101_v23  ;;  %v3700_v7 = vld [vmem:[%s9102_s13 + $0x28] sm:$0xff] }
 0x39a   : > { %v10569_v15 = vadd.f32 %v10400_v5, %v3283_v44  ;;  %v3059_v18 = vpop.f32.mrf.mxu1  ;;  %13103 = vst [vmem:[#allocation43_spill] sm:$0xff] %v13102_v23  ;;  %v2973_v41 = vadd.f32 %v10424_v63, %v10429_v59  ;;  %v245_v63 = vadd.s32 88, %v9532_v1 }
 0x39b   : > { %3763 = vst [vmem:[%s10482_s21 + $0x20] sm:$0xff] %v3731_v55  ;;  %v3509_v28 = vadd.f32 2.0, %v3477_v49  ;;  %v3060_v32 = vadd.f32 %v3059_v18, %v2971_v3 }
 0x39c   : > { %v8662_v17 = vpop.eup %8661  ;;  %v3351_v4 = vmin.f32 %v10569_v15, 20.0 }
 0x39d   : > { %v3572_v36 = vmul.f32 %v8662_v17, %v3476_v34  ;;  %8665 = vrcp.f32 %v3509_v28  ;;  %v3124_v42 = vrot.slane %v3060_v32, 1  ;;  %3098 = vmatmul.bf16.gmra.mxu1 %v9777_v20 }
 0x39e   : > { %v3391_v37 = vmul.f32 1.442695, %v3351_v4  ;;  %v10603_v4 = vpop.f32.mrf.mxu0 }
 0x39f   : > { %v8664_v6 = vpop.eup %8663  ;;  %v3636_v34 = vsel %vm3604_vm1, 1.0, %v3572_v36  ;;  %v3168_v8 = vsel %vm13104_vm15, %v3123_v19, %v3124_v42  ;;  %vm3605_vm15 = vcmp.gt.f32.partialorder %v10531_v2, 20.0  ;;  %vm13105_vm1 = vcmp.lt.s32.totalorder %v9532_v1, 7 }
 0x3a0   : > { %v3668_v54 = vmul.f32 %v3636_v34, %v10512_v22  ;;  %v3446_v45 = vadd.f32 2.0, %v8664_v6  ;;  %8667 = vpow2.f32 %v3391_v37  ;;  %v3252_v20 = vsel %vm10578_vm7, %v3168_v8, 0.0  ;;  %v3701_v37 = vld [vmem:[%s9102_s13 + $0x30] sm:$0xff]  ;;  %v10609_v34 = vpop.f32.mrf.mxu3 }
 0x3a1   : > { %v3284_v3 = vadd.f32 %v3252_v20, %v2597_v13  ;;  %v347_v20 = vand.u32 15, %v245_v63  ;;  %vm13109_vm7 = vcmp.lt.s32.totalorder %v9532_v1, 7 }
 0x3a2   : > { %v3732_v44 = vadd.f32 %v3700_v7, %v3668_v54  ;;  %v3478_v12 = vmul.f32 %v8664_v6, %v3446_v45  ;;  %v3061_v51 = vpop.f32.mrf.mxu1  ;;  %v2976_v7 = vadd.f32 %v10443_v50, %v10449_v33  ;;  %v13106_v50 = vmov 0 }
 0x3a3   : > { %v8666_v31 = vpop.eup %8665  ;;  %v10597_v18 = vadd.f32 %v10400_v5, %v3284_v3  ;;  %v3062_v19 = vadd.f32 %v3061_v51, %v2973_v41 }
 0x3a4   : > { %3764 = vst [vmem:[%s10482_s21 + $0x28] sm:$0xff] %v3732_v44  ;;  %v3573_v22 = vmul.f32 %v8666_v31, %v3477_v49  ;;  %v3510_v28 = vadd.f32 2.0, %v3478_v12  ;;  %v3825_v57 = vpack.c.bf16 %v3732_v44, %v3731_v55 }
 0x3a5   : > { %v3352_v32 = vmin.f32 %v10597_v18, 20.0  ;;  %v3125_v17 = vrot.slane %v3062_v19, 1 }
 0x3a6   : > { %v8668_v59 = vpop.eup %8667  ;;  %v3637_v36 = vsel %vm3605_vm15, 1.0, %v3573_v22  ;;  %8669 = vrcp.f32 %v3510_v28  ;;  %3927 = vmatmul.bf16.gmra.mxu2 %v3825_v57  ;;  %vm10619_vm15 = vcmp.lt.s32.totalorder %v347_v20, 15  ;;  %v2602_v22 = vadd.f32 %v10255_v30, %v10234_v61  ;;  %v3702_v57 = vld [vmem:[%s9102_s13 + $0x38] sm:$0xff] }
 0x3a7   : > { %v3669_v6 = vmul.f32 %v3637_v36, %v10531_v2  ;;  %v3447_v49 = vadd.f32 2.0, %v8668_v59  ;;  %v3393_v13 = vmul.f32 1.442695, %v3352_v32  ;;  %v3167_v55 = vsel %vm13105_vm1, %v3124_v42, %v3125_v17  ;;  %v10630_v32 = vpop.f32.mrf.mxu0 }
 0x3a8   : > { %v3285_v8 = vadd.f32 %v3167_v55, %v10248_v14  ;;  %v13107_v50 = vsel %vm10619_vm15, 4294967295, %v13106_v50  ;;  %vm3606_vm1 = vcmp.gt.f32.partialorder %v10553_v60, 20.0  ;;  %v2978_v36 = vadd.f32 %v10466_v29, %v10471_v62  ;;  %v10637_v61 = vpop.f32.mrf.mxu3 }
 0x3a9   : > { %v3733_v54 = vadd.f32 %v3701_v37, %v3669_v6  ;;  %v3479_v45 = vmul.f32 %v8668_v59, %v3447_v49  ;;  %8671 = vpow2.f32 %v3393_v13  ;;  %13108 = vst [vmem:[#allocation44_spill] sm:$0xff] %v13107_v50  ;;  %v247_v20 = vadd.s32 104, %v9532_v1 }
 0x3aa   : > { %v10615_v41 = vadd.f32 %v10400_v5, %v3285_v8  ;;  %v3064_v2 = vpop.f32.mrf.mxu1 }
 0x3ab   : > { %3765 = vst [vmem:[%s10482_s21 + $0x30] sm:$0xff] %v3733_v54  ;;  %v3511_v3 = vadd.f32 2.0, %v3479_v45  ;;  %v3065_v44 = vadd.f32 %v3064_v2, %v2976_v7 }
 0x3ac   : > { %v8670_v42 = vpop.eup %8669  ;;  %v3353_v51 = vmin.f32 %v10615_v41, 20.0 }
 0x3ad   : > { %v3574_v31 = vmul.f32 %v8670_v42, %v3478_v12  ;;  %8673 = vrcp.f32 %v3511_v3  ;;  %v3126_v14 = vrot.slane %v3065_v44, 1  ;;  %3103 = vmatmul.bf16.gmra.mxu1 %v13049_v16  ;;  %v3703_v44 = vld [vmem:[%s9102_s13 + $0x40] sm:$0xff] }
 0x3ae   : > { %v3395_v33 = vmul.f32 1.442695, %v3353_v51 }
 0x3af   : > { %v8672_v19 = vpop.eup %8671  ;;  %v3638_v28 = vsel %vm3606_vm1, 1.0, %v3574_v31  ;;  %v3166_v12 = vsel %vm13109_vm7, %v3125_v17, %v3126_v14  ;;  %vm3607_vm7 = vcmp.gt.f32.partialorder %v10569_v15, 20.0  ;;  %vm13110_vm1 = vcmp.lt.s32.totalorder %v9532_v1, 7 }
 0x3b0   : > { %v3670_v63 = vmul.f32 %v3638_v28, %v10553_v60  ;;  %v3448_v59 = vadd.f32 2.0, %v8672_v19  ;;  %8675 = vpow2.f32 %v3395_v33  ;;  %v3254_v16 = vsel %vm10619_vm15, %v3166_v12, 0.0 }
 0x3b1   : > { %v3286_v37 = vadd.f32 %v3254_v16, %v2602_v22  ;;  %v361_v28 = vand.u32 15, %v247_v20  ;;  %vm13115_vm15 = vcmp.lt.s32.totalorder %v9532_v1, 7  ;;  %v2983_v20 = vadd.f32 %v10525_v53, %v10528_v0 }
 0x3b2   : > { %v3734_v30 = vadd.f32 %v3702_v57, %v3670_v63  ;;  %v3480_v6 = vmul.f32 %v8672_v19, %v3448_v59  ;;  %v3066_v49 = vpop.f32.mrf.mxu1  ;;  %v10653_v57 = vpop.f32.mrf.mxu0 }
 0x3b3   : > { %v8674_v17 = vpop.eup %8673  ;;  %v10640_v13 = vadd.f32 %v10400_v5, %v3286_v37  ;;  %v3067_v60 = vadd.f32 %v3066_v49, %v2978_v36  ;;  %v13111_v36 = vmov 0 }
 0x3b4   : > { %3766 = vst [vmem:[%s10482_s21 + $0x38] sm:$0xff] %v3734_v30  ;;  %v3575_v55 = vmul.f32 %v8674_v17, %v3479_v45  ;;  %v3512_v7 = vadd.f32 2.0, %v3480_v6  ;;  %v3826_v8 = vpack.c.bf16 %v3734_v30, %v3733_v54  ;;  %v2981_v45 = vadd.f32 %v10499_v48, %v10505_v43  ;;  %v13114_v17 = vld [vmem:[#allocation20_spill] sm:$0xff] }
 0x3b5   : > { %v3354_v29 = vmin.f32 %v10640_v13, 20.0  ;;  %v3127_v62 = vrot.slane %v3067_v60, 1  ;;  %v2607_v60 = vadd.f32 %v13114_v17, %v10253_v38 }
 0x3b6   : > { %v8676_v2 = vpop.eup %8675  ;;  %v3639_v3 = vsel %vm3607_vm7, 1.0, %v3575_v55  ;;  %8677 = vrcp.f32 %v3512_v7  ;;  %3932 = vmatmul.bf16.gmra.mxu2 %v3826_v8  ;;  %vm10665_vm7 = vcmp.lt.s32.totalorder %v361_v28, 15  ;;  %v3704_v7 = vld [vmem:[%s9102_s13 + $0x48] sm:$0xff] }
 0x3b7   : > { %v3671_v42 = vmul.f32 %v3639_v3, %v10569_v15  ;;  %v3449_v51 = vadd.f32 2.0, %v8676_v2  ;;  %v3397_v31 = vmul.f32 1.442695, %v3354_v29  ;;  %v3165_v54 = vsel %vm13110_vm1, %v3126_v14, %v3127_v62  ;;  %v8451_v14 = vld [vmem:[%s12816_s3 + $0x258] sm:$0xff] }
 0x3b8   : > { %v3287_v33 = vadd.f32 %v3165_v54, %v10264_v9  ;;  %v10662_v9 = vpop.f32.mrf.mxu3  ;;  %5044 = vmatpush.bf16.msra.mxu3 %v8451_v14  ;;  %v13112_v36 = vsel %vm10665_vm7, 4294967295, %v13111_v36  ;;  %vm3608_vm1 = vcmp.gt.f32.partialorder %v10597_v18, 20.0  ;;  %v3705_v14 = vld [vmem:[%s9102_s13 + $0x50] sm:$0xff] }
 0x3b9   : > { %v3735_v19 = vadd.f32 %v3703_v44, %v3671_v42  ;;  %v3481_v22 = vmul.f32 %v8676_v2, %v3449_v51  ;;  %8679 = vpow2.f32 %v3397_v31  ;;  %13113 = vst [vmem:[#allocation45_spill] sm:$0xff] %v13112_v36 }
 0x3ba   : > { %v10656_v12 = vadd.f32 %v10400_v5, %v3287_v33  ;;  %v3069_v15 = vpop.f32.mrf.mxu1  ;;  %v10684_v31 = vpop.f32.mrf.mxu0  ;;  %v249_v33 = vadd.s32 120, %v9532_v1 }
 0x3bb   : > { %3767 = vst [vmem:[%s10482_s21 + $0x40] sm:$0xff] %v3735_v19  ;;  %v3513_v63 = vadd.f32 2.0, %v3481_v22  ;;  %v3070_v48 = vadd.f32 %v3069_v15, %v2981_v45 }
 0x3bc   : > { %v8678_v43 = vpop.eup %8677  ;;  %v3355_v59 = vmin.f32 %v10656_v12, 20.0  ;;  %v375_v17 = vand.u32 15, %v249_v33 }
 0x3bd   : > { %v3576_v16 = vmul.f32 %v8678_v43, %v3480_v6  ;;  %8681 = vrcp.f32 %v3513_v63  ;;  %v3128_v37 = vrot.slane %v3070_v48, 1  ;;  %3108 = vmatmul.bf16.gmra.mxu1 %v13053_v46 }
 0x3be   : > { %v3399_v30 = vmul.f32 1.442695, %v3355_v59  ;;  %v2986_v59 = vadd.f32 %v10550_v24, %v10555_v56  ;;  %v13117_v24 = vmov 0 }
 0x3bf   : > { %v8680_v49 = vpop.eup %8679  ;;  %v3640_v55 = vsel %vm3608_vm1, 1.0, %v3576_v16  ;;  %v3164_v6 = vsel %vm13115_vm15, %v3127_v62, %v3128_v37  ;;  %vm3609_vm15 = vcmp.gt.f32.partialorder %v10615_v41, 20.0  ;;  %vm13116_vm1 = vcmp.lt.s32.totalorder %v9532_v1, 7 }
 0x3c0   : > { %v3672_v8 = vmul.f32 %v3640_v55, %v10597_v18  ;;  %v3450_v29 = vadd.f32 2.0, %v8680_v49  ;;  %8683 = vpow2.f32 %v3399_v30  ;;  %v3256_v46 = vsel %vm10665_vm7, %v3164_v6, 0.0  ;;  %v10690_v15 = vpop.f32.mrf.mxu3 }
 0x3c1   : > { %v3288_v2 = vadd.f32 %v3256_v46, %v2607_v60  ;;  %vm13121_vm7 = vcmp.lt.s32.totalorder %v9532_v1, 7 }
 0x3c2   : > { %v3736_v3 = vadd.f32 %v3704_v7, %v3672_v8  ;;  %v3482_v44 = vmul.f32 %v8680_v49, %v3450_v29  ;;  %v3071_v38 = vpop.f32.mrf.mxu1  ;;  %v10708_v56 = vpop.f32.mrf.mxu0 }
 0x3c3   : > { %v8682_v42 = vpop.eup %8681  ;;  %v10682_v51 = vadd.f32 %v10400_v5, %v3288_v2  ;;  %v3072_v62 = vadd.f32 %v3071_v38, %v2983_v20  ;;  %v13120_v20 = vld [vmem:[#allocation23_spill] sm:$0xff]  ;;  %v3706_v38 = vld [vmem:[%s9102_s13 + $0x58] sm:$0xff] }
 0x3c4   : > { %3768 = vst [vmem:[%s10482_s21 + $0x48] sm:$0xff] %v3736_v3  ;;  %v3577_v18 = vmul.f32 %v8682_v42, %v3481_v22  ;;  %v3514_v54 = vadd.f32 2.0, %v3482_v44  ;;  %v3827_v45 = vpack.c.bf16 %v3736_v3, %v3735_v19  ;;  %v2612_v2 = vadd.f32 %v10290_v58, %v13120_v20 }
 0x3c5   : > { %v3356_v53 = vmin.f32 %v10682_v51, 20.0  ;;  %v3129_v0 = vrot.slane %v3072_v62, 1 }
 0x3c6   : > { %v8684_v28 = vpop.eup %8683  ;;  %v3641_v63 = vsel %vm3609_vm15, 1.0, %v3577_v18  ;;  %8685 = vrcp.f32 %v3514_v54  ;;  %3937 = vmatmul.bf16.gmra.mxu2 %v3827_v45  ;;  %vm10704_vm15 = vcmp.lt.s32.totalorder %v375_v17, 15  ;;  %v2988_v45 = vadd.f32 %v10575_v39, %v10583_v21 }
 0x3c7   : > { %v3673_v48 = vmul.f32 %v3641_v63, %v10615_v41  ;;  %v3451_v22 = vadd.f32 2.0, %v8684_v28  ;;  %v3401_v43 = vmul.f32 1.442695, %v3356_v53  ;;  %v3163_v19 = vsel %vm13116_vm1, %v3128_v37, %v3129_v0 }
 0x3c8   : > { %v3289_v16 = vadd.f32 %v3163_v19, %v10283_v11  ;;  %v13118_v24 = vsel %vm10704_vm15, 4294967295, %v13117_v24  ;;  %vm3610_vm1 = vcmp.gt.f32.partialorder %v10640_v13, 20.0  ;;  %v10716_v42 = vpop.f32.mrf.mxu3  ;;  %v251_v39 = vadd.s32 136, %v9532_v1 }
 0x3c9   : > { %v3737_v30 = vadd.f32 %v3705_v14, %v3673_v48  ;;  %v3483_v49 = vmul.f32 %v8684_v28, %v3451_v22  ;;  %8687 = vpow2.f32 %v3401_v43  ;;  %13119 = vst [vmem:[#allocation20_spill] sm:$0xff] %v13118_v24 }
 0x3ca   : > { %v10700_v60 = vadd.f32 %v10400_v5, %v3289_v16  ;;  %v3074_v55 = vpop.f32.mrf.mxu1  ;;  %v3707_v16 = vld [vmem:[%s9102_s13 + $0x60] sm:$0xff] }
 0x3cb   : > { %3769 = vst [vmem:[%s10482_s21 + $0x50] sm:$0xff] %v3737_v30  ;;  %v3515_v41 = vadd.f32 2.0, %v3483_v49  ;;  %v3075_v7 = vadd.f32 %v3074_v55, %v2986_v59 }
 0x3cc   : > { %v8686_v6 = vpop.eup %8685  ;;  %v3357_v37 = vmin.f32 %v10700_v60, 20.0 }
 0x3cd   : > { %v3578_v8 = vmul.f32 %v8686_v6, %v3482_v44  ;;  %8689 = vrcp.f32 %v3515_v41  ;;  %v3130_v11 = vrot.slane %v3075_v7, 1  ;;  %v10736_v7 = vpop.f32.mrf.mxu0 }
 0x3ce   : > { %v3403_v29 = vmul.f32 1.442695, %v3357_v37 }
 0x3cf   : > { %v8688_v46 = vpop.eup %8687  ;;  %v3642_v3 = vsel %vm3610_vm1, 1.0, %v3578_v8  ;;  %v3162_v44 = vsel %vm13121_vm7, %v3129_v0, %v3130_v11  ;;  %vm3611_vm7 = vcmp.gt.f32.partialorder %v10656_v12, 20.0  ;;  %vm13122_vm1 = vcmp.lt.s32.totalorder %v9532_v1, 7 }
 0x3d0   : > { %v3674_v62 = vmul.f32 %v3642_v3, %v10640_v13  ;;  %v3452_v18 = vadd.f32 2.0, %v8688_v46  ;;  %8691 = vpow2.f32 %v3403_v29  ;;  %v3258_v54 = vsel %vm10704_vm15, %v3162_v44, 0.0 }
 0x3d1   : > { %v3290_v53 = vadd.f32 %v3258_v54, %v2612_v2  ;;  %v389_v29 = vand.u32 15, %v251_v39  ;;  %v2617_v54 = vadd.f32 %v10305_v10, %v10288_v40  ;;  %vm13126_vm15 = vcmp.lt.s32.totalorder %v9532_v1, 7 }
 0x3d2   : > { %v3738_v58 = vadd.f32 %v3706_v38, %v3674_v62  ;;  %v3484_v33 = vmul.f32 %v8688_v46, %v3452_v18  ;;  %v3076_v28 = vpop.f32.mrf.mxu1  ;;  %v10739_v46 = vpop.f32.mrf.mxu3  ;;  %v13123_v38 = vmov 0 }
 0x3d3   : > { %v8690_v63 = vpop.eup %8689  ;;  %v10724_v0 = vadd.f32 %v10400_v5, %v3290_v53  ;;  %v3077_v14 = vadd.f32 %v3076_v28, %v2988_v45  ;;  %v3708_v53 = vld [vmem:[%s9102_s13 + $0x68] sm:$0xff] }
 0x3d4   : > { %3770 = vst [vmem:[%s10482_s21 + $0x58] sm:$0xff] %v3738_v58  ;;  %v3579_v13 = vmul.f32 %v8690_v63, %v3483_v49  ;;  %v3516_v48 = vadd.f32 2.0, %v3484_v33  ;;  %v3828_v22 = vpack.c.bf16 %v3738_v58, %v3737_v30  ;;  %v2991_v49 = vadd.f32 %v10603_v4, %v10609_v34  ;;  %v8450_v4 = vld [vmem:[%s12816_s3 + $0x250] sm:$0xff] }
 0x3d5   : > { %v3358_v43 = vmin.f32 %v10724_v0, 20.0  ;;  %v3131_v19 = vrot.slane %v3077_v14, 1  ;;  %5045 = vmatpush.bf16.msra.mxu3 %v8450_v4  ;;  %v2993_v14 = vadd.f32 %v10630_v32, %v10637_v61 }
 0x3d6   : > { %v8692_v21 = vpop.eup %8691  ;;  %v3643_v59 = vsel %vm3611_vm7, 1.0, %v3579_v13  ;;  %8693 = vrcp.f32 %v3516_v48  ;;  %3942 = vmatmul.bf16.gmra.mxu2 %v3828_v22  ;;  %vm10749_vm7 = vcmp.lt.s32.totalorder %v389_v29, 15  ;;  %v10764_v48 = vpop.f32.mrf.mxu0 }
 0x3d7   : > { %v3675_v17 = vmul.f32 %v3643_v59, %v10656_v12  ;;  %v3453_v55 = vadd.f32 2.0, %v8692_v21  ;;  %v3405_v41 = vmul.f32 1.442695, %v3358_v43  ;;  %v3161_v30 = vsel %vm13122_vm1, %v3130_v11, %v3131_v19 }
 0x3d8   : > { %v3291_v6 = vadd.f32 %v3161_v30, %v10298_v35  ;;  %v13124_v38 = vsel %vm10749_vm7, 4294967295, %v13123_v38  ;;  %vm3612_vm1 = vcmp.gt.f32.partialorder %v10682_v51, 20.0  ;;  %v3709_v30 = vld [vmem:[%s9102_s13 + $0x70] sm:$0xff] }
 0x3d9   : > { %v3739_v37 = vadd.f32 %v3707_v16, %v3675_v17  ;;  %v3485_v8 = vmul.f32 %v8692_v21, %v3453_v55  ;;  %8695 = vpow2.f32 %v3405_v41  ;;  %13125 = vst [vmem:[#allocation23_spill] sm:$0xff] %v13124_v38  ;;  %v253_v17 = vadd.s32 152, %v9532_v1 }
 0x3da   : > { %v10742_v12 = vadd.f32 %v10400_v5, %v3291_v6  ;;  %v3079_v20 = vpop.f32.mrf.mxu1  ;;  %v10769_v39 = vpop.f32.mrf.mxu3 }
 0x3db   : > { %3771 = vst [vmem:[%s10482_s21 + $0x60] sm:$0xff] %v3739_v37  ;;  %v3517_v11 = vadd.f32 2.0, %v3485_v8  ;;  %v3080_v34 = vadd.f32 %v3079_v20, %v2991_v49 }
 0x3dc   : > { %v8694_v2 = vpop.eup %8693  ;;  %v3359_v35 = vmin.f32 %v10742_v12, 20.0 }
 0x3dd   : > { %v3580_v3 = vmul.f32 %v8694_v2, %v3484_v33  ;;  %8697 = vrcp.f32 %v3517_v11  ;;  %v3132_v44 = vrot.slane %v3080_v34, 1  ;;  %v403_v34 = vand.u32 15, %v253_v17 }
 0x3de   : > { %v3407_v62 = vmul.f32 1.442695, %v3359_v35 }
 0x3df   : > { %v8696_v18 = vpop.eup %8695  ;;  %v3644_v45 = vsel %vm3612_vm1, 1.0, %v3580_v3  ;;  %v3160_v58 = vsel %vm13126_vm15, %v3131_v19, %v3132_v44  ;;  %vm3613_vm15 = vcmp.gt.f32.partialorder %v10700_v60, 20.0  ;;  %vm13127_vm1 = vcmp.lt.s32.totalorder %v9532_v1, 7 }
 0x3e0   : > { %v3676_v33 = vmul.f32 %v3644_v45, %v10682_v51  ;;  %v3454_v28 = vadd.f32 2.0, %v8696_v18  ;;  %8699 = vpow2.f32 %v3407_v62  ;;  %v3260_v63 = vsel %vm10749_vm7, %v3160_v58, 0.0 }
 0x3e1   : > { %v3292_v13 = vadd.f32 %v3260_v63, %v2617_v54  ;;  %vm13131_vm7 = vcmp.lt.s32.totalorder %v9532_v1, 7 }
 0x3e2   : > { %v3740_v40 = vadd.f32 %v3708_v53, %v3676_v33  ;;  %v3486_v10 = vmul.f32 %v8696_v18, %v3454_v28  ;;  %v3081_v22 = vpop.f32.mrf.mxu1  ;;  %v10786_v18 = vpop.f32.mrf.mxu0  ;;  %v2622_v53 = vadd.f32 %v10318_v26, %v10303_v27  ;;  %v3710_v33 = vld [vmem:[%s9102_s13 + $0x78] sm:$0xff] }
 0x3e3   : > { %v8698_v43 = vpop.eup %8697  ;;  %v10767_v19 = vadd.f32 %v10400_v5, %v3292_v13  ;;  %v3082_v51 = vadd.f32 %v3081_v22, %v2993_v14  ;;  %v10793_v54 = vpop.f32.mrf.mxu3 }
 0x3e4   : > { %3772 = vst [vmem:[%s10482_s21 + $0x68] sm:$0xff] %v3740_v40  ;;  %v3581_v21 = vmul.f32 %v8698_v43, %v3485_v8  ;;  %v3518_v59 = vadd.f32 2.0, %v3486_v10  ;;  %v3829_v16 = vpack.c.bf16 %v3740_v40, %v3739_v37  ;;  %v2996_v8 = vadd.f32 %v10653_v57, %v10662_v9 }
 0x3e5   : > { %v3360_v32 = vmin.f32 %v10767_v19, 20.0  ;;  %v3133_v61 = vrot.slane %v3082_v51, 1  ;;  %v2998_v40 = vadd.f32 %v10684_v31, %v10690_v15  ;;  %v10809_v51 = vld [vmem:[%s12817_s4] ss:$0 sm:$0xff] }
 0x3e6   : > { %v8700_v55 = vpop.eup %8699  ;;  %v3645_v41 = vsel %vm3613_vm15, 1.0, %v3581_v21  ;;  %8701 = vrcp.f32 %v3518_v59  ;;  %3947 = vmatmul.bf16.gmra.mxu2 %v3829_v16  ;;  %vm10789_vm15 = vcmp.lt.s32.totalorder %v403_v34, 15 }
 0x3e7   : > { %v3677_v49 = vmul.f32 %v3645_v41, %v10700_v60  ;;  %v3455_v6 = vadd.f32 2.0, %v8700_v55  ;;  %v3409_v29 = vmul.f32 1.442695, %v3360_v32  ;;  %v3159_v37 = vsel %vm13127_vm1, %v3132_v44, %v3133_v61 }
 0x3e8   : > { %v3293_v20 = vadd.f32 %v3159_v37, %v10313_v52  ;;  %v13128_v52 = vmov 0  ;;  %vm3614_vm1 = vcmp.gt.f32.partialorder %v10724_v0, 20.0 }
 0x3e9   : > { %v3741_v11 = vadd.f32 %v3709_v30, %v3677_v49  ;;  %v3487_v4 = vmul.f32 %v8700_v55, %v3455_v6  ;;  %8703 = vpow2.f32 %v3409_v29  ;;  %v13129_v52 = vsel %vm10789_vm15, 4294967295, %v13128_v52  ;;  %v3711_v30 = vld [vmem:[%s9102_s13 + $0x80] sm:$0xff] }
 0x3ea   : > { %v10783_v2 = vadd.f32 %v10400_v5, %v3293_v20  ;;  %v3084_v35 = vpop.f32.mrf.mxu1  ;;  %13130 = vst [vmem:[#allocation46_spill] sm:$0xff] %v13129_v52  ;;  %v10818_v55 = vpop.f32.mrf.mxu0  ;;  %v3001_v20 = vadd.f32 %v10708_v56, %v10716_v42 }
 0x3eb   : > { %3773 = vst [vmem:[%s10482_s21 + $0x70] sm:$0xff] %v3741_v11  ;;  %v3519_v60 = vadd.f32 2.0, %v3487_v4  ;;  %v3085_v3 = vadd.f32 %v3084_v35, %v2996_v8  ;;  %v10824_v8 = vpop.f32.mrf.mxu3 }
 0x3ec   : > { %v8702_v62 = vpop.eup %8701  ;;  %v3361_v44 = vmin.f32 %v10783_v2, 20.0 }
 0x3ed   : > { %v3582_v57 = vmul.f32 %v8702_v62, %v3486_v10  ;;  %8705 = vrcp.f32 %v3519_v60  ;;  %v3134_v9 = vrot.slane %v3085_v3, 1 }
 0x3ee   : > { %v3411_v5 = vmul.f32 1.442695, %v3361_v44  ;;  %v8449_v44 = vld [vmem:[%s12816_s3 + $0x248] sm:$0xff] }
 0x3ef   : > { %v8704_v45 = vpop.eup %8703  ;;  %v3646_v58 = vsel %vm3614_vm1, 1.0, %v3582_v57  ;;  %v3158_v28 = vsel %vm13131_vm7, %v3133_v61, %v3134_v9  ;;  %vm3615_vm7 = vcmp.gt.f32.partialorder %v10742_v12, 20.0  ;;  %v255_v61 = vadd.s32 168, %v9532_v1  ;;  %5046 = vmatpush.bf16.msra.mxu3 %v8449_v44 }
 0x3f0   : > { %v3678_v63 = vmul.f32 %v3646_v58, %v10724_v0  ;;  %v3456_v14 = vadd.f32 2.0, %v8704_v45  ;;  %8707 = vpow2.f32 %v3411_v5  ;;  %v3262_v13 = vsel %vm10789_vm15, %v3158_v28, 0.0  ;;  %v13138_v28 = vld [vmem:[#allocation25_spill] sm:$0xff] }
 0x3f1   : > { %v3294_v10 = vadd.f32 %v3262_v13, %v2622_v53  ;;  %vm13132_vm1 = vcmp.lt.s32.totalorder %v9532_v1, 7  ;;  %v417_v60 = vand.u32 15, %v255_v61  ;;  %v13134_v5 = vmov 0  ;;  %v3712_v13 = vld [vmem:[%s9102_s13 + $0x88] sm:$0xff] }
 0x3f2   : > { %v3742_v22 = vadd.f32 %v3710_v33, %v3678_v63  ;;  %v3488_v43 = vmul.f32 %v8704_v45, %v3456_v14  ;;  %v3086_v27 = vpop.f32.mrf.mxu1  ;;  %v13137_v33 = vld [vmem:[#allocation19_spill] sm:$0xff]  ;;  %vm13139_vm15 = vcmp.lt.s32.totalorder %v9532_v1, 7 }
 0x3f3   : > { %v8706_v26 = vpop.eup %8705  ;;  %v10812_v0 = vadd.f32 %v10809_v51, %v3294_v10  ;;  %v3087_v21 = vadd.f32 %v3086_v27, %v2998_v40  ;;  %v2627_v63 = vadd.f32 %v13138_v28, %v13137_v33  ;;  %v8463_v10 = vld [vmem:[%s12816_s3 + $0x2b8] sm:$0xff] }
 0x3f4   : > { %3774 = vst [vmem:[%s10482_s21 + $0x78] sm:$0xff] %v3742_v22  ;;  %v3583_v59 = vmul.f32 %v8706_v26, %v3487_v4  ;;  %v3520_v16 = vadd.f32 2.0, %v3488_v43  ;;  %v3830_v32 = vpack.c.bf16 %v3742_v22, %v3741_v11  ;;  %v13133_v11 = vld [vmem:[#allocation22_spill] sm:$0xff]  ;;  %v10850_v22 = vpop.f32.mrf.mxu0  ;;  %5129 = vmatpush.bf16.msrb.mxu0 %v8463_v10 }
 0x3f5   : > { %v3362_v31 = vmin.f32 %v10812_v0, 20.0  ;;  %v3135_v15 = vrot.slane %v3087_v21, 1  ;;  %v10855_v21 = vpop.f32.mrf.mxu2 }
 0x3f6   : > { %v8708_v17 = vpop.eup %8707  ;;  %v3647_v41 = vsel %vm3615_vm7, 1.0, %v3583_v59  ;;  %8709 = vrcp.f32 %v3520_v16  ;;  %3952 = vmatmul.bf16.gmra.mxu2 %v3830_v32  ;;  %vm10837_vm7 = vcmp.lt.s32.totalorder %v417_v60, 15  ;;  %v3003_v59 = vadd.f32 %v10736_v7, %v10739_v46  ;;  %v10859_v32 = vpop.f32.mrf.mxu3  ;;  %v8462_v7 = vld [vmem:[%s12816_s3 + $0x2b0] sm:$0xff] }
 0x3f7   : > { %v3679_v49 = vmul.f32 %v3647_v41, %v10742_v12  ;;  %v3457_v6 = vadd.f32 2.0, %v8708_v17  ;;  %v3413_v29 = vmul.f32 1.442695, %v3362_v31  ;;  %v3157_v37 = vsel %vm13132_vm1, %v3134_v9, %v3135_v15 }
 0x3f8   : > { %v3295_v4 = vadd.f32 %v3157_v37, %v13133_v11  ;;  %v13135_v5 = vsel %vm10837_vm7, 4294967295, %v13134_v5  ;;  %vm3616_vm1 = vcmp.gt.f32.partialorder %v10767_v19, 20.0  ;;  %5130 = vmatpush.bf16.msrb.mxu0 %v8462_v7  ;;  %v7711_v11 = vld [vmem:[#allocation2 + $0x18] sm:$0xf] }
 0x3f9   : > { %v3743_v34 = vadd.f32 %v3711_v30, %v3679_v49  ;;  %v3489_v35 = vmul.f32 %v8708_v17, %v3457_v6  ;;  %8711 = vpow2.f32 %v3413_v29  ;;  %13136 = vst [vmem:[#allocation22_spill] sm:$0xff] %v13135_v5  ;;  %v8448_v30 = vld [vmem:[%s12816_s3 + $0x240] sm:$0xff] }
 0x3fa   : > { %v10830_v3 = vadd.f32 %v10809_v51, %v3295_v4  ;;  %v3089_v12 = vpop.f32.mrf.mxu1  ;;  %5047 = vmatpush.bf16.msra.mxu3 %v8448_v30  ;;  %v8460_v30 = vld [vmem:[%s12816_s3 + $0x2a0] sm:$0xff] }
 0x3fb   : > { %3775 = vst [vmem:[%s10482_s21 + $0x80] sm:$0xff] %v3743_v34  ;;  %v3521_v62 = vadd.f32 2.0, %v3489_v35  ;;  %v3090_v57 = vadd.f32 %v3089_v12, %v3001_v20  ;;  %v257_v20 = vadd.s32 184, %v9532_v1  ;;  %v3713_v12 = vld [vmem:[%s9102_s13 + $0x90] sm:$0xff] }
 0x3fc   : > { %v8710_v9 = vpop.eup %8709  ;;  %v3363_v56 = vmin.f32 %v10830_v3, 20.0 }
 0x3fd   : > { %v3584_v42 = vmul.f32 %v8710_v9, %v3488_v43  ;;  %8713 = vrcp.f32 %v3521_v62  ;;  %v3136_v45 = vrot.slane %v3090_v57, 1 }
 0x3fe   : > { %v3415_v53 = vmul.f32 1.442695, %v3363_v56  ;;  %v3006_v56 = vadd.f32 %v10764_v48, %v10769_v39  ;;  %v8461_v48 = vld [vmem:[%s12816_s3 + $0x2a8] sm:$0xff] }
 0x3ff   : > { %v8712_v58 = vpop.eup %8711  ;;  %v3648_v14 = vsel %vm3616_vm1, 1.0, %v3584_v42  ;;  %v3156_v40 = vsel %vm13139_vm15, %v3135_v15, %v3136_v45  ;;  %vm3617_vm15 = vcmp.gt.f32.partialorder %v10783_v2, 20.0  ;;  %vm13140_vm1 = vcmp.lt.s32.totalorder %v9532_v1, 7  ;;  %v13141_v42 = vld [vmem:[#allocation24_spill] sm:$0xff]  ;;  %5131 = vmatpush.bf16.msrb.mxu0 %v8461_v48 }
 0x400   : > { %v3680_v43 = vmul.f32 %v3648_v14, %v10767_v19  ;;  %v3458_v27 = vadd.f32 2.0, %v8712_v58  ;;  %8715 = vpow2.f32 %v3415_v53  ;;  %v3264_v26 = vsel %vm10837_vm7, %v3156_v40, 0.0  ;;  %v13150_v48 = vld [vmem:[#allocation32_spill] sm:$0xff] }
 0x401   : > { %v3296_v16 = vadd.f32 %v3264_v26, %v2627_v63  ;;  %v431_v63 = vand.u32 15, %v257_v20  ;;  %vm13147_vm7 = vcmp.lt.s32.totalorder %v9532_v1, 7 }
 0x402   : > { %v3744_v31 = vadd.f32 %v3712_v13, %v3680_v43  ;;  %v3490_v15 = vmul.f32 %v8712_v58, %v3458_v27  ;;  %v3091_v61 = vpop.f32.mrf.mxu1  ;;  %v10906_v27 = vpop.f32.mrf.mxu3 }
 0x403   : > { %v8714_v17 = vpop.eup %8713  ;;  %v10862_v19 = vadd.f32 %v10809_v51, %v3296_v16  ;;  %v3092_v41 = vadd.f32 %v3091_v61, %v3003_v59  ;;  %5132 = vmatpush.bf16.msrb.mxu0 %v8460_v30 }
 0x404   : > { %3776 = vst [vmem:[%s10482_s21 + $0x88] sm:$0xff] %v3744_v31  ;;  %v3585_v46 = vmul.f32 %v8714_v17, %v3489_v35  ;;  %v3522_v49 = vadd.f32 2.0, %v3490_v15  ;;  %v3831_v6 = vpack.c.bf16 %v3744_v31, %v3743_v34  ;;  %v10878_v35 = vld [vmem:[%s12815_s2 + $0x1] ss:$0 sm:$0xff]  ;;  %v8377_v34 = vld [vmem:[#allocation2 + $0x20] sm:$0xf0] }
 0x405   : > { %v3364_v29 = vmin.f32 %v10862_v19, 20.0  ;;  %v3137_v37 = vrot.slane %v3092_v41, 1  ;;  %v10886_v58 = vor.u32 %v8377_v34, %v7711_v11  ;;  %v13142_v31 = vmov 0 }
 0x406   : > { %v8716_v4 = vpop.eup %8715  ;;  %v3649_v60 = vsel %vm3617_vm15, 1.0, %v3585_v46  ;;  %8717 = vrcp.f32 %v3522_v49  ;;  %3957 = vmatmul.bf16.gmra.mxu2 %v3831_v6  ;;  %vm10910_vm15 = vcmp.lt.s32.totalorder %v431_v63, 15  ;;  %v13145_v46 = vld [vmem:[#allocation21_spill] sm:$0xff]  ;;  %v13146_v49 = vld [vmem:[#allocation30_spill] sm:$0xff] }
 0x407   : > { %v3681_v62 = vmul.f32 %v3649_v60, %v10783_v2  ;;  %v3459_v44 = vadd.f32 2.0, %v8716_v4  ;;  %v3417_v57 = vmul.f32 1.442695, %v3364_v29  ;;  %v3155_v9 = vsel %vm13140_vm1, %v3136_v45, %v3137_v37  ;;  %v10890_v2 = vpop.f32.mrf.mxu0  ;;  %5048 = vmatmul.bf16.vlgmr.msra.gmra.mxu3 %v10886_v58  ;;  %v3714_v29 = vld [vmem:[%s9102_s13 + $0x98] sm:$0xff] }
 0x408   : > { %v3297_v53 = vadd.f32 %v3155_v9, %v13141_v42  ;;  %v13143_v31 = vsel %vm10910_vm15, 4294967295, %v13142_v31  ;;  %vm3618_vm1 = vcmp.gt.f32.partialorder %v10812_v0, 20.0  ;;  %v2632_v6 = vadd.f32 %v13146_v49, %v13145_v46  ;;  %v13148_v42 = vld [vmem:[#allocation27_spill] sm:$0xff] }
 0x409   : > { %v10888_v33 = vadd.f32 %v3713_v12, %v3681_v62  ;;  %v3491_v28 = vmul.f32 %v8716_v4, %v3459_v44  ;;  %8719 = vpow2.f32 %v3417_v57  ;;  %v3918_v14 = vpop.f32.mrf.mxu2  ;;  %13144 = vst [vmem:[#allocation19_spill] sm:$0xff] %v13143_v31  ;;  %v3008_v12 = vadd.f32 %v10786_v18, %v10793_v54  ;;  %v8471_v18 = vld [vmem:[%s12816_s3 + $0x2f8] sm:$0xff] }
 0x40a   : > { %v10893_v13 = vadd.f32 %v10809_v51, %v3297_v53  ;;  %v3094_v40 = vpop.f32.mrf.mxu1  ;;  %v10896_v45 = vadd.f32 %v10878_v35, %v3918_v14  ;;  %v13149_v53 = vld [vmem:[#allocation3_spill] sm:$0xff]  ;;  %5218 = vmatpush.bf16.msrb.mxu1 %v8471_v18  ;;  %v2928_v49 = vpop.f32.mrf.mxu3 }
 0x40b   : > { %3777 = vst [vmem:[%s10482_s21 + $0x90] sm:$0xff] %v10888_v33  ;;  %v3523_v39 = vadd.f32 2.0, %v3491_v28  ;;  %v10904_v10 = vadd.f32 %v3094_v40, %v3006_v56  ;;  %v8459_v56 = vld [vmem:[%s12816_s3 + $0x298] sm:$0xff]  ;;  %v10943_v63 = vadd.f32 %v13149_v53, %v13148_v42  ;;  %v13156_v42 = vld [vmem:[#allocation10_spill] sm:$0xff] }
 0x40c   : > { %v8718_v43 = vpop.eup %8717  ;;  %v3365_v26 = vmin.f32 %v10893_v13, 20.0  ;;  %v3998_v59 = vmin.f32 %v10896_v45, 20.0  ;;  %5133 = vmatpush.bf16.msrb.mxu0 %v8459_v56  ;;  %v10988_v53 = vadd.f32 %v10855_v21, %v13156_v42  ;;  %v3013_v21 = vadd.f32 %v10850_v22, %v10859_v32 }
 0x40d   : > { %v3586_v16 = vmul.f32 %v8718_v43, %v3490_v15  ;;  %8721 = vrcp.f32 %v3523_v39  ;;  %v3138_v61 = vrot.slane %v10904_v10, 1  ;;  %v13151_v39 = vld [vmem:[#allocation6_spill] sm:$0xff] }
 0x40e   : > { %v3419_v17 = vmul.f32 1.442695, %v3365_v26  ;;  %v4030_v41 = vmul.f32 1.442695, %v3998_v59  ;;  %v10952_v10 = vadd.f32 %v13151_v39, %v13150_v48 }
 0x40f   : > { %v8720_v7 = vpop.eup %8719  ;;  %v3650_v15 = vsel %vm3618_vm1, 1.0, %v3586_v16  ;;  %v3154_v20 = vsel %vm13147_vm7, %v3137_v37, %v3138_v61  ;;  %v10954_v43 = vpop.f32.mrf.mxu0  ;;  %vm3619_vm7 = vcmp.gt.f32.partialorder %v10830_v3, 20.0  ;;  %vm13152_vm1 = vcmp.lt.s32.totalorder %v9532_v1, 7 }
 0x410   : > { %v3682_v11 = vmul.f32 %v3650_v15, %v10812_v0  ;;  %v3460_v4 = vadd.f32 2.0, %v8720_v7  ;;  %8723 = vpow2.f32 %v3419_v17  ;;  %v3266_v60 = vsel %vm10910_vm15, %v3154_v20, 0.0  ;;  %v3715_v17 = vld [vmem:[%s9102_s13 + $0xa0] sm:$0xff]  ;;  %v8470_v20 = vld [vmem:[%s12816_s3 + $0x2f0] sm:$0xff] }
 0x411   : > { %v3298_v34 = vadd.f32 %v3266_v60, %v2632_v6  ;;  %8725 = vpow2.f32 %v4030_v41  ;;  %v3920_v62 = vpop.f32.mrf.mxu2  ;;  %v259_v0 = vadd.s32 200, %v9532_v1  ;;  %5219 = vmatpush.bf16.msrb.mxu1 %v8470_v20  ;;  %v11024_v20 = vadd.f32 %v10890_v2, %v10906_v27  ;;  %v3716_v27 = vld [vmem:[%s9102_s13 + $0xa8] sm:$0xff] }
 0x412   : > { %v3746_v44 = vadd.f32 %v3714_v29, %v3682_v11  ;;  %v10929_v57 = vmul.f32 %v8720_v7, %v3460_v4  ;;  %v3096_v9 = vpop.f32.mrf.mxu1  ;;  %v10932_v37 = vadd.f32 %v10878_v35, %v3920_v62  ;;  %v8458_v29 = vld [vmem:[%s12816_s3 + $0x290] sm:$0xff]  ;;  %v13154_v62 = vld [vmem:[#allocation12_spill] sm:$0xff]  ;;  %vm13160_vm15 = vcmp.lt.s32.totalorder %v9532_v1, 7 }
 0x413   : > { %v8722_v54 = vpop.eup %8721  ;;  %v10946_v14 = vadd.f32 %v10809_v51, %v3298_v34  ;;  %v10948_v40 = vadd.f32 %v3096_v9, %v3008_v12  ;;  %v445_v15 = vand.u32 15, %v259_v0  ;;  %v13153_v34 = vld [vmem:[#allocation5_spill] sm:$0xff]  ;;  %5134 = vmatpush.bf16.msrb.mxu0 %v8458_v29 }
 0x414   : > { %3778 = vst [vmem:[%s10482_s21 + $0x98] sm:$0xff] %v3746_v44  ;;  %v3587_v26 = vmul.f32 %v8722_v54, %v3491_v28  ;;  %v3524_v59 = vadd.f32 2.0, %v10929_v57  ;;  %v3999_v16 = vmin.f32 %v10932_v37, 20.0  ;;  %v3832_v7 = vpack.c.bf16 %v3746_v44, %v10888_v33  ;;  %v13155_v0 = vld [vmem:[#allocation29_spill] sm:$0xff] }
 0x415   : > { %v3366_v41 = vmin.f32 %v10946_v14, 20.0  ;;  %v3139_v30 = vrot.slane %v10948_v40, 1  ;;  %v10977_v44 = vadd.f32 %v13154_v62, %v13153_v34  ;;  %v11033_v34 = vadd.f32 %v10954_v43, %v2928_v49 }
 0x416   : > { %v8724_v46 = vpop.eup %8723  ;;  %v3651_v6 = vsel %vm3619_vm7, 1.0, %v3587_v26  ;;  %8727 = vrcp.f32 %v3524_v59  ;;  %v4032_v28 = vmul.f32 1.442695, %v3999_v16  ;;  %3962 = vmatmul.bf16.gmra.mxu2 %v3832_v7  ;;  %vm11009_vm7 = vcmp.lt.s32.totalorder %v445_v15, 15 }
 0x417   : > { %v8726_v11 = vpop.eup %8725  ;;  %v3683_v4 = vmul.f32 %v3651_v6, %v10830_v3  ;;  %v3461_v60 = vadd.f32 2.0, %v8724_v46  ;;  %v3421_v12 = vmul.f32 1.442695, %v3366_v41  ;;  %v3153_v33 = vsel %vm13152_vm1, %v3138_v61, %v3139_v30 }
 0x418   : > { %v4094_v9 = vadd.f32 2.0, %v8726_v11  ;;  %v3299_v56 = vadd.f32 %v3153_v33, %v13155_v0  ;;  %8729 = vpow2.f32 %v4032_v28  ;;  %v3011_v3 = vadd.f32 %v10818_v55, %v10824_v8  ;;  %v8457_v55 = vld [vmem:[%s12816_s3 + $0x288] sm:$0xff]  ;;  %v2931_v0 = vpop.f32.mrf.mxu3 }
 0x419   : > { %v10982_v18 = vadd.f32 %v3715_v17, %v3683_v4  ;;  %v10984_v54 = vmul.f32 %v8724_v46, %v3461_v60  ;;  %8731 = vpow2.f32 %v3421_v12  ;;  %v3923_v61 = vpop.f32.mrf.mxu2  ;;  %v8469_v8 = vld [vmem:[%s12816_s3 + $0x2e8] sm:$0xff]  ;;  %v13157_v17 = vmov 0  ;;  %5135 = vmatpush.bf16.msrb.mxu0 %v8457_v55  ;;  %v8456_v12 = vld [vmem:[%s12816_s3 + $0x280] sm:$0xff] }
 0x41a   : > { %v10990_v48 = vmul.f32 %v8726_v11, %v4094_v9  ;;  %v10993_v39 = vadd.f32 %v10809_v51, %v3299_v56  ;;  %v3099_v26 = vpop.f32.mrf.mxu1  ;;  %v10996_v59 = vadd.f32 %v10878_v35, %v3923_v61  ;;  %v13158_v17 = vsel %vm11009_vm7, 4294967295, %v13157_v17  ;;  %5220 = vmatpush.bf16.msrb.mxu1 %v8469_v8  ;;  %v3020_v11 = vpop.f32.mrf.mxu0 }
 0x41b   : > { %3779 = vst [vmem:[%s10482_s21 + $0xa0] sm:$0xff] %v10982_v18  ;;  %v3525_v16 = vadd.f32 2.0, %v10984_v54  ;;  %v11013_v41 = vadd.f32 %v3099_v26, %v3011_v3  ;;  %vm3620_vm1 = vcmp.gt.f32.partialorder %v10862_v19, 20.0  ;;  %v261_v15 = vadd.s32 216, %v9532_v1 }
 0x41c   : > { %13159 = vst [vmem:[#allocation25_spill] sm:$0xff] %v13158_v17  ;;  %v8728_v7 = vpop.eup %8727  ;;  %v4158_v46 = vadd.f32 2.0, %v10990_v48  ;;  %v3367_v6 = vmin.f32 %v10993_v39, 20.0  ;;  %v4000_v28 = vmin.f32 %v10996_v59, 20.0  ;;  %v11047_v49 = vadd.f32 %v3020_v11, %v2931_v0 }
 0x41d   : > { %v3588_v22 = vmul.f32 %v8728_v7, %v10929_v57  ;;  %8733 = vrcp.f32 %v3525_v16  ;;  %v3140_v32 = vrot.slane %v11013_v41, 1  ;;  %v8468_v57 = vld [vmem:[%s12816_s3 + $0x2e0] sm:$0xff]  ;;  %5136 = vmatpush.bf16.msrb.mxu0 %v8456_v12  ;;  %v459_v8 = vand.u32 15, %v261_v15  ;;  %v8467_v15 = vld [vmem:[%s12816_s3 + $0x2d8] sm:$0xff]  ;;  %v3717_v12 = vld [vmem:[%s9102_s13 + $0xb0] sm:$0xff] }
 0x41e   : > { %v8730_v29 = vpop.eup %8729  ;;  %8735 = vrcp.f32 %v4158_v46  ;;  %v3423_v4 = vmul.f32 1.442695, %v3367_v6  ;;  %v4034_v60 = vmul.f32 1.442695, %v4000_v28  ;;  %5221 = vmatpush.bf16.msrb.mxu1 %v8468_v57 }
 0x41f   : > { %v8732_v33 = vpop.eup %8731  ;;  %v3652_v2 = vsel %vm3620_vm1, 1.0, %v3588_v22  ;;  %v4095_v62 = vadd.f32 2.0, %v8730_v29  ;;  %v3152_v9 = vsel %vm13160_vm15, %v3139_v30, %v3140_v32  ;;  %vm3621_vm15 = vcmp.gt.f32.partialorder %v10893_v13, 20.0 }
 0x420   : > { %v3684_v56 = vmul.f32 %v3652_v2, %v10862_v19  ;;  %v3462_v3 = vadd.f32 2.0, %v8732_v33  ;;  %8737 = vpow2.f32 %v3423_v4  ;;  %v3268_v43 = vsel %vm11009_vm7, %v3152_v9, 0.0 }
 0x421   : > { %v4127_v61 = vmul.f32 %v8730_v29, %v4095_v62  ;;  %v3300_v42 = vadd.f32 %v3268_v43, %v10943_v63  ;;  %8739 = vpow2.f32 %v4034_v60  ;;  %v3925_v40 = vpop.f32.mrf.mxu2  ;;  %vm11075_vm1 = vcmp.lt.s32.totalorder %v459_v8, 15 }
 0x422   : > { %v3748_v26 = vadd.f32 %v3716_v27, %v3684_v56  ;;  %v3494_v30 = vmul.f32 %v8732_v33, %v3462_v3  ;;  %v3101_v55 = vpop.f32.mrf.mxu1  ;;  %v11051_v19 = vadd.f32 %v10878_v35, %v3925_v40  ;;  %v13161_v2 = vmov 0  ;;  %5222 = vmatpush.bf16.msrb.mxu1 %v8467_v15 }
 0x423   : > { %v8734_v16 = vpop.eup %8733  ;;  %v4159_v7 = vadd.f32 2.0, %v4127_v61  ;;  %v11055_v46 = vadd.f32 %v10809_v51, %v3300_v42  ;;  %v11057_v6 = vadd.f32 %v3101_v55, %v3013_v21  ;;  %v11069_v21 = vadd.s32 232, %v9532_v1 }
 0x424   : > { %v8736_v63 = vpop.eup %8735  ;;  %3780 = vst [vmem:[%s10482_s21 + $0xa8] sm:$0xff] %v3748_v26  ;;  %v3589_v28 = vmul.f32 %v8734_v16, %v10984_v54  ;;  %v3526_v22 = vadd.f32 2.0, %v3494_v30  ;;  %v4001_v29 = vmin.f32 %v11051_v19, 20.0  ;;  %v13162_v2 = vsel %vm11075_vm1, 4294967295, %v13161_v2 }
 0x425   : > { %v4222_v11 = vmul.f32 %v8736_v63, %v10990_v48  ;;  %8741 = vrcp.f32 %v4159_v7  ;;  %v3368_v4 = vmin.f32 %v11055_v46, 20.0  ;;  %v3141_v57 = vrot.slane %v11057_v6, 1  ;;  %13163 = vst [vmem:[#allocation24_spill] sm:$0xff] %v13162_v2 }
 0x426   : > { %v8738_v60 = vpop.eup %8737  ;;  %v3653_v54 = vsel %vm3621_vm15, 1.0, %v3589_v28  ;;  %8743 = vrcp.f32 %v3526_v22  ;;  %v4036_v33 = vmul.f32 1.442695, %v4001_v29  ;;  %vm13164_vm7 = vcmp.gt.f32.partialorder %v10896_v45, 20.0 }
 0x427   : > { %v8740_v48 = vpop.eup %8739  ;;  %v3685_v27 = vmul.f32 %v3653_v54, %v10893_v13  ;;  %v4286_v62 = vsel %vm13164_vm7, 1.0, %v4222_v11  ;;  %v3463_v9 = vadd.f32 2.0, %v8738_v60  ;;  %v3425_v0 = vmul.f32 1.442695, %v3368_v4  ;;  %v13166_v13 = vld [vmem:[#allocation4_spill] sm:$0xff] }
 0x428   : > { %v4318_v56 = vmul.f32 %v4286_v62, %v10896_v45  ;;  %v4096_v3 = vadd.f32 2.0, %v8740_v48  ;;  %vm13165_vm15 = vcmp.lt.s32.totalorder %v9532_v1, 7  ;;  %8745 = vpow2.f32 %v4036_v33  ;;  %v3718_v62 = vld [vmem:[%s9102_s13 + $0xb8] sm:$0xff] }
 0x429   : > { %v3151_v43 = vsel %vm13165_vm15, %v3140_v32, %v3141_v57  ;;  %v11087_v42 = vadd.f32 %v3717_v12, %v3685_v27  ;;  %v11089_v40 = vmul.f32 %v8738_v60, %v3463_v9  ;;  %8747 = vpow2.f32 %v3425_v0  ;;  %v3928_v8 = vpop.f32.mrf.mxu2  ;;  %v8466_v32 = vld [vmem:[%s12816_s3 + $0x2d0] sm:$0xff] }
 0x42a   : > { %v3301_v55 = vadd.f32 %v3151_v43, %v13166_v13  ;;  %v4350_v16 = vpack.c.bf16 %v4318_v56, %v4318_v56  ;;  %v11092_v7 = vmul.f32 %v8740_v48, %v4096_v3  ;;  %v3104_v45 = vpop.f32.mrf.mxu1  ;;  %v3833_v6 = vpack.c.bf16 %v3748_v26, %v10982_v18  ;;  %5223 = vmatpush.bf16.msrb.mxu1 %v8466_v32  ;;  %v3022_v56 = vpop.f32.mrf.mxu0 }
 0x42b   : > { %v11096_v41 = vadd.f32 %v10878_v35, %v3928_v8  ;;  %v8742_v63 = vpop.eup %8741  ;;  %3781 = vst [vmem:[%s10482_s21 + $0xb0] sm:$0xff] %v11087_v42  ;;  %v3527_v28 = vadd.f32 2.0, %v11089_v40  ;;  %vm4255_vm7 = vcmp.gt.f32.partialorder %v10932_v37, 20.0  ;;  %v11109_v29 = vadd.f32 %v3104_v45, %v11024_v20  ;;  %v2933_v45 = vpop.f32.mrf.mxu3 }
 0x42c   : > { %v11106_v22 = vadd.f32 %v10809_v51, %v3301_v55  ;;  %v8744_v18 = vpop.eup %8743  ;;  %vm3622_vm15 = vcmp.gt.f32.partialorder %v10946_v14, 20.0  ;;  %4382 = vst [vmem:[#allocation2 + $0x1c] sm:$0xf] %v4350_v16  ;;  %v4223_v26 = vmul.f32 %v8742_v63, %v4127_v61  ;;  %v4160_v15 = vadd.f32 2.0, %v11092_v7  ;;  %3967 = vmatmul.bf16.gmra.mxu2 %v3833_v6 }
 0x42d   : > { %v4002_v11 = vmin.f32 %v11096_v41, 20.0  ;;  %v3590_v4 = vmul.f32 %v8744_v18, %v3494_v30  ;;  %4414 = vst [vmem:[#allocation2 + $0x30] sm:$0xf] %v4350_v16  ;;  %8749 = vrcp.f32 %v3527_v28  ;;  %v473_v20 = vand.u32 15, %v11069_v21  ;;  %v8465_v21 = vld [vmem:[%s12816_s3 + $0x2c8] sm:$0xff]  ;;  %v8464_v28 = vld [vmem:[%s12816_s3 + $0x2c0] sm:$0xff] }
 0x42e   : > { %v3369_v60 = vmin.f32 %v11106_v22, 20.0  ;;  %v8746_v54 = vpop.eup %8745  ;;  %v4287_v12 = vsel %vm4255_vm7, 1.0, %v4223_v26  ;;  %8751 = vrcp.f32 %v4160_v15  ;;  %v3142_v61 = vrot.slane %v11109_v29, 1  ;;  %5224 = vmatpush.bf16.msrb.mxu1 %v8465_v21 }
 0x42f   : > { %v4038_v33 = vmul.f32 1.442695, %v4002_v11  ;;  %v8748_v48 = vpop.eup %8747  ;;  %v3654_v27 = vsel %vm3622_vm15, 1.0, %v3590_v4  ;;  %v4319_v30 = vmul.f32 %v4287_v12, %v10932_v37  ;;  %v4097_v0 = vadd.f32 2.0, %v8746_v54 }
 0x430   : > { %v3427_v9 = vmul.f32 1.442695, %v3369_v60  ;;  %v3686_v3 = vmul.f32 %v3654_v27, %v10946_v14  ;;  %v3464_v43 = vadd.f32 2.0, %v8748_v48  ;;  %vm13167_vm7 = vcmp.lt.s32.totalorder %v9532_v1, 7 }
 0x431   : > { %v3150_v13 = vsel %vm13167_vm7, %v3141_v57, %v3142_v61  ;;  %8753 = vpow2.f32 %v4038_v33  ;;  %v4351_v55 = vpack.c.bf16 %v4319_v30, %v4319_v30  ;;  %v11129_v8 = vmul.f32 %v8746_v54, %v4097_v0  ;;  %v3930_v16 = vpop.f32.mrf.mxu2 }
 0x432   : > { %8755 = vpow2.f32 %v3427_v9  ;;  %v3270_v37 = vsel %vm11075_vm1, %v3150_v13, 0.0  ;;  %v11133_v6 = vadd.f32 %v3718_v62, %v3686_v3  ;;  %v11135_v32 = vmul.f32 %v8748_v48, %v3464_v43  ;;  %v3106_v63 = vpop.f32.mrf.mxu1  ;;  %5225 = vmatpush.bf16.msrb.mxu1 %v8464_v28  ;;  %v3719_v48 = vld [vmem:[%s9102_s13 + $0xc0] sm:$0xff]  ;;  %v13174_v13 = vld [vmem:[#allocation8_spill] sm:$0xff] }
 0x433   : > { %v3302_v14 = vadd.f32 %v3270_v37, %v10952_v10  ;;  %v11139_v57 = vadd.f32 %v10878_v35, %v3930_v16  ;;  %v8750_v29 = vpop.eup %8749  ;;  %v11144_v18 = vadd.f32 %v3022_v56, %v2933_v45  ;;  %4383 = vst [vmem:[#allocation2 + $0x28] sm:$0xf] %v4351_v55  ;;  %v4161_v26 = vadd.f32 2.0, %v11129_v8 }
 0x434   : > { %v11149_v15 = vadd.f32 %v3106_v63, %v11033_v34  ;;  %v8752_v10 = vpop.eup %8751  ;;  %3782 = vst [vmem:[%s10482_s21 + $0xb8] sm:$0xff] %v11133_v6  ;;  %v3591_v11 = vmul.f32 %v8750_v29, %v11089_v40  ;;  %v3528_v4 = vadd.f32 2.0, %v11135_v32  ;;  %vm13168_vm1 = vcmp.gt.f32.partialorder %v10993_v39, 20.0 }
 0x435   : > { %v11157_v60 = vadd.f32 %v10809_v51, %v3302_v14  ;;  %4415 = vst [vmem:[#allocation2 + $0x3c] sm:$0xf] %v4351_v55  ;;  %v4224_v54 = vmul.f32 %v8752_v10, %v11092_v7  ;;  %8757 = vrcp.f32 %v4161_v26  ;;  %v4003_v12 = vmin.f32 %v11139_v57, 20.0  ;;  %v8431_v26 = vld [vmem:[%s12816_s3 + $0x338] sm:$0xff] }
 0x436   : > { %v3143_v34 = vrot.slane %v11149_v15, 1  ;;  %v3655_v40 = vsel %vm13168_vm1, 1.0, %v3591_v11  ;;  %8759 = vrcp.f32 %v3528_v4  ;;  %vm11167_vm7 = vcmp.lt.s32.totalorder %v473_v20, 15  ;;  %5547 = vmatpush.bf16.msrb.mxu2 %v8431_v26 }
 0x437   : > { %v8754_v33 = vpop.eup %8753  ;;  %v3370_v27 = vmin.f32 %v11157_v60, 20.0  ;;  %v13169_v62 = vmov 0  ;;  %v3687_v30 = vmul.f32 %v3655_v40, %v10993_v39  ;;  %vm13172_vm15 = vcmp.gt.f32.partialorder %v10996_v59, 20.0 }
 0x438   : > { %v13170_v62 = vsel %vm11167_vm7, 4294967295, %v13169_v62  ;;  %v8756_v7 = vpop.eup %8755  ;;  %v4288_v9 = vsel %vm13172_vm15, 1.0, %v4224_v54  ;;  %v4098_v0 = vadd.f32 2.0, %v8754_v33  ;;  %v3149_v21 = vsel %vm13173_vm14, %v3142_v61, %v3143_v34 }
 0x439   : > { %13171 = vst [vmem:[#allocation21_spill] sm:$0xff] %v13170_v62  ;;  %v4320_v56 = vmul.f32 %v4288_v9, %v10996_v59  ;;  %v3465_v3 = vadd.f32 2.0, %v8756_v7  ;;  %v3429_v43 = vmul.f32 1.442695, %v3370_v27  ;;  %v3303_v20 = vadd.f32 %v3149_v21, %v13174_v13  ;;  %v3933_v45 = vpop.f32.mrf.mxu2 }
 0x43a   : > { %v11178_v55 = vadd.f32 %v3719_v48, %v3687_v30  ;;  %v11180_v37 = vmul.f32 %v8754_v33, %v4098_v0  ;;  %v4040_v16 = vmul.f32 1.442695, %v4003_v12  ;;  %v3834_v39 = vpack.c.bf16 %v11133_v6, %v11087_v42  ;;  %v3109_v59 = vpop.f32.mrf.mxu1  ;;  %v8439_v42 = vld [vmem:[%s12816_s3 + $0x378] sm:$0xff]  ;;  %v7713_v13 = vld [vmem:[#allocation2 + $0x24] sm:$0xf0] }
 0x43b   : > { %v4352_v14 = vpack.c.bf16 %v4320_v56, %v4320_v56  ;;  %v11184_v63 = vmul.f32 %v8756_v7, %v3465_v3  ;;  %8761 = vpow2.f32 %v3429_v43  ;;  %v11187_v61 = vadd.f32 %v10809_v51, %v3303_v20  ;;  %v8758_v28 = vpop.eup %8757  ;;  %5636 = vmatpush.bf16.msrb.mxu3 %v8439_v42  ;;  %v3720_v7 = vld [vmem:[%s9102_s13 + $0xc8] sm:$0xff] }
 0x43c   : > { %3783 = vst [vmem:[%s10482_s21 + $0xc0] sm:$0xff] %v11178_v55  ;;  %v4162_v29 = vadd.f32 2.0, %v11180_v37  ;;  %8763 = vpow2.f32 %v4040_v16  ;;  %v11199_v6 = vadd.f32 %v3109_v59, %v11047_v49  ;;  %v11202_v15 = vadd.f32 %v10878_v35, %v3933_v45  ;;  %v8760_v10 = vpop.eup %8759  ;;  %3972 = vmatmul.bf16.gmra.mxu2 %v3834_v39  ;;  %v8380_v0 = vld [vmem:[#allocation2 + $0x38] sm:$0xf0]  ;;  %v7723_v45 = vld [vmem:[#allocation2 + $0x30] sm:$0xf] }
 0x43d   : > { %4384 = vst [vmem:[#allocation2 + $0x34] sm:$0xf] %v4352_v14  ;;  %v3529_v11 = vadd.f32 2.0, %v11184_v63  ;;  %v4225_v4 = vmul.f32 %v8758_v28, %v11129_v8  ;;  %v3371_v54 = vmin.f32 %v11187_v61, 20.0  ;;  %v265_v12 = vadd.s32 248, %v9532_v1 }
 0x43e   : > { %v3592_v33 = vmul.f32 %v8760_v10, %v11135_v32  ;;  %4416 = vst [vmem:[#allocation2 + $0x48] sm:$0xf] %v4352_v14  ;;  %8765 = vrcp.f32 %v4162_v29  ;;  %v3144_v49 = vrot.slane %v11199_v6, 1  ;;  %v4004_v40 = vmin.f32 %v11202_v15, 20.0  ;;  %v8376_v29 = vld [vmem:[#allocation2 + $0x1c] sm:$0xf] }
 0x43f   : > { %vm3624_vm14 = vcmp.gt.f32.partialorder %v11055_v46, 20.0  ;;  %4448 = vst [vmem:[#allocation2 + $0x20] sm:$0xf] %v4352_v14  ;;  %8767 = vrcp.f32 %v3529_v11  ;;  %vm13175_vm1 = vcmp.gt.f32.partialorder %v11051_v19, 20.0  ;;  %v3431_v48 = vmul.f32 1.442695, %v3371_v54 }
 0x440   : > { %v4289_v8 = vsel %vm13175_vm1, 1.0, %v4225_v4  ;;  %v3656_v27 = vsel %vm3624_vm14, 1.0, %v3592_v33  ;;  %vm13176_vm15 = vcmp.lt.s32.totalorder %v9532_v1, 7  ;;  %v4042_v9 = vmul.f32 1.442695, %v4004_v40  ;;  %v13184_v6 = vld [vmem:[#allocation13_spill] sm:$0xff] }
 0x441   : > { %v4321_v32 = vmul.f32 %v4289_v8, %v11051_v19  ;;  %v3148_v30 = vsel %vm13176_vm15, %v3143_v34, %v3144_v49  ;;  %v8762_v21 = vpop.eup %8761  ;;  %v3688_v56 = vmul.f32 %v3656_v27, %v11055_v46  ;;  %8769 = vpow2.f32 %v3431_v48  ;;  %v3935_v34 = vpop.f32.mrf.mxu2 }
 0x442   : > { %v3272_v3 = vsel %vm11167_vm7, %v3148_v30, 0.0  ;;  %v487_v43 = vand.u32 15, %v265_v12  ;;  %v8764_v20 = vpop.eup %8763  ;;  %v3466_v39 = vadd.f32 2.0, %v8762_v21  ;;  %8771 = vpow2.f32 %v4042_v9  ;;  %v3111_v59 = vpop.f32.mrf.mxu1 }
 0x443   : > { %v4353_v16 = vpack.c.bf16 %v4321_v32, %v4321_v32  ;;  %v3304_v19 = vadd.f32 %v3272_v3, %v10977_v44  ;;  %v11224_v14 = vadd.f32 %v3720_v7, %v3688_v56  ;;  %vm4258_vm14 = vcmp.gt.f32.partialorder %v11096_v41, 20.0 }
 0x444   : > { %v4099_v46 = vadd.f32 2.0, %v8764_v20  ;;  %v11227_v28 = vor.u32 %v8380_v0, %v7723_v45  ;;  %v8766_v26 = vpop.eup %8765  ;;  %v3498_v42 = vmul.f32 %v8762_v21, %v3466_v39  ;;  %v3112_v44 = vadd.f32 %v3111_v59, %v11144_v18  ;;  %v3721_v0 = vld [vmem:[%s9102_s13 + $0xd0] sm:$0xff] }
 0x445   : > { %4385 = vst [vmem:[#allocation2 + $0x40] sm:$0xf] %v4353_v16  ;;  %v11230_v10 = vadd.f32 %v10809_v51, %v3304_v19  ;;  %v11233_v11 = vor.u32 %v8376_v29, %v7713_v13  ;;  %v8768_v4 = vpop.eup %8767  ;;  %vm3625_vm1 = vcmp.gt.f32.partialorder %v11106_v22, 20.0  ;;  %v4226_v54 = vmul.f32 %v8766_v26, %v11180_v37  ;;  %v13181_v19 = vld [vmem:[#allocation15_spill] sm:$0xff] }
 0x446   : > { %3784 = vst [vmem:[%s10482_s21 + $0xc8] sm:$0xff] %v11224_v14  ;;  %v4131_v12 = vmul.f32 %v8764_v20, %v4099_v46  ;;  %5053 = vmatmul.bf16.gmra.mxu3 %v11227_v28  ;;  %v11241_v33 = vadd.f32 %v10878_v35, %v3935_v34  ;;  %v3593_v40 = vmul.f32 %v8768_v4, %v11184_v63  ;;  %v3530_v18 = vadd.f32 2.0, %v3498_v42 }
 0x447   : > { %4417 = vst [vmem:[#allocation2 + $0x54] sm:$0xf] %v4353_v16  ;;  %v3372_v8 = vmin.f32 %v11230_v10, 20.0  ;;  %vm11245_vm15 = vcmp.lt.s32.totalorder %v487_v43, 15  ;;  %v13177_v48 = vmov 0  ;;  %5137 = vmatmul.bf16.vlgmr.msrb.gmra.mxu0 %v11233_v11  ;;  %v8770_v37 = vpop.eup %8769  ;;  %v4290_v27 = vsel %vm4258_vm14, 1.0, %v4226_v54 }
 0x448   : > { %v13178_v48 = vsel %vm11245_vm15, 4294967295, %v13177_v48  ;;  %4449 = vst [vmem:[#allocation2 + $0x2c] sm:$0xf] %v4353_v16  ;;  %v4163_v7 = vadd.f32 2.0, %v4131_v12  ;;  %v3145_v32 = vrot.slane %v3112_v44, 1  ;;  %v4005_v30 = vmin.f32 %v11241_v33, 20.0  ;;  %v8772_v63 = vpop.eup %8771 }
 0x449   : > { %13179 = vst [vmem:[#allocation30_spill] sm:$0xff] %v13178_v48  ;;  %v3657_v9 = vsel %vm3625_vm1, 1.0, %v3593_v40  ;;  %8773 = vrcp.f32 %v3530_v18  ;;  %v4322_v21 = vmul.f32 %v4290_v27, %v11096_v41  ;;  %v3467_v56 = vadd.f32 2.0, %v8770_v37  ;;  %v3938_v41 = vpop.f32.mrf.mxu2 }
 0x44a   : > { %v3689_v3 = vmul.f32 %v3657_v9, %v11106_v22  ;;  %8775 = vrcp.f32 %v4163_v7  ;;  %v3433_v43 = vmul.f32 1.442695, %v3372_v8  ;;  %v4100_v13 = vadd.f32 2.0, %v8772_v63 }
 0x44b   : > { %v4354_v20 = vpack.c.bf16 %v4322_v21, %v4322_v21  ;;  %v3499_v16 = vmul.f32 %v8770_v37, %v3467_v56  ;;  %vm13180_vm14 = vcmp.lt.s32.totalorder %v9532_v1, 7  ;;  %v13182_v45 = vrot.slane %v13181_v19, 1  ;;  %v3722_v21 = vld [vmem:[%s9102_s13 + $0xd8] sm:$0xff] }
 0x44c   : > { %v3147_v39 = vsel %vm13180_vm14, %v3144_v49, %v3145_v32  ;;  %vm13183_vm1 = vmmov %vm13180_vm14  ;;  %v11266_v46 = vadd.f32 %v3721_v0, %v3689_v3  ;;  %8777 = vpow2.f32 %v3433_v43  ;;  %v11268_v22 = vmul.f32 %v8772_v63, %v4100_v13  ;;  %v7735_v63 = vld [vmem:[#allocation2 + $0x48] sm:$0xf]  ;;  %v7725_v9 = vld [vmem:[#allocation2 + $0x3c] sm:$0xf0] }
 0x44d   : > { %v3178_v34 = vsel %vm13183_vm1, %v3145_v32, %v13182_v45  ;;  %4386 = vst [vmem:[#allocation2 + $0x4c] sm:$0xf] %v4354_v20  ;;  %v3531_v29 = vadd.f32 2.0, %v3499_v16  ;;  %v3305_v26 = vadd.f32 %v3147_v39, %v13184_v6  ;;  %v4044_v4 = vmul.f32 1.442695, %v4005_v30 }
 0x44e   : > { %v3274_v59 = vsel %vm11245_vm15, %v3178_v34, 0.0  ;;  %3785 = vst [vmem:[%s10482_s21 + $0xd0] sm:$0xff] %v11266_v46  ;;  %v4164_v44 = vadd.f32 2.0, %v11268_v22  ;;  %v3835_v54 = vpack.c.bf16 %v11224_v14, %v11178_v55  ;;  %v11280_v40 = vadd.f32 %v10878_v35, %v3938_v41  ;;  %v8383_v37 = vld [vmem:[#allocation2 + $0x50] sm:$0xf0] }
 0x44f   : > { %v3306_v49 = vadd.f32 %v3274_v59, %v10988_v53  ;;  %v8774_v18 = vpop.eup %8773  ;;  %4418 = vst [vmem:[#allocation2 + $0x60] sm:$0xf] %v4354_v20  ;;  %8779 = vrcp.f32 %v3531_v29  ;;  %vm4259_vm14 = vcmp.gt.f32.partialorder %v11139_v57, 20.0  ;;  %v11284_v8 = vadd.f32 %v10809_v51, %v3305_v26  ;;  %v8378_v3 = vld [vmem:[#allocation2 + $0x28] sm:$0xf0]  ;;  %v8430_v41 = vld [vmem:[%s12816_s3 + $0x330] sm:$0xff] }
 0x450   : > { %v8776_v27 = vpop.eup %8775  ;;  %v3594_v7 = vmul.f32 %v8774_v18, %v3498_v42  ;;  %vm3626_vm1 = vcmp.gt.f32.partialorder %v11157_v60, 20.0  ;;  %4450 = vst [vmem:[#allocation2 + $0x38] sm:$0xf] %v4354_v20  ;;  %8781 = vrcp.f32 %v4164_v44  ;;  %3977 = vmatmul.bf16.gmra.mxu2 %v3835_v54  ;;  %v4006_v55 = vmin.f32 %v11280_v40, 20.0  ;;  %v8379_v39 = vld [vmem:[#allocation2 + $0x34] sm:$0xf] }
 0x451   : > { %v11287_v53 = vadd.f32 %v10809_v51, %v3306_v49  ;;  %v4227_v14 = vmul.f32 %v8776_v27, %v4131_v12  ;;  %v3373_v32 = vmin.f32 %v11284_v8, 20.0  ;;  %8783 = vpow2.f32 %v4044_v4  ;;  %v3940_v19 = vpop.f32.mrf.mxu2  ;;  %v7719_v29 = vld [vmem:[#allocation2 + $0x20] sm:$0xf]  ;;  %5548 = vmatpush.bf16.msrb.mxu2 %v8430_v41 }
 0x452   : > { %v8778_v51 = vpop.eup %8777  ;;  %v3658_v0 = vsel %vm3626_vm1, 1.0, %v3594_v7  ;;  %v4046_v56 = vmul.f32 1.442695, %v4006_v55  ;;  %v11294_v42 = vor.u32 %v8383_v37, %v7735_v63  ;;  %v11303_v59 = vor.u32 %v8379_v39, %v7725_v9  ;;  %v8429_v9 = vld [vmem:[%s12816_s3 + $0x328] sm:$0xff] }
 0x453   : > { %v3374_v30 = vmin.f32 %v11287_v53, 20.0  ;;  %v3690_v43 = vmul.f32 %v3658_v0, %v11157_v60  ;;  %v4291_v13 = vsel %vm4259_vm14, 1.0, %v4227_v14  ;;  %v3468_v12 = vadd.f32 2.0, %v8778_v51  ;;  %v8438_v60 = vld [vmem:[%s12816_s3 + $0x370] sm:$0xff]  ;;  %v3723_v14 = vld [vmem:[%s9102_s13 + $0xe0] sm:$0xff] }
 0x454   : > { %v3435_v20 = vmul.f32 1.442695, %v3373_v32  ;;  %v4323_v45 = vmul.f32 %v4291_v13, %v11139_v57  ;;  %8785 = vpow2.f32 %v4046_v56  ;;  %v11310_v57 = vor.u32 %v8378_v3, %v7719_v29  ;;  %5637 = vmatpush.bf16.msrb.mxu3 %v8438_v60 }
 0x455   : > { %v3437_v34 = vmul.f32 1.442695, %v3374_v30  ;;  %v8780_v6 = vpop.eup %8779  ;;  %v11308_v26 = vadd.f32 %v3722_v21, %v3690_v43  ;;  %v3500_v49 = vmul.f32 %v8778_v51, %v3468_v12  ;;  %v11314_v18 = vadd.f32 %v10878_v35, %v3940_v19  ;;  %5549 = vmatpush.bf16.msrb.mxu2 %v8429_v9 }
 0x456   : > { %8787 = vpow2.f32 %v3435_v20  ;;  %13185 = vst [vmem:[#allocation27_spill] sm:$0xff] %v11310_v57  ;;  %v8782_v44 = vpop.eup %8781  ;;  %v3595_v4 = vmul.f32 %v8780_v6, %v3499_v16  ;;  %v4355_v54 = vpack.c.bf16 %v4323_v45, %v4323_v45  ;;  %5058 = vmatmul.bf16.gmra.mxu3 %v11294_v42  ;;  %vm3627_vm14 = vcmp.gt.f32.partialorder %v11187_v61, 20.0  ;;  %5226 = vmatmul.bf16.vlgmr.msrb.gmra.mxu1 %v11310_v57 }
 0x457   : > { %8789 = vpow2.f32 %v3437_v34  ;;  %3786 = vst [vmem:[%s10482_s21 + $0xd8] sm:$0xff] %v11308_v26  ;;  %v3532_v37 = vadd.f32 2.0, %v3500_v49  ;;  %v4228_v27 = vmul.f32 %v8782_v44, %v11268_v22  ;;  %5142 = vmatmul.bf16.gmra.mxu0 %v11303_v59  ;;  %v3836_v16 = vpack.c.bf16 %v11308_v26, %v11266_v46  ;;  %v8784_v7 = vpop.eup %8783  ;;  %v8428_v34 = vld [vmem:[%s12816_s3 + $0x320] sm:$0xff]  ;;  %v8382_v44 = vld [vmem:[#allocation2 + $0x4c] sm:$0xf] }
 0x458   : > { %v3659_v55 = vsel %vm3627_vm14, 1.0, %v3595_v4  ;;  %4387 = vst [vmem:[#allocation2 + $0x58] sm:$0xf] %v4355_v54  ;;  %vm4260_vm1 = vcmp.gt.f32.partialorder %v11202_v15, 20.0  ;;  %v4007_v32 = vmin.f32 %v11314_v18, 20.0  ;;  %v4101_v63 = vadd.f32 2.0, %v8784_v7 }
 0x459   : > { %v3691_v30 = vmul.f32 %v3659_v55, %v11187_v61  ;;  %4419 = vst [vmem:[#allocation2 + $0x6c] sm:$0xf] %v4355_v54  ;;  %8791 = vrcp.f32 %v3532_v37  ;;  %v4292_v22 = vsel %vm4260_vm1, 1.0, %v4228_v27  ;;  %v3943_v61 = vpop.f32.mrf.mxu2  ;;  %5550 = vmatpush.bf16.msrb.mxu2 %v8428_v34  ;;  %vm3628_vm14 = vcmp.gt.f32.partialorder %v11230_v10, 20.0 }
 0x45a   : > { %v8786_v46 = vpop.eup %8785  ;;  %4451 = vst [vmem:[#allocation2 + $0x44] sm:$0xf] %v4355_v54  ;;  %v4324_v51 = vmul.f32 %v4292_v22, %v11202_v15  ;;  %v4048_v0 = vmul.f32 1.442695, %v4007_v32  ;;  %v4133_v3 = vmul.f32 %v8784_v7, %v4101_v63  ;;  %v11335_v39 = vadd.f32 %v10878_v35, %v3943_v61  ;;  %v7747_v35 = vld [vmem:[#allocation2 + $0x60] sm:$0xf] }
 0x45b   : > { %v11332_v56 = vadd.f32 %v3723_v14, %v3691_v30  ;;  %v4102_v43 = vadd.f32 2.0, %v8786_v46  ;;  %v8427_v32 = vld [vmem:[%s12816_s3 + $0x318] sm:$0xff]  ;;  %v3724_v63 = vld [vmem:[%s9102_s13 + $0xe8] sm:$0xff]  ;;  %vm4261_vm1 = vcmp.gt.f32.partialorder %v11241_v33, 20.0  ;;  %vm3629_vm15 = vcmp.gt.f32.partialorder %v11284_v8, 20.0 }
 0x45c   : > { %v8788_v21 = vpop.eup %8787  ;;  %v4356_v12 = vpack.c.bf16 %v4324_v51, %v4324_v51  ;;  %8793 = vpow2.f32 %v4048_v0  ;;  %v4165_v45 = vadd.f32 2.0, %v4133_v3  ;;  %v4008_v29 = vmin.f32 %v11335_v39, 20.0 }
 0x45d   : > { %v8790_v13 = vpop.eup %8789  ;;  %v3469_v20 = vadd.f32 2.0, %v8788_v21  ;;  %3787 = vst [vmem:[%s10482_s21 + $0xe0] sm:$0xff] %v11332_v56  ;;  %v4134_v15 = vmul.f32 %v8786_v46, %v4102_v43  ;;  %v7731_v46 = vld [vmem:[#allocation2 + $0x38] sm:$0xf]  ;;  %5551 = vmatpush.bf16.msrb.mxu2 %v8427_v32  ;;  %v11358_v43 = vld [vmem:[%s12815_s2 + $0x1] ss:$0 sm:$0xff] }
 0x45e   : > { %v3470_v19 = vadd.f32 2.0, %v8790_v13  ;;  %4388 = vst [vmem:[#allocation2 + $0x64] sm:$0xf] %v4356_v12  ;;  %8795 = vrcp.f32 %v4165_v45  ;;  %v4050_v27 = vmul.f32 1.442695, %v4008_v29 }
 0x45f   : > { %v3501_v41 = vmul.f32 %v8788_v21, %v3469_v20  ;;  %v8792_v60 = vpop.eup %8791  ;;  %4420 = vst [vmem:[#allocation2 + $0x78] sm:$0xf] %v4356_v12  ;;  %v4166_v26 = vadd.f32 2.0, %v4134_v15  ;;  %v7737_v4 = vld [vmem:[#allocation2 + $0x54] sm:$0xf0] }
 0x460   : > { %v3502_v6 = vmul.f32 %v8790_v13, %v3470_v19  ;;  %v3596_v54 = vmul.f32 %v8792_v60, %v3500_v49  ;;  %4452 = vst [vmem:[#allocation2 + $0x50] sm:$0xf] %v4356_v12  ;;  %3982 = vmatmul.bf16.gmra.mxu2 %v3836_v16  ;;  %v8386_v55 = vld [vmem:[#allocation2 + $0x68] sm:$0xf0]  ;;  %v11350_v49 = vor.u32 %v8382_v44, %v7737_v4 }
 0x461   : > { %v3533_v37 = vadd.f32 2.0, %v3501_v41  ;;  %8797 = vrcp.f32 %v4166_v26  ;;  %v8381_v14 = vld [vmem:[#allocation2 + $0x40] sm:$0xf0]  ;;  %v11348_v9 = vor.u32 %v8386_v55, %v7747_v35  ;;  %v3945_v21 = vpop.f32.mrf.mxu2 }
 0x462   : > { %v3534_v7 = vadd.f32 2.0, %v3502_v6  ;;  %v8794_v30 = vpop.eup %8793  ;;  %v3660_v22 = vsel %vm3628_vm14, 1.0, %v3596_v54  ;;  %v11353_v0 = vor.u32 %v8381_v14, %v7731_v46  ;;  %v11361_v61 = vadd.f32 %v11358_v43, %v3945_v21  ;;  %v3725_v14 = vld [vmem:[%s9102_s13 + $0xf0] sm:$0xff]  ;;  %v3726_v46 = vld [vmem:[%s9102_s13 + $0xf8] sm:$0xff] }
 0x463   : > { %8799 = vrcp.f32 %v3533_v37  ;;  %v3692_v16 = vmul.f32 %v3660_v22, %v11230_v10  ;;  %v4103_v51 = vadd.f32 2.0, %v8794_v30  ;;  %v8426_v10 = vld [vmem:[%s12816_s3 + $0x310] sm:$0xff]  ;;  %vm4262_vm14 = vcmp.gt.f32.partialorder %v11280_v40, 20.0 }
 0x464   : > { %8801 = vrcp.f32 %v3534_v7  ;;  %13186 = vst [vmem:[#allocation3_spill] sm:$0xff] %v11353_v0  ;;  %v8796_v13 = vpop.eup %8795  ;;  %v4009_v45 = vmin.f32 %v11361_v61, 20.0  ;;  %5552 = vmatpush.bf16.msrb.mxu2 %v8426_v10 }
 0x465   : > { %8803 = vpow2.f32 %v4050_v27  ;;  %v3756_v12 = vadd.f32 %v3724_v63, %v3692_v16  ;;  %v4135_v20 = vmul.f32 %v8794_v30, %v4103_v51  ;;  %v4229_v19 = vmul.f32 %v8796_v13, %v4133_v3 }
 0x466   : > { %5063 = vmatmul.bf16.gmra.mxu3 %v11348_v9  ;;  %5231 = vmatmul.bf16.gmra.mxu1 %v11353_v0  ;;  %v4052_v3 = vmul.f32 1.442695, %v4009_v45 }
 0x467   : > { %v8798_v34 = vpop.eup %8797  ;;  %3788 = vst [vmem:[%s10482_s21 + $0xe8] sm:$0xff] %v3756_v12  ;;  %v4167_v29 = vadd.f32 2.0, %v4135_v20  ;;  %5147 = vmatmul.bf16.gmra.mxu0 %v11350_v49  ;;  %v3837_v60 = vpack.c.bf16 %v3756_v12, %v11332_v56  ;;  %v4293_v35 = vsel %vm4261_vm1, 1.0, %v4229_v19  ;;  %v8425_v56 = vld [vmem:[%s12816_s3 + $0x308] sm:$0xff]  ;;  %vm3630_vm1 = vcmp.gt.f32.partialorder %v11287_v53, 20.0 }
 0x468   : > { %v4230_v44 = vmul.f32 %v8798_v34, %v4134_v15  ;;  %v4325_v37 = vmul.f32 %v4293_v35, %v11241_v33  ;;  %5553 = vmatpush.bf16.msrb.mxu2 %v8425_v56 }
 0x469   : > { %v8800_v26 = vpop.eup %8799  ;;  %8805 = vrcp.f32 %v4167_v29  ;;  %v3948_v22 = vpop.f32.mrf.mxu2 }
 0x46a   : > { %v8802_v4 = vpop.eup %8801  ;;  %v3597_v54 = vmul.f32 %v8800_v26, %v3501_v41  ;;  %v4294_v15 = vsel %vm4262_vm14, 1.0, %v4230_v44  ;;  %8807 = vpow2.f32 %v4052_v3  ;;  %v4357_v32 = vpack.c.bf16 %v4325_v37, %v4325_v37 }
 0x46b   : > { %v8804_v27 = vpop.eup %8803  ;;  %v3598_v7 = vmul.f32 %v8802_v4, %v3502_v6  ;;  %v4326_v41 = vmul.f32 %v4294_v15, %v11280_v40  ;;  %v11385_v16 = vadd.f32 %v11358_v43, %v3948_v22  ;;  %v8424_v40 = vld [vmem:[%s12816_s3 + $0x300] sm:$0xff]  ;;  %vm4264_vm14 = vcmp.gt.f32.partialorder %v11335_v39, 20.0 }
 0x46c   : > { %v3661_v55 = vsel %vm3629_vm15, 1.0, %v3597_v54  ;;  %v4104_v30 = vadd.f32 2.0, %v8804_v27  ;;  %4389 = vst [vmem:[#allocation2 + $0x70] sm:$0xf] %v4357_v32  ;;  %vm4263_vm15 = vcmp.gt.f32.partialorder %v11314_v18, 20.0  ;;  %5554 = vmatpush.bf16.msrb.mxu2 %v8424_v40 }
 0x46d   : > { %v3662_v33 = vsel %vm3630_vm1, 1.0, %v3598_v7  ;;  %v3693_v63 = vmul.f32 %v3661_v55, %v11284_v8  ;;  %4421 = vst [vmem:[#allocation2 + $0x84] sm:$0xf] %v4357_v32  ;;  %v4358_v13 = vpack.c.bf16 %v4326_v41, %v4326_v41  ;;  %v4010_v8 = vmin.f32 %v11385_v16, 20.0  ;;  %v8385_v4 = vld [vmem:[#allocation2 + $0x64] sm:$0xf] }
 0x46e   : > { %v3694_v6 = vmul.f32 %v3662_v33, %v11287_v53  ;;  %v4136_v51 = vmul.f32 %v8804_v27, %v4104_v30  ;;  %4453 = vst [vmem:[#allocation2 + $0x5c] sm:$0xf] %v4357_v32  ;;  %v8437_v53 = vld [vmem:[%s12816_s3 + $0x368] sm:$0xff]  ;;  %v7759_v7 = vld [vmem:[#allocation2 + $0x78] sm:$0xf]  ;;  %vm4265_vm1 = vcmp.gt.f32.partialorder %v11361_v61, 20.0 }
 0x46f   : > { %v11391_v21 = vadd.f32 %v3725_v14, %v3693_v63  ;;  %v8806_v12 = vpop.eup %8805  ;;  %v4054_v29 = vmul.f32 1.442695, %v4010_v8  ;;  %5638 = vmatpush.bf16.msrb.mxu3 %v8437_v53  ;;  %4390 = vst [vmem:[#allocation2 + $0x7c] sm:$0xf] %v4358_v13  ;;  %v7743_v32 = vld [vmem:[#allocation2 + $0x50] sm:$0xf] }
 0x470   : > { %v11394_v10 = vadd.f32 %v3726_v46, %v3694_v6  ;;  %v4168_v19 = vadd.f32 2.0, %v4136_v51  ;;  %v8808_v45 = vpop.eup %8807  ;;  %v4231_v34 = vmul.f32 %v8806_v12, %v4135_v20  ;;  %3987 = vmatmul.bf16.gmra.mxu2 %v3837_v60  ;;  %4422 = vst [vmem:[#allocation2 + $0x90] sm:$0xf] %v4358_v13 }
 0x471   : > { %3789 = vst [vmem:[%s10482_s21 + $0xf0] sm:$0xff] %v11391_v21  ;;  %v4105_v26 = vadd.f32 2.0, %v8808_v45  ;;  %v3950_v60 = vpop.f32.mrf.mxu2 }
 0x472   : > { %3790 = vst [vmem:[%s10482_s21 + $0xf8] sm:$0xff] %v11394_v10  ;;  %8809 = vrcp.f32 %v4168_v19  ;;  %v3838_v35 = vpack.c.bf16 %v11394_v10, %v11391_v21  ;;  %v4295_v44 = vsel %vm4263_vm15, 1.0, %v4231_v34  ;;  %v11408_v37 = vadd.f32 %v11358_v43, %v3950_v60 }
 0x473   : > { %8811 = vpow2.f32 %v4054_v29  ;;  %v4327_v3 = vmul.f32 %v4295_v44, %v11314_v18  ;;  %v4137_v20 = vmul.f32 %v8808_v45, %v4105_v26  ;;  %4454 = vst [vmem:[#allocation2 + $0x68] sm:$0xf] %v4358_v13  ;;  %v7749_v54 = vld [vmem:[#allocation2 + $0x6c] sm:$0xf0]  ;;  %vm4266_vm15 = vcmp.gt.f32.partialorder %v11385_v16, 20.0 }
 0x474   : > { %v8389_v15 = vld [vmem:[#allocation2 + $0x80] sm:$0xf0]  ;;  %v11410_v55 = vor.u32 %v8385_v4, %v7749_v54  ;;  %v4011_v18 = vmin.f32 %v11408_v37, 20.0 }
 0x475   : > { %v4359_v56 = vpack.c.bf16 %v4327_v3, %v4327_v3  ;;  %v4169_v27 = vadd.f32 2.0, %v4137_v20  ;;  %v11412_v14 = vor.u32 %v8389_v15, %v7759_v7  ;;  %v8384_v41 = vld [vmem:[#allocation2 + $0x58] sm:$0xf0] }
 0x476   : > { %v11416_v22 = vor.u32 %v8384_v41, %v7743_v32  ;;  %v4056_v46 = vmul.f32 1.442695, %v4011_v18  ;;  %v8388_v4 = vld [vmem:[#allocation2 + $0x7c] sm:$0xf] }
 0x477   : > { %4391 = vst [vmem:[#allocation2 + $0x88] sm:$0xf] %v4359_v56  ;;  %8813 = vrcp.f32 %v4169_v27  ;;  %5152 = vmatmul.bf16.gmra.mxu0 %v11410_v55  ;;  %5068 = vmatmul.bf16.gmra.mxu3 %v11412_v14  ;;  %v7771_v27 = vld [vmem:[#allocation2 + $0x90] sm:$0xf] }
 0x478   : > { %v8810_v30 = vpop.eup %8809  ;;  %13187 = vst [vmem:[#allocation32_spill] sm:$0xff] %v11416_v22  ;;  %5236 = vmatmul.bf16.gmra.mxu1 %v11416_v22  ;;  %8815 = vpow2.f32 %v4056_v46 }
 0x479   : > { %v8812_v33 = vpop.eup %8811  ;;  %4423 = vst [vmem:[#allocation2 + $0x9c] sm:$0xf] %v4359_v56  ;;  %v4232_v63 = vmul.f32 %v8810_v30, %v4136_v51  ;;  %v3953_v8 = vpop.f32.mrf.mxu2 }
 0x47a   : > { %4455 = vst [vmem:[#allocation2 + $0x74] sm:$0xf] %v4359_v56  ;;  %v4106_v6 = vadd.f32 2.0, %v8812_v33  ;;  %v11423_v12 = vadd.f32 %v11358_v43, %v3953_v8  ;;  %v7755_v41 = vld [vmem:[#allocation2 + $0x68] sm:$0xf] }
 0x47b   : > { %v4296_v40 = vsel %vm4264_vm14, 1.0, %v4232_v63  ;;  %vm4267_vm14 = vcmp.gt.f32.partialorder %v11408_v37, 20.0 }
 0x47c   : > { %v4328_v21 = vmul.f32 %v4296_v40, %v11335_v39  ;;  %v4138_v13 = vmul.f32 %v8812_v33, %v4106_v6  ;;  %v4012_v45 = vmin.f32 %v11423_v12, 20.0 }
 0x47d   : > { %v8814_v10 = vpop.eup %8813 }
 0x47e   : > { %v4360_v51 = vpack.c.bf16 %v4328_v21, %v4328_v21  ;;  %v4170_v19 = vadd.f32 2.0, %v4138_v13  ;;  %v4233_v53 = vmul.f32 %v8814_v10, %v4137_v20  ;;  %v7761_v34 = vld [vmem:[#allocation2 + $0x84] sm:$0xf0]  ;;  %v8816_v29 = vpop.eup %8815  ;;  %v4058_v39 = vmul.f32 1.442695, %v4012_v45 }
 0x47f   : > { %v4107_v3 = vadd.f32 2.0, %v8816_v29  ;;  %v11428_v7 = vor.u32 %v8388_v4, %v7761_v34 }
 0x480   : > { %4392 = vst [vmem:[#allocation2 + $0x94] sm:$0xf] %v4360_v51  ;;  %8817 = vrcp.f32 %v4170_v19  ;;  %v4297_v26 = vsel %vm4265_vm1, 1.0, %v4233_v53  ;;  %3992 = vmatmul.bf16.gmra.mxu2 %v3838_v35  ;;  %v8392_v60 = vld [vmem:[#allocation2 + $0x98] sm:$0xf0]  ;;  %vm4268_vm1 = vcmp.gt.f32.partialorder %v11423_v12, 20.0 }
 0x481   : > { %4424 = vst [vmem:[#allocation2 + $0xa8] sm:$0xf] %v4360_v51  ;;  %v4329_v44 = vmul.f32 %v4297_v26, %v11361_v61  ;;  %8819 = vpow2.f32 %v4058_v39  ;;  %v8387_v20 = vld [vmem:[#allocation2 + $0x70] sm:$0xf0]  ;;  %v4139_v56 = vmul.f32 %v8816_v29, %v4107_v3  ;;  %v3955_v15 = vpop.f32.mrf.mxu2  ;;  %v11430_v32 = vor.u32 %v8392_v60, %v7771_v27 }
 0x482   : > { %4456 = vst [vmem:[#allocation2 + $0x80] sm:$0xf] %v4360_v51  ;;  %v11433_v35 = vadd.f32 %v11358_v43, %v3955_v15  ;;  %v11435_v30 = vor.u32 %v8387_v20, %v7755_v41 }
 0x483   : > { %v4361_v54 = vpack.c.bf16 %v4329_v44, %v4329_v44  ;;  %v4171_v61 = vadd.f32 2.0, %v4139_v56 }
 0x484   : > { %13188 = vst [vmem:[#allocation6_spill] sm:$0xff] %v11435_v30  ;;  %v4013_v63 = vmin.f32 %v11433_v35, 20.0 }
 0x485   : > { %4393 = vst [vmem:[#allocation2 + $0xa0] sm:$0xf] %v4361_v54  ;;  %8821 = vrcp.f32 %v4171_v61 }
 0x486   : > { %v8818_v18 = vpop.eup %8817  ;;  %4425 = vst [vmem:[#allocation2 + $0xb4] sm:$0xf] %v4361_v54  ;;  %v4060_v40 = vmul.f32 1.442695, %v4013_v63 }
 0x487   : > { %v4234_v33 = vmul.f32 %v8818_v18, %v4138_v13  ;;  %4457 = vst [vmem:[#allocation2 + $0x8c] sm:$0xf] %v4361_v54  ;;  %5157 = vmatmul.bf16.gmra.mxu0 %v11428_v7  ;;  %v8820_v46 = vpop.eup %8819  ;;  %5073 = vmatmul.bf16.gmra.mxu3 %v11430_v32  ;;  %v8391_v54 = vld [vmem:[#allocation2 + $0x94] sm:$0xf] }
 0x488   : > { %v4108_v8 = vadd.f32 2.0, %v8820_v46  ;;  %5241 = vmatmul.bf16.gmra.mxu1 %v11435_v30  ;;  %8823 = vpow2.f32 %v4060_v40  ;;  %v7783_v41 = vld [vmem:[#allocation2 + $0xa8] sm:$0xf] }
 0x489   : > { %v4298_v6 = vsel %vm4266_vm15, 1.0, %v4234_v33  ;;  %v3958_v51 = vpop.f32.mrf.mxu2  ;;  %v7767_v63 = vld [vmem:[#allocation2 + $0x80] sm:$0xf]  ;;  %vm4269_vm15 = vcmp.gt.f32.partialorder %v11433_v35, 20.0 }
 0x48a   : > { %v4330_v21 = vmul.f32 %v4298_v6, %v11385_v16  ;;  %v4140_v10 = vmul.f32 %v8820_v46, %v4108_v8  ;;  %v11444_v19 = vadd.f32 %v11358_v43, %v3958_v51  ;;  %v8436_v16 = vld [vmem:[%s12816_s3 + $0x360] sm:$0xff] }
 0x48b   : > { %v8822_v53 = vpop.eup %8821  ;;  %5639 = vmatpush.bf16.msrb.mxu3 %v8436_v16 }
 0x48c   : > { %v4362_v13 = vpack.c.bf16 %v4330_v21, %v4330_v21  ;;  %v4172_v45 = vadd.f32 2.0, %v4140_v10  ;;  %v4235_v34 = vmul.f32 %v8822_v53, %v4139_v56  ;;  %v4014_v29 = vmin.f32 %v11444_v19, 20.0  ;;  %v7773_v3 = vld [vmem:[#allocation2 + $0x9c] sm:$0xf0] }
 0x48d   : > { %v8395_v20 = vld [vmem:[#allocation2 + $0xb0] sm:$0xf0]  ;;  %v11453_v18 = vor.u32 %v8391_v54, %v7773_v3 }
 0x48e   : > { %4394 = vst [vmem:[#allocation2 + $0xac] sm:$0xf] %v4362_v13  ;;  %8825 = vrcp.f32 %v4172_v45  ;;  %v8824_v26 = vpop.eup %8823  ;;  %v4299_v39 = vsel %vm4267_vm14, 1.0, %v4235_v34  ;;  %v4062_v44 = vmul.f32 1.442695, %v4014_v29  ;;  %v11455_v33 = vor.u32 %v8395_v20, %v7783_v41 }
 0x48f   : > { %4426 = vst [vmem:[#allocation2 + $0xc0] sm:$0xf] %v4362_v13  ;;  %v4331_v60 = vmul.f32 %v4299_v39, %v11408_v37  ;;  %v4109_v4 = vadd.f32 2.0, %v8824_v26  ;;  %v8390_v56 = vld [vmem:[#allocation2 + $0x88] sm:$0xf0]  ;;  %vm4270_vm14 = vcmp.gt.f32.partialorder %v11444_v19, 20.0 }
 0x490   : > { %4458 = vst [vmem:[#allocation2 + $0x98] sm:$0xf] %v4362_v13  ;;  %5555 = vmatmul.bf16.vlgmr.msrb.gmra.mxu2 %v10886_v58  ;;  %8827 = vpow2.f32 %v4062_v44  ;;  %v11460_v40 = vor.u32 %v8390_v56, %v7767_v63 }
 0x491   : > { %v4363_v27 = vpack.c.bf16 %v4331_v60, %v4331_v60  ;;  %v4141_v15 = vmul.f32 %v8824_v26, %v4109_v4  ;;  %v3960_v61 = vpop.f32.mrf.mxu2 }
 0x492   : > { %v11458_v46 = vadd.f32 %v11358_v43, %v3960_v61  ;;  %13189 = vst [vmem:[#allocation5_spill] sm:$0xff] %v11460_v40 }
 0x493   : > { %4395 = vst [vmem:[#allocation2 + $0xb8] sm:$0xf] %v4363_v27  ;;  %v4173_v37 = vadd.f32 2.0, %v4141_v15 }
 0x494   : > { %v8826_v6 = vpop.eup %8825  ;;  %4427 = vst [vmem:[#allocation2 + $0xcc] sm:$0xf] %v4363_v27  ;;  %v4015_v8 = vmin.f32 %v11458_v46, 20.0 }
 0x495   : > { %v4236_v21 = vmul.f32 %v8826_v6, %v4140_v10  ;;  %4459 = vst [vmem:[#allocation2 + $0xa4] sm:$0xf] %v4363_v27  ;;  %8829 = vrcp.f32 %v4173_v37  ;;  %v8394_v61 = vld [vmem:[#allocation2 + $0xac] sm:$0xf] }
 0x496   : > { %v8828_v13 = vpop.eup %8827  ;;  %v4064_v53 = vmul.f32 1.442695, %v4015_v8  ;;  %v7795_v37 = vld [vmem:[#allocation2 + $0xc0] sm:$0xf] }
 0x497   : > { %5162 = vmatmul.bf16.gmra.mxu0 %v11453_v18  ;;  %v4300_v51 = vsel %vm4268_vm1, 1.0, %v4236_v21  ;;  %5078 = vmatmul.bf16.gmra.mxu3 %v11455_v33  ;;  %v4110_v34 = vadd.f32 2.0, %v8828_v13  ;;  %vm4271_vm1 = vcmp.gt.f32.partialorder %v11458_v46, 20.0 }
 0x498   : > { %v4332_v45 = vmul.f32 %v4300_v51, %v11423_v12  ;;  %5246 = vmatmul.bf16.gmra.mxu1 %v11460_v40  ;;  %8831 = vpow2.f32 %v4064_v53 }
 0x499   : > { %v4142_v29 = vmul.f32 %v8828_v13, %v4110_v34  ;;  %v3963_v16 = vpop.f32.mrf.mxu2  ;;  %v7779_v13 = vld [vmem:[#allocation2 + $0x98] sm:$0xf] }
 0x49a   : > { %v4364_v10 = vpack.c.bf16 %v4332_v45, %v4332_v45  ;;  %v11469_v44 = vadd.f32 %v11358_v43, %v3963_v16  ;;  %v7785_v20 = vld [vmem:[#allocation2 + $0xb4] sm:$0xf0] }
 0x49b   : > { %v8830_v26 = vpop.eup %8829  ;;  %v4174_v39 = vadd.f32 2.0, %v4142_v29  ;;  %v8398_v41 = vld [vmem:[#allocation2 + $0xc8] sm:$0xf0]  ;;  %v11475_v21 = vor.u32 %v8394_v61, %v7785_v20 }
 0x49c   : > { %4396 = vst [vmem:[#allocation2 + $0xc4] sm:$0xf] %v4364_v10  ;;  %v4237_v3 = vmul.f32 %v8830_v26, %v4141_v15  ;;  %v4016_v12 = vmin.f32 %v11469_v44, 20.0  ;;  %v8393_v63 = vld [vmem:[#allocation2 + $0xa0] sm:$0xf0]  ;;  %v11477_v8 = vor.u32 %v8398_v41, %v7795_v37 }
 0x49d   : > { %4428 = vst [vmem:[#allocation2 + $0xd8] sm:$0xf] %v4364_v10  ;;  %8833 = vrcp.f32 %v4174_v39  ;;  %v11479_v34 = vor.u32 %v8393_v63, %v7779_v13 }
 0x49e   : > { %4460 = vst [vmem:[#allocation2 + $0xb0] sm:$0xf] %v4364_v10  ;;  %v8832_v60 = vpop.eup %8831  ;;  %v4301_v4 = vsel %vm4269_vm15, 1.0, %v4237_v3  ;;  %v4066_v27 = vmul.f32 1.442695, %v4016_v12  ;;  %vm4272_vm15 = vcmp.gt.f32.partialorder %v11469_v44, 20.0 }
 0x49f   : > { %v4333_v54 = vmul.f32 %v4301_v4, %v11433_v35  ;;  %v4111_v56 = vadd.f32 2.0, %v8832_v60  ;;  %13190 = vst [vmem:[#allocation12_spill] sm:$0xff] %v11477_v8 }
 0x4a0   : > { %5560 = vmatmul.bf16.gmra.mxu2 %v11227_v28  ;;  %8835 = vpow2.f32 %v4066_v27 }
 0x4a1   : > { %v4365_v6 = vpack.c.bf16 %v4333_v54, %v4333_v54  ;;  %v4143_v15 = vmul.f32 %v8832_v60, %v4111_v56  ;;  %v3965_v51 = vpop.f32.mrf.mxu2 }
 0x4a2   : > { %v11482_v35 = vadd.f32 %v11358_v43, %v3965_v51 }
 0x4a3   : > { %v8834_v53 = vpop.eup %8833  ;;  %4397 = vst [vmem:[#allocation2 + $0xd0] sm:$0xf] %v4365_v6  ;;  %v4175_v45 = vadd.f32 2.0, %v4143_v15  ;;  %v8397_v51 = vld [vmem:[#allocation2 + $0xc4] sm:$0xf] }
 0x4a4   : > { %4429 = vst [vmem:[#allocation2 + $0xe4] sm:$0xf] %v4365_v6  ;;  %v4238_v10 = vmul.f32 %v8834_v53, %v4142_v29  ;;  %v4017_v16 = vmin.f32 %v11482_v35, 20.0 }
 0x4a5   : > { %4461 = vst [vmem:[#allocation2 + $0xbc] sm:$0xf] %v4365_v6  ;;  %8837 = vrcp.f32 %v4175_v45  ;;  %v7807_v45 = vld [vmem:[#allocation2 + $0xd8] sm:$0xf] }
 0x4a6   : > { %v4302_v26 = vsel %vm4270_vm14, 1.0, %v4238_v10  ;;  %v8836_v39 = vpop.eup %8835  ;;  %v4068_v12 = vmul.f32 1.442695, %v4017_v16  ;;  %vm4273_vm14 = vcmp.gt.f32.partialorder %v11482_v35, 20.0 }
 0x4a7   : > { %5167 = vmatmul.bf16.gmra.mxu0 %v11475_v21  ;;  %5083 = vmatmul.bf16.gmra.mxu3 %v11477_v8  ;;  %v4334_v3 = vmul.f32 %v4302_v26, %v11444_v19  ;;  %v4112_v60 = vadd.f32 2.0, %v8836_v39 }
 0x4a8   : > { %5251 = vmatmul.bf16.gmra.mxu1 %v11479_v34  ;;  %8839 = vpow2.f32 %v4068_v12 }
 0x4a9   : > { %v4366_v4 = vpack.c.bf16 %v4334_v3, %v4334_v3  ;;  %v4144_v29 = vmul.f32 %v8836_v39, %v4112_v60  ;;  %v7791_v3 = vld [vmem:[#allocation2 + $0xb0] sm:$0xf] }
 0x4aa   : > { %v7797_v19 = vld [vmem:[#allocation2 + $0xcc] sm:$0xf0] }
 0x4ab   : > { %v8838_v20 = vpop.eup %8837  ;;  %4398 = vst [vmem:[#allocation2 + $0xdc] sm:$0xf] %v4366_v4  ;;  %v4176_v56 = vadd.f32 2.0, %v4144_v29  ;;  %v8401_v6 = vld [vmem:[#allocation2 + $0xe0] sm:$0xf0]  ;;  %v11496_v10 = vor.u32 %v8397_v51, %v7797_v19 }
 0x4ac   : > { %4430 = vst [vmem:[#allocation2 + $0xf0] sm:$0xf] %v4366_v4  ;;  %v4239_v54 = vmul.f32 %v8838_v20, %v4143_v15  ;;  %v8396_v15 = vld [vmem:[#allocation2 + $0xb8] sm:$0xf0]  ;;  %v11499_v39 = vor.u32 %v8401_v6, %v7807_v45 }
 0x4ad   : > { %4462 = vst [vmem:[#allocation2 + $0xc8] sm:$0xf] %v4366_v4  ;;  %8841 = vrcp.f32 %v4176_v56  ;;  %v8435_v20 = vld [vmem:[%s12816_s3 + $0x358] sm:$0xff]  ;;  %v5049_v56 = vpop.f32.mrf.mxu3 }
 0x4ae   : > { %v4303_v27 = vsel %vm4271_vm1, 1.0, %v4239_v54  ;;  %v8840_v41 = vpop.eup %8839  ;;  %13191 = vst [vmem:[#allocation29_spill] sm:$0xff] %v11499_v39  ;;  %5640 = vmatpush.bf16.msrb.mxu3 %v8435_v20 }
 0x4af   : > { %v4335_v61 = vmul.f32 %v4303_v27, %v11458_v46  ;;  %v3968_v63 = vpop.f32.mrf.mxu2  ;;  %v4113_v37 = vadd.f32 2.0, %v8840_v41  ;;  %v11501_v46 = vor.u32 %v8396_v15, %v7791_v3 }
 0x4b0   : > { %5565 = vmatmul.bf16.gmra.mxu2 %v11294_v42  ;;  %v11494_v13 = vadd.f32 %v11358_v43, %v3968_v63 }
 0x4b1   : > { %v4367_v53 = vpack.c.bf16 %v4335_v61, %v4335_v61  ;;  %v4145_v16 = vmul.f32 %v8840_v41, %v4113_v37  ;;  %13192 = vst [vmem:[#allocation10_spill] sm:$0xff] %v11501_v46 }
 0x4b2   : > { %v4018_v26 = vmin.f32 %v11494_v13, 20.0  ;;  %vm4274_vm1 = vcmp.gt.f32.partialorder %v11494_v13, 20.0 }
 0x4b3   : > { %4399 = vst [vmem:[#allocation2 + $0xe8] sm:$0xf] %v4367_v53  ;;  %v8842_v12 = vpop.eup %8841  ;;  %v4177_v60 = vadd.f32 2.0, %v4145_v16 }
 0x4b4   : > { %4431 = vst [vmem:[#allocation2 + $0xfc] sm:$0xf] %v4367_v53  ;;  %v4070_v4 = vmul.f32 1.442695, %v4018_v26  ;;  %v4240_v54 = vmul.f32 %v8842_v12, %v4144_v29 }
 0x4b5   : > { %4463 = vst [vmem:[#allocation2 + $0xd4] sm:$0xf] %v4367_v53  ;;  %8843 = vrcp.f32 %v4177_v60  ;;  %v5051_v26 = vpop.f32.mrf.mxu3 }
 0x4b6   : > { %v4304_v27 = vsel %vm4272_vm15, 1.0, %v4240_v54  ;;  %8845 = vpow2.f32 %v4070_v4  ;;  %v8400_v54 = vld [vmem:[#allocation2 + $0xdc] sm:$0xf] }
 0x4b7   : > { %5172 = vmatmul.bf16.gmra.mxu0 %v11496_v10  ;;  %5088 = vmatmul.bf16.gmra.mxu3 %v11499_v39  ;;  %v3970_v19 = vpop.f32.mrf.mxu2  ;;  %v4336_v41 = vmul.f32 %v4304_v27, %v11469_v44  ;;  %v7819_v27 = vld [vmem:[#allocation2 + $0xf0] sm:$0xf] }
 0x4b8   : > { %5256 = vmatmul.bf16.gmra.mxu1 %v11501_v46  ;;  %v11512_v61 = vadd.f32 %v11358_v43, %v3970_v19 }
 0x4b9   : > { %v4368_v29 = vpack.c.bf16 %v4336_v41, %v4336_v41 }
 0x4ba   : > { %v4019_v63 = vmin.f32 %v11512_v61, 20.0  ;;  %v7809_v44 = vld [vmem:[#allocation2 + $0xe4] sm:$0xf0]  ;;  %vm4275_vm15 = vcmp.gt.f32.partialorder %v11512_v61, 20.0 }
 0x4bb   : > { %v8844_v6 = vpop.eup %8843  ;;  %4400 = vst [vmem:[#allocation2 + $0xf4] sm:$0xf] %v4368_v29  ;;  %v8404_v12 = vld [vmem:[#allocation2 + $0xf8] sm:$0xf0]  ;;  %v11521_v19 = vor.u32 %v8400_v54, %v7809_v44 }
 0x4bc   : > { %v4072_v37 = vmul.f32 1.442695, %v4019_v63  ;;  %v8846_v51 = vpop.eup %8845  ;;  %4432 = vst [vmem:[#allocation2 + $0x108] sm:$0xf] %v4368_v29  ;;  %v4241_v15 = vmul.f32 %v8844_v6, %v4145_v16  ;;  %v8399_v16 = vld [vmem:[#allocation2 + $0xd0] sm:$0xf0] }
 0x4bd   : > { %4464 = vst [vmem:[#allocation2 + $0xe0] sm:$0xf] %v4368_v29  ;;  %v4114_v53 = vadd.f32 2.0, %v8846_v51 }
 0x4be   : > { %8847 = vpow2.f32 %v4072_v37  ;;  %v4305_v45 = vsel %vm4273_vm14, 1.0, %v4241_v15  ;;  %v11524_v37 = vor.u32 %v8404_v12, %v7819_v27  ;;  %v7803_v15 = vld [vmem:[#allocation2 + $0xc8] sm:$0xf] }
 0x4bf   : > { %v3973_v3 = vpop.f32.mrf.mxu2  ;;  %v4337_v60 = vmul.f32 %v4305_v45, %v11482_v35  ;;  %v4146_v4 = vmul.f32 %v8846_v51, %v4114_v53  ;;  %v11526_v62 = vor.u32 %v8399_v16, %v7803_v15 }
 0x4c0   : > { %5570 = vmatmul.bf16.gmra.mxu2 %v11348_v9  ;;  %v11519_v20 = vadd.f32 %v11358_v43, %v3973_v3 }
 0x4c1   : > { %v4369_v41 = vpack.c.bf16 %v4337_v60, %v4337_v60  ;;  %v4178_v29 = vadd.f32 2.0, %v4146_v4  ;;  %13193 = vst [vmem:[#allocation4_spill] sm:$0xff] %v11526_v62 }
 0x4c2   : > { %v4020_v63 = vmin.f32 %v11519_v20, 20.0  ;;  %vm4276_vm14 = vcmp.gt.f32.partialorder %v11519_v20, 20.0 }
 0x4c3   : > { %4401 = vst [vmem:[#allocation2 + $0x100] sm:$0xf] %v4369_v41  ;;  %8849 = vrcp.f32 %v4178_v29  ;;  %v7831_v31 = vld [vmem:[#allocation2 + $0x108] sm:$0xf] }
 0x4c4   : > { %v5138_v6 = vpop.f32.mrf.mxu0  ;;  %v8848_v35 = vpop.eup %8847  ;;  %v4074_v51 = vmul.f32 1.442695, %v4020_v63  ;;  %4433 = vst [vmem:[#allocation2 + $0x114] sm:$0xf] %v4369_v41 }
 0x4c5   : > { %v5139_v48 = vadd.f32 %v5138_v6, %v5049_v56  ;;  %v4115_v53 = vadd.f32 2.0, %v8848_v35  ;;  %4465 = vst [vmem:[#allocation2 + $0xec] sm:$0xf] %v4369_v41 }
 0x4c6   : > { %8851 = vpow2.f32 %v4074_v51 }
 0x4c7   : > { %5177 = vmatmul.bf16.gmra.mxu0 %v11521_v19  ;;  %5093 = vmatmul.bf16.gmra.mxu3 %v11524_v37  ;;  %v4147_v44 = vmul.f32 %v8848_v35, %v4115_v53  ;;  %v3975_v3 = vpop.f32.mrf.mxu2 }
 0x4c8   : > { %5261 = vmatmul.bf16.gmra.mxu1 %v11526_v62  ;;  %v11532_v56 = vadd.f32 %v11358_v43, %v3975_v3 }
 0x4c9   : > { %v5054_v45 = vpop.f32.mrf.mxu3  ;;  %v4179_v12 = vadd.f32 2.0, %v4147_v44  ;;  %v8850_v60 = vpop.eup %8849 }
 0x4ca   : > { %v4021_v54 = vmin.f32 %v11532_v56, 20.0  ;;  %v4242_v27 = vmul.f32 %v8850_v60, %v4146_v4  ;;  %v7821_v51 = vld [vmem:[#allocation2 + $0xfc] sm:$0xf0]  ;;  %v8403_v4 = vld [vmem:[#allocation2 + $0xf4] sm:$0xf] }
 0x4cb   : > { %8853 = vrcp.f32 %v4179_v12  ;;  %v8407_v2 = vld [vmem:[#allocation2 + $0x110] sm:$0xf0]  ;;  %v11540_v5 = vor.u32 %v8403_v4, %v7821_v51 }
 0x4cc   : > { %v5140_v16 = vpop.f32.mrf.mxu0  ;;  %v8852_v41 = vpop.eup %8851  ;;  %v4076_v63 = vmul.f32 1.442695, %v4021_v54  ;;  %v4306_v6 = vsel %vm4274_vm1, 1.0, %v4242_v27  ;;  %v8402_v12 = vld [vmem:[#allocation2 + $0xe8] sm:$0xf0]  ;;  %vm13197_vm1 = vcmp.lt.s32.totalorder %v9532_v1, 1 }
 0x4cd   : > { %v11535_v29 = vadd.f32 %v5140_v16, %v5051_v26  ;;  %v4116_v15 = vadd.f32 2.0, %v8852_v41  ;;  %v4338_v35 = vmul.f32 %v4306_v6, %v11494_v13  ;;  %13194 = vst [vmem:[#allocation8_spill] sm:$0xff] %v11540_v5  ;;  %v7815_v6 = vld [vmem:[#allocation2 + $0xe0] sm:$0xf] }
 0x4ce   : > { %8855 = vpow2.f32 %v4076_v63  ;;  %v11546_v63 = vor.u32 %v8407_v2, %v7831_v31  ;;  %v11552_v51 = vor.u32 %v8402_v12, %v7815_v6  ;;  %v8434_v31 = vld [vmem:[%s12816_s3 + $0x350] sm:$0xff] }
 0x4cf   : > { %v4148_v53 = vmul.f32 %v8852_v41, %v4116_v15  ;;  %v4370_v17 = vpack.c.bf16 %v4338_v35, %v4338_v35  ;;  %5641 = vmatpush.bf16.msrb.mxu3 %v8434_v31 }
 0x4d0   : > { %5575 = vmatmul.bf16.gmra.mxu2 %v11412_v14  ;;  %13196 = vst [vmem:[#allocation13_spill] sm:$0xff] %v11552_v51 }
 0x4d1   : > { %v5056_v3 = vpop.f32.mrf.mxu3  ;;  %v8854_v26 = vpop.eup %8853  ;;  %v4180_v60 = vadd.f32 2.0, %v4148_v53  ;;  %4402 = vst [vmem:[#allocation2 + $0x10c] sm:$0xf] %v4370_v17 }
 0x4d2   : > { %v4243_v54 = vmul.f32 %v8854_v26, %v4147_v44  ;;  %4434 = vst [vmem:[#allocation2 + $0x120] sm:$0xf] %v4370_v17 }
 0x4d3   : > { %v3978_v16 = vpop.f32.mrf.mxu2  ;;  %v5227_v41 = vpop.f32.mrf.mxu1  ;;  %8857 = vrcp.f32 %v4180_v60  ;;  %4466 = vst [vmem:[#allocation2 + $0xf8] sm:$0xf] %v4370_v17 }
 0x4d4   : > { %v11544_v13 = vadd.f32 %v11358_v43, %v3978_v16  ;;  %v5143_v27 = vpop.f32.mrf.mxu0  ;;  %v11550_v35 = vadd.f32 %v5227_v41, %v5139_v48  ;;  %v8856_v4 = vpop.eup %8855  ;;  %v4307_v44 = vsel %vm4275_vm15, 1.0, %v4243_v54  ;;  %vm4277_vm15 = vcmp.gt.f32.partialorder %v11532_v56, 20.0 }
 0x4d5   : > { %v11548_v15 = vadd.f32 %v5143_v27, %v5054_v45  ;;  %v4339_v16 = vmul.f32 %v4307_v44, %v11512_v61  ;;  %v4117_v52 = vadd.f32 2.0, %v8856_v4 }
 0x4d6   : > { %13195 = vst [vmem:[#allocation15_spill] sm:$0xff] %v11550_v35  ;;  %v4022_v26 = vmin.f32 %v11544_v13, 20.0 }
 0x4d7   : > { %5182 = vmatmul.bf16.gmra.mxu0 %v11540_v5  ;;  %5098 = vmatmul.bf16.gmra.mxu3 %v11546_v63  ;;  %v4371_v48 = vpack.c.bf16 %v4339_v16, %v4339_v16  ;;  %v4149_v45 = vmul.f32 %v8856_v4, %v4117_v52 }
 0x4d8   : > { %v4078_v2 = vmul.f32 1.442695, %v4022_v26  ;;  %5266 = vmatmul.bf16.gmra.mxu1 %v11552_v51 }
 0x4d9   : > { %v5059_v17 = vpop.f32.mrf.mxu3  ;;  %v8858_v12 = vpop.eup %8857  ;;  %4403 = vst [vmem:[#allocation2 + $0x118] sm:$0xf] %v4371_v48  ;;  %v4181_v61 = vadd.f32 2.0, %v4149_v45 }
 0x4da   : > { %8859 = vpow2.f32 %v4078_v2  ;;  %4435 = vst [vmem:[#allocation2 + $0x12c] sm:$0xf] %v4371_v48  ;;  %v4244_v54 = vmul.f32 %v8858_v12, %v4148_v53  ;;  %v12909_v53 = vrot.slane %v11550_v35, 7 }
 0x4db   : > { %v3980_v60 = vpop.f32.mrf.mxu2  ;;  %v5229_v6 = vpop.f32.mrf.mxu1  ;;  %4467 = vst [vmem:[#allocation2 + $0x104] sm:$0xf] %v4371_v48  ;;  %8861 = vrcp.f32 %v4181_v61 }
 0x4dc   : > { %v11563_v27 = vadd.f32 %v11358_v43, %v3980_v60  ;;  %v5145_v41 = vpop.f32.mrf.mxu0  ;;  %v5230_v4 = vadd.f32 %v5229_v6, %v11535_v29  ;;  %v4308_v44 = vsel %vm4276_vm14, 1.0, %v4244_v54  ;;  %v7843_v6 = vld [vmem:[#allocation2 + $0x120] sm:$0xf]  ;;  %vm13200_vm14 = vmmov %vm13197_vm1 }
 0x4dd   : > { %v11566_v52 = vadd.f32 %v5145_v41, %v5056_v3  ;;  %v4340_v16 = vmul.f32 %v4308_v44, %v11519_v20  ;;  %v8406_v20 = vld [vmem:[#allocation2 + $0x10c] sm:$0xf] }
 0x4de   : > { %v4023_v26 = vmin.f32 %v11563_v27, 20.0  ;;  %v5308_v31 = vrot.slane %v5230_v4, 7 }
 0x4df   : > { %v4372_v48 = vpack.c.bf16 %v4340_v16, %v4340_v16 }
 0x4e0   : > { %v8860_v2 = vpop.eup %8859  ;;  %v4080_v12 = vmul.f32 1.442695, %v4023_v26  ;;  %5580 = vmatmul.bf16.gmra.mxu2 %v11430_v32  ;;  %v11577_v29 = vsel %vm13197_vm1, %v12909_v53, %v5308_v31  ;;  %v7833_v3 = vld [vmem:[#allocation2 + $0x114] sm:$0xf0]  ;;  %vm4278_vm1 = vcmp.gt.f32.partialorder %v11544_v13, 20.0 }
 0x4e1   : > { %v4118_v60 = vadd.f32 2.0, %v8860_v2  ;;  %v5061_v38 = vpop.f32.mrf.mxu3  ;;  %v8862_v61 = vpop.eup %8861  ;;  %4404 = vst [vmem:[#allocation2 + $0x124] sm:$0xf] %v4372_v48  ;;  %v8410_v4 = vld [vmem:[#allocation2 + $0x128] sm:$0xf0]  ;;  %v11580_v44 = vor.u32 %v8406_v20, %v7833_v3 }
 0x4e2   : > { %8863 = vpow2.f32 %v4080_v12  ;;  %4436 = vst [vmem:[#allocation2 + $0x138] sm:$0xf] %v4372_v48  ;;  %v4245_v26 = vmul.f32 %v8862_v61, %v4149_v45  ;;  %v11585_v36 = vor.u32 %v8410_v4, %v7843_v6  ;;  %v7827_v12 = vld [vmem:[#allocation2 + $0xf8] sm:$0xf]  ;;  %v8405_v50 = vld [vmem:[#allocation2 + $0x100] sm:$0xf0] }
 0x4e3   : > { %v4150_v54 = vmul.f32 %v8860_v2, %v4118_v60  ;;  %v3983_v41 = vpop.f32.mrf.mxu2  ;;  %13198 = vst [vmem:[#allocation47_spill] sm:$0xff] %v11580_v44  ;;  %v5232_v24 = vpop.f32.mrf.mxu1  ;;  %v11590_v60 = vor.u32 %v8405_v50, %v7827_v12 }
 0x4e4   : > { %v11583_v16 = vadd.f32 %v11358_v43, %v3983_v41  ;;  %v5148_v53 = vpop.f32.mrf.mxu0  ;;  %4468 = vst [vmem:[#allocation2 + $0x110] sm:$0xf] %v4372_v48  ;;  %v5233_v2 = vadd.f32 %v5232_v24, %v11548_v15  ;;  %v4309_v45 = vsel %vm4277_vm15, 1.0, %v4245_v26  ;;  %vm13201_vm15 = vmmov %vm13200_vm14 }
 0x4e5   : > { %v4182_v23 = vadd.f32 2.0, %v4150_v54  ;;  %v11587_v47 = vadd.f32 %v5148_v53, %v5059_v17  ;;  %13199 = vst [vmem:[#allocation48_spill] sm:$0xff] %v11590_v60  ;;  %v4341_v3 = vmul.f32 %v4309_v45, %v11532_v56 }
 0x4e6   : > { %v4024_v20 = vmin.f32 %v11583_v16, 20.0  ;;  %v5309_v61 = vrot.slane %v5233_v2, 7 }
 0x4e7   : > { %8865 = vrcp.f32 %v4182_v23  ;;  %5187 = vmatmul.bf16.gmra.mxu0 %v11580_v44  ;;  %5103 = vmatmul.bf16.gmra.mxu3 %v11585_v36  ;;  %v4373_v17 = vpack.c.bf16 %v4341_v3, %v4341_v3 }
 0x4e8   : > { %v8864_v41 = vpop.eup %8863  ;;  %v4082_v48 = vmul.f32 1.442695, %v4024_v20  ;;  %5271 = vmatmul.bf16.gmra.mxu1 %v11590_v60  ;;  %v11601_v24 = vsel %vm13200_vm14, %v5308_v31, %v5309_v61  ;;  %vm4279_vm14 = vcmp.gt.f32.partialorder %v11563_v27, 20.0 }
 0x4e9   : > { %v4119_v53 = vadd.f32 2.0, %v8864_v41  ;;  %v5064_v50 = vpop.f32.mrf.mxu3  ;;  %4405 = vst [vmem:[#allocation2 + $0x130] sm:$0xf] %v4373_v17 }
 0x4ea   : > { %8867 = vpow2.f32 %v4082_v48  ;;  %4437 = vst [vmem:[#allocation2 + $0x144] sm:$0xf] %v4373_v17 }
 0x4eb   : > { %v4151_v56 = vmul.f32 %v8864_v41, %v4119_v53  ;;  %v3985_v23 = vpop.f32.mrf.mxu2  ;;  %v5234_v4 = vpop.f32.mrf.mxu1  ;;  %4469 = vst [vmem:[#allocation2 + $0x11c] sm:$0xf] %v4373_v17 }
 0x4ec   : > { %v11604_v15 = vadd.f32 %v11358_v43, %v3985_v23  ;;  %v5150_v6 = vpop.f32.mrf.mxu0  ;;  %v5235_v45 = vadd.f32 %v5234_v4, %v11566_v52  ;;  %v8409_v52 = vld [vmem:[#allocation2 + $0x124] sm:$0xf] }
 0x4ed   : > { %v8866_v26 = vpop.eup %8865  ;;  %v4183_v12 = vadd.f32 2.0, %v4151_v56  ;;  %v11606_v2 = vadd.f32 %v5150_v6, %v5061_v38 }
 0x4ee   : > { %v4246_v20 = vmul.f32 %v8866_v26, %v4150_v54  ;;  %v4025_v31 = vmin.f32 %v11604_v15, 20.0  ;;  %v5310_v3 = vrot.slane %v5235_v45, 7 }
 0x4ef   : > { %8869 = vrcp.f32 %v4183_v12  ;;  %v7855_v12 = vld [vmem:[#allocation2 + $0x138] sm:$0xf] }
 0x4f0   : > { %v8868_v41 = vpop.eup %8867  ;;  %v4310_v48 = vsel %vm4278_vm1, 1.0, %v4246_v20  ;;  %v4084_v43 = vmul.f32 1.442695, %v4025_v31  ;;  %5585 = vmatmul.bf16.gmra.mxu2 %v11455_v33  ;;  %v11615_v38 = vsel %vm13201_vm15, %v5309_v61, %v5310_v3  ;;  %v7845_v54 = vld [vmem:[#allocation2 + $0x12c] sm:$0xf0]  ;;  %vm13204_vm1 = vmmov %vm13201_vm15  ;;  %vm4280_vm15 = vcmp.gt.f32.partialorder %v11583_v16, 20.0 }
 0x4f1   : > { %v4342_v53 = vmul.f32 %v4310_v48, %v11544_v13  ;;  %v4120_v17 = vadd.f32 2.0, %v8868_v41  ;;  %v5066_v23 = vpop.f32.mrf.mxu3  ;;  %v8413_v45 = vld [vmem:[#allocation2 + $0x140] sm:$0xf0]  ;;  %v11617_v20 = vor.u32 %v8409_v52, %v7845_v54  ;;  %v11622_v13 = vld [vmem:[%s12815_s2 + $0x1] ss:$0 sm:$0xff] }
 0x4f2   : > { %8871 = vpow2.f32 %v4084_v43  ;;  %v11627_v48 = vor.u32 %v8413_v45, %v7855_v12  ;;  %v7839_v43 = vld [vmem:[#allocation2 + $0x110] sm:$0xf]  ;;  %v8408_v25 = vld [vmem:[#allocation2 + $0x118] sm:$0xf0] }
 0x4f3   : > { %v4374_v6 = vpack.c.bf16 %v4342_v53, %v4342_v53  ;;  %v4152_v4 = vmul.f32 %v8868_v41, %v4120_v17  ;;  %v3988_v26 = vpop.f32.mrf.mxu2  ;;  %13202 = vst [vmem:[#allocation49_spill] sm:$0xff] %v11617_v20  ;;  %v11631_v52 = vor.u32 %v8408_v25, %v7839_v43 }
 0x4f4   : > { %v11625_v31 = vadd.f32 %v11622_v13, %v3988_v26  ;;  %v5153_v61 = vpop.f32.mrf.mxu0 }
 0x4f5   : > { %v8870_v53 = vpop.eup %8869  ;;  %4406 = vst [vmem:[#allocation2 + $0x13c] sm:$0xf] %v4374_v6  ;;  %v4184_v41 = vadd.f32 2.0, %v4152_v4  ;;  %v11629_v17 = vadd.f32 %v5153_v61, %v5064_v50  ;;  %v5237_v60 = vpop.f32.mrf.mxu1  ;;  %v8433_v50 = vld [vmem:[%s12816_s3 + $0x348] sm:$0xff] }
 0x4f6   : > { %13203 = vst [vmem:[#allocation50_spill] sm:$0xff] %v11631_v52  ;;  %v4247_v54 = vmul.f32 %v8870_v53, %v4151_v56  ;;  %v4026_v44 = vmin.f32 %v11625_v31, 20.0  ;;  %v5238_v26 = vadd.f32 %v5237_v60, %v11587_v47  ;;  %5642 = vmatpush.bf16.msrb.mxu3 %v8433_v50 }
 0x4f7   : > { %4438 = vst [vmem:[#allocation2 + $0x150] sm:$0xf] %v4374_v6  ;;  %8873 = vrcp.f32 %v4184_v41  ;;  %5192 = vmatmul.bf16.gmra.mxu0 %v11617_v20  ;;  %5108 = vmatmul.bf16.gmra.mxu3 %v11627_v48 }
 0x4f8   : > { %4470 = vst [vmem:[#allocation2 + $0x128] sm:$0xf] %v4374_v6  ;;  %v8872_v12 = vpop.eup %8871  ;;  %v4311_v25 = vsel %vm4279_vm14, 1.0, %v4247_v54  ;;  %v4086_v45 = vmul.f32 1.442695, %v4026_v44  ;;  %v5311_v6 = vrot.slane %v5238_v26, 7  ;;  %5276 = vmatmul.bf16.gmra.mxu1 %v11631_v52  ;;  %vm13205_vm14 = vmmov %vm13204_vm1 }
 0x4f9   : > { %v4343_v56 = vmul.f32 %v4311_v25, %v11563_v27  ;;  %v4121_v61 = vadd.f32 2.0, %v8872_v12 }
 0x4fa   : > { %8875 = vpow2.f32 %v4086_v45  ;;  %v5069_v43 = vpop.f32.mrf.mxu3  ;;  %v11645_v41 = vsel %vm13204_vm1, %v5310_v3, %v5311_v6  ;;  %vm4281_vm1 = vcmp.gt.f32.partialorder %v11604_v15, 20.0 }
 0x4fb   : > { %v4375_v47 = vpack.c.bf16 %v4343_v56, %v4343_v56  ;;  %v4153_v60 = vmul.f32 %v8872_v12, %v4121_v61  ;;  %v3990_v53 = vpop.f32.mrf.mxu2 }
 0x4fc   : > { %v11648_v44 = vadd.f32 %v11622_v13, %v3990_v53  ;;  %v5155_v54 = vpop.f32.mrf.mxu0 }
 0x4fd   : > { %v8874_v20 = vpop.eup %8873  ;;  %4407 = vst [vmem:[#allocation2 + $0x148] sm:$0xf] %v4375_v47  ;;  %v4185_v27 = vadd.f32 2.0, %v4153_v60  ;;  %v11650_v26 = vadd.f32 %v5155_v54, %v5066_v23  ;;  %v5239_v12 = vpop.f32.mrf.mxu1 }
 0x4fe   : > { %4439 = vst [vmem:[#allocation2 + $0x15c] sm:$0xf] %v4375_v47  ;;  %v4248_v50 = vmul.f32 %v8874_v20, %v4152_v4  ;;  %v4027_v25 = vmin.f32 %v11648_v44, 20.0  ;;  %v5240_v3 = vadd.f32 %v5239_v12, %v11606_v2 }
 0x4ff   : > { %4471 = vst [vmem:[#allocation2 + $0x134] sm:$0xf] %v4375_v47  ;;  %8877 = vrcp.f32 %v4185_v27  ;;  %v8412_v47 = vld [vmem:[#allocation2 + $0x13c] sm:$0xf] }
 0x500   : > { %v8876_v45 = vpop.eup %8875  ;;  %v4312_v56 = vsel %vm4280_vm15, 1.0, %v4248_v50  ;;  %v4088_v61 = vmul.f32 1.442695, %v4027_v25  ;;  %5590 = vmatmul.bf16.gmra.mxu2 %v11477_v8  ;;  %v5312_v54 = vrot.slane %v5240_v3, 7  ;;  %v7867_v25 = vld [vmem:[#allocation2 + $0x150] sm:$0xf]  ;;  %vm13208_vm15 = vmmov %vm13205_vm14 }
 0x501   : > { %v4344_v53 = vmul.f32 %v4312_v56, %v11583_v16  ;;  %v4122_v23 = vadd.f32 2.0, %v8876_v45  ;;  %v7851_v8 = vld [vmem:[#allocation2 + $0x128] sm:$0xf] }
 0x502   : > { %8879 = vpow2.f32 %v4088_v61  ;;  %v5071_v52 = vpop.f32.mrf.mxu3  ;;  %v11659_v27 = vsel %vm13205_vm14, %v5311_v6, %v5312_v54  ;;  %vm4282_vm14 = vcmp.gt.f32.partialorder %v11625_v31, 20.0 }
 0x503   : > { %v4376_v4 = vpack.c.bf16 %v4344_v53, %v4344_v53  ;;  %v4154_v20 = vmul.f32 %v8876_v45, %v4122_v23  ;;  %v3993_v35 = vpop.f32.mrf.mxu2 }
 0x504   : > { %v11662_v2 = vadd.f32 %v11622_v13, %v3993_v35  ;;  %v5158_v50 = vpop.f32.mrf.mxu0  ;;  %v7857_v12 = vld [vmem:[#allocation2 + $0x144] sm:$0xf0] }
 0x505   : > { %v8878_v16 = vpop.eup %8877  ;;  %4408 = vst [vmem:[#allocation2 + $0x154] sm:$0xf] %v4376_v4  ;;  %v4186_v3 = vadd.f32 2.0, %v4154_v20  ;;  %v11664_v56 = vadd.f32 %v5158_v50, %v5069_v43  ;;  %v8416_v45 = vld [vmem:[#allocation2 + $0x158] sm:$0xf0]  ;;  %v11666_v61 = vor.u32 %v8412_v47, %v7857_v12  ;;  %v5242_v23 = vpop.f32.mrf.mxu1 }
 0x506   : > { %4440 = vst [vmem:[#allocation2 + $0x168] sm:$0xf] %v4376_v4  ;;  %v4249_v53 = vmul.f32 %v8878_v16, %v4153_v60  ;;  %v4028_v6 = vmin.f32 %v11662_v2, 20.0  ;;  %v11669_v5 = vor.u32 %v8416_v45, %v7867_v25  ;;  %v8411_v35 = vld [vmem:[#allocation2 + $0x130] sm:$0xf0]  ;;  %v5243_v51 = vadd.f32 %v5242_v23, %v11629_v17  ;;  %v8447_v60 = vld [vmem:[%s12816_s3 + $0x3b8] sm:$0xff] }
 0x507   : > { %13206 = vst [vmem:[#allocation51_spill] sm:$0xff] %v11666_v61  ;;  %8881 = vrcp.f32 %v4186_v3  ;;  %5197 = vmatmul.bf16.gmra.mxu0 %v11666_v61  ;;  %v11674_v43 = vor.u32 %v8411_v35, %v7851_v8 }
 0x508   : > { %4472 = vst [vmem:[#allocation2 + $0x140] sm:$0xf] %v4376_v4  ;;  %v8880_v47 = vpop.eup %8879  ;;  %v4313_v50 = vsel %vm4281_vm1, 1.0, %v4249_v53  ;;  %v4090_v12 = vmul.f32 1.442695, %v4028_v6  ;;  %5113 = vmatmul.bf16.gmra.mxu3 %v11669_v5  ;;  %v5313_v16 = vrot.slane %v5243_v51, 7  ;;  %5725 = vmatpush.bf16.msra.mxu0 %v8447_v60  ;;  %vm13210_vm1 = vmmov %vm13208_vm15 }
 0x509   : > { %13207 = vst [vmem:[#allocation52_spill] sm:$0xff] %v11674_v43  ;;  %v4345_v4 = vmul.f32 %v4313_v50, %v11604_v15  ;;  %v4123_v25 = vadd.f32 2.0, %v8880_v47  ;;  %5281 = vmatmul.bf16.gmra.mxu1 %v11674_v43  ;;  %v8446_v51 = vld [vmem:[%s12816_s3 + $0x3b0] sm:$0xff] }
 0x50a   : > { %8883 = vpow2.f32 %v4090_v12  ;;  %v5074_v3 = vpop.f32.mrf.mxu3  ;;  %v11684_v53 = vsel %vm13208_vm15, %v5312_v54, %v5313_v16  ;;  %v8432_v54 = vld [vmem:[%s12816_s3 + $0x340] sm:$0xff]  ;;  %vm4283_vm15 = vcmp.gt.f32.partialorder %v11648_v44, 20.0 }
 0x50b   : > { %v4377_v17 = vpack.c.bf16 %v4345_v4, %v4345_v4  ;;  %v4155_v8 = vmul.f32 %v8880_v47, %v4123_v25  ;;  %v3995_v45 = vpop.f32.mrf.mxu2  ;;  %5643 = vmatpush.bf16.msrb.mxu3 %v8432_v54 }
 0x50c   : > { %v11687_v6 = vadd.f32 %v11622_v13, %v3995_v45  ;;  %v5160_v23 = vpop.f32.mrf.mxu0  ;;  %5726 = vmatpush.bf16.msra.mxu0 %v8446_v51 }
 0x50d   : > { %v8882_v15 = vpop.eup %8881  ;;  %4409 = vst [vmem:[#allocation2 + $0x160] sm:$0xf] %v4377_v17  ;;  %v4187_v35 = vadd.f32 2.0, %v4155_v8  ;;  %v11692_v50 = vadd.f32 %v5160_v23, %v5071_v52  ;;  %v5244_v60 = vpop.f32.mrf.mxu1  ;;  %v7879_v61 = vld [vmem:[#allocation2 + $0x168] sm:$0xf] }
 0x50e   : > { %4441 = vst [vmem:[#allocation2 + $0x174] sm:$0xf] %v4377_v17  ;;  %v4250_v47 = vmul.f32 %v8882_v15, %v4154_v20  ;;  %v4029_v12 = vmin.f32 %v11687_v6, 20.0  ;;  %v11697_v13 = vadd.f32 %v5244_v60, %v11650_v26  ;;  %v8445_v20 = vld [vmem:[%s12816_s3 + $0x3a8] sm:$0xff] }
 0x50f   : > { %4473 = vst [vmem:[#allocation2 + $0x14c] sm:$0xf] %v4377_v17  ;;  %8885 = vrcp.f32 %v4187_v35 }
 0x510   : > { %v8884_v4 = vpop.eup %8883  ;;  %v4314_v52 = vsel %vm4282_vm14, 1.0, %v4250_v47  ;;  %v4092_v25 = vmul.f32 1.442695, %v4029_v12  ;;  %5595 = vmatmul.bf16.gmra.mxu2 %v11499_v39  ;;  %v5314_v23 = vrot.slane %v11697_v13, 7  ;;  %5727 = vmatpush.bf16.msra.mxu0 %v8445_v20  ;;  %v8415_v47 = vld [vmem:[#allocation2 + $0x154] sm:$0xf]  ;;  %vm13213_vm14 = vmmov %vm13210_vm1 }
 0x511   : > { %v4346_v17 = vmul.f32 %v4314_v52, %v11625_v31  ;;  %v4124_v45 = vadd.f32 2.0, %v8884_v4  ;;  %v8444_v31 = vld [vmem:[%s12816_s3 + $0x3a0] sm:$0xff] }
 0x512   : > { %8887 = vpow2.f32 %v4092_v25  ;;  %v5076_v15 = vpop.f32.mrf.mxu3  ;;  %v11712_v12 = vsel %vm13210_vm1, %v5313_v16, %v5314_v23  ;;  %vm4284_vm1 = vcmp.gt.f32.partialorder %v11662_v2, 20.0 }
 0x513   : > { %v4378_v26 = vpack.c.bf16 %v4346_v17, %v4346_v17  ;;  %v4156_v51 = vmul.f32 %v8884_v4, %v4124_v45  ;;  %v11708_v35 = vpop.f32.mrf.mxu2  ;;  %v7863_v45 = vld [vmem:[#allocation2 + $0x140] sm:$0xf] }
 0x514   : > { %13209 = vst [vmem:[#allocation53_spill] sm:$0xff] %v11708_v35  ;;  %v5163_v60 = vpop.f32.mrf.mxu0  ;;  %v7869_v43 = vld [vmem:[#allocation2 + $0x15c] sm:$0xf0]  ;;  %5728 = vmatpush.bf16.msra.mxu0 %v8444_v31  ;;  %v8495_v31 = vld [vmem:[%s12816_s3 + $0x478] sm:$0xff] }
 0x515   : > { %v8886_v13 = vpop.eup %8885  ;;  %4410 = vst [vmem:[#allocation2 + $0x16c] sm:$0xf] %v4378_v26  ;;  %v4188_v54 = vadd.f32 2.0, %v4156_v51  ;;  %v11717_v52 = vadd.f32 %v5163_v60, %v5074_v3  ;;  %v8419_v4 = vld [vmem:[#allocation2 + $0x170] sm:$0xf0]  ;;  %v11719_v25 = vor.u32 %v8415_v47, %v7869_v43  ;;  %v5247_v17 = vpop.f32.mrf.mxu1  ;;  %6185 = vmatpush.bf16.msra.mxu3 %v8495_v31 }
 0x516   : > { %4442 = vst [vmem:[#allocation2 + $0x180] sm:$0xf] %v4378_v26  ;;  %v4251_v20 = vmul.f32 %v8886_v13, %v4155_v8  ;;  %v11721_v16 = vor.u32 %v8419_v4, %v7879_v61  ;;  %v8414_v39 = vld [vmem:[#allocation2 + $0x148] sm:$0xf0]  ;;  %v5248_v35 = vadd.f32 %v5247_v17, %v11664_v56  ;;  %v8443_v61 = vld [vmem:[%s12816_s3 + $0x398] sm:$0xff] }
 0x517   : > { %13211 = vst [vmem:[#allocation54_spill] sm:$0xff] %v11719_v25  ;;  %8889 = vrcp.f32 %v4188_v54  ;;  %5202 = vmatmul.bf16.gmra.mxu0 %v11719_v25  ;;  %v11726_v3 = vor.u32 %v8414_v39, %v7863_v45  ;;  %v8479_v8 = vld [vmem:[%s12816_s3 + $0x3f8] sm:$0xff]  ;;  %v8442_v45 = vld [vmem:[%s12816_s3 + $0x390] sm:$0xff] }
 0x518   : > { %4474 = vst [vmem:[#allocation2 + $0x158] sm:$0xf] %v4378_v26  ;;  %v8888_v43 = vpop.eup %8887  ;;  %v4315_v47 = vsel %vm4283_vm15, 1.0, %v4251_v20  ;;  %5118 = vmatmul.bf16.gmra.mxu3 %v11721_v16  ;;  %v5315_v56 = vrot.slane %v5248_v35, 7  ;;  %v8487_v39 = vld [vmem:[%s12816_s3 + $0x438] sm:$0xff]  ;;  %5729 = vmatpush.bf16.msra.mxu0 %v8443_v61  ;;  %vm13215_vm15 = vmmov %vm13213_vm14 }
 0x519   : > { %13212 = vst [vmem:[#allocation55_spill] sm:$0xff] %v11726_v3  ;;  %v4347_v26 = vmul.f32 %v4315_v47, %v11648_v44  ;;  %v4125_v60 = vadd.f32 2.0, %v8888_v43  ;;  %5286 = vmatmul.bf16.gmra.mxu1 %v11726_v3  ;;  %6096 = vmatpush.bf16.msra.mxu2 %v8487_v39  ;;  %v8441_v39 = vld [vmem:[%s12816_s3 + $0x388] sm:$0xff] }
 0x51a   : > { %6007 = vmatpush.bf16.msra.mxu1 %v8479_v8  ;;  %v5079_v4 = vpop.f32.mrf.mxu3  ;;  %v11745_v44 = vsel %vm13213_vm14, %v5314_v23, %v5315_v56 }
 0x51b   : > { %v4379_v13 = vpack.c.bf16 %v4347_v26, %v4347_v26  ;;  %v4157_v54 = vmul.f32 %v8888_v43, %v4125_v60  ;;  %v5558_v20 = vpop.f32.mrf.mxu2  ;;  %v8478_v43 = vld [vmem:[%s12816_s3 + $0x3f0] sm:$0xff] }
 0x51c   : > { %v11748_v35 = vadd.f32 %v5558_v20, %v11577_v29  ;;  %v5165_v17 = vpop.f32.mrf.mxu0  ;;  %5730 = vmatpush.bf16.msra.mxu0 %v8442_v45 }
 0x51d   : > { %v8890_v47 = vpop.eup %8889  ;;  %4411 = vst [vmem:[#allocation2 + $0x178] sm:$0xf] %v4379_v13  ;;  %v4189_v61 = vadd.f32 2.0, %v4157_v54  ;;  %v11756_v8 = vadd.f32 %v5165_v17, %v5076_v15  ;;  %v5249_v26 = vpop.f32.mrf.mxu1  ;;  %v5373_v17 = vsel %vm9744_vm0, %v11601_v24, 0.0  ;;  %vm4285_vm0 = vcmp.gt.f32.partialorder %v11687_v6, 20.0 }
 0x51e   : > { %4443 = vst [vmem:[#allocation2 + $0x18c] sm:$0xf] %v4379_v13  ;;  %v4252_v23 = vmul.f32 %v8890_v47, %v4156_v51  ;;  %6008 = vmatpush.bf16.msra.mxu1 %v8478_v43  ;;  %v5250_v29 = vadd.f32 %v5249_v26, %v11692_v50  ;;  %v8477_v51 = vld [vmem:[%s12816_s3 + $0x3e8] sm:$0xff] }
 0x51f   : > { %4475 = vst [vmem:[#allocation2 + $0x164] sm:$0xf] %v4379_v13  ;;  %8891 = vrcp.f32 %v4189_v61  ;;  %v8418_v43 = vld [vmem:[#allocation2 + $0x16c] sm:$0xf] }
 0x520   : > { %v4316_v60 = vsel %vm4284_vm1, 1.0, %v4252_v23  ;;  %5600 = vmatmul.bf16.gmra.mxu2 %v11524_v37  ;;  %v5316_v31 = vrot.slane %v5250_v29, 7  ;;  %5731 = vmatpush.bf16.msra.mxu0 %v8441_v39  ;;  %v8476_v29 = vld [vmem:[%s12816_s3 + $0x3e0] sm:$0xff]  ;;  %vm13218_vm1 = vmmov %vm13213_vm14 }
 0x521   : > { %v4348_v15 = vmul.f32 %v4316_v60, %v11662_v2  ;;  %v8440_v2 = vld [vmem:[%s12816_s3 + $0x380] sm:$0xff] }
 0x522   : > { %6009 = vmatpush.bf16.msra.mxu1 %v8477_v51  ;;  %v5081_v20 = vpop.f32.mrf.mxu3  ;;  %v11773_v47 = vsel %vm13215_vm15, %v5315_v56, %v5316_v31  ;;  %v7891_v39 = vld [vmem:[#allocation2 + $0x180] sm:$0xf]  ;;  %vm13223_vm15 = vmmov %vm13218_vm1 }
 0x523   : > { %v4380_v13 = vpack.c.bf16 %v4348_v15, %v4348_v15  ;;  %v5561_v45 = vpop.f32.mrf.mxu2 }
 0x524   : > { %v11775_v61 = vadd.f32 %v5561_v45, %v5373_v17  ;;  %v5168_v23 = vpop.f32.mrf.mxu0  ;;  %v7881_v26 = vld [vmem:[#allocation2 + $0x174] sm:$0xf0]  ;;  %5732 = vmatpush.bf16.msra.mxu0 %v8440_v2 }
 0x525   : > { %v8892_v60 = vpop.eup %8891  ;;  %4412 = vst [vmem:[#allocation2 + $0x184] sm:$0xf] %v4380_v13  ;;  %v5169_v24 = vadd.f32 %v5168_v23, %v5079_v4  ;;  %v8422_v51 = vld [vmem:[#allocation2 + $0x188] sm:$0xf0]  ;;  %v11783_v15 = vor.u32 %v8418_v43, %v7881_v26  ;;  %v5252_v50 = vpop.f32.mrf.mxu1  ;;  %v7875_v45 = vld [vmem:[#allocation2 + $0x158] sm:$0xf] }
 0x526   : > { %v4253_v56 = vmul.f32 %v8892_v60, %v4157_v54  ;;  %v11785_v17 = vor.u32 %v8422_v51, %v7891_v39  ;;  %v8417_v25 = vld [vmem:[#allocation2 + $0x160] sm:$0xf0]  ;;  %6010 = vmatpush.bf16.msra.mxu1 %v8476_v29  ;;  %4476 = vst [vmem:[#allocation2 + $0x170] sm:$0xf] %v4380_v13  ;;  %v5253_v3 = vadd.f32 %v5252_v50, %v11717_v52  ;;  %v8475_v54 = vld [vmem:[%s12816_s3 + $0x3d8] sm:$0xff]  ;;  %v8474_v39 = vld [vmem:[%s12816_s3 + $0x3d0] sm:$0xff] }
 0x527   : > { %13216 = vst [vmem:[#allocation26_spill] sm:$0xff] %v11783_v15  ;;  %5207 = vmatmul.bf16.gmra.mxu0 %v11783_v15  ;;  %v11790_v4 = vor.u32 %v8417_v25, %v7875_v45  ;;  %v5375_v45 = vsel %vm9803_vm2, %v11645_v41, 0.0  ;;  %vm13221_vm2 = vmmov %vm13218_vm1 }
 0x528   : > { %v4317_v23 = vsel %vm4285_vm0, 1.0, %v4253_v56  ;;  %5123 = vmatmul.bf16.gmra.mxu3 %v11785_v17  ;;  %v5317_v26 = vrot.slane %v5253_v3, 7  ;;  %vm13227_vm0 = vmmov %vm13218_vm1 }
 0x529   : > { %v4349_v43 = vmul.f32 %v4317_v23, %v11687_v6  ;;  %5291 = vmatmul.bf16.gmra.mxu1 %v11790_v4 }
 0x52a   : > { %6011 = vmatpush.bf16.msra.mxu1 %v8475_v54  ;;  %v5084_v2 = vpop.f32.mrf.mxu3  ;;  %v11800_v25 = vsel %vm13213_vm14, %v5316_v31, %v5317_v26  ;;  %v8473_v31 = vld [vmem:[%s12816_s3 + $0x3c8] sm:$0xff]  ;;  %vm13230_vm14 = vmmov %vm13227_vm0 }
 0x52b   : > { %v4381_v13 = vpack.c.bf16 %v4349_v43, %v4349_v43  ;;  %v5563_v52 = vpop.f32.mrf.mxu2 }
 0x52c   : > { %v11803_v29 = vadd.f32 %v5563_v52, %v11615_v38  ;;  %v5170_v60 = vpop.f32.mrf.mxu0  ;;  %v8421_v43 = vld [vmem:[#allocation2 + $0x184] sm:$0xf] }
 0x52d   : > { %4413 = vst [vmem:[#allocation2 + $0x190] sm:$0xf] %v4381_v13  ;;  %v5171_v6 = vadd.f32 %v5170_v60, %v5081_v20  ;;  %v5254_v3 = vpop.f32.mrf.mxu1  ;;  %v8472_v52 = vld [vmem:[%s12816_s3 + $0x3c0] sm:$0xff] }
 0x52e   : > { %6012 = vmatpush.bf16.msra.mxu1 %v8474_v39  ;;  %4477 = vst [vmem:[#allocation2 + $0x17c] sm:$0xf] %v4381_v13  ;;  %v5255_v51 = vadd.f32 %v5254_v3, %v11756_v8 }
 0x530   : > { %5605 = vmatmul.bf16.gmra.mxu2 %v11546_v63  ;;  %v5318_v38 = vrot.slane %v5255_v51, 7  ;;  %v7887_v51 = vld [vmem:[#allocation2 + $0x170] sm:$0xf] }
 0x532   : > { %6013 = vmatpush.bf16.msra.mxu1 %v8473_v31  ;;  %v5086_v56 = vpop.f32.mrf.mxu3  ;;  %v11818_v20 = vsel %vm13218_vm1, %v5317_v26, %v5318_v38 }
 0x533   : > { %v5566_v23 = vpop.f32.mrf.mxu2 }
 0x534   : > { %v11820_v54 = vadd.f32 %v5566_v23, %v5375_v45  ;;  %v5173_v8 = vpop.f32.mrf.mxu0  ;;  %v7893_v13 = vld [vmem:[#allocation2 + $0x18c] sm:$0xf0] }
 0x535   : > { %v5174_v60 = vadd.f32 %v5173_v8, %v5084_v2  ;;  %v11825_v39 = vor.u32 %v8421_v43, %v7893_v13  ;;  %v5257_v3 = vpop.f32.mrf.mxu1  ;;  %v8420_v41 = vld [vmem:[#allocation2 + $0x178] sm:$0xf0]  ;;  %v8486_v2 = vld [vmem:[%s12816_s3 + $0x430] sm:$0xff] }
 0x536   : > { %6014 = vmatpush.bf16.msra.mxu1 %v8472_v52  ;;  %v5258_v31 = vadd.f32 %v5257_v3, %v5169_v24  ;;  %v11828_v26 = vor.u32 %v8420_v41, %v7887_v51  ;;  %v8494_v45 = vld [vmem:[%s12816_s3 + $0x470] sm:$0xff]  ;;  %6097 = vmatpush.bf16.msra.mxu2 %v8486_v2 }
 0x537   : > { %13219 = vst [vmem:[#allocation28_spill] sm:$0xff] %v11825_v39  ;;  %5212 = vmatmul.bf16.gmra.mxu0 %v11825_v39  ;;  %6186 = vmatpush.bf16.msra.mxu3 %v8494_v45  ;;  %v8423_v39 = vld [vmem:[#allocation2 + $0x190] sm:$0xf0]  ;;  %v5377_v45 = vsel %vm9844_vm3, %v11684_v53, 0.0  ;;  %vm13225_vm3 = vmmov %vm13218_vm1 }
 0x538   : > { %13220 = vst [vmem:[#allocation56_spill] sm:$0xff] %v11828_v26  ;;  %5644 = vmatmul.bf16.vlgmr.msrb.gmra.mxu3 %v11233_v11  ;;  %v5319_v50 = vrot.slane %v5258_v31, 7  ;;  %v7899_v31 = vld [vmem:[#allocation2 + $0x188] sm:$0xf]  ;;  %vm13233_vm1 = vmmov %vm13227_vm0 }
 0x539   : > { %5296 = vmatmul.bf16.gmra.mxu1 %v11828_v26 }
 0x53a   : > { %v5089_v23 = vpop.f32.mrf.mxu3  ;;  %v11840_v24 = vsel %vm13221_vm2, %v5318_v38, %v5319_v50  ;;  %vm13236_vm2 = vmmov %vm13227_vm0 }
 0x53b   : > { %v5568_v8 = vpop.f32.mrf.mxu2 }
 0x53c   : > { %v11843_v43 = vadd.f32 %v5568_v8, %v11659_v27  ;;  %v5175_v13 = vpop.f32.mrf.mxu0 }
 0x53d   : > { %v5176_v52 = vadd.f32 %v5175_v13, %v5086_v56  ;;  %v5259_v3 = vpop.f32.mrf.mxu1 }
 0x53e   : > { %v5260_v51 = vadd.f32 %v5259_v3, %v5171_v6  ;;  %v11855_v6 = vor.u32 %v8423_v39, %v7899_v31 }
 0x540   : > { %5610 = vmatmul.bf16.gmra.mxu2 %v11585_v36  ;;  %v5320_v41 = vrot.slane %v5260_v51, 7  ;;  %13224 = vst [vmem:[#allocation31_spill] sm:$0xff] %v11855_v6 }
 0x542   : > { %v5091_v26 = vpop.f32.mrf.mxu3  ;;  %v11851_v38 = vsel %vm13223_vm15, %v5319_v50, %v5320_v41  ;;  %vm13239_vm15 = vmmov %vm13227_vm0 }
 0x543   : > { %v5571_v15 = vpop.f32.mrf.mxu2 }
 0x544   : > { %v11853_v27 = vadd.f32 %v5571_v15, %v5377_v45  ;;  %v5178_v56 = vpop.f32.mrf.mxu0 }
 0x545   : > { %v5179_v8 = vadd.f32 %v5178_v56, %v5089_v23  ;;  %v5262_v13 = vpop.f32.mrf.mxu1 }
 0x546   : > { %v5263_v3 = vadd.f32 %v5262_v13, %v5174_v60  ;;  %v8484_v13 = vld [vmem:[%s12816_s3 + $0x420] sm:$0xff] }
 0x547   : > { %5733 = vmatmul.bf16.vlgmr.msra.gmra.mxu0 %v11310_v57 }
 0x548   : > { %5649 = vmatmul.bf16.gmra.mxu3 %v11303_v59  ;;  %v5321_v51 = vrot.slane %v5263_v3, 7  ;;  %v5379_v3 = vsel %vm9871_vm4, %v11745_v44, 0.0  ;;  %v8485_v44 = vld [vmem:[%s12816_s3 + $0x428] sm:$0xff]  ;;  %vm13228_vm4 = vmmov %vm13227_vm0 }
 0x549   : > { %5301 = vmatmul.bf16.gmra.mxu1 %v11855_v6  ;;  %6098 = vmatpush.bf16.msra.mxu2 %v8485_v44  ;;  %v5381_v44 = vsel %vm9902_vm5, %v11800_v25, 0.0  ;;  %vm13231_vm5 = vmmov %vm13227_vm0 }
 0x54a   : > { %v5094_v53 = vpop.f32.mrf.mxu3  ;;  %v11862_v50 = vsel %vm13225_vm3, %v5320_v41, %v5321_v51  ;;  %vm13242_vm3 = vmmov %vm13227_vm0 }
 0x54b   : > { %v5573_v2 = vpop.f32.mrf.mxu2 }
 0x54c   : > { %v11865_v15 = vadd.f32 %v5573_v2, %v11712_v12  ;;  %v5180_v39 = vpop.f32.mrf.mxu0 }
 0x54d   : > { %v5181_v23 = vadd.f32 %v5180_v39, %v5091_v26  ;;  %v5264_v31 = vpop.f32.mrf.mxu1  ;;  %6099 = vmatpush.bf16.msra.mxu2 %v8484_v13  ;;  %v8482_v13 = vld [vmem:[%s12816_s3 + $0x410] sm:$0xff] }
 0x54e   : > { %v5265_v60 = vadd.f32 %v5264_v31, %v5176_v52 }
 0x550   : > { %5615 = vmatmul.bf16.gmra.mxu2 %v11627_v48  ;;  %v5322_v45 = vrot.slane %v5265_v60, 7 }
 0x552   : > { %v5096_v56 = vpop.f32.mrf.mxu3  ;;  %v11873_v41 = vsel %vm13227_vm0, %v5321_v51, %v5322_v45 }
 0x553   : > { %v5576_v57 = vpop.f32.mrf.mxu2 }
 0x554   : > { %v11875_v6 = vadd.f32 %v5576_v57, %v5379_v3  ;;  %v5183_v12 = vpop.f32.mrf.mxu0  ;;  %v8493_v57 = vld [vmem:[%s12816_s3 + $0x468] sm:$0xff] }
 0x555   : > { %v5184_v2 = vadd.f32 %v5183_v12, %v5094_v53  ;;  %v5267_v26 = vpop.f32.mrf.mxu1  ;;  %6187 = vmatpush.bf16.msra.mxu3 %v8493_v57 }
 0x556   : > { %v5268_v39 = vadd.f32 %v5267_v26, %v5179_v8 }
 0x557   : > { %5738 = vmatmul.bf16.gmra.mxu0 %v11353_v0 }
 0x558   : > { %5654 = vmatmul.bf16.gmra.mxu3 %v11350_v49  ;;  %v5323_v52 = vrot.slane %v5268_v39, 7 }
 0x559   : > { %6015 = vmatmul.bf16.vlgmr.msra.gmra.mxu1 %v10886_v58 }
 0x55a   : > { %v5099_v51 = vpop.f32.mrf.mxu3  ;;  %v11888_v8 = vsel %vm13228_vm4, %v5322_v45, %v5323_v52  ;;  %v8483_v45 = vld [vmem:[%s12816_s3 + $0x418] sm:$0xff]  ;;  %vm13247_vm4 = vmmov %vm13227_vm0 }
 0x55b   : > { %v5578_v31 = vpop.f32.mrf.mxu2  ;;  %6100 = vmatpush.bf16.msra.mxu2 %v8483_v45 }
 0x55c   : > { %v11891_v53 = vadd.f32 %v5578_v31, %v11773_v47  ;;  %v5185_v58 = vpop.f32.mrf.mxu0 }
 0x55d   : > { %v5186_v60 = vadd.f32 %v5185_v58, %v5096_v56  ;;  %v5269_v3 = vpop.f32.mrf.mxu1 }
 0x55e   : > { %v5270_v12 = vadd.f32 %v5269_v3, %v5181_v23 }
 0x55f   : > { %6101 = vmatpush.bf16.msra.mxu2 %v8482_v13 }
 0x560   : > { %5620 = vmatmul.bf16.gmra.mxu2 %v11669_v5  ;;  %v5324_v26 = vrot.slane %v5270_v12, 7 }
 0x562   : > { %v5101_v39 = vpop.f32.mrf.mxu3  ;;  %v11905_v57 = vsel %vm13230_vm14, %v5323_v52, %v5324_v26  ;;  %v8481_v52 = vld [vmem:[%s12816_s3 + $0x408] sm:$0xff]  ;;  %vm13255_vm14 = vmmov %vm13227_vm0 }
 0x563   : > { %v5581_v56 = vpop.f32.mrf.mxu2  ;;  %6102 = vmatpush.bf16.msra.mxu2 %v8481_v52 }
 0x564   : > { %v11907_v23 = vadd.f32 %v5581_v56, %v5381_v44  ;;  %v5188_v31 = vpop.f32.mrf.mxu0 }
 0x565   : > { %v5189_v58 = vadd.f32 %v5188_v31, %v5099_v51  ;;  %v5272_v3 = vpop.f32.mrf.mxu1 }
 0x566   : > { %v5273_v12 = vadd.f32 %v5272_v3, %v5184_v2 }
 0x567   : > { %5743 = vmatmul.bf16.gmra.mxu0 %v11416_v22 }
 0x568   : > { %5659 = vmatmul.bf16.gmra.mxu3 %v11410_v55  ;;  %v5325_v25 = vrot.slane %v5273_v12, 7 }
 0x569   : > { %6020 = vmatmul.bf16.gmra.mxu1 %v11227_v28  ;;  %v8480_v28 = vld [vmem:[%s12816_s3 + $0x400] sm:$0xff] }
 0x56a   : > { %v5104_v45 = vpop.f32.mrf.mxu3  ;;  %v11920_v47 = vsel %vm13231_vm5, %v5324_v26, %v5325_v25  ;;  %6103 = vmatpush.bf16.msra.mxu2 %v8480_v28  ;;  %v5383_v26 = vsel %vm9939_vm6, %v11840_v24, 0.0  ;;  %v8492_v24 = vld [vmem:[%s12816_s3 + $0x460] sm:$0xff]  ;;  %vm13234_vm6 = vmmov %vm13227_vm0 }
 0x56b   : > { %v5583_v51 = vpop.f32.mrf.mxu2  ;;  %6188 = vmatpush.bf16.msra.mxu3 %v8492_v24  ;;  %vm13257_vm5 = vmmov %vm13227_vm0 }
 0x56c   : > { %v11923_v2 = vadd.f32 %v5583_v51, %v11818_v20  ;;  %v5190_v44 = vpop.f32.mrf.mxu0 }
 0x56d   : > { %v5191_v56 = vadd.f32 %v5190_v44, %v5101_v39  ;;  %v5274_v31 = vpop.f32.mrf.mxu1 }
 0x56e   : > { %v5275_v13 = vadd.f32 %v5274_v31, %v5186_v60 }
 0x570   : > { %5625 = vmatmul.bf16.gmra.mxu2 %v11721_v16  ;;  %v5326_v3 = vrot.slane %v5275_v13, 7 }
 0x572   : > { %v5106_v12 = vpop.f32.mrf.mxu3  ;;  %v11934_v20 = vsel %vm13233_vm1, %v5325_v25, %v5326_v3 }
 0x573   : > { %v5586_v22 = vpop.f32.mrf.mxu2 }
 0x574   : > { %v11936_v39 = vadd.f32 %v5586_v22, %v5383_v26  ;;  %v5193_v51 = vpop.f32.mrf.mxu0 }
 0x575   : > { %v5194_v44 = vadd.f32 %v5193_v51, %v5104_v45  ;;  %v5277_v0 = vpop.f32.mrf.mxu1 }
 0x576   : > { %v5278_v60 = vadd.f32 %v5277_v0, %v5189_v58 }
 0x577   : > { %5748 = vmatmul.bf16.gmra.mxu0 %v11435_v30 }
 0x578   : > { %5664 = vmatmul.bf16.gmra.mxu3 %v11428_v7  ;;  %v5327_v28 = vrot.slane %v5278_v60, 7  ;;  %v5385_v60 = vsel %vm9970_vm8, %v11862_v50, 0.0  ;;  %vm13237_vm8 = vmmov %vm13227_vm0 }
 0x579   : > { %6025 = vmatmul.bf16.gmra.mxu1 %v11294_v42 }
 0x57a   : > { %v5109_v31 = vpop.f32.mrf.mxu3  ;;  %v11946_v22 = vsel %vm13234_vm6, %v5326_v3, %v5327_v28 }
 0x57b   : > { %v5588_v25 = vpop.f32.mrf.mxu2 }
 0x57c   : > { %v11949_v0 = vadd.f32 %v5588_v25, %v11851_v38  ;;  %v5195_v58 = vpop.f32.mrf.mxu0 }
 0x57d   : > { %v5196_v45 = vadd.f32 %v5195_v58, %v5106_v12  ;;  %v5279_v13 = vpop.f32.mrf.mxu1 }
 0x57e   : > { %v5280_v52 = vadd.f32 %v5279_v13, %v5191_v56 }
 0x580   : > { %5630 = vmatmul.bf16.gmra.mxu2 %v11785_v17  ;;  %v5328_v42 = vrot.slane %v5280_v52, 7 }
 0x582   : > { %v5111_v26 = vpop.f32.mrf.mxu3  ;;  %v11957_v3 = vsel %vm13236_vm2, %v5327_v28, %v5328_v42 }
 0x583   : > { %v5591_v24 = vpop.f32.mrf.mxu2 }
 0x584   : > { %v11959_v30 = vadd.f32 %v5591_v24, %v5385_v60  ;;  %v5198_v38 = vpop.f32.mrf.mxu0 }
 0x585   : > { %v5199_v25 = vadd.f32 %v5198_v38, %v5109_v31 }
 0x586   : > { %v5282_v12 = vpop.f32.mrf.mxu1 }
 0x587   : > { %v5283_v58 = vadd.f32 %v5282_v12, %v5194_v44  ;;  %5753 = vmatmul.bf16.gmra.mxu0 %v11460_v40 }
 0x588   : > { %5669 = vmatmul.bf16.gmra.mxu3 %v11453_v18 }
 0x589   : > { %v5329_v56 = vrot.slane %v5283_v58, 7  ;;  %6030 = vmatmul.bf16.gmra.mxu1 %v11348_v9  ;;  %v5387_v9 = vsel %vm9995_vm9, %v11888_v8, 0.0  ;;  %v8491_v8 = vld [vmem:[%s12816_s3 + $0x458] sm:$0xff]  ;;  %vm13240_vm9 = vmmov %vm13227_vm0 }
 0x58a   : > { %6189 = vmatpush.bf16.msra.mxu3 %v8491_v8 }
 0x58b   : > { %v5114_v13 = vpop.f32.mrf.mxu3  ;;  %v5593_v50 = vpop.f32.mrf.mxu2  ;;  %v11966_v52 = vsel %vm13237_vm8, %v5328_v42, %v5329_v56  ;;  %vm13295_vm8 = vcmp.lt.s32.totalorder %v9532_v1, 7 }
 0x58c   : > { %v11969_v28 = vadd.f32 %v5593_v50, %v11873_v41  ;;  %v5200_v51 = vpop.f32.mrf.mxu0 }
 0x58d   : > { %v5201_v31 = vadd.f32 %v5200_v51, %v5111_v26 }
 0x58e   : > { %v5284_v60 = vpop.f32.mrf.mxu1 }
 0x58f   : > { %v5285_v44 = vadd.f32 %v5284_v60, %v5196_v45 }
 0x590   : > { %6104 = vmatmul.bf16.vlgmr.msra.gmra.mxu2 %v11233_v11 }
 0x591   : > { %v5330_v24 = vrot.slane %v5285_v44, 7 }
 0x593   : > { %v5116_v38 = vpop.f32.mrf.mxu3  ;;  %v5596_v58 = vpop.f32.mrf.mxu2  ;;  %v11977_v42 = vsel %vm13239_vm15, %v5329_v56, %v5330_v24  ;;  %vm13296_vm15 = vmmov %vm13295_vm8 }
 0x594   : > { %v11979_v40 = vadd.f32 %v5596_v58, %v5387_v9  ;;  %v5203_v41 = vpop.f32.mrf.mxu0 }
 0x595   : > { %v5204_v50 = vadd.f32 %v5203_v41, %v5114_v13 }
 0x596   : > { %v5287_v26 = vpop.f32.mrf.mxu1 }
 0x597   : > { %v5288_v51 = vadd.f32 %v5287_v26, %v5199_v25  ;;  %5758 = vmatmul.bf16.gmra.mxu0 %v11479_v34  ;;  %v5389_v26 = vsel %vm10023_vm10, %v11920_v47, 0.0  ;;  %vm13243_vm10 = vmmov %vm13227_vm0 }
 0x598   : > { %5674 = vmatmul.bf16.gmra.mxu3 %v11475_v21 }
 0x599   : > { %v5331_v11 = vrot.slane %v5288_v51, 7  ;;  %6035 = vmatmul.bf16.gmra.mxu1 %v11412_v14 }
 0x59b   : > { %v5119_v45 = vpop.f32.mrf.mxu3  ;;  %v5598_v56 = vpop.f32.mrf.mxu2  ;;  %v11989_v60 = vsel %vm13240_vm9, %v5330_v24, %v5331_v11 }
 0x59c   : > { %v11992_v25 = vadd.f32 %v5598_v56, %v11905_v57  ;;  %v5205_v13 = vpop.f32.mrf.mxu0 }
 0x59d   : > { %v5206_v44 = vadd.f32 %v5205_v13, %v5116_v38 }
 0x59e   : > { %v5289_v12 = vpop.f32.mrf.mxu1 }
 0x59f   : > { %v5290_v9 = vadd.f32 %v5289_v12, %v5201_v31 }
 0x5a0   : > { %6109 = vmatmul.bf16.gmra.mxu2 %v11303_v59 }
 0x5a1   : > { %v5332_v14 = vrot.slane %v5290_v9, 7 }
 0x5a3   : > { %v5121_v58 = vpop.f32.mrf.mxu3  ;;  %v5601_v51 = vpop.f32.mrf.mxu2  ;;  %v12000_v24 = vsel %vm13242_vm3, %v5331_v11, %v5332_v14  ;;  %vm13300_vm3 = vmmov %vm13295_vm8 }
 0x5a4   : > { %v12002_v8 = vadd.f32 %v5601_v51, %v5389_v26  ;;  %v5208_v57 = vpop.f32.mrf.mxu0 }
 0x5a5   : > { %v5209_v56 = vadd.f32 %v5208_v57, %v5119_v45 }
 0x5a6   : > { %v5292_v38 = vpop.f32.mrf.mxu1 }
 0x5a7   : > { %v5293_v13 = vadd.f32 %v5292_v38, %v5204_v50  ;;  %5763 = vmatmul.bf16.gmra.mxu0 %v11501_v46  ;;  %v13261_v46 = vld [vmem:[#allocation48_spill] sm:$0xff] }
 0x5a8   : > { %5679 = vmatmul.bf16.gmra.mxu3 %v11496_v10 }
 0x5a9   : > { %v5333_v59 = vrot.slane %v5293_v13, 7  ;;  %6040 = vmatmul.bf16.gmra.mxu1 %v11430_v32  ;;  %v5391_v32 = vsel %vm10048_vm11, %v11946_v22, 0.0  ;;  %v8490_v22 = vld [vmem:[%s12816_s3 + $0x450] sm:$0xff]  ;;  %vm13245_vm11 = vmmov %vm13227_vm0 }
 0x5aa   : > { %6190 = vmatpush.bf16.msra.mxu3 %v8490_v22 }
 0x5ab   : > { %v5124_v31 = vpop.f32.mrf.mxu3  ;;  %v5603_v47 = vpop.f32.mrf.mxu2  ;;  %v12009_v12 = vsel %vm13243_vm10, %v5332_v14, %v5333_v59  ;;  %vm13301_vm10 = vmmov %vm13300_vm3 }
 0x5ac   : > { %v12012_v11 = vadd.f32 %v5603_v47, %v11934_v20  ;;  %v5210_v9 = vpop.f32.mrf.mxu0 }
 0x5ad   : > { %v5211_v45 = vadd.f32 %v5210_v9, %v5121_v58 }
 0x5ae   : > { %v5294_v41 = vpop.f32.mrf.mxu1 }
 0x5af   : > { %v5295_v50 = vadd.f32 %v5294_v41, %v5206_v44 }
 0x5b0   : > { %6114 = vmatmul.bf16.gmra.mxu2 %v11350_v49 }
 0x5b1   : > { %v5334_v26 = vrot.slane %v5295_v50, 7 }
 0x5b3   : > { %v5126_v51 = vpop.f32.mrf.mxu3  ;;  %v5606_v38 = vpop.f32.mrf.mxu2  ;;  %v12020_v14 = vsel %vm13227_vm0, %v5333_v59, %v5334_v26 }
 0x5b4   : > { %v12022_v13 = vadd.f32 %v5606_v38, %v5391_v32  ;;  %v5213_v20 = vpop.f32.mrf.mxu0 }
 0x5b5   : > { %v5214_v47 = vadd.f32 %v5213_v20, %v5124_v31 }
 0x5b6   : > { %v5297_v58 = vpop.f32.mrf.mxu1 }
 0x5b7   : > { %v5298_v9 = vadd.f32 %v5297_v58, %v5209_v56  ;;  %5768 = vmatmul.bf16.gmra.mxu0 %v11526_v62  ;;  %v5393_v58 = vsel %vm10079_vm12, %v11966_v52, 0.0  ;;  %vm13251_vm12 = vmmov %vm13227_vm0 }
 0x5b8   : > { %5684 = vmatmul.bf16.gmra.mxu3 %v11521_v19 }
 0x5b9   : > { %v5335_v49 = vrot.slane %v5298_v9, 7  ;;  %6045 = vmatmul.bf16.gmra.mxu1 %v11455_v33 }
 0x5bb   : > { %v5645_v44 = vpop.f32.mrf.mxu3  ;;  %v5608_v59 = vpop.f32.mrf.mxu2  ;;  %v12032_v41 = vsel %vm13245_vm11, %v5334_v26, %v5335_v49 }
 0x5bc   : > { %v12035_v56 = vadd.f32 %v5608_v59, %v11957_v3  ;;  %v5215_v31 = vpop.f32.mrf.mxu0 }
 0x5bd   : > { %v5216_v50 = vadd.f32 %v5215_v31, %v5126_v51  ;;  %v13248_v31 = vld [vmem:[#allocation13_spill] sm:$0xff] }
 0x5be   : > { %v5299_v57 = vpop.f32.mrf.mxu1 }
 0x5bf   : > { %v5300_v32 = vadd.f32 %v5299_v57, %v5211_v45 }
 0x5c0   : > { %6119 = vmatmul.bf16.gmra.mxu2 %v11410_v55  ;;  %v13249_v55 = vld [vmem:[#allocation8_spill] sm:$0xff] }
 0x5c1   : > { %v5336_v33 = vrot.slane %v5300_v32, 7  ;;  %v13250_v32 = vld [vmem:[#allocation12_spill] sm:$0xff] }
 0x5c3   : > { %v5647_v38 = vpop.f32.mrf.mxu3  ;;  %v5611_v9 = vpop.f32.mrf.mxu2  ;;  %v12043_v26 = vsel %vm13247_vm4, %v5335_v49, %v5336_v33  ;;  %vm13304_vm4 = vmmov %vm13300_vm3 }
 0x5c4   : > { %v5648_v3 = vadd.f32 %v5647_v38, %v11748_v35  ;;  %v12046_v22 = vadd.f32 %v5611_v9, %v5393_v58  ;;  %v5734_v51 = vpop.f32.mrf.mxu0 }
 0x5c6   : > { %v5302_v59 = vpop.f32.mrf.mxu1 }
 0x5c7   : > { %v5303_v45 = vadd.f32 %v5302_v59, %v5214_v47  ;;  %5773 = vmatmul.bf16.gmra.mxu0 %v13248_v31 }
 0x5c8   : > { %5689 = vmatmul.bf16.gmra.mxu3 %v13249_v55 }
 0x5c9   : > { %v5337_v57 = vrot.slane %v5303_v45, 7  ;;  %6050 = vmatmul.bf16.gmra.mxu1 %v13250_v32  ;;  %v13253_v32 = vld [vmem:[#allocation15_spill] sm:$0xff] }
 0x5ca   : > { %v13254_v31 = vrot.slane %v13253_v32, 7 }
 0x5cb   : > { %v5650_v52 = vpop.f32.mrf.mxu3  ;;  %v5613_v20 = vpop.f32.mrf.mxu2  ;;  %v12053_v49 = vsel %vm13251_vm12, %v5336_v33, %v5337_v57 }
 0x5cc   : > { %v5651_v35 = vadd.f32 %v5650_v52, %v11775_v61  ;;  %v12057_v38 = vadd.f32 %v5613_v20, %v11977_v42  ;;  %v5736_v58 = vpop.f32.mrf.mxu0  ;;  %v5395_v61 = vsel %vm10106_vm13, %v11989_v60, 0.0  ;;  %v13258_v52 = vld [vmem:[#allocation40_spill] sm:$0xff]  ;;  %v13262_v60 = vld [vmem:[#allocation47_spill] sm:$0xff] }
 0x5cd   : > { %v12059_v47 = vadd.f32 %v5736_v58, %v5648_v3  ;;  %vm13259_vm1 = vnez %v13258_v52 }
 0x5ce   : > { %v5304_v9 = vpop.f32.mrf.mxu1 }
 0x5cf   : > { %13252 = vst [vmem:[#allocation33_spill] sm:$0xff] %v12059_v47  ;;  %v5305_v59 = vadd.f32 %v5304_v9, %v5216_v50  ;;  %v13260_v9 = vld [vmem:[#allocation53_spill] sm:$0xff] }
 0x5d0   : > { %6124 = vmatmul.bf16.gmra.mxu2 %v11428_v7  ;;  %v13263_v47 = vld [vmem:[#allocation29_spill] sm:$0xff] }
 0x5d1   : > { %v5338_v45 = vrot.slane %v5305_v59, 7 }
 0x5d3   : > { %v5370_v62 = vsel %vm13255_vm14, %v5338_v45, %v13254_v31  ;;  %v5652_v33 = vpop.f32.mrf.mxu3  ;;  %v5616_v42 = vpop.f32.mrf.mxu2  ;;  %v12071_v3 = vsel %vm13257_vm5, %v5337_v57, %v5338_v45  ;;  %vm13305_vm14 = vmmov %vm13300_vm3 }
 0x5d4   : > { %v5371_v50 = vsel %vm13259_vm1, %v5370_v62, 0.0  ;;  %v5653_v7 = vadd.f32 %v5652_v33, %v11803_v29  ;;  %v12076_v20 = vadd.f32 %v5616_v42, %v5395_v61  ;;  %v5739_v58 = vpop.f32.mrf.mxu0  ;;  %v8489_v62 = vld [vmem:[%s12816_s3 + $0x448] sm:$0xff]  ;;  %v13264_v42 = vld [vmem:[#allocation17_spill] sm:$0xff] }
 0x5d5   : > { %v5557_v31 = vadd.f32 %v13260_v9, %v5371_v50  ;;  %v12079_v59 = vadd.f32 %v5739_v58, %v5651_v35  ;;  %6191 = vmatpush.bf16.msra.mxu3 %v8489_v62  ;;  %vm13265_vm13 = vnez %v13264_v42 }
 0x5d6   : > { %v5397_v52 = vsel %vm13265_vm13, %v12009_v12, 0.0  ;;  %vm13308_vm13 = vmmov %vm13300_vm3 }
 0x5d7   : > { %v5646_v32 = vadd.f32 %v5645_v44, %v5557_v31  ;;  %5778 = vmatmul.bf16.gmra.mxu0 %v13261_v46  ;;  %v13267_v31 = vld [vmem:[#allocation49_spill] sm:$0xff] }
 0x5d8   : > { %5694 = vmatmul.bf16.gmra.mxu3 %v13262_v60 }
 0x5d9   : > { %6055 = vmatmul.bf16.gmra.mxu1 %v13263_v47  ;;  %v12087_v57 = vadd.f32 %v5734_v51, %v5646_v32 }
 0x5db   : > { %v5655_v29 = vpop.f32.mrf.mxu3  ;;  %v5618_v45 = vpop.f32.mrf.mxu2 }
 0x5dc   : > { %v5656_v33 = vadd.f32 %v5655_v29, %v11820_v54  ;;  %v12091_v35 = vadd.f32 %v5618_v45, %v12000_v24  ;;  %v5741_v44 = vpop.f32.mrf.mxu0  ;;  %v13266_v24 = vld [vmem:[#allocation50_spill] sm:$0xff]  ;;  %v13268_v45 = vld [vmem:[#allocation16_spill] sm:$0xff] }
 0x5dd   : > { %v12093_v61 = vadd.f32 %v5741_v44, %v5653_v7  ;;  %vm13269_vm6 = vnez %v13268_v45 }
 0x5e0   : > { %6129 = vmatmul.bf16.gmra.mxu2 %v11453_v18 }
 0x5e3   : > { %v5657_v47 = vpop.f32.mrf.mxu3  ;;  %v5621_v51 = vpop.f32.mrf.mxu2 }
 0x5e4   : > { %v5658_v50 = vadd.f32 %v5657_v47, %v11843_v43  ;;  %v12100_v58 = vadd.f32 %v5621_v51, %v5397_v52  ;;  %v5744_v9 = vpop.f32.mrf.mxu0  ;;  %v13271_v52 = vld [vmem:[#allocation51_spill] sm:$0xff] }
 0x5e5   : > { %v12102_v54 = vadd.f32 %v5744_v9, %v5656_v33  ;;  %v5399_v33 = vsel %vm13269_vm6, %v12032_v41, 0.0 }
 0x5e7   : > { %5783 = vmatmul.bf16.gmra.mxu0 %v13266_v24 }
 0x5e8   : > { %5699 = vmatmul.bf16.gmra.mxu3 %v13267_v31 }
 0x5e9   : > { %6060 = vmatmul.bf16.gmra.mxu1 %v11524_v37 }
 0x5eb   : > { %v5660_v18 = vpop.f32.mrf.mxu3  ;;  %v5623_v7 = vpop.f32.mrf.mxu2 }
 0x5ec   : > { %v5661_v32 = vadd.f32 %v5660_v18, %v11853_v27  ;;  %v12109_v12 = vadd.f32 %v5623_v7, %v12020_v14  ;;  %v5746_v62 = vpop.f32.mrf.mxu0  ;;  %v13270_v14 = vld [vmem:[#allocation52_spill] sm:$0xff]  ;;  %v6016_v7 = vpop.f32.mrf.mxu1 }
 0x5ed   : > { %v12111_v43 = vadd.f32 %v5746_v62, %v5658_v50 }
 0x5f0   : > { %6134 = vmatmul.bf16.gmra.mxu2 %v11475_v21  ;;  %v8488_v21 = vld [vmem:[%s12816_s3 + $0x440] sm:$0xff] }
 0x5f1   : > { %6192 = vmatpush.bf16.msra.mxu3 %v8488_v21 }
 0x5f3   : > { %v5662_v29 = vpop.f32.mrf.mxu3  ;;  %v5626_v44 = vpop.f32.mrf.mxu2 }
 0x5f4   : > { %v5663_v37 = vadd.f32 %v5662_v29, %v11865_v15  ;;  %v12118_v47 = vadd.f32 %v5626_v44, %v5399_v33  ;;  %v5749_v42 = vpop.f32.mrf.mxu0  ;;  %v13274_v33 = vld [vmem:[#allocation55_spill] sm:$0xff] }
 0x5f5   : > { %v12120_v27 = vadd.f32 %v5749_v42, %v5661_v32  ;;  %v13272_v32 = vld [vmem:[#allocation11_spill] sm:$0xff] }
 0x5f6   : > { %vm13273_vm2 = vnez %v13272_v32 }
 0x5f7   : > { %5788 = vmatmul.bf16.gmra.mxu0 %v13270_v14  ;;  %v5401_v62 = vsel %vm13273_vm2, %v12053_v49, 0.0  ;;  %vm13309_vm2 = vmmov %vm13300_vm3 }
 0x5f8   : > { %5704 = vmatmul.bf16.gmra.mxu3 %v13271_v52 }
 0x5f9   : > { %6065 = vmatmul.bf16.gmra.mxu1 %v11546_v63 }
 0x5fb   : > { %v5665_v51 = vpop.f32.mrf.mxu3  ;;  %v5628_v41 = vpop.f32.mrf.mxu2 }
 0x5fc   : > { %v12129_v15 = vadd.f32 %v5665_v51, %v11875_v6  ;;  %v12132_v50 = vadd.f32 %v5628_v41, %v12043_v26  ;;  %v5751_v9 = vpop.f32.mrf.mxu0  ;;  %v13275_v26 = vld [vmem:[#allocation54_spill] sm:$0xff] }
 0x5fd   : > { %v12134_v18 = vadd.f32 %v5751_v9, %v5663_v37  ;;  %v6018_v37 = vpop.f32.mrf.mxu1 }
 0x600   : > { %6139 = vmatmul.bf16.gmra.mxu2 %v11496_v10 }
 0x603   : > { %v5667_v63 = vpop.f32.mrf.mxu3  ;;  %v5631_v29 = vpop.f32.mrf.mxu2 }
 0x604   : > { %v12141_v45 = vadd.f32 %v5667_v63, %v11891_v53  ;;  %v12143_v6 = vadd.f32 %v5631_v29, %v5401_v62 }
 0x605   : > { %v6021_v9 = vpop.f32.mrf.mxu1 }
 0x607   : > { %5793 = vmatmul.bf16.gmra.mxu0 %v13274_v33 }
 0x608   : > { %5709 = vmatmul.bf16.gmra.mxu3 %v13275_v26 }
 0x609   : > { %6070 = vmatmul.bf16.gmra.mxu1 %v11585_v36  ;;  %v13276_v36 = vld [vmem:[#allocation26_spill] sm:$0xff] }
 0x60b   : > { %v5670_v44 = vpop.f32.mrf.mxu3  ;;  %v5633_v10 = vpop.f32.mrf.mxu2 }
 0x60c   : > { %v12149_v42 = vadd.f32 %v5670_v44, %v11907_v23  ;;  %v12152_v49 = vadd.f32 %v5633_v10, %v12071_v3  ;;  %v13277_v44 = vld [vmem:[#allocation56_spill] sm:$0xff] }
 0x60d   : > { %v6023_v32 = vpop.f32.mrf.mxu1 }
 0x610   : > { %6144 = vmatmul.bf16.gmra.mxu2 %v11521_v19 }
 0x613   : > { %v5672_v53 = vpop.f32.mrf.mxu3  ;;  %v6105_v21 = vpop.f32.mrf.mxu2 }
 0x614   : > { %v12156_v51 = vadd.f32 %v5672_v53, %v11923_v2  ;;  %v12158_v41 = vadd.f32 %v6105_v21, %v6016_v7 }
 0x617   : > { %5798 = vmatmul.bf16.gmra.mxu0 %v11790_v4 }
 0x618   : > { %5714 = vmatmul.bf16.gmra.mxu3 %v13276_v36 }
 0x619   : > { %6075 = vmatmul.bf16.gmra.mxu1 %v11627_v48  ;;  %v13278_v48 = vld [vmem:[#allocation28_spill] sm:$0xff] }
 0x61b   : > { %v5675_v23 = vpop.f32.mrf.mxu3  ;;  %v6107_v63 = vpop.f32.mrf.mxu2 }
 0x61c   : > { %v12164_v3 = vadd.f32 %v5675_v23, %v11936_v39  ;;  %v12166_v19 = vadd.f32 %v6107_v63, %v6018_v37  ;;  %v6026_v39 = vpop.f32.mrf.mxu1 }
 0x620   : > { %6149 = vmatmul.bf16.gmra.mxu2 %v13249_v55 }
 0x623   : > { %v5677_v2 = vpop.f32.mrf.mxu3  ;;  %v6110_v7 = vpop.f32.mrf.mxu2 }
 0x624   : > { %v12170_v62 = vadd.f32 %v5677_v2, %v11949_v0  ;;  %v12172_v29 = vadd.f32 %v6110_v7, %v6021_v9  ;;  %v6028_v63 = vpop.f32.mrf.mxu1  ;;  %v13279_v2 = vld [vmem:[#allocation31_spill] sm:$0xff] }
 0x627   : > { %5803 = vmatmul.bf16.gmra.mxu0 %v13277_v44 }
 0x628   : > { %5719 = vmatmul.bf16.gmra.mxu3 %v13278_v48 }
 0x629   : > { %6080 = vmatmul.bf16.gmra.mxu1 %v11669_v5  ;;  %v13280_v5 = vld [vmem:[#allocation27_spill] sm:$0xff] }
 0x62b   : > { %v5680_v10 = vpop.f32.mrf.mxu3  ;;  %v6112_v37 = vpop.f32.mrf.mxu2 }
 0x62c   : > { %v12178_v53 = vadd.f32 %v5680_v10, %v11959_v30  ;;  %v12180_v55 = vadd.f32 %v6112_v37, %v6023_v32  ;;  %v6031_v10 = vpop.f32.mrf.mxu1 }
 0x630   : > { %6154 = vmatmul.bf16.gmra.mxu2 %v13262_v60 }
 0x633   : > { %v5682_v0 = vpop.f32.mrf.mxu3  ;;  %v6115_v21 = vpop.f32.mrf.mxu2 }
 0x634   : > { %v12184_v9 = vadd.f32 %v5682_v0, %v11969_v28  ;;  %v12186_v23 = vadd.f32 %v6115_v21, %v6026_v39  ;;  %v13281_v21 = vld [vmem:[#allocation3_spill] sm:$0xff] }
 0x637   : > { %5808 = vmatmul.bf16.gmra.mxu0 %v13279_v2 }
 0x638   : > { %6193 = vmatmul.bf16.vlgmr.msra.gmra.mxu3 %v13280_v5 }
 0x639   : > { %6085 = vmatmul.bf16.gmra.mxu1 %v11721_v16  ;;  %v6033_v16 = vpop.f32.mrf.mxu1 }
 0x63b   : > { %v5685_v30 = vpop.f32.mrf.mxu3  ;;  %v6117_v7 = vpop.f32.mrf.mxu2 }
 0x63c   : > { %v12192_v32 = vadd.f32 %v5685_v30, %v11979_v40  ;;  %v12194_v60 = vadd.f32 %v6117_v7, %v6028_v63  ;;  %v13282_v7 = vld [vmem:[#allocation32_spill] sm:$0xff] }
 0x640   : > { %6159 = vmatmul.bf16.gmra.mxu2 %v13267_v31 }
 0x643   : > { %v5687_v28 = vpop.f32.mrf.mxu3  ;;  %v6120_v39 = vpop.f32.mrf.mxu2 }
 0x644   : > { %v12198_v37 = vadd.f32 %v5687_v28, %v11992_v25  ;;  %v12200_v0 = vadd.f32 %v6120_v39, %v6031_v10  ;;  %v13283_v39 = vld [vmem:[#allocation6_spill] sm:$0xff] }
 0x648   : > { %6198 = vmatmul.bf16.gmra.mxu3 %v13281_v21 }
 0x649   : > { %6090 = vmatmul.bf16.gmra.mxu1 %v11785_v17 }
 0x64b   : > { %v5690_v5 = vpop.f32.mrf.mxu3  ;;  %v6122_v40 = vpop.f32.mrf.mxu2 }
 0x64c   : > { %v12205_v63 = vadd.f32 %v5690_v5, %v12002_v8  ;;  %v12207_v30 = vadd.f32 %v6122_v40, %v6033_v16 }
 0x650   : > { %6164 = vmatmul.bf16.gmra.mxu2 %v13271_v52 }
 0x653   : > { %v5692_v31 = vpop.f32.mrf.mxu3 }
 0x654   : > { %v12211_v25 = vadd.f32 %v5692_v31, %v12012_v11 }
 0x658   : > { %6203 = vmatmul.bf16.gmra.mxu3 %v13282_v7  ;;  %v13287_v7 = vld [vmem:[#allocation10_spill] sm:$0xff] }
 0x65b   : > { %v5695_v10 = vpop.f32.mrf.mxu3 }
 0x65c   : > { %v12215_v28 = vadd.f32 %v5695_v10, %v12022_v13  ;;  %v13284_v13 = vld [vmem:[#allocation5_spill] sm:$0xff] }
 0x660   : > { %6169 = vmatmul.bf16.gmra.mxu2 %v13275_v26 }
 0x663   : > { %v5697_v17 = vpop.f32.mrf.mxu3 }
 0x664   : > { %v12219_v8 = vadd.f32 %v5697_v17, %v12035_v56  ;;  %v13290_v17 = vld [vmem:[#allocation4_spill] sm:$0xff] }
 0x668   : > { %6208 = vmatmul.bf16.gmra.mxu3 %v13283_v39 }
 0x66b   : > { %v5700_v21 = vpop.f32.mrf.mxu3 }
 0x66c   : > { %v12223_v52 = vadd.f32 %v5700_v21, %v12046_v22  ;;  %v13293_v21 = vld [vmem:[#allocation13_spill] sm:$0xff] }
 0x670   : > { %6174 = vmatmul.bf16.gmra.mxu2 %v13276_v36 }
 0x673   : > { %v5702_v11 = vpop.f32.mrf.mxu3 }
 0x674   : > { %v12227_v16 = vadd.f32 %v5702_v11, %v12057_v38 }
 0x678   : > { %6213 = vmatmul.bf16.gmra.mxu3 %v13284_v13 }
 0x67b   : > { %v5705_v5 = vpop.f32.mrf.mxu3 }
 0x67c   : > { %v12231_v26 = vadd.f32 %v5705_v5, %v12076_v20 }
 0x680   : > { %6179 = vmatmul.bf16.gmra.mxu2 %v13278_v48 }
 0x683   : > { %v5707_v56 = vpop.f32.mrf.mxu3 }
 0x684   : > { %v12235_v40 = vadd.f32 %v5707_v56, %v12091_v35 }
 0x688   : > { %6218 = vmatmul.bf16.gmra.mxu3 %v11479_v34 }
 0x68b   : > { %v5710_v22 = vpop.f32.mrf.mxu3 }
 0x68c   : > { %v12239_v36 = vadd.f32 %v5710_v22, %v12100_v58 }
 0x68e   : > { %13285 = vst [vmem:[#allocation34_spill] sm:$0xff] %v12239_v36 }
 0x693   : > { %v5712_v38 = vpop.f32.mrf.mxu3 }
 0x694   : > { %v12242_v31 = vadd.f32 %v5712_v38, %v12109_v12 }
 0x696   : > { %13286 = vst [vmem:[#allocation35_spill] sm:$0xff] %v12242_v31 }
 0x698   : > { %6223 = vmatmul.bf16.gmra.mxu3 %v13287_v7 }
 0x69b   : > { %v5715_v20 = vpop.f32.mrf.mxu3 }
 0x69c   : > { %v12246_v10 = vadd.f32 %v5715_v20, %v12118_v47 }
 0x69e   : > { %13288 = vst [vmem:[#allocation36_spill] sm:$0xff] %v12246_v10 }
 0x6a3   : > { %v5717_v48 = vpop.f32.mrf.mxu3 }
 0x6a4   : > { %v12249_v35 = vadd.f32 %v5717_v48, %v12132_v50 }
 0x6a6   : > { %13289 = vst [vmem:[#allocation37_spill] sm:$0xff] %v12249_v35 }
 0x6a8   : > { %6228 = vmatmul.bf16.gmra.mxu3 %v13290_v17 }
 0x6ab   : > { %v5720_v34 = vpop.f32.mrf.mxu3 }
 0x6ac   : > { %v12253_v58 = vadd.f32 %v5720_v34, %v12143_v6  ;;  %v12267_v6 = vld [vmem:[%s12817_s4 + $0x1] ss:$0 sm:$0xff] }
 0x6ae   : > { %13291 = vst [vmem:[#allocation38_spill] sm:$0xff] %v12253_v58 }
 0x6b3   : > { %v5722_v39 = vpop.f32.mrf.mxu3 }
 0x6b4   : > { %v12256_v12 = vadd.f32 %v5722_v39, %v12152_v49  ;;  %v12281_v39 = vpop.f32.mrf.mxu0 }
 0x6b6   : > { %13292 = vst [vmem:[#allocation39_spill] sm:$0xff] %v12256_v12 }
 0x6b8   : > { %6233 = vmatmul.bf16.gmra.mxu3 %v13293_v21 }
 0x6bb   : > { %v6194_v11 = vpop.f32.mrf.mxu3 }
 0x6bc   : > { %v12260_v47 = vadd.f32 %v6194_v11, %v12158_v41  ;;  %v12274_v41 = vpop.f32.mrf.mxu2 }
 0x6be   : > { %13294 = vst [vmem:[#allocation7_spill] sm:$0xff] %v12260_v47  ;;  %v12954_v5 = vrot.slane %v12260_v47, 1 }
 0x6c3   : > { %v6196_v13 = vpop.f32.mrf.mxu3 }
 0x6c4   : > { %v6197_v50 = vadd.f32 %v6196_v13, %v12166_v19  ;;  %v12277_v19 = vpop.f32.mrf.mxu1 }
 0x6c6   : > { %v6275_v56 = vrot.slane %v6197_v50, 1  ;;  %v12288_v50 = vpop.f32.mrf.mxu2 }
 0x6c8   : > { %v6336_v49 = vsel %vm13295_vm8, %v12954_v5, %v6275_v56  ;;  %6238 = vmatmul.bf16.gmra.mxu3 %v13261_v46  ;;  %v13297_v46 = vld [vmem:[#allocation41_spill] sm:$0xff] }
 0x6c9   : > { %v6370_v22 = vadd.f32 %v6336_v49, %v12087_v57  ;;  %vm13298_vm9 = vnez %v13297_v46  ;;  %v13299_v57 = vld [vmem:[#allocation33_spill] sm:$0xff] }
 0x6cb   : > { %v6407_v38 = vadd.f32 %v12267_v6, %v6370_v22  ;;  %v6199_v7 = vpop.f32.mrf.mxu3 }
 0x6cc   : > { %v6200_v20 = vadd.f32 %v6199_v7, %v12172_v29  ;;  %v12294_v7 = vpop.f32.mrf.mxu1 }
 0x6cd   : > { %v6439_v48 = vmin.f32 %v6407_v38, 20.0  ;;  %vm6695_vm11 = vcmp.gt.f32.partialorder %v6407_v38, 20.0 }
 0x6ce   : > { %v6276_v17 = vrot.slane %v6200_v20, 1  ;;  %v12307_v47 = vpop.f32.mrf.mxu2 }
 0x6cf   : > { %v6471_v34 = vmul.f32 1.442695, %v6439_v48 }
 0x6d0   : > { %v6335_v21 = vsel %vm13296_vm15, %v6275_v56, %v6276_v17 }
 0x6d1   : > { %8893 = vpow2.f32 %v6471_v34  ;;  %v6339_v11 = vsel %vm13298_vm9, %v6335_v21, 0.0  ;;  %vm13312_vm9 = vmmov %vm13309_vm2 }
 0x6d2   : > { %v6371_v13 = vadd.f32 %v6339_v11, %v13299_v57  ;;  %v12301_v11 = vpop.f32.mrf.mxu0 }
 0x6d3   : > { %v6201_v49 = vpop.f32.mrf.mxu3 }
 0x6d4   : > { %v12291_v22 = vadd.f32 %v12267_v6, %v6371_v13  ;;  %v6202_v29 = vadd.f32 %v6201_v49, %v12180_v55 }
 0x6d6   : > { %v6440_v20 = vmin.f32 %v12291_v22, 20.0  ;;  %v6277_v48 = vrot.slane %v6202_v29, 1  ;;  %v12324_v10 = vpop.f32.mrf.mxu2  ;;  %vm6696_vm12 = vcmp.gt.f32.partialorder %v12291_v22, 20.0 }
 0x6d7   : > { %v8894_v56 = vpop.eup %8893 }
 0x6d8   : > { %v6535_v34 = vadd.f32 2.0, %v8894_v56  ;;  %v6473_v5 = vmul.f32 1.442695, %v6440_v20  ;;  %v6334_v21 = vsel %vm13300_vm3, %v6276_v17, %v6277_v48  ;;  %6243 = vmatmul.bf16.gmra.mxu3 %v13266_v24  ;;  %v12310_v24 = vpop.f32.mrf.mxu1 }
 0x6d9   : > { %v6372_v46 = vadd.f32 %v6334_v21, %v12079_v59 }
 0x6da   : > { %v6567_v57 = vmul.f32 %v8894_v56, %v6535_v34  ;;  %8895 = vpow2.f32 %v6473_v5  ;;  %v13302_v34 = vld [vmem:[#allocation18_spill] sm:$0xff]  ;;  %v12317_v35 = vpop.f32.mrf.mxu0 }
 0x6db   : > { %v12304_v55 = vadd.f32 %v12267_v6, %v6372_v46  ;;  %v6204_v13 = vpop.f32.mrf.mxu3  ;;  %vm13303_vm0 = vnez %v13302_v34 }
 0x6dc   : > { %v6599_v49 = vadd.f32 2.0, %v6567_v57  ;;  %v6205_v29 = vadd.f32 %v6204_v13, %v12186_v23 }
 0x6dd   : > { %v6441_v20 = vmin.f32 %v12304_v55, 20.0  ;;  %vm6697_vm1 = vcmp.gt.f32.partialorder %v12304_v55, 20.0 }
 0x6de   : > { %8897 = vrcp.f32 %v6599_v49  ;;  %v6278_v17 = vrot.slane %v6205_v29, 1 }
 0x6df   : > { %v6475_v59 = vmul.f32 1.442695, %v6441_v20 }
 0x6e0   : > { %v8896_v21 = vpop.eup %8895  ;;  %v6333_v5 = vsel %vm13301_vm10, %v6277_v48, %v6278_v17  ;;  %vm13313_vm10 = vmmov %vm13309_vm2 }
 0x6e1   : > { %v6536_v56 = vadd.f32 2.0, %v8896_v21  ;;  %8899 = vpow2.f32 %v6475_v59  ;;  %v6341_v46 = vsel %vm13303_vm0, %v6333_v5, 0.0 }
 0x6e2   : > { %v6373_v23 = vadd.f32 %v6341_v46, %v12093_v61 }
 0x6e3   : > { %v6568_v13 = vmul.f32 %v8896_v21, %v6536_v56  ;;  %v6206_v12 = vpop.f32.mrf.mxu3 }
 0x6e4   : > { %v8898_v58 = vpop.eup %8897  ;;  %v12320_v49 = vadd.f32 %v12267_v6, %v6373_v23  ;;  %v6207_v29 = vadd.f32 %v6206_v12, %v12194_v60  ;;  %v12329_v60 = vpop.f32.mrf.mxu1 }
 0x6e5   : > { %v6663_v20 = vmul.f32 %v8898_v58, %v6567_v57  ;;  %v6600_v48 = vadd.f32 2.0, %v6568_v13  ;;  %v6791_v58 = vld [vmem:[%s10482_s21] sm:$0xff] }
 0x6e6   : > { %v6442_v59 = vmin.f32 %v12320_v49, 20.0  ;;  %v6279_v34 = vrot.slane %v6207_v29, 1  ;;  %vm6698_vm6 = vcmp.gt.f32.partialorder %v12320_v49, 20.0 }
 0x6e7   : > { %v8900_v5 = vpop.eup %8899  ;;  %v6727_v61 = vsel %vm6695_vm11, 1.0, %v6663_v20  ;;  %8901 = vrcp.f32 %v6600_v48 }
 0x6e8   : > { %v6759_v21 = vmul.f32 %v6727_v61, %v6407_v38  ;;  %v6537_v56 = vadd.f32 2.0, %v8900_v5  ;;  %v6477_v46 = vmul.f32 1.442695, %v6442_v59  ;;  %v6332_v23 = vsel %vm13304_vm4, %v6278_v17, %v6279_v34  ;;  %6248 = vmatmul.bf16.gmra.mxu3 %v13270_v14  ;;  %v12339_v17 = vpop.f32.mrf.mxu0  ;;  %vm13316_vm4 = vmmov %vm13309_vm2 }
 0x6e9   : > { %v6374_v12 = vadd.f32 %v6332_v23, %v12102_v54  ;;  %v12344_v23 = vpop.f32.mrf.mxu2 }
 0x6ea   : > { %v6823_v57 = vadd.f32 %v6791_v58, %v6759_v21  ;;  %v6569_v29 = vmul.f32 %v8900_v5, %v6537_v56  ;;  %8903 = vpow2.f32 %v6477_v46 }
 0x6eb   : > { %v12334_v31 = vadd.f32 %v12267_v6, %v6374_v12  ;;  %v6209_v20 = vpop.f32.mrf.mxu3  ;;  %v13306_v12 = vld [vmem:[#allocation9_spill] sm:$0xff] }
 0x6ec   : > { %6855 = vst [vmem:[%s10482_s21] sm:$0xff] %v6823_v57  ;;  %v6601_v38 = vadd.f32 2.0, %v6569_v29  ;;  %v6210_v48 = vadd.f32 %v6209_v20, %v12200_v0  ;;  %vm13307_vm5 = vnez %v13306_v12  ;;  %v6792_v57 = vld [vmem:[%s10482_s21 + $0x8] sm:$0xff] }
 0x6ed   : > { %v8902_v59 = vpop.eup %8901  ;;  %v6443_v14 = vmin.f32 %v12334_v31, 20.0  ;;  %vm6699_vm15 = vcmp.gt.f32.partialorder %v12334_v31, 20.0 }
 0x6ee   : > { %v6664_v61 = vmul.f32 %v8902_v59, %v6568_v13  ;;  %8905 = vrcp.f32 %v6601_v38  ;;  %v6280_v54 = vrot.slane %v6210_v48, 1  ;;  %v12351_v38 = vpop.f32.mrf.mxu1 }
 0x6ef   : > { %v6479_v5 = vmul.f32 1.442695, %v6443_v14 }
 0x6f0   : > { %v8904_v21 = vpop.eup %8903  ;;  %v6728_v56 = vsel %vm6696_vm12, 1.0, %v6664_v61  ;;  %v6331_v46 = vsel %vm13305_vm14, %v6279_v34, %v6280_v54  ;;  %vm13317_vm14 = vmmov %vm13309_vm2 }
 0x6f1   : > { %v6760_v0 = vmul.f32 %v6728_v56, %v12291_v22  ;;  %v6538_v58 = vadd.f32 2.0, %v8904_v21  ;;  %8907 = vpow2.f32 %v6479_v5  ;;  %v6343_v13 = vsel %vm13307_vm5, %v6331_v46, 0.0 }
 0x6f2   : > { %v6375_v20 = vadd.f32 %v6343_v13, %v12111_v43 }
 0x6f3   : > { %v6824_v48 = vadd.f32 %v6792_v57, %v6760_v0  ;;  %v6570_v59 = vmul.f32 %v8904_v21, %v6538_v58  ;;  %v6211_v14 = vpop.f32.mrf.mxu3  ;;  %v12360_v21 = vpop.f32.mrf.mxu0 }
 0x6f4   : > { %v8906_v61 = vpop.eup %8905  ;;  %v12354_v34 = vadd.f32 %v12267_v6, %v6375_v20  ;;  %v6212_v36 = vadd.f32 %v6211_v14, %v12207_v30  ;;  %v12370_v14 = vpop.f32.mrf.mxu2 }
 0x6f5   : > { %6856 = vst [vmem:[%s10482_s21 + $0x8] sm:$0xff] %v6824_v48  ;;  %v6665_v22 = vmul.f32 %v8906_v61, %v6569_v29  ;;  %v6602_v5 = vadd.f32 2.0, %v6570_v59  ;;  %v6793_v29 = vld [vmem:[%s10482_s21 + $0x10] sm:$0xff] }
 0x6f6   : > { %v6444_v56 = vmin.f32 %v12354_v34, 20.0  ;;  %v6281_v43 = vrot.slane %v6212_v36, 1  ;;  %v6126_v36 = vadd.f32 %v12274_v41, %v12277_v19  ;;  %vm6700_vm3 = vcmp.gt.f32.partialorder %v12354_v34, 20.0 }
 0x6f7   : > { %v8908_v46 = vpop.eup %8907  ;;  %v6729_v12 = vsel %vm6697_vm1, 1.0, %v6665_v22  ;;  %8909 = vrcp.f32 %v6602_v5 }
 0x6f8   : > { %v6761_v0 = vmul.f32 %v6729_v12, %v12304_v55  ;;  %v6539_v58 = vadd.f32 2.0, %v8908_v46  ;;  %v6481_v13 = vmul.f32 1.442695, %v6444_v56  ;;  %v6330_v30 = vsel %vm13308_vm13, %v6280_v54, %v6281_v43  ;;  %6253 = vmatmul.bf16.gmra.mxu3 %v13274_v33  ;;  %v12376_v33 = vpop.f32.mrf.mxu1  ;;  %vm13320_vm13 = vmmov %vm13309_vm2 }
 0x6f9   : > { %v6376_v57 = vadd.f32 %v6330_v30, %v12120_v27  ;;  %v13310_v30 = vld [vmem:[#allocation42_spill] sm:$0xff] }
 0x6fa   : > { %v6825_v20 = vadd.f32 %v6793_v29, %v6761_v0  ;;  %v6571_v48 = vmul.f32 %v8908_v46, %v6539_v58  ;;  %8911 = vpow2.f32 %v6481_v13  ;;  %vm13311_vm8 = vnez %v13310_v30 }
 0x6fb   : > { %v12373_v55 = vadd.f32 %v12267_v6, %v6376_v57  ;;  %v6214_v61 = vpop.f32.mrf.mxu3  ;;  %v12385_v57 = vpop.f32.mrf.mxu0 }
 0x6fc   : > { %6857 = vst [vmem:[%s10482_s21 + $0x10] sm:$0xff] %v6825_v20  ;;  %v6603_v22 = vadd.f32 2.0, %v6571_v48  ;;  %v6215_v54 = vadd.f32 %v6214_v61, %v6126_v36  ;;  %v6794_v36 = vld [vmem:[%s10482_s21 + $0x18] sm:$0xff] }
 0x6fd   : > { %v8910_v5 = vpop.eup %8909  ;;  %v6445_v27 = vmin.f32 %v12373_v55, 20.0  ;;  %vm6701_vm11 = vcmp.gt.f32.partialorder %v12373_v55, 20.0 }
 0x6fe   : > { %v6666_v56 = vmul.f32 %v8910_v5, %v6570_v59  ;;  %8913 = vrcp.f32 %v6603_v22  ;;  %v6282_v41 = vrot.slane %v6215_v54, 1  ;;  %v6128_v59 = vadd.f32 %v12288_v50, %v12294_v7 }
 0x6ff   : > { %v6483_v19 = vmul.f32 1.442695, %v6445_v27  ;;  %v12394_v27 = vpop.f32.mrf.mxu2 }
 0x700   : > { %v8912_v46 = vpop.eup %8911  ;;  %v6730_v12 = vsel %vm6698_vm6, 1.0, %v6666_v56  ;;  %v6329_v0 = vsel %vm13309_vm2, %v6281_v43, %v6282_v41 }
 0x701   : > { %v6762_v58 = vmul.f32 %v6730_v12, %v12320_v49  ;;  %v6540_v13 = vadd.f32 2.0, %v8912_v46  ;;  %8915 = vpow2.f32 %v6483_v19  ;;  %v6345_v29 = vsel %vm13311_vm8, %v6329_v0, 0.0  ;;  %v12401_v12 = vpop.f32.mrf.mxu1 }
 0x702   : > { %v6377_v20 = vadd.f32 %v6345_v29, %v12134_v18  ;;  %v6795_v29 = vld [vmem:[%s10482_s21 + $0x20] sm:$0xff] }
 0x703   : > { %v6826_v61 = vadd.f32 %v6794_v36, %v6762_v58  ;;  %v6572_v22 = vmul.f32 %v8912_v46, %v6540_v13  ;;  %v6216_v54 = vpop.f32.mrf.mxu3  ;;  %v5755_v46 = vadd.f32 %v12281_v39, %v12129_v15  ;;  %v6131_v36 = vadd.f32 %v12307_v47, %v12310_v24 }
 0x704   : > { %v8914_v43 = vpop.eup %8913  ;;  %v12392_v5 = vadd.f32 %v12267_v6, %v6377_v20  ;;  %v6217_v49 = vadd.f32 %v6216_v54, %v6128_v59 }
 0x705   : > { %6858 = vst [vmem:[%s10482_s21 + $0x18] sm:$0xff] %v6826_v61  ;;  %v6667_v56 = vmul.f32 %v8914_v43, %v6571_v48  ;;  %v6604_v19 = vadd.f32 2.0, %v6572_v22 }
 0x706   : > { %v6446_v50 = vmin.f32 %v12392_v5, 20.0  ;;  %v6283_v7 = vrot.slane %v6217_v49, 1  ;;  %vm6702_vm12 = vcmp.gt.f32.partialorder %v12392_v5, 20.0 }
 0x707   : > { %v8916_v18 = vpop.eup %8915  ;;  %v6731_v0 = vsel %vm6699_vm15, 1.0, %v6667_v56  ;;  %8917 = vrcp.f32 %v6604_v19  ;;  %v12417_v47 = vpop.f32.mrf.mxu2 }
 0x708   : > { %v6763_v58 = vmul.f32 %v6731_v0, %v12334_v31  ;;  %v6541_v13 = vadd.f32 2.0, %v8916_v18  ;;  %v6485_v30 = vmul.f32 1.442695, %v6446_v50  ;;  %v6328_v48 = vsel %vm13312_vm9, %v6282_v41, %v6283_v7  ;;  %6258 = vmatmul.bf16.gmra.mxu3 %v11790_v4  ;;  %v12413_v31 = vpop.f32.mrf.mxu0  ;;  %vm13323_vm9 = vmmov %vm13309_vm2 }
 0x709   : > { %v6378_v59 = vadd.f32 %v6328_v48, %v5755_v46  ;;  %v5757_v50 = vadd.f32 %v12301_v11, %v12141_v45  ;;  %v12424_v0 = vpop.f32.mrf.mxu1  ;;  %v6133_v48 = vadd.f32 %v12324_v10, %v12329_v60 }
 0x70a   : > { %v6827_v15 = vadd.f32 %v6795_v29, %v6763_v58  ;;  %v6573_v39 = vmul.f32 %v8916_v18, %v6541_v13  ;;  %8919 = vpow2.f32 %v6485_v30  ;;  %v13314_v13 = vld [vmem:[#allocation43_spill] sm:$0xff]  ;;  %v6796_v29 = vld [vmem:[%s10482_s21 + $0x28] sm:$0xff] }
 0x70b   : > { %v12411_v20 = vadd.f32 %v12267_v6, %v6378_v59  ;;  %v6219_v61 = vpop.f32.mrf.mxu3  ;;  %vm13315_vm0 = vnez %v13314_v13 }
 0x70c   : > { %6859 = vst [vmem:[%s10482_s21 + $0x20] sm:$0xff] %v6827_v15  ;;  %v6605_v54 = vadd.f32 2.0, %v6573_v39  ;;  %v6220_v43 = vadd.f32 %v6219_v61, %v6131_v36 }
 0x70d   : > { %v8918_v41 = vpop.eup %8917  ;;  %v6447_v4 = vmin.f32 %v12411_v20, 20.0  ;;  %vm6703_vm1 = vcmp.gt.f32.partialorder %v12411_v20, 20.0 }
 0x70e   : > { %v6668_v49 = vmul.f32 %v8918_v41, %v6572_v22  ;;  %8921 = vrcp.f32 %v6605_v54  ;;  %v6284_v56 = vrot.slane %v6220_v43, 1 }
 0x70f   : > { %v6487_v24 = vmul.f32 1.442695, %v6447_v4  ;;  %v5760_v4 = vadd.f32 %v12317_v35, %v12149_v42 }
 0x710   : > { %v8920_v19 = vpop.eup %8919  ;;  %v6732_v18 = vsel %vm6700_vm3, 1.0, %v6668_v49  ;;  %v6327_v46 = vsel %vm13313_vm10, %v6283_v7, %v6284_v56  ;;  %v12436_v43 = vpop.f32.mrf.mxu0  ;;  %vm13324_vm10 = vmmov %vm13309_vm2 }
 0x711   : > { %v6764_v22 = vmul.f32 %v6732_v18, %v12354_v34  ;;  %v6542_v58 = vadd.f32 2.0, %v8920_v19  ;;  %8923 = vpow2.f32 %v6487_v24  ;;  %v6347_v30 = vsel %vm13315_vm0, %v6327_v46, 0.0  ;;  %v12446_v18 = vpop.f32.mrf.mxu2  ;;  %v6797_v46 = vld [vmem:[%s10482_s21 + $0x30] sm:$0xff]  ;;  %v12451_v13 = vpop.f32.mrf.mxu1 }
 0x712   : > { %v6379_v59 = vadd.f32 %v6347_v30, %v5757_v50 }
 0x713   : > { %v6828_v45 = vadd.f32 %v6796_v29, %v6764_v22  ;;  %v6574_v11 = vmul.f32 %v8920_v19, %v6542_v58  ;;  %v6221_v36 = vpop.f32.mrf.mxu3  ;;  %v6136_v58 = vadd.f32 %v12344_v23, %v12351_v38 }
 0x714   : > { %v8922_v15 = vpop.eup %8921  ;;  %v12433_v7 = vadd.f32 %v12267_v6, %v6379_v59  ;;  %v6222_v61 = vadd.f32 %v6221_v36, %v6133_v48  ;;  %v5762_v36 = vadd.f32 %v12339_v17, %v12156_v51 }
 0x715   : > { %6860 = vst [vmem:[%s10482_s21 + $0x28] sm:$0xff] %v6828_v45  ;;  %v6669_v34 = vmul.f32 %v8922_v15, %v6573_v39  ;;  %v6606_v54 = vadd.f32 2.0, %v6574_v11 }
 0x716   : > { %v6448_v10 = vmin.f32 %v12433_v7, 20.0  ;;  %v6285_v60 = vrot.slane %v6222_v61, 1  ;;  %vm6704_vm6 = vcmp.gt.f32.partialorder %v12433_v7, 20.0 }
 0x717   : > { %v8924_v41 = vpop.eup %8923  ;;  %v6733_v49 = vsel %vm6701_vm11, 1.0, %v6669_v34  ;;  %8925 = vrcp.f32 %v6606_v54 }
 0x718   : > { %v6765_v24 = vmul.f32 %v6733_v49, %v12373_v55  ;;  %v6543_v19 = vadd.f32 2.0, %v8924_v41  ;;  %v6489_v39 = vmul.f32 1.442695, %v6448_v10  ;;  %v6326_v50 = vsel %vm13316_vm4, %v6284_v56, %v6285_v60  ;;  %6263 = vmatmul.bf16.gmra.mxu3 %v13277_v44  ;;  %v12461_v15 = vpop.f32.mrf.mxu0  ;;  %v6798_v49 = vld [vmem:[%s10482_s21 + $0x38] sm:$0xff]  ;;  %vm13327_vm4 = vmmov %vm13309_vm2 }
 0x719   : > { %v6380_v22 = vadd.f32 %v6326_v50, %v5760_v4  ;;  %v6138_v4 = vadd.f32 %v12370_v14, %v12376_v33  ;;  %v12471_v51 = vpop.f32.mrf.mxu2 }
 0x71a   : > { %v6829_v42 = vadd.f32 %v6797_v46, %v6765_v24  ;;  %v6575_v35 = vmul.f32 %v8924_v41, %v6543_v19  ;;  %8927 = vpow2.f32 %v6489_v39  ;;  %v12476_v46 = vpop.f32.mrf.mxu1 }
 0x71b   : > { %v12454_v55 = vadd.f32 %v12267_v6, %v6380_v22  ;;  %v6224_v30 = vpop.f32.mrf.mxu3 }
 0x71c   : > { %6861 = vst [vmem:[%s10482_s21 + $0x30] sm:$0xff] %v6829_v42  ;;  %v6607_v56 = vadd.f32 2.0, %v6575_v35  ;;  %v6225_v48 = vadd.f32 %v6224_v30, %v6136_v58  ;;  %v5765_v30 = vadd.f32 %v12360_v21, %v12164_v3 }
 0x71d   : > { %v8926_v44 = vpop.eup %8925  ;;  %v6449_v29 = vmin.f32 %v12454_v55, 20.0  ;;  %vm6705_vm15 = vcmp.gt.f32.partialorder %v12454_v55, 20.0 }
 0x71e   : > { %v6670_v59 = vmul.f32 %v8926_v44, %v6574_v11  ;;  %8929 = vrcp.f32 %v6607_v56  ;;  %v6286_v45 = vrot.slane %v6225_v48, 1  ;;  %v13318_v11 = vld [vmem:[#allocation44_spill] sm:$0xff] }
 0x71f   : > { %v6491_v23 = vmul.f32 1.442695, %v6449_v29  ;;  %vm13319_vm5 = vnez %v13318_v11 }
 0x720   : > { %v8928_v38 = vpop.eup %8927  ;;  %v6734_v61 = vsel %vm6702_vm12, 1.0, %v6670_v59  ;;  %v6325_v34 = vsel %vm13317_vm14, %v6285_v60, %v6286_v45  ;;  %v6799_v59 = vld [vmem:[%s10482_s21 + $0x40] sm:$0xff]  ;;  %vm13328_vm14 = vmmov %vm13309_vm2 }
 0x721   : > { %v6766_v54 = vmul.f32 %v6734_v61, %v12392_v5  ;;  %v6544_v10 = vadd.f32 2.0, %v8928_v38  ;;  %8931 = vpow2.f32 %v6491_v23  ;;  %v6349_v41 = vsel %vm13319_vm5, %v6325_v34, 0.0 }
 0x722   : > { %v6381_v24 = vadd.f32 %v6349_v41, %v5762_v36  ;;  %v6141_v36 = vadd.f32 %v12394_v27, %v12401_v12  ;;  %v12499_v27 = vpop.f32.mrf.mxu1 }
 0x723   : > { %v6830_v17 = vadd.f32 %v6798_v49, %v6766_v54  ;;  %v6576_v19 = vmul.f32 %v8928_v38, %v6544_v10  ;;  %v6226_v39 = vpop.f32.mrf.mxu3  ;;  %v12488_v38 = vpop.f32.mrf.mxu0  ;;  %v5767_v49 = vadd.f32 %v12385_v57, %v12170_v62 }
 0x724   : > { %v8930_v50 = vpop.eup %8929  ;;  %v12474_v60 = vadd.f32 %v12267_v6, %v6381_v24  ;;  %v6227_v5 = vadd.f32 %v6226_v39, %v6138_v4  ;;  %v12496_v10 = vpop.f32.mrf.mxu2 }
 0x725   : > { %6862 = vst [vmem:[%s10482_s21 + $0x38] sm:$0xff] %v6830_v17  ;;  %v6671_v22 = vmul.f32 %v8930_v50, %v6575_v35  ;;  %v6608_v58 = vadd.f32 2.0, %v6576_v19 }
 0x726   : > { %v6450_v14 = vmin.f32 %v12474_v60, 20.0  ;;  %v6287_v33 = vrot.slane %v6227_v5, 1  ;;  %vm6706_vm3 = vcmp.gt.f32.partialorder %v12474_v60, 20.0 }
 0x727   : > { %v8932_v42 = vpop.eup %8931  ;;  %v6735_v56 = vsel %vm6703_vm1, 1.0, %v6671_v22  ;;  %8933 = vrcp.f32 %v6608_v58  ;;  %v6143_v22 = vadd.f32 %v12417_v47, %v12424_v0  ;;  %v6800_v58 = vld [vmem:[%s10482_s21 + $0x48] sm:$0xff] }
 0x728   : > { %v6767_v48 = vmul.f32 %v6735_v56, %v12411_v20  ;;  %v6545_v44 = vadd.f32 2.0, %v8932_v42  ;;  %v6493_v29 = vmul.f32 1.442695, %v6450_v14  ;;  %v6324_v35 = vsel %vm13320_vm13, %v6286_v45, %v6287_v33  ;;  %6268 = vmatmul.bf16.gmra.mxu3 %v13279_v2  ;;  %vm13331_vm13 = vmmov %vm13309_vm2 }
 0x729   : > { %v6382_v23 = vadd.f32 %v6324_v35, %v5765_v30  ;;  %v5770_v35 = vadd.f32 %v12413_v31, %v12178_v53 }
 0x72a   : > { %v6831_v3 = vadd.f32 %v6799_v59, %v6767_v48  ;;  %v6577_v21 = vmul.f32 %v8932_v42, %v6545_v44  ;;  %8935 = vpow2.f32 %v6493_v29 }
 0x72b   : > { %v12493_v61 = vadd.f32 %v12267_v6, %v6382_v23  ;;  %v6229_v20 = vpop.f32.mrf.mxu3  ;;  %v12512_v56 = vpop.f32.mrf.mxu0 }
 0x72c   : > { %6863 = vst [vmem:[%s10482_s21 + $0x40] sm:$0xff] %v6831_v3  ;;  %v6609_v34 = vadd.f32 2.0, %v6577_v21  ;;  %v6230_v54 = vadd.f32 %v6229_v20, %v6141_v36  ;;  %v12522_v59 = vpop.f32.mrf.mxu2 }
 0x72d   : > { %v8934_v45 = vpop.eup %8933  ;;  %v6451_v2 = vmin.f32 %v12493_v61, 20.0  ;;  %vm6707_vm11 = vcmp.gt.f32.partialorder %v12493_v61, 20.0 }
 0x72e   : > { %v6672_v11 = vmul.f32 %v8934_v45, %v6576_v19  ;;  %8937 = vrcp.f32 %v6609_v34  ;;  %v6288_v41 = vrot.slane %v6230_v54, 1  ;;  %v13321_v19 = vld [vmem:[#allocation45_spill] sm:$0xff]  ;;  %v12527_v34 = vpop.f32.mrf.mxu1  ;;  %v6801_v54 = vld [vmem:[%s10482_s21 + $0x50] sm:$0xff] }
 0x72f   : > { %v6495_v12 = vmul.f32 1.442695, %v6451_v2  ;;  %vm13322_vm8 = vnez %v13321_v19  ;;  %v6146_v2 = vadd.f32 %v12446_v18, %v12451_v13 }
 0x730   : > { %v8936_v4 = vpop.eup %8935  ;;  %v6736_v24 = vsel %vm6704_vm6, 1.0, %v6672_v11  ;;  %v6323_v17 = vsel %vm13309_vm2, %v6287_v33, %v6288_v41 }
 0x731   : > { %v6768_v39 = vmul.f32 %v6736_v24, %v12433_v7  ;;  %v6546_v50 = vadd.f32 2.0, %v8936_v4  ;;  %8939 = vpow2.f32 %v6495_v12  ;;  %v6351_v5 = vsel %vm13322_vm8, %v6323_v17, 0.0 }
 0x732   : > { %v6383_v14 = vadd.f32 %v6351_v5, %v5767_v49 }
 0x733   : > { %v6832_v42 = vadd.f32 %v6800_v58, %v6768_v39  ;;  %v6578_v30 = vmul.f32 %v8936_v4, %v6546_v50  ;;  %v6231_v62 = vpop.f32.mrf.mxu3  ;;  %v12537_v24 = vpop.f32.mrf.mxu0  ;;  %v5772_v50 = vadd.f32 %v12436_v43, %v12184_v9 }
 0x734   : > { %v8938_v57 = vpop.eup %8937  ;;  %v12515_v33 = vadd.f32 %v12267_v6, %v6383_v14  ;;  %v6232_v7 = vadd.f32 %v6231_v62, %v6143_v22  ;;  %v12544_v22 = vpop.f32.mrf.mxu2  ;;  %v6148_v62 = vadd.f32 %v12471_v51, %v12476_v46 }
 0x735   : > { %6864 = vst [vmem:[%s10482_s21 + $0x48] sm:$0xff] %v6832_v42  ;;  %v6673_v48 = vmul.f32 %v8938_v57, %v6577_v21  ;;  %v6610_v44 = vadd.f32 2.0, %v6578_v30  ;;  %v13325_v42 = vld [vmem:[#allocation20_spill] sm:$0xff] }
 0x736   : > { %v6452_v47 = vmin.f32 %v12515_v33, 20.0  ;;  %v6289_v0 = vrot.slane %v6232_v7, 1  ;;  %vm13326_vm0 = vnez %v13325_v42  ;;  %v6802_v57 = vld [vmem:[%s10482_s21 + $0x58] sm:$0xff]  ;;  %v12552_v9 = vpop.f32.mrf.mxu1  ;;  %vm6708_vm12 = vcmp.gt.f32.partialorder %v12515_v33, 20.0 }
 0x737   : > { %v8940_v29 = vpop.eup %8939  ;;  %v6737_v23 = vsel %vm6705_vm15, 1.0, %v6673_v48  ;;  %8941 = vrcp.f32 %v6610_v44 }
 0x738   : > { %v6769_v36 = vmul.f32 %v6737_v23, %v12454_v55  ;;  %v6547_v3 = vadd.f32 2.0, %v8940_v29  ;;  %v6497_v20 = vmul.f32 1.442695, %v6452_v47  ;;  %v6322_v21 = vsel %vm13323_vm9, %v6288_v41, %v6289_v0  ;;  %vm13334_vm9 = vmmov %vm13309_vm2 }
 0x739   : > { %v6384_v45 = vadd.f32 %v6322_v21, %v5770_v35 }
 0x73a   : > { %v6833_v53 = vadd.f32 %v6801_v54, %v6769_v36  ;;  %v6579_v31 = vmul.f32 %v8940_v29, %v6547_v3  ;;  %8943 = vpow2.f32 %v6497_v20  ;;  %v5775_v36 = vadd.f32 %v12461_v15, %v12192_v32 }
 0x73b   : > { %v12533_v11 = vadd.f32 %v12267_v6, %v6384_v45  ;;  %v6234_v12 = vpop.f32.mrf.mxu3  ;;  %v12562_v20 = vpop.f32.mrf.mxu0 }
 0x73c   : > { %6865 = vst [vmem:[%s10482_s21 + $0x50] sm:$0xff] %v6833_v53  ;;  %v6611_v55 = vadd.f32 2.0, %v6579_v31  ;;  %v6235_v4 = vadd.f32 %v6234_v12, %v6146_v2  ;;  %v6803_v53 = vld [vmem:[%s10482_s21 + $0x60] sm:$0xff]  ;;  %v6151_v12 = vadd.f32 %v12496_v10, %v12499_v27  ;;  %v12570_v32 = vpop.f32.mrf.mxu2 }
 0x73d   : > { %v8942_v49 = vpop.eup %8941  ;;  %v6453_v41 = vmin.f32 %v12533_v11, 20.0  ;;  %vm6709_vm1 = vcmp.gt.f32.partialorder %v12533_v11, 20.0 }
 0x73e   : > { %v6674_v17 = vmul.f32 %v8942_v49, %v6578_v30  ;;  %8945 = vrcp.f32 %v6611_v55  ;;  %v6290_v39 = vrot.slane %v6235_v4, 1 }
 0x73f   : > { %v6499_v18 = vmul.f32 1.442695, %v6453_v41 }
 0x740   : > { %v8944_v13 = vpop.eup %8943  ;;  %v6738_v19 = vsel %vm6706_vm3, 1.0, %v6674_v17  ;;  %v6321_v5 = vsel %vm13324_vm10, %v6289_v0, %v6290_v39  ;;  %vm13335_vm10 = vmmov %vm13309_vm2 }
 0x741   : > { %v6770_v58 = vmul.f32 %v6738_v19, %v12474_v60  ;;  %v6548_v14 = vadd.f32 2.0, %v8944_v13  ;;  %8947 = vpow2.f32 %v6499_v18  ;;  %v6353_v30 = vsel %vm13326_vm0, %v6321_v5, 0.0  ;;  %v12576_v18 = vpop.f32.mrf.mxu1 }
 0x742   : > { %v6385_v7 = vadd.f32 %v6353_v30, %v5772_v50  ;;  %v5777_v19 = vadd.f32 %v12488_v38, %v12198_v37  ;;  %v13329_v30 = vld [vmem:[#allocation23_spill] sm:$0xff] }
 0x743   : > { %v6834_v43 = vadd.f32 %v6802_v57, %v6770_v58  ;;  %v6580_v48 = vmul.f32 %v8944_v13, %v6548_v14  ;;  %v6236_v44 = vpop.f32.mrf.mxu3  ;;  %vm13330_vm5 = vnez %v13329_v30  ;;  %v12587_v57 = vpop.f32.mrf.mxu0 }
 0x744   : > { %v8946_v47 = vpop.eup %8945  ;;  %v12555_v0 = vadd.f32 %v12267_v6, %v6385_v7  ;;  %v6237_v60 = vadd.f32 %v6236_v44, %v6148_v62  ;;  %v6153_v7 = vadd.f32 %v12522_v59, %v12527_v34 }
 0x745   : > { %6866 = vst [vmem:[%s10482_s21 + $0x58] sm:$0xff] %v6834_v43  ;;  %v6675_v29 = vmul.f32 %v8946_v47, %v6579_v31  ;;  %v6612_v35 = vadd.f32 2.0, %v6580_v48  ;;  %v6804_v43 = vld [vmem:[%s10482_s21 + $0x68] sm:$0xff] }
 0x746   : > { %v6454_v51 = vmin.f32 %v12555_v0, 20.0  ;;  %v6291_v46 = vrot.slane %v6237_v60, 1  ;;  %vm6710_vm6 = vcmp.gt.f32.partialorder %v12555_v0, 20.0 }
 0x747   : > { %v8948_v23 = vpop.eup %8947  ;;  %v6739_v3 = vsel %vm6707_vm11, 1.0, %v6675_v29  ;;  %8949 = vrcp.f32 %v6612_v35  ;;  %v12595_v29 = vpop.f32.mrf.mxu2 }
 0x748   : > { %v6771_v21 = vmul.f32 %v6739_v3, %v12493_v61  ;;  %v6549_v54 = vadd.f32 2.0, %v8948_v23  ;;  %v6501_v45 = vmul.f32 1.442695, %v6454_v51  ;;  %v6320_v2 = vsel %vm13327_vm4, %v6290_v39, %v6291_v46  ;;  %vm13338_vm4 = vmmov %vm13309_vm2 }
 0x749   : > { %v6386_v31 = vadd.f32 %v6320_v2, %v5775_v36  ;;  %v12602_v36 = vpop.f32.mrf.mxu1 }
 0x74a   : > { %v6835_v55 = vadd.f32 %v6803_v53, %v6771_v21  ;;  %v6581_v4 = vmul.f32 %v8948_v23, %v6549_v54  ;;  %8951 = vpow2.f32 %v6501_v45  ;;  %v5780_v23 = vadd.f32 %v12512_v56, %v12205_v63  ;;  %v6805_v53 = vld [vmem:[%s10482_s21 + $0x70] sm:$0xff] }
 0x74b   : > { %v12573_v15 = vadd.f32 %v12267_v6, %v6386_v31  ;;  %v6239_v49 = vpop.f32.mrf.mxu3 }
 0x74c   : > { %6867 = vst [vmem:[%s10482_s21 + $0x60] sm:$0xff] %v6835_v55  ;;  %v6613_v61 = vadd.f32 2.0, %v6581_v4  ;;  %v6240_v41 = vadd.f32 %v6239_v49, %v6151_v12  ;;  %v6156_v12 = vadd.f32 %v12544_v22, %v12552_v9  ;;  %v12613_v49 = vpop.f32.mrf.mxu0 }
 0x74d   : > { %v8950_v17 = vpop.eup %8949  ;;  %v6455_v39 = vmin.f32 %v12573_v15, 20.0  ;;  %vm6711_vm15 = vcmp.gt.f32.partialorder %v12573_v15, 20.0 }
 0x74e   : > { %v6676_v13 = vmul.f32 %v8950_v17, %v6580_v48  ;;  %8953 = vrcp.f32 %v6613_v61  ;;  %v6292_v10 = vrot.slane %v6240_v41, 1 }
 0x74f   : > { %v6503_v27 = vmul.f32 1.442695, %v6455_v39  ;;  %v12617_v22 = vpop.f32.mrf.mxu2 }
 0x750   : > { %v8952_v50 = vpop.eup %8951  ;;  %v6740_v5 = vsel %vm6708_vm12, 1.0, %v6676_v13  ;;  %v6319_v58 = vsel %vm13328_vm14, %v6291_v46, %v6292_v10  ;;  %vm13339_vm14 = vmmov %vm13309_vm2 }
 0x751   : > { %v6772_v14 = vmul.f32 %v6740_v5, %v12515_v33  ;;  %v6550_v42 = vadd.f32 2.0, %v8952_v50  ;;  %8955 = vpow2.f32 %v6503_v27  ;;  %v6355_v62 = vsel %vm13330_vm5, %v6319_v58, 0.0  ;;  %v6073_v5 = vpop.f32.mrf.mxu1 }
 0x752   : > { %v6387_v48 = vadd.f32 %v6355_v62, %v5777_v19  ;;  %v5782_v27 = vadd.f32 %v12537_v24, %v12211_v25  ;;  %v6158_v62 = vadd.f32 %v12570_v32, %v12576_v18 }
 0x753   : > { %v6836_v37 = vadd.f32 %v6804_v43, %v6772_v14  ;;  %v6582_v38 = vmul.f32 %v8952_v50, %v6550_v42  ;;  %v6241_v44 = vpop.f32.mrf.mxu3  ;;  %v13332_v42 = vld [vmem:[#allocation46_spill] sm:$0xff] }
 0x754   : > { %v8954_v47 = vpop.eup %8953  ;;  %v12593_v60 = vadd.f32 %v12267_v6, %v6387_v48  ;;  %v6242_v33 = vadd.f32 %v6241_v44, %v6153_v7  ;;  %vm13333_vm8 = vnez %v13332_v42  ;;  %v6806_v7 = vld [vmem:[%s10482_s21 + $0x78] sm:$0xff] }
 0x755   : > { %6868 = vst [vmem:[%s10482_s21 + $0x68] sm:$0xff] %v6836_v37  ;;  %v6677_v35 = vmul.f32 %v8954_v47, %v6581_v4  ;;  %v6614_v51 = vadd.f32 2.0, %v6582_v38 }
 0x756   : > { %v6456_v59 = vmin.f32 %v12593_v60, 20.0  ;;  %v6293_v34 = vrot.slane %v6242_v33, 1  ;;  %v12634_v33 = vpop.f32.mrf.mxu0  ;;  %vm6712_vm3 = vcmp.gt.f32.partialorder %v12593_v60, 20.0 }
 0x757   : > { %v8956_v46 = vpop.eup %8955  ;;  %v6741_v3 = vsel %vm6709_vm1, 1.0, %v6677_v35  ;;  %8957 = vrcp.f32 %v6614_v51  ;;  %v5785_v51 = vadd.f32 %v12562_v20, %v12215_v28 }
 0x758   : > { %v6773_v21 = vmul.f32 %v6741_v3, %v12533_v11  ;;  %v6551_v54 = vadd.f32 2.0, %v8956_v46  ;;  %v6505_v45 = vmul.f32 1.442695, %v6456_v59  ;;  %v6318_v2 = vsel %vm13331_vm13, %v6292_v10, %v6293_v34  ;;  %vm13342_vm13 = vmmov %vm13309_vm2 }
 0x759   : > { %v6388_v31 = vadd.f32 %v6318_v2, %v5780_v23  ;;  %v6161_v2 = vadd.f32 %v12595_v29, %v12602_v36  ;;  %v6076_v28 = vpop.f32.mrf.mxu1 }
 0x75a   : > { %v6837_v55 = vadd.f32 %v6805_v53, %v6773_v21  ;;  %v6583_v4 = vmul.f32 %v8956_v46, %v6551_v54  ;;  %8959 = vpow2.f32 %v6505_v45  ;;  %v6165_v21 = vpop.f32.mrf.mxu2  ;;  %v6807_v54 = vld [vmem:[%s10482_s21 + $0x80] sm:$0xff] }
 0x75b   : > { %v12611_v63 = vadd.f32 %v12267_v6, %v6388_v31  ;;  %v6244_v56 = vpop.f32.mrf.mxu3 }
 0x75c   : > { %6869 = vst [vmem:[%s10482_s21 + $0x70] sm:$0xff] %v6837_v55  ;;  %v6615_v11 = vadd.f32 2.0, %v6583_v4  ;;  %v6245_v61 = vadd.f32 %v6244_v56, %v6156_v12 }
 0x75d   : > { %v8958_v41 = vpop.eup %8957  ;;  %v6457_v17 = vmin.f32 %v12611_v63, 20.0  ;;  %vm6713_vm11 = vcmp.gt.f32.partialorder %v12611_v63, 20.0 }
 0x75e   : > { %v6678_v39 = vmul.f32 %v8958_v41, %v6582_v38  ;;  %8961 = vrcp.f32 %v6615_v11  ;;  %v6294_v13 = vrot.slane %v6245_v61, 1  ;;  %v5787_v41 = vadd.f32 %v12587_v57, %v12219_v8 }
 0x75f   : > { %v6507_v9 = vmul.f32 1.442695, %v6457_v17 }
 0x760   : > { %v8960_v10 = vpop.eup %8959  ;;  %v6742_v50 = vsel %vm6710_vm6, 1.0, %v6678_v39  ;;  %v6317_v19 = vsel %vm13309_vm2, %v6293_v34, %v6294_v13 }
 0x761   : > { %v6774_v58 = vmul.f32 %v6742_v50, %v12555_v0  ;;  %v6552_v14 = vadd.f32 2.0, %v8960_v10  ;;  %8963 = vpow2.f32 %v6507_v9  ;;  %v6357_v30 = vsel %vm13333_vm8, %v6317_v19, 0.0  ;;  %v6808_v19 = vld [vmem:[%s10482_s21 + $0x88] sm:$0xff] }
 0x762   : > { %v6389_v43 = vadd.f32 %v6357_v30, %v5782_v27  ;;  %v6163_v50 = vadd.f32 %v12617_v22, %v6073_v5 }
 0x763   : > { %v6838_v48 = vadd.f32 %v6806_v7, %v6774_v58  ;;  %v6584_v25 = vmul.f32 %v8960_v10, %v6552_v14  ;;  %v6246_v24 = vpop.f32.mrf.mxu3  ;;  %v13336_v10 = vld [vmem:[#allocation22_spill] sm:$0xff]  ;;  %v6167_v14 = vpop.f32.mrf.mxu2 }
 0x764   : > { %v8962_v37 = vpop.eup %8961  ;;  %v12631_v38 = vadd.f32 %v12267_v6, %v6389_v43  ;;  %v6247_v44 = vadd.f32 %v6246_v24, %v6158_v62  ;;  %vm13337_vm0 = vnez %v13336_v10  ;;  %v12666_v62 = vld [vmem:[%s12817_s4 + $0x1] ss:$0 sm:$0xff]  ;;  %v6078_v43 = vpop.f32.mrf.mxu1 }
 0x765   : > { %6870 = vst [vmem:[%s10482_s21 + $0x78] sm:$0xff] %v6838_v48  ;;  %v6679_v0 = vmul.f32 %v8962_v37, %v6583_v4  ;;  %v6616_v47 = vadd.f32 2.0, %v6584_v25  ;;  %v5790_v37 = vadd.f32 %v12613_v49, %v12223_v52 }
 0x766   : > { %v6458_v32 = vmin.f32 %v12631_v38, 20.0  ;;  %v6295_v18 = vrot.slane %v6247_v44, 1  ;;  %vm6714_vm12 = vcmp.gt.f32.partialorder %v12631_v38, 20.0 }
 0x767   : > { %v8964_v35 = vpop.eup %8963  ;;  %v6743_v59 = vsel %vm6711_vm15, 1.0, %v6679_v0  ;;  %8965 = vrcp.f32 %v6616_v47 }
 0x768   : > { %v6775_v34 = vmul.f32 %v6743_v59, %v12573_v15  ;;  %v6553_v46 = vadd.f32 2.0, %v8964_v35  ;;  %v6509_v23 = vmul.f32 1.442695, %v6458_v32  ;;  %v6316_v3 = vsel %vm13334_vm9, %v6294_v13, %v6295_v18  ;;  %vm13346_vm9 = vmmov %vm13309_vm2 }
 0x769   : > { %v6390_v45 = vadd.f32 %v6316_v3, %v5785_v51 }
 0x76a   : > { %v6839_v53 = vadd.f32 %v6807_v54, %v6775_v34  ;;  %v6585_v31 = vmul.f32 %v8964_v35, %v6553_v46  ;;  %8967 = vpow2.f32 %v6509_v23  ;;  %v6809_v35 = vld [vmem:[%s10482_s21 + $0x90] sm:$0xff]  ;;  %v6166_v34 = vadd.f32 %v6165_v21, %v6076_v28 }
 0x76b   : > { %v12647_v20 = vadd.f32 %v12267_v6, %v6390_v45  ;;  %v6249_v12 = vpop.f32.mrf.mxu3  ;;  %v12654_v6 = vpop.f32.mrf.mxu0 }
 0x76c   : > { %6871 = vst [vmem:[%s10482_s21 + $0x80] sm:$0xff] %v6839_v53  ;;  %v6617_v15 = vadd.f32 2.0, %v6585_v31  ;;  %v6250_v55 = vadd.f32 %v6249_v12, %v6161_v2  ;;  %v6170_v45 = vpop.f32.mrf.mxu2  ;;  %v6081_v12 = vpop.f32.mrf.mxu1 }
 0x76d   : > { %v8966_v4 = vpop.eup %8965  ;;  %v6459_v56 = vmin.f32 %v12647_v20, 20.0  ;;  %vm6715_vm1 = vcmp.gt.f32.partialorder %v12647_v20, 20.0 }
 0x76e   : > { %v6680_v11 = vmul.f32 %v8966_v4, %v6584_v25  ;;  %8969 = vrcp.f32 %v6617_v15  ;;  %v6296_v61 = vrot.slane %v6250_v55, 1  ;;  %v5792_v15 = vadd.f32 %v12634_v33, %v12227_v16 }
 0x76f   : > { %v6511_v29 = vmul.f32 1.442695, %v6459_v56 }
 0x770   : > { %v8968_v36 = vpop.eup %8967  ;;  %v6744_v17 = vsel %vm6712_vm3, 1.0, %v6680_v11  ;;  %v6315_v39 = vsel %vm13335_vm10, %v6295_v18, %v6296_v61  ;;  %vm13348_vm10 = vmmov %vm13309_vm2 }
 0x771   : > { %v6776_v13 = vmul.f32 %v6744_v17, %v12593_v60  ;;  %v6554_v9 = vadd.f32 2.0, %v8968_v36  ;;  %8971 = vpow2.f32 %v6511_v29  ;;  %v6359_v27 = vsel %vm13337_vm0, %v6315_v39, 0.0 }
 0x772   : > { %v6391_v58 = vadd.f32 %v6359_v27, %v5787_v41  ;;  %v6810_v41 = vld [vmem:[%s10482_s21 + $0x98] sm:$0xff] }
 0x773   : > { %v6840_v8 = vadd.f32 %v6808_v19, %v6776_v13  ;;  %v6586_v57 = vmul.f32 %v8968_v36, %v6554_v9  ;;  %v6251_v42 = vpop.f32.mrf.mxu3  ;;  %v12680_v59 = vpop.f32.mrf.mxu0  ;;  %v6168_v36 = vadd.f32 %v6167_v14, %v6078_v43 }
 0x774   : > { %v8970_v30 = vpop.eup %8969  ;;  %v12669_v60 = vadd.f32 %v12666_v62, %v6391_v58  ;;  %v6252_v7 = vadd.f32 %v6251_v42, %v6163_v50 }
 0x775   : > { %6872 = vst [vmem:[%s10482_s21 + $0x88] sm:$0xff] %v6840_v8  ;;  %v6681_v22 = vmul.f32 %v8970_v30, %v6585_v31  ;;  %v6618_v5 = vadd.f32 2.0, %v6586_v57  ;;  %v5795_v8 = vadd.f32 %v12654_v6, %v12231_v26 }
 0x776   : > { %v6460_v48 = vmin.f32 %v12669_v60, 20.0  ;;  %v6297_v25 = vrot.slane %v6252_v7, 1  ;;  %vm6716_vm6 = vcmp.gt.f32.partialorder %v12669_v60, 20.0 }
 0x777   : > { %v8972_v24 = vpop.eup %8971  ;;  %v6745_v44 = vsel %vm6713_vm11, 1.0, %v6681_v22  ;;  %8973 = vrcp.f32 %v6618_v5  ;;  %v6083_v5 = vpop.f32.mrf.mxu1 }
 0x778   : > { %v6777_v0 = vmul.f32 %v6745_v44, %v12611_v63  ;;  %v6555_v47 = vadd.f32 2.0, %v8972_v24  ;;  %v6513_v32 = vmul.f32 1.442695, %v6460_v48  ;;  %v6314_v18 = vsel %vm13338_vm4, %v6296_v61, %v6297_v25  ;;  %v13340_v61 = vld [vmem:[#allocation19_spill] sm:$0xff]  ;;  %v6811_v48 = vld [vmem:[%s10482_s21 + $0xa0] sm:$0xff]  ;;  %vm13352_vm4 = vmmov %vm13309_vm2 }
 0x779   : > { %v6392_v51 = vadd.f32 %v6314_v18, %v5790_v37  ;;  %vm13341_vm5 = vnez %v13340_v61 }
 0x77a   : > { %v6841_v46 = vadd.f32 %v6809_v35, %v6777_v0  ;;  %v6587_v23 = vmul.f32 %v8972_v24, %v6555_v47  ;;  %8975 = vpow2.f32 %v6513_v32  ;;  %v6171_v24 = vadd.f32 %v6170_v45, %v6081_v12  ;;  %v6812_v12 = vld [vmem:[%s10482_s21 + $0xa8] sm:$0xff] }
 0x77b   : > { %v12683_v52 = vadd.f32 %v12666_v62, %v6392_v51  ;;  %v6254_v49 = vpop.f32.mrf.mxu3  ;;  %v12696_v16 = vpop.f32.mrf.mxu0 }
 0x77c   : > { %6873 = vst [vmem:[%s10482_s21 + $0x90] sm:$0xff] %v6841_v46  ;;  %v6619_v3 = vadd.f32 2.0, %v6587_v23  ;;  %v6255_v63 = vadd.f32 %v6254_v49, %v6166_v34 }
 0x77d   : > { %v8974_v54 = vpop.eup %8973  ;;  %v6461_v2 = vmin.f32 %v12683_v52, 20.0  ;;  %vm6717_vm15 = vcmp.gt.f32.partialorder %v12683_v52, 20.0 }
 0x77e   : > { %v6682_v53 = vmul.f32 %v8974_v54, %v6586_v57  ;;  %8977 = vrcp.f32 %v6619_v3  ;;  %v6298_v31 = vrot.slane %v6255_v63, 1  ;;  %v6172_v57 = vpop.f32.mrf.mxu2 }
 0x77f   : > { %v6515_v21 = vmul.f32 1.442695, %v6461_v2  ;;  %v13343_v2 = vld [vmem:[#allocation25_spill] sm:$0xff] }
 0x780   : > { %v8976_v28 = vpop.eup %8975  ;;  %v6746_v55 = vsel %vm6714_vm12, 1.0, %v6682_v53  ;;  %v6313_v4 = vsel %vm13339_vm14, %v6297_v25, %v6298_v31  ;;  %vm13344_vm8 = vnez %v13343_v2  ;;  %vm13354_vm14 = vmmov %vm13309_vm2 }
 0x781   : > { %v6778_v56 = vmul.f32 %v6746_v55, %v12631_v38  ;;  %v6556_v11 = vadd.f32 2.0, %v8976_v28  ;;  %8979 = vpow2.f32 %v6515_v21  ;;  %v6361_v29 = vsel %vm13341_vm5, %v6313_v4, 0.0 }
 0x782   : > { %v6393_v17 = vadd.f32 %v6361_v29, %v5792_v15 }
 0x783   : > { %v6842_v39 = vadd.f32 %v6810_v41, %v6778_v56  ;;  %v6588_v13 = vmul.f32 %v8976_v28, %v6556_v11  ;;  %v6256_v9 = vpop.f32.mrf.mxu3  ;;  %v5801_v18 = vpop.f32.mrf.mxu0  ;;  %v13345_v41 = vld [vmem:[#allocation34_spill] sm:$0xff] }
 0x784   : > { %v8978_v10 = vpop.eup %8977  ;;  %v12699_v33 = vadd.f32 %v12666_v62, %v6393_v17  ;;  %v6257_v27 = vadd.f32 %v6256_v9, %v6168_v36  ;;  %v6086_v28 = vpop.f32.mrf.mxu1  ;;  %v5800_v17 = vadd.f32 %v12696_v16, %v13345_v41 }
 0x785   : > { %6874 = vst [vmem:[%s10482_s21 + $0x98] sm:$0xff] %v6842_v39  ;;  %v6683_v38 = vmul.f32 %v8978_v10, %v6587_v23  ;;  %v6620_v50 = vadd.f32 2.0, %v6588_v13  ;;  %v5797_v23 = vadd.f32 %v12680_v59, %v12235_v40 }
 0x786   : > { %v6462_v19 = vmin.f32 %v12699_v33, 20.0  ;;  %v6299_v58 = vrot.slane %v6257_v27, 1  ;;  %v6175_v63 = vpop.f32.mrf.mxu2  ;;  %vm6718_vm3 = vcmp.gt.f32.partialorder %v12699_v33, 20.0 }
 0x787   : > { %v8980_v14 = vpop.eup %8979  ;;  %v6747_v42 = vsel %vm6715_vm1, 1.0, %v6683_v38  ;;  %8981 = vrcp.f32 %v6620_v50  ;;  %v6813_v50 = vld [vmem:[%s10482_s21 + $0xb0] sm:$0xff]  ;;  %vm13361_vm1 = vmmov %vm13309_vm2 }
 0x788   : > { %v6779_v30 = vmul.f32 %v6747_v42, %v12647_v20  ;;  %v6557_v7 = vadd.f32 2.0, %v8980_v14  ;;  %v6517_v43 = vmul.f32 1.442695, %v6462_v19  ;;  %v6312_v22 = vsel %vm13342_vm13, %v6298_v31, %v6299_v58 }
 0x789   : > { %v6394_v25 = vadd.f32 %v6312_v22, %v5795_v8  ;;  %v6173_v31 = vadd.f32 %v6172_v57, %v6083_v5 }
 0x78a   : > { %v6843_v37 = vadd.f32 %v6811_v48, %v6779_v30  ;;  %v6589_v44 = vmul.f32 %v8980_v14, %v6557_v7  ;;  %8983 = vpow2.f32 %v6517_v43 }
 0x78b   : > { %v12711_v26 = vadd.f32 %v12666_v62, %v6394_v25  ;;  %v6259_v6 = vpop.f32.mrf.mxu3 }
 0x78c   : > { %6875 = vst [vmem:[%s10482_s21 + $0xa0] sm:$0xff] %v6843_v37  ;;  %v6621_v0 = vadd.f32 2.0, %v6589_v44  ;;  %v6260_v47 = vadd.f32 %v6259_v6, %v6171_v24  ;;  %v6088_v43 = vpop.f32.mrf.mxu1  ;;  %v13347_v37 = vld [vmem:[#allocation35_spill] sm:$0xff] }
 0x78d   : > { %v8982_v20 = vpop.eup %8981  ;;  %v6463_v32 = vmin.f32 %v12711_v26, 20.0  ;;  %vm6719_vm11 = vcmp.gt.f32.partialorder %v12711_v26, 20.0 }
 0x78e   : > { %v6684_v35 = vmul.f32 %v8982_v20, %v6588_v13  ;;  %8985 = vrcp.f32 %v6621_v0  ;;  %v6300_v51 = vrot.slane %v6260_v47, 1  ;;  %v5804_v13 = vpop.f32.mrf.mxu0  ;;  %v6177_v57 = vpop.f32.mrf.mxu2 }
 0x78f   : > { %v6519_v34 = vmul.f32 1.442695, %v6463_v32  ;;  %v13349_v32 = vld [vmem:[#allocation24_spill] sm:$0xff] }
 0x790   : > { %v8984_v46 = vpop.eup %8983  ;;  %v6748_v49 = vsel %vm6716_vm6, 1.0, %v6684_v35  ;;  %v6311_v3 = vsel %vm13309_vm2, %v6299_v58, %v6300_v51  ;;  %v6176_v58 = vadd.f32 %v6175_v63, %v6086_v28  ;;  %vm13350_vm0 = vnez %v13349_v32  ;;  %v13351_v28 = vld [vmem:[#allocation36_spill] sm:$0xff] }
 0x791   : > { %v6780_v54 = vmul.f32 %v6748_v49, %v12669_v60  ;;  %v6558_v45 = vadd.f32 2.0, %v8984_v46  ;;  %8987 = vpow2.f32 %v6519_v34  ;;  %v6363_v53 = vsel %vm13344_vm8, %v6311_v3, 0.0 }
 0x792   : > { %v6395_v21 = vadd.f32 %v6363_v53, %v5797_v23  ;;  %v6178_v34 = vadd.f32 %v6177_v57, %v6088_v43  ;;  %v13353_v57 = vld [vmem:[#allocation37_spill] sm:$0xff] }
 0x793   : > { %v6844_v15 = vadd.f32 %v6812_v12, %v6780_v54  ;;  %v6590_v55 = vmul.f32 %v8984_v46, %v6558_v45  ;;  %v6261_v40 = vpop.f32.mrf.mxu3  ;;  %v6814_v46 = vld [vmem:[%s10482_s21 + $0xb8] sm:$0xff] }
 0x794   : > { %v8986_v59 = vpop.eup %8985  ;;  %v12725_v4 = vadd.f32 %v12666_v62, %v6395_v21  ;;  %v6262_v56 = vadd.f32 %v6261_v40, %v6173_v31 }
 0x795   : > { %6876 = vst [vmem:[%s10482_s21 + $0xa8] sm:$0xff] %v6844_v15  ;;  %v6685_v60 = vmul.f32 %v8986_v59, %v6589_v44  ;;  %v6622_v11 = vadd.f32 2.0, %v6590_v55  ;;  %v5802_v44 = vadd.f32 %v5801_v18, %v13347_v37  ;;  %v5805_v15 = vadd.f32 %v5804_v13, %v13351_v28 }
 0x796   : > { %v6464_v61 = vmin.f32 %v12725_v4, 20.0  ;;  %v6301_v29 = vrot.slane %v6262_v56, 1  ;;  %v6180_v2 = vpop.f32.mrf.mxu2  ;;  %vm6720_vm12 = vcmp.gt.f32.partialorder %v12725_v4, 20.0 }
 0x797   : > { %v8988_v36 = vpop.eup %8987  ;;  %v6749_v39 = vsel %vm6717_vm15, 1.0, %v6685_v60  ;;  %8989 = vrcp.f32 %v6622_v11 }
 0x798   : > { %v6781_v9 = vmul.f32 %v6749_v39, %v12683_v52  ;;  %v6559_v10 = vadd.f32 2.0, %v8988_v36  ;;  %v6521_v27 = vmul.f32 1.442695, %v6464_v61  ;;  %v6310_v38 = vsel %vm13346_vm9, %v6300_v51, %v6301_v29  ;;  %v5806_v51 = vpop.f32.mrf.mxu0  ;;  %v6815_v61 = vld [vmem:[%s10482_s21 + $0xc0] sm:$0xff] }
 0x799   : > { %v6396_v19 = vadd.f32 %v6310_v38, %v5800_v17 }
 0x79a   : > { %v6845_v14 = vadd.f32 %v6813_v50, %v6781_v9  ;;  %v6591_v8 = vmul.f32 %v8988_v36, %v6559_v10  ;;  %8991 = vpow2.f32 %v6521_v27 }
 0x79b   : > { %v12737_v16 = vadd.f32 %v12666_v62, %v6396_v19  ;;  %v6264_v42 = vpop.f32.mrf.mxu3 }
 0x79c   : > { %6877 = vst [vmem:[%s10482_s21 + $0xb0] sm:$0xff] %v6845_v14  ;;  %v6623_v30 = vadd.f32 2.0, %v6591_v8  ;;  %v6265_v7 = vadd.f32 %v6264_v42, %v6176_v58  ;;  %v5807_v42 = vadd.f32 %v5806_v51, %v13353_v57 }
 0x79d   : > { %v8990_v52 = vpop.eup %8989  ;;  %v6465_v22 = vmin.f32 %v12737_v16, 20.0  ;;  %vm6721_vm5 = vcmp.gt.f32.partialorder %v12737_v16, 20.0 }
 0x79e   : > { %v6686_v5 = vmul.f32 %v8990_v52, %v6590_v55  ;;  %8993 = vrcp.f32 %v6623_v30  ;;  %v6302_v48 = vrot.slane %v6265_v7, 1  ;;  %v6091_v55 = vpop.f32.mrf.mxu1  ;;  %v6182_v58 = vpop.f32.mrf.mxu2 }
 0x79f   : > { %v6523_v25 = vmul.f32 1.442695, %v6465_v22  ;;  %v6181_v36 = vadd.f32 %v6180_v2, %v6091_v55 }
 0x7a0   : > { %v8992_v24 = vpop.eup %8991  ;;  %v6750_v6 = vsel %vm6718_vm3, 1.0, %v6686_v5  ;;  %v6309_v0 = vsel %vm13348_vm10, %v6301_v29, %v6302_v48  ;;  %v5809_v9 = vpop.f32.mrf.mxu0 }
 0x7a1   : > { %v6782_v47 = vmul.f32 %v6750_v6, %v12699_v33  ;;  %v6560_v20 = vadd.f32 2.0, %v8992_v24  ;;  %8995 = vpow2.f32 %v6523_v25  ;;  %v6365_v35 = vsel %vm13350_vm0, %v6309_v0, 0.0 }
 0x7a2   : > { %v6397_v23 = vadd.f32 %v6365_v35, %v5802_v44 }
 0x7a3   : > { %v6846_v49 = vadd.f32 %v6814_v46, %v6782_v47  ;;  %v6592_v3 = vmul.f32 %v8992_v24, %v6560_v20  ;;  %v6266_v63 = vpop.f32.mrf.mxu3  ;;  %v6816_v24 = vld [vmem:[%s10482_s21 + $0xc8] sm:$0xff] }
 0x7a4   : > { %v8994_v18 = vpop.eup %8993  ;;  %v12750_v54 = vadd.f32 %v12666_v62, %v6397_v23  ;;  %v6267_v45 = vadd.f32 %v6266_v63, %v6178_v34 }
 0x7a5   : > { %6878 = vst [vmem:[%s10482_s21 + $0xb8] sm:$0xff] %v6846_v49  ;;  %v6687_v33 = vmul.f32 %v8994_v18, %v6591_v8  ;;  %v6624_v53 = vadd.f32 2.0, %v6592_v3  ;;  %v13356_v49 = vld [vmem:[#allocation38_spill] sm:$0xff] }
 0x7a6   : > { %v6466_v31 = vmin.f32 %v12750_v54, 20.0  ;;  %v6303_v12 = vrot.slane %v6267_v45, 1  ;;  %v6093_v52 = vpop.f32.mrf.mxu1  ;;  %vm6722_vm6 = vcmp.gt.f32.partialorder %v12750_v54, 20.0 }
 0x7a7   : > { %v8996_v21 = vpop.eup %8995  ;;  %v6751_v40 = vsel %vm6719_vm11, 1.0, %v6687_v33  ;;  %8997 = vrcp.f32 %v6624_v53  ;;  %v6183_v25 = vadd.f32 %v6182_v58, %v6093_v52  ;;  %v13358_v53 = vld [vmem:[#allocation39_spill] sm:$0xff]  ;;  %v6819_v52 = vld [vmem:[%s10482_s21 + $0xe0] sm:$0xff] }
 0x7a8   : > { %v6783_v59 = vmul.f32 %v6751_v40, %v12711_v26  ;;  %v6561_v56 = vadd.f32 2.0, %v8996_v21  ;;  %v6525_v60 = vmul.f32 1.442695, %v6466_v31  ;;  %v6308_v11 = vsel %vm13352_vm4, %v6302_v48, %v6303_v12  ;;  %v5811_v51 = vpop.f32.mrf.mxu0 }
 0x7a9   : > { %v6398_v29 = vadd.f32 %v6308_v11, %v5805_v15  ;;  %v5812_v31 = vadd.f32 %v5811_v51, %v13358_v53 }
 0x7aa   : > { %v6847_v41 = vadd.f32 %v6815_v61, %v6783_v59  ;;  %v6593_v17 = vmul.f32 %v8996_v21, %v6561_v56  ;;  %8999 = vpow2.f32 %v6525_v60  ;;  %v13359_v21 = vld [vmem:[#allocation7_spill] sm:$0xff]  ;;  %v13362_v56 = vld [vmem:[#allocation30_spill] sm:$0xff] }
 0x7ab   : > { %v12761_v39 = vadd.f32 %v12666_v62, %v6398_v29  ;;  %v6269_v13 = vpop.f32.mrf.mxu3  ;;  %v13360_v28 = vrot.slane %v13359_v21, 1  ;;  %vm13363_vm13 = vnez %v13362_v56 }
 0x7ac   : > { %6879 = vst [vmem:[%s10482_s21 + $0xc0] sm:$0xff] %v6847_v41  ;;  %v6625_v10 = vadd.f32 2.0, %v6593_v17  ;;  %v6270_v27 = vadd.f32 %v6269_v13, %v6181_v36 }
 0x7ad   : > { %v8998_v26 = vpop.eup %8997  ;;  %v6467_v38 = vmin.f32 %v12761_v39, 20.0 }
 0x7ae   : > { %v6688_v50 = vmul.f32 %v8998_v26, %v6592_v3  ;;  %9001 = vrcp.f32 %v6625_v10  ;;  %v6304_v19 = vrot.slane %v6270_v27, 1  ;;  %v5810_v3 = vadd.f32 %v5809_v9, %v13356_v49  ;;  %v6821_v49 = vld [vmem:[%s10482_s21 + $0xf0] sm:$0xff] }
 0x7af   : > { %v6527_v14 = vmul.f32 1.442695, %v6467_v38 }
 0x7b0   : > { %v9000_v8 = vpop.eup %8999  ;;  %v6752_v30 = vsel %vm6720_vm12, 1.0, %v6688_v50  ;;  %v6307_v7 = vsel %vm13354_vm14, %v6303_v12, %v6304_v19  ;;  %v6817_v12 = vld [vmem:[%s10482_s21 + $0xd0] sm:$0xff]  ;;  %v6818_v50 = vld [vmem:[%s10482_s21 + $0xd8] sm:$0xff] }
 0x7b1   : > { %v6784_v43 = vmul.f32 %v6752_v30, %v12725_v4  ;;  %v6562_v22 = vadd.f32 2.0, %v9000_v8  ;;  %9003 = vpow2.f32 %v6527_v14  ;;  %v6367_v48 = vsel %vm11167_vm7, %v6307_v7, 0.0  ;;  %vm13357_vm7 = vmmov %vm13309_vm2 }
 0x7b2   : > { %v6399_v37 = vadd.f32 %v6367_v48, %v5807_v42  ;;  %vm6723_vm2 = vcmp.gt.f32.partialorder %v12761_v39, 20.0 }
 0x7b3   : > { %v6848_v44 = vadd.f32 %v6816_v24, %v6784_v43  ;;  %v6594_v6 = vmul.f32 %v9000_v8, %v6562_v22  ;;  %v6271_v0 = vpop.f32.mrf.mxu3 }
 0x7b4   : > { %v9002_v47 = vpop.eup %9001  ;;  %v12774_v20 = vadd.f32 %v12666_v62, %v6399_v37  ;;  %v6272_v32 = vadd.f32 %v6271_v0, %v6183_v25  ;;  %v6820_v0 = vld [vmem:[%s10482_s21 + $0xe8] sm:$0xff] }
 0x7b5   : > { %6880 = vst [vmem:[%s10482_s21 + $0xc8] sm:$0xff] %v6848_v44  ;;  %v6689_v35 = vmul.f32 %v9002_v47, %v6593_v17  ;;  %v6626_v4 = vadd.f32 2.0, %v6594_v6 }
 0x7b6   : > { %v6468_v34 = vmin.f32 %v12774_v20, 20.0  ;;  %v6305_v46 = vrot.slane %v6272_v32, 1  ;;  %vm6724_vm8 = vcmp.gt.f32.partialorder %v12774_v20, 20.0 }
 0x7b7   : > { %v9004_v23 = vpop.eup %9003  ;;  %v6753_v63 = vsel %vm6721_vm5, 1.0, %v6689_v35  ;;  %9005 = vrcp.f32 %v6626_v4 }
 0x7b8   : > { %v6785_v18 = vmul.f32 %v6753_v63, %v12737_v16  ;;  %v6563_v45 = vadd.f32 2.0, %v9004_v23  ;;  %v6529_v2 = vmul.f32 1.442695, %v6468_v34  ;;  %v6306_v33 = vsel %vm13357_vm7, %v6304_v19, %v6305_v46 }
 0x7b9   : > { %v6337_v15 = vsel %vm13361_vm1, %v6305_v46, %v13360_v28  ;;  %v6400_v55 = vadd.f32 %v6306_v33, %v5810_v3 }
 0x7ba   : > { %v6849_v40 = vadd.f32 %v6817_v12, %v6785_v18  ;;  %v6595_v59 = vmul.f32 %v9004_v23, %v6563_v45  ;;  %9007 = vpow2.f32 %v6529_v2  ;;  %v6369_v16 = vsel %vm13363_vm13, %v6337_v15, 0.0  ;;  %v6822_v18 = vld [vmem:[%s10482_s21 + $0xf8] sm:$0xff] }
 0x7bb   : > { %v6401_v60 = vadd.f32 %v6369_v16, %v5812_v31  ;;  %v6437_v11 = vadd.f32 %v12666_v62, %v6400_v55 }
 0x7bc   : > { %6881 = vst [vmem:[%s10482_s21 + $0xd0] sm:$0xff] %v6849_v40  ;;  %v6627_v61 = vadd.f32 2.0, %v6595_v59 }
 0x7bd   : > { %v9006_v29 = vpop.eup %9005  ;;  %v6438_v36 = vadd.f32 %v12666_v62, %v6401_v60  ;;  %v6469_v41 = vmin.f32 %v6437_v11, 20.0  ;;  %vm6725_vm15 = vcmp.gt.f32.partialorder %v6437_v11, 20.0 }
 0x7be   : > { %v6690_v17 = vmul.f32 %v9006_v29, %v6594_v6  ;;  %9009 = vrcp.f32 %v6627_v61 }
 0x7bf   : > { %v6470_v1 = vmin.f32 %v6438_v36, 20.0  ;;  %v6531_v13 = vmul.f32 1.442695, %v6469_v41  ;;  %vm6726_vm9 = vcmp.gt.f32.partialorder %v6438_v36, 20.0 }
 0x7c0   : > { %v9008_v9 = vpop.eup %9007  ;;  %v6754_v10 = vsel %vm6722_vm6, 1.0, %v6690_v17 }
 0x7c1   : > { %v6786_v27 = vmul.f32 %v6754_v10, %v12750_v54  ;;  %v6564_v26 = vadd.f32 2.0, %v9008_v9  ;;  %9011 = vpow2.f32 %v6531_v13  ;;  %v6533_v38 = vmul.f32 1.442695, %v6470_v1 }
 0x7c3   : > { %v6850_v19 = vadd.f32 %v6818_v50, %v6786_v27  ;;  %v6596_v58 = vmul.f32 %v9008_v9, %v6564_v26  ;;  %9013 = vpow2.f32 %v6533_v38 }
 0x7c4   : > { %v9010_v62 = vpop.eup %9009 }
 0x7c5   : > { %6882 = vst [vmem:[%s10482_s21 + $0xd8] sm:$0xff] %v6850_v19  ;;  %v6691_v14 = vmul.f32 %v9010_v62, %v6595_v59  ;;  %v6628_v8 = vadd.f32 2.0, %v6596_v58 }
 0x7c7   : > { %v9012_v57 = vpop.eup %9011  ;;  %v6755_v42 = vsel %vm6723_vm2, 1.0, %v6691_v14  ;;  %9015 = vrcp.f32 %v6628_v8 }
 0x7c8   : > { %v6787_v54 = vmul.f32 %v6755_v42, %v12761_v39  ;;  %v6565_v30 = vadd.f32 2.0, %v9012_v57 }
 0x7c9   : > { %v9014_v7 = vpop.eup %9013 }
 0x7ca   : > { %v6851_v43 = vadd.f32 %v6819_v52, %v6787_v54  ;;  %v6566_v22 = vadd.f32 2.0, %v9014_v7  ;;  %v6597_v5 = vmul.f32 %v9012_v57, %v6565_v30 }
 0x7cc   : > { %6883 = vst [vmem:[%s10482_s21 + $0xe0] sm:$0xff] %v6851_v43  ;;  %v6598_v48 = vmul.f32 %v9014_v7, %v6566_v22  ;;  %v6629_v25 = vadd.f32 2.0, %v6597_v5 }
 0x7cd   : > { %v9016_v24 = vpop.eup %9015 }
 0x7ce   : > { %v6692_v37 = vmul.f32 %v9016_v24, %v6596_v58  ;;  %v6630_v44 = vadd.f32 2.0, %v6598_v48  ;;  %9017 = vrcp.f32 %v6629_v25 }
 0x7d0   : > { %v6756_v6 = vsel %vm6724_vm8, 1.0, %v6692_v37  ;;  %9019 = vrcp.f32 %v6630_v44 }
 0x7d1   : > { %v6788_v39 = vmul.f32 %v6756_v6, %v12774_v20 }
 0x7d3   : > { %v6852_v47 = vadd.f32 %v6820_v0, %v6788_v39 }
 0x7d4   : > { %v9018_v32 = vpop.eup %9017 }
 0x7d5   : > { %6884 = vst [vmem:[%s10482_s21 + $0xe8] sm:$0xff] %v6852_v47  ;;  %v6693_v35 = vmul.f32 %v9018_v32, %v6597_v5 }
 0x7d6   : > { %v9020_v4 = vpop.eup %9019 }
 0x7d7   : > { %v6694_v51 = vmul.f32 %v9020_v4, %v6598_v48  ;;  %v6757_v34 = vsel %vm6725_vm15, 1.0, %v6693_v35 }
 0x7d8   : > { %v6789_v46 = vmul.f32 %v6757_v34, %v6437_v11 }
 0x7d9   : > { %v6758_v23 = vsel %vm6726_vm9, 1.0, %v6694_v51 }
 0x7da   : > { %v6790_v3 = vmul.f32 %v6758_v23, %v6438_v36  ;;  %v6853_v63 = vadd.f32 %v6821_v49, %v6789_v46 }
 0x7dc   : > { %v6854_v20 = vadd.f32 %v6822_v18, %v6790_v3  ;;  %6885 = vst [vmem:[%s10482_s21 + $0xf0] sm:$0xff] %v6853_v63 }
 0x7de   : > { %6886 = vst [vmem:[%s10482_s21 + $0xf8] sm:$0xff] %v6854_v20 }
 0x7df PF: > { %s15_s18 = sadd.s32 1, %s9032_s18  }
 0x7e0   : > { %p12_p4 = scmp.ge.s32.totalorder %s15_s18, 4  }
 0x7e2   :  { %14 = sbr.rel (!%p12_p4) target bundleno = 1 (0x1), region = 81 }

</bundles_post_ra>
